<compile_context>
chip_gen: v7x
topology: tpu7x:2x2x1
jax: 0.10.0
libtpu: 0.0.40
codegen_flags: <defaults>
</compile_context>

<pallas_src>
import functools

import jax
import jax.numpy as jnp
import numpy as np
from jax.experimental import pallas as pl
from jax.experimental.pallas import tpu as pltpu


LANE = 128
_VMEM = pl.BlockSpec(memory_space=pltpu.MemorySpace.VMEM)


def _silu(x):
    # exp lands on the EUP slot; keep elementwise math in f32.
    return x * (1.0 / (1.0 + jnp.exp(-x)))


# ----------------------------------------------------------------------------
# fused Pallas kernel: embed -> n_layers x E_GCL -> decoders
# ----------------------------------------------------------------------------
def _fused_egnn_kernel(n_layers, n_edges, *refs):
    it = iter(refs)
    h_ref, x_ref, g_ref, ea_ref, invdeg_ref, pool_ref = (next(it) for _ in range(6))
    w_emb = next(it)[...]
    b_emb = next(it)[...]
    layer_w = [tuple(next(it)[...] for _ in range(9)) for _ in range(n_layers)]
    wc1 = next(it)[...]
    bc1 = next(it)[...]
    wc2 = next(it)[...]
    (wx1, bx1, wx2, bx2,
     wd1, bd1, wd2, bd2,
     wg1, bg1, wg2, bg2) = (next(it)[...] for _ in range(12))
    pred_ref, xp_ref, coord_ref = next(it), next(it), next(it)

    f32 = jnp.float32
    E = n_edges

    hv = h_ref[...]                          # [N, F]
    cv = x_ref[...]                          # [N, 128]  (lanes 3.. are zero)
    Gf = g_ref[...].astype(f32)              # [2E, N]   stacked one-hot (row; col)
    ea = ea_ref[...]                         # [E, C]
    inv_deg = invdeg_ref[...]                # [N, 1]

    gr = Gf[:E]                              # [E, N] row one-hot (scatter pattern)
    grT = gr.T                               # [N, E] single transpose, reused

    # node embedding
    h = jnp.dot(hv, w_emb, preferred_element_type=f32) + b_emb          # [N, H]

    # geometry is layer-invariant (coords only change in the final layer and
    # that layer's radial uses the pre-update coords) -> compute once.
    c_all = jnp.dot(Gf, cv, preferred_element_type=f32)                 # [2E, 128]
    coord_diff = c_all[:E] - c_all[E:]                                  # [E, 128]
    radial = jnp.sum(coord_diff * coord_diff, axis=-1, keepdims=True)   # [E, 1]

    for li in range(n_layers):
        we1_cat, we1r, be1, we2, be2, wn1, bn1, wn2, bn2 = layer_w[li]

        # gather h[row], h[col] in one MXU push
        h_all = jnp.dot(Gf, h, preferred_element_type=f32)              # [2E, H]

        # edge model: fused first Linear (K = 2H + C) + rank-1 radial term
        e_in = jnp.concatenate([h_all[:E], h_all[E:], ea], axis=-1)     # [E, 2H+C]
        m = (jnp.dot(e_in, we1_cat, preferred_element_type=f32)
             + radial * we1r + be1)
        m = _silu(m)
        edge_feat = _silu(jnp.dot(m, we2, preferred_element_type=f32) + be2)

        # coord model only in the last layer (mean-scatter of coord_diff*phi_x)
        if li == n_layers - 1:
            cm = _silu(jnp.dot(edge_feat, wc1, preferred_element_type=f32) + bc1)
            phi = jnp.dot(cm, wc2, preferred_element_type=f32)          # [E, 1]
            trans = coord_diff * phi                                    # [E, 128]
            t_sum = jnp.dot(grT, trans, preferred_element_type=f32)     # [N, 128]
            coord_ref[...] = cv + inv_deg * t_sum

        # node model: scatter-sum of edge features, fused first Linear (K = 2H)
        agg = jnp.dot(grT, edge_feat, preferred_element_type=f32)       # [N, H]
        n_in = jnp.concatenate([h, agg], axis=-1)                       # [N, 2H]
        nh = _silu(jnp.dot(n_in, wn1, preferred_element_type=f32) + bn1)
        h = h + jnp.dot(nh, wn2, preferred_element_type=f32) + bn2      # residual

    # noise_pred head (lane-padded to 128 output columns)
    xp = _silu(jnp.dot(h, wx1, preferred_element_type=f32) + bx1)
    xp_ref[...] = jnp.dot(xp, wx2, preferred_element_type=f32) + bx2

    # node_dec -> per-graph sum -> graph_dec (lane-padded output)
    hd = _silu(jnp.dot(h, wd1, preferred_element_type=f32) + bd1)
    hd = jnp.dot(hd, wd2, preferred_element_type=f32) + bd2
    pooled = jnp.dot(pool_ref[...], hd, preferred_element_type=f32)     # [B, H]
    g = _silu(jnp.dot(pooled, wg1, preferred_element_type=f32) + bg1)
    pred_ref[...] = jnp.dot(g, wg2, preferred_element_type=f32) + bg2


# ----------------------------------------------------------------------------
# wrapper: builds kernel-layout operands and calls the fused kernel once
# ----------------------------------------------------------------------------
def egnn_finetune_last_forward(params, h_in, x_in, row, col, edge_attr, n_nodes):
    """Pallas forward; returns (pred [B], xp [N,3], x_updated [N,3])."""
    N, _ = h_in.shape
    B = N // n_nodes
    E = row.shape[0]
    H = params["w_emb"].shape[1]
    n_layers = len(params["layers"])

    # pad edge count to a sublane multiple (padded rows are all-zero in the
    # incidence matrix so they contribute nothing to any gather/scatter).
    Ep = ((E + 7) // 8) * 8
    pad_e = Ep - E

    gr = (row[:, None] == jnp.arange(N)[None, :]).astype(jnp.float32)   # [E, N]
    gc = (col[:, None] == jnp.arange(N)[None, :]).astype(jnp.float32)   # [E, N]
    gr = jnp.pad(gr, ((0, pad_e), (0, 0)))
    gc = jnp.pad(gc, ((0, pad_e), (0, 0)))
    G = jnp.concatenate([gr, gc], axis=0).astype(jnp.bfloat16)          # [2Ep, N]
    ea = jnp.pad(edge_attr, ((0, pad_e), (0, 0)))                       # [Ep, C]

    # per-node out-degree (scatter target counts) and its reciprocal
    deg = jnp.zeros((N,), jnp.float32).at[row].add(1.0)
    inv_deg = (1.0 / jnp.maximum(deg, 1.0))[:, None]                    # [N, 1]

    # per-graph pooling matrix [B, N]
    graph_id = jnp.repeat(jnp.arange(B), n_nodes)
    pool = (graph_id[None, :] == jnp.arange(B)[:, None]).astype(jnp.float32)

    # lane-pad coords and the narrow decoder heads to 128 lanes (dense stores)
    x_pad = jnp.pad(x_in, ((0, 0), (0, LANE - x_in.shape[1])))          # [N, 128]
    d = params["dec"]
    wx2_p = jnp.pad(d["wx2"], ((0, 0), (0, LANE - d["wx2"].shape[1])))
    bx2_p = jnp.pad(d["bx2"], ((0, 0), (0, LANE - d["bx2"].shape[1])))
    wg2_p = jnp.pad(d["wg2"], ((0, 0), (0, LANE - d["wg2"].shape[1])))
    bg2_p = jnp.pad(d["bg2"], ((0, 0), (0, LANE - d["bg2"].shape[1])))

    args = [h_in, x_pad, G, ea, inv_deg, pool, params["w_emb"], params["b_emb"]]
    for lp in params["layers"]:
        we1 = lp["we1"]                       # [2H+1+C, H], PyTorch row order
        we1_cat = jnp.concatenate([we1[:2 * H], we1[2 * H + 1:]], axis=0)
        we1r = we1[2 * H:2 * H + 1]           # [1, H] (radial column)
        args += [we1_cat, we1r, lp["be1"], lp["we2"], lp["be2"],
                 lp["wn1"], lp["bn1"], lp["wn2"], lp["bn2"]]
    last = params["layers"][-1]
    args += [last["wc1"], last["bc1"], last["wc2"]]           # only last layer
    args += [d["wx1"], d["bx1"], wx2_p, bx2_p,
             d["wd1"], d["bd1"], d["wd2"], d["bd2"],
             d["wg1"], d["bg1"], wg2_p, bg2_p]

    kernel = functools.partial(_fused_egnn_kernel, n_layers, Ep)

    pred_p, xp_p, x_new_p = pl.pallas_call(
        kernel,
        out_shape=(
            jax.ShapeDtypeStruct((B, LANE), jnp.float32),
            jax.ShapeDtypeStruct((N, LANE), jnp.float32),
            jax.ShapeDtypeStruct((N, LANE), jnp.float32),
        ),
        in_specs=[_VMEM] * len(args),
        out_specs=(_VMEM, _VMEM, _VMEM),
        compiler_params=pltpu.CompilerParams(vmem_limit_bytes=32 * 1024 * 1024),
    )(*args)

    return pred_p[:, 0], xp_p[:, :3], x_new_p[:, :3]


# ----------------------------------------------------------------------------
# deterministic parameter init (synthetic; mimics nn.Linear fan-in init)
# ----------------------------------------------------------------------------
def _linear(key, fan_in, fan_out, bias=True, bound=None):
    kw, kb = jax.random.split(key)
    bnd = (1.0 / np.sqrt(fan_in)) if bound is None else bound
    w = jax.random.uniform(kw, (fan_in, fan_out), jnp.float32, -bnd, bnd)
    if not bias:
        return w
    b = jax.random.uniform(kb, (1, fan_out), jnp.float32, -bnd, bnd)
    return w, b


def init_params(key, in_node_nf, hidden_nf, in_edge_nf, n_layers):
    keys = jax.random.split(key, 2 + n_layers)
    w_emb, b_emb = _linear(keys[0], in_node_nf, hidden_nf)
    H = hidden_nf

    layers = []
    for i in range(n_layers):
        lk = jax.random.split(keys[1 + i], 6)
        edge_in = 2 * H + 1 + in_edge_nf
        we1, be1 = _linear(lk[0], edge_in, H)
        we2, be2 = _linear(lk[1], H, H)
        wn1, bn1 = _linear(lk[2], 2 * H, H)
        wn2, bn2 = _linear(lk[3], H, H)
        wc1, bc1 = _linear(lk[4], H, H)
        # xavier_uniform_(gain=0.001) for the coord output layer (no bias)
        xav = 0.001 * np.sqrt(6.0 / (H + 1))
        wc2 = _linear(lk[5], H, 1, bias=False, bound=xav)
        layers.append(dict(we1=we1, be1=be1, we2=we2, be2=be2,
                           wn1=wn1, bn1=bn1, wn2=wn2, bn2=bn2,
                           wc1=wc1, bc1=bc1, wc2=wc2))

    dk = jax.random.split(keys[1 + n_layers], 6)
    wd1, bd1 = _linear(dk[0], H, H)
    wd2, bd2 = _linear(dk[1], H, H)
    wg1, bg1 = _linear(dk[2], H, H)
    wg2, bg2 = _linear(dk[3], H, 1)
    wx1, bx1 = _linear(dk[4], H, H)
    wx2, bx2 = _linear(dk[5], H, 3)
    dec = dict(wd1=wd1, bd1=bd1, wd2=wd2, bd2=bd2,
               wg1=wg1, bg1=bg1, wg2=wg2, bg2=bg2,
               wx1=wx1, bx1=bx1, wx2=wx2, bx2=bx2)
    return dict(w_emb=w_emb, b_emb=b_emb, layers=layers, dec=dec)


# ----------------------------------------------------------------------------
# pure-JAX reference (mirrors the PyTorch semantics) for a correctness check
# ----------------------------------------------------------------------------
def _ref_silu(x):
    return x * jax.nn.sigmoid(x)


def ref_forward(params, h_in, x_in, row, col, edge_attr, n_nodes):
    N = h_in.shape[0]
    B = N // n_nodes
    h = h_in @ params["w_emb"] + params["b_emb"]
    x = x_in
    n_layers = len(params["layers"])
    for i, lp in enumerate(params["layers"]):
        update_coords = i == n_layers - 1
        cdiff = x[row] - x[col]
        radial = jnp.sum(cdiff ** 2, axis=1, keepdims=True)
        h0 = h
        m = jnp.concatenate([h[row], h[col], radial, edge_attr], axis=1) @ lp["we1"] + lp["be1"]
        m = _ref_silu(m)
        m = _ref_silu(m @ lp["we2"] + lp["be2"])
        if update_coords:
            cm = _ref_silu(m @ lp["wc1"] + lp["bc1"])
            trans = cdiff * (cm @ lp["wc2"])
            tsum = jax.ops.segment_sum(trans, row, num_segments=N)
            cnt = jax.ops.segment_sum(jnp.ones_like(trans), row, num_segments=N)
            x = x + tsum / jnp.maximum(cnt, 1.0)
        agg = jax.ops.segment_sum(m, row, num_segments=N)
        nh = _ref_silu(jnp.concatenate([h, agg], axis=1) @ lp["wn1"] + lp["bn1"])
        nh = nh @ lp["wn2"] + lp["bn2"]
        h = h0 + nh
    d = params["dec"]
    xp = _ref_silu(h @ d["wx1"] + d["bx1"]) @ d["wx2"] + d["bx2"]
    hd = _ref_silu(h @ d["wd1"] + d["bd1"]) @ d["wd2"] + d["bd2"]
    hd = hd.reshape(B, n_nodes, -1).sum(axis=1)
    pred = _ref_silu(hd @ d["wg1"] + d["bg1"]) @ d["wg2"] + d["bg2"]
    return pred[:, 0], xp, x


# ----------------------------------------------------------------------------
# main
# ----------------------------------------------------------------------------
if __name__ == "__main__":
    B = 2            # graphs in the batch
    n_nodes = 8      # nodes per graph
    N = B * n_nodes
    in_node_nf = 11
    hidden_nf = 32
    in_edge_nf = 4
    n_layers = 4

    key = jax.random.PRNGKey(0)
    k_h, k_x, k_ea, k_p = jax.random.split(key, 4)

    # fully-connected edges within each graph (no self loops)
    rows, cols = [], []
    for b in range(B):
        for i in range(n_nodes):
            for j in range(n_nodes):
                if i != j:
                    rows.append(b * n_nodes + i)
                    cols.append(b * n_nodes + j)
    row = jnp.asarray(rows, dtype=jnp.int32)
    col = jnp.asarray(cols, dtype=jnp.int32)
    E = row.shape[0]

    h = jax.random.normal(k_h, (N, in_node_nf), jnp.float32)
    x = jax.random.normal(k_x, (N, 3), jnp.float32)
    edge_attr = jax.random.normal(k_ea, (E, in_edge_nf), jnp.float32)

    params = init_params(k_p, in_node_nf, hidden_nf, in_edge_nf, n_layers)

    pred, xp, x_new = egnn_finetune_last_forward(
        params, h, x, row, col, edge_attr, n_nodes
    )
    jax.block_until_ready((pred, xp, x_new))

    # correctness check against the pure-JAX reference of the PyTorch module
    pred_r, xp_r, x_r = ref_forward(params, h, x, row, col, edge_attr, n_nodes)
    np.testing.assert_allclose(np.asarray(pred), np.asarray(pred_r),
                               rtol=1e-2, atol=1e-2)
    np.testing.assert_allclose(np.asarray(xp), np.asarray(xp_r),
                               rtol=1e-2, atol=1e-2)
    np.testing.assert_allclose(np.asarray(x_new), np.asarray(x_r),
                               rtol=1e-2, atol=1e-2)

    print("KERNEL_OK")
</pallas_src>

<mosaic_0001>
module attributes {stable_mosaic.version = 11 : i64} {
  func.func @_fused_egnn_kernel(%arg0: memref<16x11xf32, #tpu.memory_space<vmem>>, %arg1: memref<16x128xf32, #tpu.memory_space<vmem>>, %arg2: memref<224x16xbf16, #tpu.memory_space<vmem>>, %arg3: memref<112x4xf32, #tpu.memory_space<vmem>>, %arg4: memref<16x1xf32, #tpu.memory_space<vmem>>, %arg5: memref<2x16xf32, #tpu.memory_space<vmem>>, %arg6: memref<11x32xf32, #tpu.memory_space<vmem>>, %arg7: memref<1x32xf32, #tpu.memory_space<vmem>>, %arg8: memref<68x32xf32, #tpu.memory_space<vmem>>, %arg9: memref<1x32xf32, #tpu.memory_space<vmem>>, %arg10: memref<1x32xf32, #tpu.memory_space<vmem>>, %arg11: memref<32x32xf32, #tpu.memory_space<vmem>>, %arg12: memref<1x32xf32, #tpu.memory_space<vmem>>, %arg13: memref<64x32xf32, #tpu.memory_space<vmem>>, %arg14: memref<1x32xf32, #tpu.memory_space<vmem>>, %arg15: memref<32x32xf32, #tpu.memory_space<vmem>>, %arg16: memref<1x32xf32, #tpu.memory_space<vmem>>, %arg17: memref<68x32xf32, #tpu.memory_space<vmem>>, %arg18: memref<1x32xf32, #tpu.memory_space<vmem>>, %arg19: memref<1x32xf32, #tpu.memory_space<vmem>>, %arg20: memref<32x32xf32, #tpu.memory_space<vmem>>, %arg21: memref<1x32xf32, #tpu.memory_space<vmem>>, %arg22: memref<64x32xf32, #tpu.memory_space<vmem>>, %arg23: memref<1x32xf32, #tpu.memory_space<vmem>>, %arg24: memref<32x32xf32, #tpu.memory_space<vmem>>, %arg25: memref<1x32xf32, #tpu.memory_space<vmem>>, %arg26: memref<68x32xf32, #tpu.memory_space<vmem>>, %arg27: memref<1x32xf32, #tpu.memory_space<vmem>>, %arg28: memref<1x32xf32, #tpu.memory_space<vmem>>, %arg29: memref<32x32xf32, #tpu.memory_space<vmem>>, %arg30: memref<1x32xf32, #tpu.memory_space<vmem>>, %arg31: memref<64x32xf32, #tpu.memory_space<vmem>>, %arg32: memref<1x32xf32, #tpu.memory_space<vmem>>, %arg33: memref<32x32xf32, #tpu.memory_space<vmem>>, %arg34: memref<1x32xf32, #tpu.memory_space<vmem>>, %arg35: memref<68x32xf32, #tpu.memory_space<vmem>>, %arg36: memref<1x32xf32, #tpu.memory_space<vmem>>, %arg37: memref<1x32xf32, #tpu.memory_space<vmem>>, %arg38: memref<32x32xf32, #tpu.memory_space<vmem>>, %arg39: memref<1x32xf32, #tpu.memory_space<vmem>>, %arg40: memref<64x32xf32, #tpu.memory_space<vmem>>, %arg41: memref<1x32xf32, #tpu.memory_space<vmem>>, %arg42: memref<32x32xf32, #tpu.memory_space<vmem>>, %arg43: memref<1x32xf32, #tpu.memory_space<vmem>>, %arg44: memref<32x32xf32, #tpu.memory_space<vmem>>, %arg45: memref<1x32xf32, #tpu.memory_space<vmem>>, %arg46: memref<32x1xf32, #tpu.memory_space<vmem>>, %arg47: memref<32x32xf32, #tpu.memory_space<vmem>>, %arg48: memref<1x32xf32, #tpu.memory_space<vmem>>, %arg49: memref<32x128xf32, #tpu.memory_space<vmem>>, %arg50: memref<1x128xf32, #tpu.memory_space<vmem>>, %arg51: memref<32x32xf32, #tpu.memory_space<vmem>>, %arg52: memref<1x32xf32, #tpu.memory_space<vmem>>, %arg53: memref<32x32xf32, #tpu.memory_space<vmem>>, %arg54: memref<1x32xf32, #tpu.memory_space<vmem>>, %arg55: memref<32x32xf32, #tpu.memory_space<vmem>>, %arg56: memref<1x32xf32, #tpu.memory_space<vmem>>, %arg57: memref<32x128xf32, #tpu.memory_space<vmem>>, %arg58: memref<1x128xf32, #tpu.memory_space<vmem>>, %arg59: memref<2x128xf32, #tpu.memory_space<vmem>>, %arg60: memref<16x128xf32, #tpu.memory_space<vmem>>, %arg61: memref<16x128xf32, #tpu.memory_space<vmem>>) attributes {dimension_semantics = [], scalar_prefetch = 0 : i64, scratch_operands = 0 : i64, tpu.core_type = #tpu.core_type<tc>} {
    %c0 = arith.constant 0 : index
    %c0_0 = arith.constant 0 : index
    %0 = vector.load %arg6[%c0, %c0_0] : memref<11x32xf32, #tpu.memory_space<vmem>>, vector<11x32xf32>
    %c0_1 = arith.constant 0 : index
    %c0_2 = arith.constant 0 : index
    %1 = vector.load %arg7[%c0_1, %c0_2] : memref<1x32xf32, #tpu.memory_space<vmem>>, vector<1x32xf32>
    %c0_3 = arith.constant 0 : index
    %c0_4 = arith.constant 0 : index
    %2 = vector.load %arg8[%c0_3, %c0_4] : memref<68x32xf32, #tpu.memory_space<vmem>>, vector<68x32xf32>
    %c0_5 = arith.constant 0 : index
    %c0_6 = arith.constant 0 : index
    %3 = vector.load %arg9[%c0_5, %c0_6] : memref<1x32xf32, #tpu.memory_space<vmem>>, vector<1x32xf32>
    %c0_7 = arith.constant 0 : index
    %c0_8 = arith.constant 0 : index
    %4 = vector.load %arg10[%c0_7, %c0_8] : memref<1x32xf32, #tpu.memory_space<vmem>>, vector<1x32xf32>
    %c0_9 = arith.constant 0 : index
    %c0_10 = arith.constant 0 : index
    %5 = vector.load %arg11[%c0_9, %c0_10] : memref<32x32xf32, #tpu.memory_space<vmem>>, vector<32x32xf32>
    %c0_11 = arith.constant 0 : index
    %c0_12 = arith.constant 0 : index
    %6 = vector.load %arg12[%c0_11, %c0_12] : memref<1x32xf32, #tpu.memory_space<vmem>>, vector<1x32xf32>
    %c0_13 = arith.constant 0 : index
    %c0_14 = arith.constant 0 : index
    %7 = vector.load %arg13[%c0_13, %c0_14] : memref<64x32xf32, #tpu.memory_space<vmem>>, vector<64x32xf32>
    %c0_15 = arith.constant 0 : index
    %c0_16 = arith.constant 0 : index
    %8 = vector.load %arg14[%c0_15, %c0_16] : memref<1x32xf32, #tpu.memory_space<vmem>>, vector<1x32xf32>
    %c0_17 = arith.constant 0 : index
    %c0_18 = arith.constant 0 : index
    %9 = vector.load %arg15[%c0_17, %c0_18] : memref<32x32xf32, #tpu.memory_space<vmem>>, vector<32x32xf32>
    %c0_19 = arith.constant 0 : index
    %c0_20 = arith.constant 0 : index
    %10 = vector.load %arg16[%c0_19, %c0_20] : memref<1x32xf32, #tpu.memory_space<vmem>>, vector<1x32xf32>
    %c0_21 = arith.constant 0 : index
    %c0_22 = arith.constant 0 : index
    %11 = vector.load %arg17[%c0_21, %c0_22] : memref<68x32xf32, #tpu.memory_space<vmem>>, vector<68x32xf32>
    %c0_23 = arith.constant 0 : index
    %c0_24 = arith.constant 0 : index
    %12 = vector.load %arg18[%c0_23, %c0_24] : memref<1x32xf32, #tpu.memory_space<vmem>>, vector<1x32xf32>
    %c0_25 = arith.constant 0 : index
    %c0_26 = arith.constant 0 : index
    %13 = vector.load %arg19[%c0_25, %c0_26] : memref<1x32xf32, #tpu.memory_space<vmem>>, vector<1x32xf32>
    %c0_27 = arith.constant 0 : index
    %c0_28 = arith.constant 0 : index
    %14 = vector.load %arg20[%c0_27, %c0_28] : memref<32x32xf32, #tpu.memory_space<vmem>>, vector<32x32xf32>
    %c0_29 = arith.constant 0 : index
    %c0_30 = arith.constant 0 : index
    %15 = vector.load %arg21[%c0_29, %c0_30] : memref<1x32xf32, #tpu.memory_space<vmem>>, vector<1x32xf32>
    %c0_31 = arith.constant 0 : index
    %c0_32 = arith.constant 0 : index
    %16 = vector.load %arg22[%c0_31, %c0_32] : memref<64x32xf32, #tpu.memory_space<vmem>>, vector<64x32xf32>
    %c0_33 = arith.constant 0 : index
    %c0_34 = arith.constant 0 : index
    %17 = vector.load %arg23[%c0_33, %c0_34] : memref<1x32xf32, #tpu.memory_space<vmem>>, vector<1x32xf32>
    %c0_35 = arith.constant 0 : index
    %c0_36 = arith.constant 0 : index
    %18 = vector.load %arg24[%c0_35, %c0_36] : memref<32x32xf32, #tpu.memory_space<vmem>>, vector<32x32xf32>
    %c0_37 = arith.constant 0 : index
    %c0_38 = arith.constant 0 : index
    %19 = vector.load %arg25[%c0_37, %c0_38] : memref<1x32xf32, #tpu.memory_space<vmem>>, vector<1x32xf32>
    %c0_39 = arith.constant 0 : index
    %c0_40 = arith.constant 0 : index
    %20 = vector.load %arg26[%c0_39, %c0_40] : memref<68x32xf32, #tpu.memory_space<vmem>>, vector<68x32xf32>
    %c0_41 = arith.constant 0 : index
    %c0_42 = arith.constant 0 : index
    %21 = vector.load %arg27[%c0_41, %c0_42] : memref<1x32xf32, #tpu.memory_space<vmem>>, vector<1x32xf32>
    %c0_43 = arith.constant 0 : index
    %c0_44 = arith.constant 0 : index
    %22 = vector.load %arg28[%c0_43, %c0_44] : memref<1x32xf32, #tpu.memory_space<vmem>>, vector<1x32xf32>
    %c0_45 = arith.constant 0 : index
    %c0_46 = arith.constant 0 : index
    %23 = vector.load %arg29[%c0_45, %c0_46] : memref<32x32xf32, #tpu.memory_space<vmem>>, vector<32x32xf32>
    %c0_47 = arith.constant 0 : index
    %c0_48 = arith.constant 0 : index
    %24 = vector.load %arg30[%c0_47, %c0_48] : memref<1x32xf32, #tpu.memory_space<vmem>>, vector<1x32xf32>
    %c0_49 = arith.constant 0 : index
    %c0_50 = arith.constant 0 : index
    %25 = vector.load %arg31[%c0_49, %c0_50] : memref<64x32xf32, #tpu.memory_space<vmem>>, vector<64x32xf32>
    %c0_51 = arith.constant 0 : index
    %c0_52 = arith.constant 0 : index
    %26 = vector.load %arg32[%c0_51, %c0_52] : memref<1x32xf32, #tpu.memory_space<vmem>>, vector<1x32xf32>
    %c0_53 = arith.constant 0 : index
    %c0_54 = arith.constant 0 : index
    %27 = vector.load %arg33[%c0_53, %c0_54] : memref<32x32xf32, #tpu.memory_space<vmem>>, vector<32x32xf32>
    %c0_55 = arith.constant 0 : index
    %c0_56 = arith.constant 0 : index
    %28 = vector.load %arg34[%c0_55, %c0_56] : memref<1x32xf32, #tpu.memory_space<vmem>>, vector<1x32xf32>
    %c0_57 = arith.constant 0 : index
    %c0_58 = arith.constant 0 : index
    %29 = vector.load %arg35[%c0_57, %c0_58] : memref<68x32xf32, #tpu.memory_space<vmem>>, vector<68x32xf32>
    %c0_59 = arith.constant 0 : index
    %c0_60 = arith.constant 0 : index
    %30 = vector.load %arg36[%c0_59, %c0_60] : memref<1x32xf32, #tpu.memory_space<vmem>>, vector<1x32xf32>
    %c0_61 = arith.constant 0 : index
    %c0_62 = arith.constant 0 : index
    %31 = vector.load %arg37[%c0_61, %c0_62] : memref<1x32xf32, #tpu.memory_space<vmem>>, vector<1x32xf32>
    %c0_63 = arith.constant 0 : index
    %c0_64 = arith.constant 0 : index
    %32 = vector.load %arg38[%c0_63, %c0_64] : memref<32x32xf32, #tpu.memory_space<vmem>>, vector<32x32xf32>
    %c0_65 = arith.constant 0 : index
    %c0_66 = arith.constant 0 : index
    %33 = vector.load %arg39[%c0_65, %c0_66] : memref<1x32xf32, #tpu.memory_space<vmem>>, vector<1x32xf32>
    %c0_67 = arith.constant 0 : index
    %c0_68 = arith.constant 0 : index
    %34 = vector.load %arg40[%c0_67, %c0_68] : memref<64x32xf32, #tpu.memory_space<vmem>>, vector<64x32xf32>
    %c0_69 = arith.constant 0 : index
    %c0_70 = arith.constant 0 : index
    %35 = vector.load %arg41[%c0_69, %c0_70] : memref<1x32xf32, #tpu.memory_space<vmem>>, vector<1x32xf32>
    %c0_71 = arith.constant 0 : index
    %c0_72 = arith.constant 0 : index
    %36 = vector.load %arg42[%c0_71, %c0_72] : memref<32x32xf32, #tpu.memory_space<vmem>>, vector<32x32xf32>
    %c0_73 = arith.constant 0 : index
    %c0_74 = arith.constant 0 : index
    %37 = vector.load %arg43[%c0_73, %c0_74] : memref<1x32xf32, #tpu.memory_space<vmem>>, vector<1x32xf32>
    %c0_75 = arith.constant 0 : index
    %c0_76 = arith.constant 0 : index
    %38 = vector.load %arg44[%c0_75, %c0_76] : memref<32x32xf32, #tpu.memory_space<vmem>>, vector<32x32xf32>
    %c0_77 = arith.constant 0 : index
    %c0_78 = arith.constant 0 : index
    %39 = vector.load %arg45[%c0_77, %c0_78] : memref<1x32xf32, #tpu.memory_space<vmem>>, vector<1x32xf32>
    %c0_79 = arith.constant 0 : index
    %c0_80 = arith.constant 0 : index
    %40 = vector.load %arg46[%c0_79, %c0_80] : memref<32x1xf32, #tpu.memory_space<vmem>>, vector<32x1xf32>
    %c0_81 = arith.constant 0 : index
    %c0_82 = arith.constant 0 : index
    %41 = vector.load %arg47[%c0_81, %c0_82] : memref<32x32xf32, #tpu.memory_space<vmem>>, vector<32x32xf32>
    %c0_83 = arith.constant 0 : index
    %c0_84 = arith.constant 0 : index
    %42 = vector.load %arg48[%c0_83, %c0_84] : memref<1x32xf32, #tpu.memory_space<vmem>>, vector<1x32xf32>
    %c0_85 = arith.constant 0 : index
    %c0_86 = arith.constant 0 : index
    %43 = vector.load %arg49[%c0_85, %c0_86] : memref<32x128xf32, #tpu.memory_space<vmem>>, vector<32x128xf32>
    %c0_87 = arith.constant 0 : index
    %c0_88 = arith.constant 0 : index
    %44 = vector.load %arg50[%c0_87, %c0_88] : memref<1x128xf32, #tpu.memory_space<vmem>>, vector<1x128xf32>
    %c0_89 = arith.constant 0 : index
    %c0_90 = arith.constant 0 : index
    %45 = vector.load %arg51[%c0_89, %c0_90] : memref<32x32xf32, #tpu.memory_space<vmem>>, vector<32x32xf32>
    %c0_91 = arith.constant 0 : index
    %c0_92 = arith.constant 0 : index
    %46 = vector.load %arg52[%c0_91, %c0_92] : memref<1x32xf32, #tpu.memory_space<vmem>>, vector<1x32xf32>
    %c0_93 = arith.constant 0 : index
    %c0_94 = arith.constant 0 : index
    %47 = vector.load %arg53[%c0_93, %c0_94] : memref<32x32xf32, #tpu.memory_space<vmem>>, vector<32x32xf32>
    %c0_95 = arith.constant 0 : index
    %c0_96 = arith.constant 0 : index
    %48 = vector.load %arg54[%c0_95, %c0_96] : memref<1x32xf32, #tpu.memory_space<vmem>>, vector<1x32xf32>
    %c0_97 = arith.constant 0 : index
    %c0_98 = arith.constant 0 : index
    %49 = vector.load %arg55[%c0_97, %c0_98] : memref<32x32xf32, #tpu.memory_space<vmem>>, vector<32x32xf32>
    %c0_99 = arith.constant 0 : index
    %c0_100 = arith.constant 0 : index
    %50 = vector.load %arg56[%c0_99, %c0_100] : memref<1x32xf32, #tpu.memory_space<vmem>>, vector<1x32xf32>
    %c0_101 = arith.constant 0 : index
    %c0_102 = arith.constant 0 : index
    %51 = vector.load %arg57[%c0_101, %c0_102] : memref<32x128xf32, #tpu.memory_space<vmem>>, vector<32x128xf32>
    %c0_103 = arith.constant 0 : index
    %c0_104 = arith.constant 0 : index
    %52 = vector.load %arg58[%c0_103, %c0_104] : memref<1x128xf32, #tpu.memory_space<vmem>>, vector<1x128xf32>
    %c0_105 = arith.constant 0 : index
    %c0_106 = arith.constant 0 : index
    %53 = vector.load %arg0[%c0_105, %c0_106] : memref<16x11xf32, #tpu.memory_space<vmem>>, vector<16x11xf32>
    %c0_107 = arith.constant 0 : index
    %c0_108 = arith.constant 0 : index
    %54 = vector.load %arg1[%c0_107, %c0_108] : memref<16x128xf32, #tpu.memory_space<vmem>>, vector<16x128xf32>
    %c0_109 = arith.constant 0 : index
    %c0_110 = arith.constant 0 : index
    %55 = vector.load %arg2[%c0_109, %c0_110] : memref<224x16xbf16, #tpu.memory_space<vmem>>, vector<224x16xbf16>
    %56 = arith.extf %55 : vector<224x16xbf16> to vector<224x16xf32>
    %c0_111 = arith.constant 0 : index
    %c0_112 = arith.constant 0 : index
    %57 = vector.load %arg3[%c0_111, %c0_112] : memref<112x4xf32, #tpu.memory_space<vmem>>, vector<112x4xf32>
    %c0_113 = arith.constant 0 : index
    %c0_114 = arith.constant 0 : index
    %58 = vector.load %arg4[%c0_113, %c0_114] : memref<16x1xf32, #tpu.memory_space<vmem>>, vector<16x1xf32>
    %59 = vector.extract_strided_slice %56 {offsets = [0, 0], sizes = [112, 16], strides = [1, 1]} : vector<224x16xf32> to vector<112x16xf32>
    %60 = tpu.transpose %59, [1, 0] : vector<112x16xf32> -> vector<16x112xf32>
    %cst = arith.constant dense<0.000000e+00> : vector<16x32xf32>
    %61 = tpu.matmul %53, %0, %cst {dimension_numbers = #tpu.dot_dimension_numbers<[1], [0], [0], [1], [0, 0, 1, 1], [], []>} : vector<16x11xf32>, vector<11x32xf32>, vector<16x32xf32> -> vector<16x32xf32>
    %62 = vector.broadcast %1 : vector<1x32xf32> to vector<16x32xf32>
    %63 = arith.addf %61, %62 : vector<16x32xf32>
    %cst_115 = arith.constant dense<0.000000e+00> : vector<224x128xf32>
    %64 = tpu.matmul %56, %54, %cst_115 {dimension_numbers = #tpu.dot_dimension_numbers<[1], [0], [0], [1], [0, 0, 1, 1], [], []>} : vector<224x16xf32>, vector<16x128xf32>, vector<224x128xf32> -> vector<224x128xf32>
    %65 = vector.extract_strided_slice %64 {offsets = [0, 0], sizes = [112, 128], strides = [1, 1]} : vector<224x128xf32> to vector<112x128xf32>
    %66 = vector.extract_strided_slice %64 {offsets = [112, 0], sizes = [112, 128], strides = [1, 1]} : vector<224x128xf32> to vector<112x128xf32>
    %67 = arith.subf %65, %66 : vector<112x128xf32>
    %68 = arith.mulf %67, %67 : vector<112x128xf32>
    %cst_116 = arith.constant dense<0.000000e+00> : vector<112xf32>
    %69 = vector.multi_reduction <add>, %68, %cst_116 [1] : vector<112x128xf32> to vector<112xf32>
    %70 = vector.shape_cast %69 : vector<112xf32> to vector<112x1xf32>
    %cst_117 = arith.constant dense<0.000000e+00> : vector<224x32xf32>
    %71 = tpu.matmul %56, %63, %cst_117 {dimension_numbers = #tpu.dot_dimension_numbers<[1], [0], [0], [1], [0, 0, 1, 1], [], []>} : vector<224x16xf32>, vector<16x32xf32>, vector<224x32xf32> -> vector<224x32xf32>
    %72 = vector.extract_strided_slice %71 {offsets = [0, 0], sizes = [112, 32], strides = [1, 1]} : vector<224x32xf32> to vector<112x32xf32>
    %73 = vector.extract_strided_slice %71 {offsets = [112, 0], sizes = [112, 32], strides = [1, 1]} : vector<224x32xf32> to vector<112x32xf32>
    %74 = tpu.concatenate %72, %73, %57 in 1 : vector<112x32xf32>, vector<112x32xf32>, vector<112x4xf32> -> vector<112x68xf32>
    %cst_118 = arith.constant dense<0.000000e+00> : vector<112x32xf32>
    %75 = tpu.matmul %74, %2, %cst_118 {dimension_numbers = #tpu.dot_dimension_numbers<[1], [0], [0], [1], [0, 0, 1, 1], [], []>} : vector<112x68xf32>, vector<68x32xf32>, vector<112x32xf32> -> vector<112x32xf32>
    %76 = vector.broadcast %70 : vector<112x1xf32> to vector<112x32xf32>
    %77 = vector.broadcast %3 : vector<1x32xf32> to vector<112x32xf32>
    %78 = arith.mulf %76, %77 : vector<112x32xf32>
    %79 = arith.addf %75, %78 : vector<112x32xf32>
    %80 = vector.broadcast %4 : vector<1x32xf32> to vector<112x32xf32>
    %81 = arith.addf %79, %80 : vector<112x32xf32>
    %cst_119 = arith.constant 0.000000e+00 : f32
    %82 = vector.broadcast %cst_119 : f32 to vector<112x32xf32>
    %83 = arith.subf %82, %81 : vector<112x32xf32>
    %84 = math.exp %83 : vector<112x32xf32>
    %cst_120 = arith.constant 1.000000e+00 : f32
    %85 = vector.broadcast %cst_120 : f32 to vector<112x32xf32>
    %86 = arith.addf %85, %84 : vector<112x32xf32>
    %cst_121 = arith.constant 1.000000e+00 : f32
    %87 = vector.broadcast %cst_121 : f32 to vector<112x32xf32>
    %88 = arith.divf %87, %86 : vector<112x32xf32>
    %89 = arith.mulf %81, %88 : vector<112x32xf32>
    %cst_122 = arith.constant dense<0.000000e+00> : vector<112x32xf32>
    %90 = tpu.matmul %89, %5, %cst_122 {dimension_numbers = #tpu.dot_dimension_numbers<[1], [0], [0], [1], [0, 0, 1, 1], [], []>} : vector<112x32xf32>, vector<32x32xf32>, vector<112x32xf32> -> vector<112x32xf32>
    %91 = vector.broadcast %6 : vector<1x32xf32> to vector<112x32xf32>
    %92 = arith.addf %90, %91 : vector<112x32xf32>
    %cst_123 = arith.constant 0.000000e+00 : f32
    %93 = vector.broadcast %cst_123 : f32 to vector<112x32xf32>
    %94 = arith.subf %93, %92 : vector<112x32xf32>
    %95 = math.exp %94 : vector<112x32xf32>
    %cst_124 = arith.constant 1.000000e+00 : f32
    %96 = vector.broadcast %cst_124 : f32 to vector<112x32xf32>
    %97 = arith.addf %96, %95 : vector<112x32xf32>
    %cst_125 = arith.constant 1.000000e+00 : f32
    %98 = vector.broadcast %cst_125 : f32 to vector<112x32xf32>
    %99 = arith.divf %98, %97 : vector<112x32xf32>
    %100 = arith.mulf %92, %99 : vector<112x32xf32>
    %cst_126 = arith.constant dense<0.000000e+00> : vector<16x32xf32>
    %101 = tpu.matmul %60, %100, %cst_126 {dimension_numbers = #tpu.dot_dimension_numbers<[1], [0], [0], [1], [0, 0, 1, 1], [], []>} : vector<16x112xf32>, vector<112x32xf32>, vector<16x32xf32> -> vector<16x32xf32>
    %102 = tpu.concatenate %63, %101 in 1 : vector<16x32xf32>, vector<16x32xf32> -> vector<16x64xf32>
    %cst_127 = arith.constant dense<0.000000e+00> : vector<16x32xf32>
    %103 = tpu.matmul %102, %7, %cst_127 {dimension_numbers = #tpu.dot_dimension_numbers<[1], [0], [0], [1], [0, 0, 1, 1], [], []>} : vector<16x64xf32>, vector<64x32xf32>, vector<16x32xf32> -> vector<16x32xf32>
    %104 = vector.broadcast %8 : vector<1x32xf32> to vector<16x32xf32>
    %105 = arith.addf %103, %104 : vector<16x32xf32>
    %cst_128 = arith.constant 0.000000e+00 : f32
    %106 = vector.broadcast %cst_128 : f32 to vector<16x32xf32>
    %107 = arith.subf %106, %105 : vector<16x32xf32>
    %108 = math.exp %107 : vector<16x32xf32>
    %cst_129 = arith.constant 1.000000e+00 : f32
    %109 = vector.broadcast %cst_129 : f32 to vector<16x32xf32>
    %110 = arith.addf %109, %108 : vector<16x32xf32>
    %cst_130 = arith.constant 1.000000e+00 : f32
    %111 = vector.broadcast %cst_130 : f32 to vector<16x32xf32>
    %112 = arith.divf %111, %110 : vector<16x32xf32>
    %113 = arith.mulf %105, %112 : vector<16x32xf32>
    %cst_131 = arith.constant dense<0.000000e+00> : vector<16x32xf32>
    %114 = tpu.matmul %113, %9, %cst_131 {dimension_numbers = #tpu.dot_dimension_numbers<[1], [0], [0], [1], [0, 0, 1, 1], [], []>} : vector<16x32xf32>, vector<32x32xf32>, vector<16x32xf32> -> vector<16x32xf32>
    %115 = arith.addf %63, %114 : vector<16x32xf32>
    %116 = vector.broadcast %10 : vector<1x32xf32> to vector<16x32xf32>
    %117 = arith.addf %115, %116 : vector<16x32xf32>
    %cst_132 = arith.constant dense<0.000000e+00> : vector<224x32xf32>
    %118 = tpu.matmul %56, %117, %cst_132 {dimension_numbers = #tpu.dot_dimension_numbers<[1], [0], [0], [1], [0, 0, 1, 1], [], []>} : vector<224x16xf32>, vector<16x32xf32>, vector<224x32xf32> -> vector<224x32xf32>
    %119 = vector.extract_strided_slice %118 {offsets = [0, 0], sizes = [112, 32], strides = [1, 1]} : vector<224x32xf32> to vector<112x32xf32>
    %120 = vector.extract_strided_slice %118 {offsets = [112, 0], sizes = [112, 32], strides = [1, 1]} : vector<224x32xf32> to vector<112x32xf32>
    %121 = tpu.concatenate %119, %120, %57 in 1 : vector<112x32xf32>, vector<112x32xf32>, vector<112x4xf32> -> vector<112x68xf32>
    %cst_133 = arith.constant dense<0.000000e+00> : vector<112x32xf32>
    %122 = tpu.matmul %121, %11, %cst_133 {dimension_numbers = #tpu.dot_dimension_numbers<[1], [0], [0], [1], [0, 0, 1, 1], [], []>} : vector<112x68xf32>, vector<68x32xf32>, vector<112x32xf32> -> vector<112x32xf32>
    %123 = vector.broadcast %70 : vector<112x1xf32> to vector<112x32xf32>
    %124 = vector.broadcast %12 : vector<1x32xf32> to vector<112x32xf32>
    %125 = arith.mulf %123, %124 : vector<112x32xf32>
    %126 = arith.addf %122, %125 : vector<112x32xf32>
    %127 = vector.broadcast %13 : vector<1x32xf32> to vector<112x32xf32>
    %128 = arith.addf %126, %127 : vector<112x32xf32>
    %cst_134 = arith.constant 0.000000e+00 : f32
    %129 = vector.broadcast %cst_134 : f32 to vector<112x32xf32>
    %130 = arith.subf %129, %128 : vector<112x32xf32>
    %131 = math.exp %130 : vector<112x32xf32>
    %cst_135 = arith.constant 1.000000e+00 : f32
    %132 = vector.broadcast %cst_135 : f32 to vector<112x32xf32>
    %133 = arith.addf %132, %131 : vector<112x32xf32>
    %cst_136 = arith.constant 1.000000e+00 : f32
    %134 = vector.broadcast %cst_136 : f32 to vector<112x32xf32>
    %135 = arith.divf %134, %133 : vector<112x32xf32>
    %136 = arith.mulf %128, %135 : vector<112x32xf32>
    %cst_137 = arith.constant dense<0.000000e+00> : vector<112x32xf32>
    %137 = tpu.matmul %136, %14, %cst_137 {dimension_numbers = #tpu.dot_dimension_numbers<[1], [0], [0], [1], [0, 0, 1, 1], [], []>} : vector<112x32xf32>, vector<32x32xf32>, vector<112x32xf32> -> vector<112x32xf32>
    %138 = vector.broadcast %15 : vector<1x32xf32> to vector<112x32xf32>
    %139 = arith.addf %137, %138 : vector<112x32xf32>
    %cst_138 = arith.constant 0.000000e+00 : f32
    %140 = vector.broadcast %cst_138 : f32 to vector<112x32xf32>
    %141 = arith.subf %140, %139 : vector<112x32xf32>
    %142 = math.exp %141 : vector<112x32xf32>
    %cst_139 = arith.constant 1.000000e+00 : f32
    %143 = vector.broadcast %cst_139 : f32 to vector<112x32xf32>
    %144 = arith.addf %143, %142 : vector<112x32xf32>
    %cst_140 = arith.constant 1.000000e+00 : f32
    %145 = vector.broadcast %cst_140 : f32 to vector<112x32xf32>
    %146 = arith.divf %145, %144 : vector<112x32xf32>
    %147 = arith.mulf %139, %146 : vector<112x32xf32>
    %cst_141 = arith.constant dense<0.000000e+00> : vector<16x32xf32>
    %148 = tpu.matmul %60, %147, %cst_141 {dimension_numbers = #tpu.dot_dimension_numbers<[1], [0], [0], [1], [0, 0, 1, 1], [], []>} : vector<16x112xf32>, vector<112x32xf32>, vector<16x32xf32> -> vector<16x32xf32>
    %149 = tpu.concatenate %117, %148 in 1 : vector<16x32xf32>, vector<16x32xf32> -> vector<16x64xf32>
    %cst_142 = arith.constant dense<0.000000e+00> : vector<16x32xf32>
    %150 = tpu.matmul %149, %16, %cst_142 {dimension_numbers = #tpu.dot_dimension_numbers<[1], [0], [0], [1], [0, 0, 1, 1], [], []>} : vector<16x64xf32>, vector<64x32xf32>, vector<16x32xf32> -> vector<16x32xf32>
    %151 = vector.broadcast %17 : vector<1x32xf32> to vector<16x32xf32>
    %152 = arith.addf %150, %151 : vector<16x32xf32>
    %cst_143 = arith.constant 0.000000e+00 : f32
    %153 = vector.broadcast %cst_143 : f32 to vector<16x32xf32>
    %154 = arith.subf %153, %152 : vector<16x32xf32>
    %155 = math.exp %154 : vector<16x32xf32>
    %cst_144 = arith.constant 1.000000e+00 : f32
    %156 = vector.broadcast %cst_144 : f32 to vector<16x32xf32>
    %157 = arith.addf %156, %155 : vector<16x32xf32>
    %cst_145 = arith.constant 1.000000e+00 : f32
    %158 = vector.broadcast %cst_145 : f32 to vector<16x32xf32>
    %159 = arith.divf %158, %157 : vector<16x32xf32>
    %160 = arith.mulf %152, %159 : vector<16x32xf32>
    %cst_146 = arith.constant dense<0.000000e+00> : vector<16x32xf32>
    %161 = tpu.matmul %160, %18, %cst_146 {dimension_numbers = #tpu.dot_dimension_numbers<[1], [0], [0], [1], [0, 0, 1, 1], [], []>} : vector<16x32xf32>, vector<32x32xf32>, vector<16x32xf32> -> vector<16x32xf32>
    %162 = arith.addf %117, %161 : vector<16x32xf32>
    %163 = vector.broadcast %19 : vector<1x32xf32> to vector<16x32xf32>
    %164 = arith.addf %162, %163 : vector<16x32xf32>
    %cst_147 = arith.constant dense<0.000000e+00> : vector<224x32xf32>
    %165 = tpu.matmul %56, %164, %cst_147 {dimension_numbers = #tpu.dot_dimension_numbers<[1], [0], [0], [1], [0, 0, 1, 1], [], []>} : vector<224x16xf32>, vector<16x32xf32>, vector<224x32xf32> -> vector<224x32xf32>
    %166 = vector.extract_strided_slice %165 {offsets = [0, 0], sizes = [112, 32], strides = [1, 1]} : vector<224x32xf32> to vector<112x32xf32>
    %167 = vector.extract_strided_slice %165 {offsets = [112, 0], sizes = [112, 32], strides = [1, 1]} : vector<224x32xf32> to vector<112x32xf32>
    %168 = tpu.concatenate %166, %167, %57 in 1 : vector<112x32xf32>, vector<112x32xf32>, vector<112x4xf32> -> vector<112x68xf32>
    %cst_148 = arith.constant dense<0.000000e+00> : vector<112x32xf32>
    %169 = tpu.matmul %168, %20, %cst_148 {dimension_numbers = #tpu.dot_dimension_numbers<[1], [0], [0], [1], [0, 0, 1, 1], [], []>} : vector<112x68xf32>, vector<68x32xf32>, vector<112x32xf32> -> vector<112x32xf32>
    %170 = vector.broadcast %70 : vector<112x1xf32> to vector<112x32xf32>
    %171 = vector.broadcast %21 : vector<1x32xf32> to vector<112x32xf32>
    %172 = arith.mulf %170, %171 : vector<112x32xf32>
    %173 = arith.addf %169, %172 : vector<112x32xf32>
    %174 = vector.broadcast %22 : vector<1x32xf32> to vector<112x32xf32>
    %175 = arith.addf %173, %174 : vector<112x32xf32>
    %cst_149 = arith.constant 0.000000e+00 : f32
    %176 = vector.broadcast %cst_149 : f32 to vector<112x32xf32>
    %177 = arith.subf %176, %175 : vector<112x32xf32>
    %178 = math.exp %177 : vector<112x32xf32>
    %cst_150 = arith.constant 1.000000e+00 : f32
    %179 = vector.broadcast %cst_150 : f32 to vector<112x32xf32>
    %180 = arith.addf %179, %178 : vector<112x32xf32>
    %cst_151 = arith.constant 1.000000e+00 : f32
    %181 = vector.broadcast %cst_151 : f32 to vector<112x32xf32>
    %182 = arith.divf %181, %180 : vector<112x32xf32>
    %183 = arith.mulf %175, %182 : vector<112x32xf32>
    %cst_152 = arith.constant dense<0.000000e+00> : vector<112x32xf32>
    %184 = tpu.matmul %183, %23, %cst_152 {dimension_numbers = #tpu.dot_dimension_numbers<[1], [0], [0], [1], [0, 0, 1, 1], [], []>} : vector<112x32xf32>, vector<32x32xf32>, vector<112x32xf32> -> vector<112x32xf32>
    %185 = vector.broadcast %24 : vector<1x32xf32> to vector<112x32xf32>
    %186 = arith.addf %184, %185 : vector<112x32xf32>
    %cst_153 = arith.constant 0.000000e+00 : f32
    %187 = vector.broadcast %cst_153 : f32 to vector<112x32xf32>
    %188 = arith.subf %187, %186 : vector<112x32xf32>
    %189 = math.exp %188 : vector<112x32xf32>
    %cst_154 = arith.constant 1.000000e+00 : f32
    %190 = vector.broadcast %cst_154 : f32 to vector<112x32xf32>
    %191 = arith.addf %190, %189 : vector<112x32xf32>
    %cst_155 = arith.constant 1.000000e+00 : f32
    %192 = vector.broadcast %cst_155 : f32 to vector<112x32xf32>
    %193 = arith.divf %192, %191 : vector<112x32xf32>
    %194 = arith.mulf %186, %193 : vector<112x32xf32>
    %cst_156 = arith.constant dense<0.000000e+00> : vector<16x32xf32>
    %195 = tpu.matmul %60, %194, %cst_156 {dimension_numbers = #tpu.dot_dimension_numbers<[1], [0], [0], [1], [0, 0, 1, 1], [], []>} : vector<16x112xf32>, vector<112x32xf32>, vector<16x32xf32> -> vector<16x32xf32>
    %196 = tpu.concatenate %164, %195 in 1 : vector<16x32xf32>, vector<16x32xf32> -> vector<16x64xf32>
    %cst_157 = arith.constant dense<0.000000e+00> : vector<16x32xf32>
    %197 = tpu.matmul %196, %25, %cst_157 {dimension_numbers = #tpu.dot_dimension_numbers<[1], [0], [0], [1], [0, 0, 1, 1], [], []>} : vector<16x64xf32>, vector<64x32xf32>, vector<16x32xf32> -> vector<16x32xf32>
    %198 = vector.broadcast %26 : vector<1x32xf32> to vector<16x32xf32>
    %199 = arith.addf %197, %198 : vector<16x32xf32>
    %cst_158 = arith.constant 0.000000e+00 : f32
    %200 = vector.broadcast %cst_158 : f32 to vector<16x32xf32>
    %201 = arith.subf %200, %199 : vector<16x32xf32>
    %202 = math.exp %201 : vector<16x32xf32>
    %cst_159 = arith.constant 1.000000e+00 : f32
    %203 = vector.broadcast %cst_159 : f32 to vector<16x32xf32>
    %204 = arith.addf %203, %202 : vector<16x32xf32>
    %cst_160 = arith.constant 1.000000e+00 : f32
    %205 = vector.broadcast %cst_160 : f32 to vector<16x32xf32>
    %206 = arith.divf %205, %204 : vector<16x32xf32>
    %207 = arith.mulf %199, %206 : vector<16x32xf32>
    %cst_161 = arith.constant dense<0.000000e+00> : vector<16x32xf32>
    %208 = tpu.matmul %207, %27, %cst_161 {dimension_numbers = #tpu.dot_dimension_numbers<[1], [0], [0], [1], [0, 0, 1, 1], [], []>} : vector<16x32xf32>, vector<32x32xf32>, vector<16x32xf32> -> vector<16x32xf32>
    %209 = arith.addf %164, %208 : vector<16x32xf32>
    %210 = vector.broadcast %28 : vector<1x32xf32> to vector<16x32xf32>
    %211 = arith.addf %209, %210 : vector<16x32xf32>
    %cst_162 = arith.constant dense<0.000000e+00> : vector<224x32xf32>
    %212 = tpu.matmul %56, %211, %cst_162 {dimension_numbers = #tpu.dot_dimension_numbers<[1], [0], [0], [1], [0, 0, 1, 1], [], []>} : vector<224x16xf32>, vector<16x32xf32>, vector<224x32xf32> -> vector<224x32xf32>
    %213 = vector.extract_strided_slice %212 {offsets = [0, 0], sizes = [112, 32], strides = [1, 1]} : vector<224x32xf32> to vector<112x32xf32>
    %214 = vector.extract_strided_slice %212 {offsets = [112, 0], sizes = [112, 32], strides = [1, 1]} : vector<224x32xf32> to vector<112x32xf32>
    %215 = tpu.concatenate %213, %214, %57 in 1 : vector<112x32xf32>, vector<112x32xf32>, vector<112x4xf32> -> vector<112x68xf32>
    %cst_163 = arith.constant dense<0.000000e+00> : vector<112x32xf32>
    %216 = tpu.matmul %215, %29, %cst_163 {dimension_numbers = #tpu.dot_dimension_numbers<[1], [0], [0], [1], [0, 0, 1, 1], [], []>} : vector<112x68xf32>, vector<68x32xf32>, vector<112x32xf32> -> vector<112x32xf32>
    %217 = vector.broadcast %70 : vector<112x1xf32> to vector<112x32xf32>
    %218 = vector.broadcast %30 : vector<1x32xf32> to vector<112x32xf32>
    %219 = arith.mulf %217, %218 : vector<112x32xf32>
    %220 = arith.addf %216, %219 : vector<112x32xf32>
    %221 = vector.broadcast %31 : vector<1x32xf32> to vector<112x32xf32>
    %222 = arith.addf %220, %221 : vector<112x32xf32>
    %cst_164 = arith.constant 0.000000e+00 : f32
    %223 = vector.broadcast %cst_164 : f32 to vector<112x32xf32>
    %224 = arith.subf %223, %222 : vector<112x32xf32>
    %225 = math.exp %224 : vector<112x32xf32>
    %cst_165 = arith.constant 1.000000e+00 : f32
    %226 = vector.broadcast %cst_165 : f32 to vector<112x32xf32>
    %227 = arith.addf %226, %225 : vector<112x32xf32>
    %cst_166 = arith.constant 1.000000e+00 : f32
    %228 = vector.broadcast %cst_166 : f32 to vector<112x32xf32>
    %229 = arith.divf %228, %227 : vector<112x32xf32>
    %230 = arith.mulf %222, %229 : vector<112x32xf32>
    %cst_167 = arith.constant dense<0.000000e+00> : vector<112x32xf32>
    %231 = tpu.matmul %230, %32, %cst_167 {dimension_numbers = #tpu.dot_dimension_numbers<[1], [0], [0], [1], [0, 0, 1, 1], [], []>} : vector<112x32xf32>, vector<32x32xf32>, vector<112x32xf32> -> vector<112x32xf32>
    %232 = vector.broadcast %33 : vector<1x32xf32> to vector<112x32xf32>
    %233 = arith.addf %231, %232 : vector<112x32xf32>
    %cst_168 = arith.constant 0.000000e+00 : f32
    %234 = vector.broadcast %cst_168 : f32 to vector<112x32xf32>
    %235 = arith.subf %234, %233 : vector<112x32xf32>
    %236 = math.exp %235 : vector<112x32xf32>
    %cst_169 = arith.constant 1.000000e+00 : f32
    %237 = vector.broadcast %cst_169 : f32 to vector<112x32xf32>
    %238 = arith.addf %237, %236 : vector<112x32xf32>
    %cst_170 = arith.constant 1.000000e+00 : f32
    %239 = vector.broadcast %cst_170 : f32 to vector<112x32xf32>
    %240 = arith.divf %239, %238 : vector<112x32xf32>
    %241 = arith.mulf %233, %240 : vector<112x32xf32>
    %cst_171 = arith.constant dense<0.000000e+00> : vector<112x32xf32>
    %242 = tpu.matmul %241, %38, %cst_171 {dimension_numbers = #tpu.dot_dimension_numbers<[1], [0], [0], [1], [0, 0, 1, 1], [], []>} : vector<112x32xf32>, vector<32x32xf32>, vector<112x32xf32> -> vector<112x32xf32>
    %243 = vector.broadcast %39 : vector<1x32xf32> to vector<112x32xf32>
    %244 = arith.addf %242, %243 : vector<112x32xf32>
    %cst_172 = arith.constant 0.000000e+00 : f32
    %245 = vector.broadcast %cst_172 : f32 to vector<112x32xf32>
    %246 = arith.subf %245, %244 : vector<112x32xf32>
    %247 = math.exp %246 : vector<112x32xf32>
    %cst_173 = arith.constant 1.000000e+00 : f32
    %248 = vector.broadcast %cst_173 : f32 to vector<112x32xf32>
    %249 = arith.addf %248, %247 : vector<112x32xf32>
    %cst_174 = arith.constant 1.000000e+00 : f32
    %250 = vector.broadcast %cst_174 : f32 to vector<112x32xf32>
    %251 = arith.divf %250, %249 : vector<112x32xf32>
    %252 = arith.mulf %244, %251 : vector<112x32xf32>
    %cst_175 = arith.constant dense<0.000000e+00> : vector<112x1xf32>
    %253 = tpu.matmul %252, %40, %cst_175 {dimension_numbers = #tpu.dot_dimension_numbers<[1], [0], [0], [1], [0, 0, 1, 1], [], []>} : vector<112x32xf32>, vector<32x1xf32>, vector<112x1xf32> -> vector<112x1xf32>
    %254 = vector.broadcast %253 : vector<112x1xf32> to vector<112x128xf32>
    %255 = arith.mulf %67, %254 : vector<112x128xf32>
    %cst_176 = arith.constant dense<0.000000e+00> : vector<16x128xf32>
    %256 = tpu.matmul %60, %255, %cst_176 {dimension_numbers = #tpu.dot_dimension_numbers<[1], [0], [0], [1], [0, 0, 1, 1], [], []>} : vector<16x112xf32>, vector<112x128xf32>, vector<16x128xf32> -> vector<16x128xf32>
    %257 = vector.broadcast %58 : vector<16x1xf32> to vector<16x128xf32>
    %258 = arith.mulf %257, %256 : vector<16x128xf32>
    %259 = arith.addf %54, %258 : vector<16x128xf32>
    %c0_177 = arith.constant 0 : index
    %c0_178 = arith.constant 0 : index
    %260 = vector.load %arg61[%c0_177, %c0_178] : memref<16x128xf32, #tpu.memory_space<vmem>>, vector<16x128xf32>
    tpu.vector_store %arg61[%c0_177, %c0_178], %259 {strides = array<i32>} : memref<16x128xf32, #tpu.memory_space<vmem>>, vector<16x128xf32>,
    %cst_179 = arith.constant dense<0.000000e+00> : vector<16x32xf32>
    %261 = tpu.matmul %60, %241, %cst_179 {dimension_numbers = #tpu.dot_dimension_numbers<[1], [0], [0], [1], [0, 0, 1, 1], [], []>} : vector<16x112xf32>, vector<112x32xf32>, vector<16x32xf32> -> vector<16x32xf32>
    %262 = tpu.concatenate %211, %261 in 1 : vector<16x32xf32>, vector<16x32xf32> -> vector<16x64xf32>
    %cst_180 = arith.constant dense<0.000000e+00> : vector<16x32xf32>
    %263 = tpu.matmul %262, %34, %cst_180 {dimension_numbers = #tpu.dot_dimension_numbers<[1], [0], [0], [1], [0, 0, 1, 1], [], []>} : vector<16x64xf32>, vector<64x32xf32>, vector<16x32xf32> -> vector<16x32xf32>
    %264 = vector.broadcast %35 : vector<1x32xf32> to vector<16x32xf32>
    %265 = arith.addf %263, %264 : vector<16x32xf32>
    %cst_181 = arith.constant 0.000000e+00 : f32
    %266 = vector.broadcast %cst_181 : f32 to vector<16x32xf32>
    %267 = arith.subf %266, %265 : vector<16x32xf32>
    %268 = math.exp %267 : vector<16x32xf32>
    %cst_182 = arith.constant 1.000000e+00 : f32
    %269 = vector.broadcast %cst_182 : f32 to vector<16x32xf32>
    %270 = arith.addf %269, %268 : vector<16x32xf32>
    %cst_183 = arith.constant 1.000000e+00 : f32
    %271 = vector.broadcast %cst_183 : f32 to vector<16x32xf32>
    %272 = arith.divf %271, %270 : vector<16x32xf32>
    %273 = arith.mulf %265, %272 : vector<16x32xf32>
    %cst_184 = arith.constant dense<0.000000e+00> : vector<16x32xf32>
    %274 = tpu.matmul %273, %36, %cst_184 {dimension_numbers = #tpu.dot_dimension_numbers<[1], [0], [0], [1], [0, 0, 1, 1], [], []>} : vector<16x32xf32>, vector<32x32xf32>, vector<16x32xf32> -> vector<16x32xf32>
    %275 = arith.addf %211, %274 : vector<16x32xf32>
    %276 = vector.broadcast %37 : vector<1x32xf32> to vector<16x32xf32>
    %277 = arith.addf %275, %276 : vector<16x32xf32>
    %cst_185 = arith.constant dense<0.000000e+00> : vector<16x32xf32>
    %278 = tpu.matmul %277, %41, %cst_185 {dimension_numbers = #tpu.dot_dimension_numbers<[1], [0], [0], [1], [0, 0, 1, 1], [], []>} : vector<16x32xf32>, vector<32x32xf32>, vector<16x32xf32> -> vector<16x32xf32>
    %279 = vector.broadcast %42 : vector<1x32xf32> to vector<16x32xf32>
    %280 = arith.addf %278, %279 : vector<16x32xf32>
    %cst_186 = arith.constant 0.000000e+00 : f32
    %281 = vector.broadcast %cst_186 : f32 to vector<16x32xf32>
    %282 = arith.subf %281, %280 : vector<16x32xf32>
    %283 = math.exp %282 : vector<16x32xf32>
    %cst_187 = arith.constant 1.000000e+00 : f32
    %284 = vector.broadcast %cst_187 : f32 to vector<16x32xf32>
    %285 = arith.addf %284, %283 : vector<16x32xf32>
    %cst_188 = arith.constant 1.000000e+00 : f32
    %286 = vector.broadcast %cst_188 : f32 to vector<16x32xf32>
    %287 = arith.divf %286, %285 : vector<16x32xf32>
    %288 = arith.mulf %280, %287 : vector<16x32xf32>
    %cst_189 = arith.constant dense<0.000000e+00> : vector<16x128xf32>
    %289 = tpu.matmul %288, %43, %cst_189 {dimension_numbers = #tpu.dot_dimension_numbers<[1], [0], [0], [1], [0, 0, 1, 1], [], []>} : vector<16x32xf32>, vector<32x128xf32>, vector<16x128xf32> -> vector<16x128xf32>
    %290 = vector.broadcast %44 : vector<1x128xf32> to vector<16x128xf32>
    %291 = arith.addf %289, %290 : vector<16x128xf32>
    %c0_190 = arith.constant 0 : index
    %c0_191 = arith.constant 0 : index
    %292 = vector.load %arg60[%c0_190, %c0_191] : memref<16x128xf32, #tpu.memory_space<vmem>>, vector<16x128xf32>
    tpu.vector_store %arg60[%c0_190, %c0_191], %291 {strides = array<i32>} : memref<16x128xf32, #tpu.memory_space<vmem>>, vector<16x128xf32>,
    %cst_192 = arith.constant dense<0.000000e+00> : vector<16x32xf32>
    %293 = tpu.matmul %277, %45, %cst_192 {dimension_numbers = #tpu.dot_dimension_numbers<[1], [0], [0], [1], [0, 0, 1, 1], [], []>} : vector<16x32xf32>, vector<32x32xf32>, vector<16x32xf32> -> vector<16x32xf32>
    %294 = vector.broadcast %46 : vector<1x32xf32> to vector<16x32xf32>
    %295 = arith.addf %293, %294 : vector<16x32xf32>
    %cst_193 = arith.constant 0.000000e+00 : f32
    %296 = vector.broadcast %cst_193 : f32 to vector<16x32xf32>
    %297 = arith.subf %296, %295 : vector<16x32xf32>
    %298 = math.exp %297 : vector<16x32xf32>
    %cst_194 = arith.constant 1.000000e+00 : f32
    %299 = vector.broadcast %cst_194 : f32 to vector<16x32xf32>
    %300 = arith.addf %299, %298 : vector<16x32xf32>
    %cst_195 = arith.constant 1.000000e+00 : f32
    %301 = vector.broadcast %cst_195 : f32 to vector<16x32xf32>
    %302 = arith.divf %301, %300 : vector<16x32xf32>
    %303 = arith.mulf %295, %302 : vector<16x32xf32>
    %cst_196 = arith.constant dense<0.000000e+00> : vector<16x32xf32>
    %304 = tpu.matmul %303, %47, %cst_196 {dimension_numbers = #tpu.dot_dimension_numbers<[1], [0], [0], [1], [0, 0, 1, 1], [], []>} : vector<16x32xf32>, vector<32x32xf32>, vector<16x32xf32> -> vector<16x32xf32>
    %305 = vector.broadcast %48 : vector<1x32xf32> to vector<16x32xf32>
    %306 = arith.addf %304, %305 : vector<16x32xf32>
    %c0_197 = arith.constant 0 : index
    %c0_198 = arith.constant 0 : index
    %307 = vector.load %arg5[%c0_197, %c0_198] : memref<2x16xf32, #tpu.memory_space<vmem>>, vector<2x16xf32>
    %cst_199 = arith.constant dense<0.000000e+00> : vector<2x32xf32>
    %308 = tpu.matmul %307, %306, %cst_199 {dimension_numbers = #tpu.dot_dimension_numbers<[1], [0], [0], [1], [0, 0, 1, 1], [], []>} : vector<2x16xf32>, vector<16x32xf32>, vector<2x32xf32> -> vector<2x32xf32>
    %cst_200 = arith.constant dense<0.000000e+00> : vector<2x32xf32>
    %309 = tpu.matmul %308, %49, %cst_200 {dimension_numbers = #tpu.dot_dimension_numbers<[1], [0], [0], [1], [0, 0, 1, 1], [], []>} : vector<2x32xf32>, vector<32x32xf32>, vector<2x32xf32> -> vector<2x32xf32>
    %310 = vector.broadcast %50 : vector<1x32xf32> to vector<2x32xf32>
    %311 = arith.addf %309, %310 : vector<2x32xf32>
    %cst_201 = arith.constant 0.000000e+00 : f32
    %312 = vector.broadcast %cst_201 : f32 to vector<2x32xf32>
    %313 = arith.subf %312, %311 : vector<2x32xf32>
    %314 = math.exp %313 : vector<2x32xf32>
    %cst_202 = arith.constant 1.000000e+00 : f32
    %315 = vector.broadcast %cst_202 : f32 to vector<2x32xf32>
    %316 = arith.addf %315, %314 : vector<2x32xf32>
    %cst_203 = arith.constant 1.000000e+00 : f32
    %317 = vector.broadcast %cst_203 : f32 to vector<2x32xf32>
    %318 = arith.divf %317, %316 : vector<2x32xf32>
    %319 = arith.mulf %311, %318 : vector<2x32xf32>
    %cst_204 = arith.constant dense<0.000000e+00> : vector<2x128xf32>
    %320 = tpu.matmul %319, %51, %cst_204 {dimension_numbers = #tpu.dot_dimension_numbers<[1], [0], [0], [1], [0, 0, 1, 1], [], []>} : vector<2x32xf32>, vector<32x128xf32>, vector<2x128xf32> -> vector<2x128xf32>
    %321 = vector.broadcast %52 : vector<1x128xf32> to vector<2x128xf32>
    %322 = arith.addf %320, %321 : vector<2x128xf32>
    %c0_205 = arith.constant 0 : index
    %c0_206 = arith.constant 0 : index
    %323 = vector.load %arg59[%c0_205, %c0_206] : memref<2x128xf32, #tpu.memory_space<vmem>>, vector<2x128xf32>
    tpu.vector_store %arg59[%c0_205, %c0_206], %322 {strides = array<i32>} : memref<2x128xf32, #tpu.memory_space<vmem>>, vector<2x128xf32>,
    return
  }
}

</mosaic_0001>

<bundles_post_ra>
// kernel: tpu_custom_call.1
= control target key start
LH: loop header
LB: loop body
LE: loop exit
PB: predicated region body
PF: predicated region fallthrough
CT: control target
= control target key end

     0   :  { %s10538_s6 = smov 1   ;;  %s10539_s10 = smov 2   ;;  %s13035_s0 = inlined_call_operand.smem [shape: u32[62], index: -1, kind: input, shape index: {}] }
   0x1   :  { %s10633_s5 = sld [smem:[%s13035_s0]]   ;;  %s10540_s14 = smov 3  }
   0x2   :  { %s10638_s9 = sld [smem:[%s13035_s0 + %s10538_s6]]   ;;  %s10541_s18 = smov 4  }
   0x3   :  { %s10643_s13 = sld [smem:[%s13035_s0 + %s10539_s10]]   ;;  %s10542_s22 = smov 5  }
   0x4   :  { %s10648_s17 = sld [smem:[%s13035_s0 + %s10540_s14]]   ;;  %s10543_s26 = smov 6  }
   0x5   :  { %s10653_s21 = sld [smem:[%s13035_s0 + %s10541_s18]]   ;;  %s10544_s30 = smov 7  }
   0x6   :  { %s10658_s25 = sld [smem:[%s13035_s0 + %s10542_s22]]   ;;  %s10545_s4 = smov 8  }
   0x7   :  { %13143 = sst [smem:[#allocation39_spill]] %s10633_s5  ;;  %s10546_s10 = smov 9  }
   0x8   :  { %13144 = sst [smem:[#allocation40_spill]] %s10638_s9  ;;  %s10547_s15 = smov 10  }
   0x9   :  { %13145 = sst [smem:[#allocation41_spill]] %s10643_s13  ;;  %s10548_s20 = smov 11  }
   0xa   :  { %13146 = sst [smem:[#allocation42_spill]] %s10648_s17  ;;  %s10550_s1 = smov 13  }
   0xb   :  { %13147 = sst [smem:[#allocation43_spill]] %s10653_s21  ;;  %s10551_s7 = smov 14  }
   0xc   :  { %13148 = sst [smem:[#allocation44_spill]] %s10658_s25  ;;  %s10553_s22 = smov 16  }
   0xd   :  { %s10663_s29 = sld [smem:[%s13035_s0 + %s10543_s26]]   ;;  %s10549_s26 = smov 12  }
   0xe   :  { %s10668_s3 = sld [smem:[%s13035_s0 + %s10544_s30]]   ;;  %s10554_s28 = smov 17  }
   0xf   :  { %s10673_s8 = sld [smem:[%s13035_s0 + %s10545_s4]]  }
  0x10   :  { %s10678_s14 = sld [smem:[%s13035_s0 + %s10546_s10]]  }
  0x11   :  { %s10683_s19 = sld [smem:[%s13035_s0 + %s10547_s15]]   ;;  %s10552_s15 = smov 15  }
  0x12   :  { %s10688_s24 = sld [smem:[%s13035_s0 + %s10548_s20]]  }
  0x13   :  { %s10693_s30 = sld [smem:[%s13035_s0 + %s10549_s26]]  }
  0x14   :  { %13149 = sst [smem:[#allocation45_spill]] %s10668_s3 }
  0x15   :  { %13150 = sst [smem:[#allocation46_spill]] %s10673_s8 }
  0x16   :  { %13151 = sst [smem:[#allocation47_spill]] %s10678_s14 }
  0x17   :  { %13152 = sst [smem:[#allocation48_spill]] %s10683_s19 }
  0x18   :  { %13153 = sst [smem:[#allocation49_spill]] %s10688_s24 }
  0x19   :  { %13154 = sst [smem:[#allocation50_spill]] %s10693_s30 }
  0x1a   :  { %s10698_s6 = sld [smem:[%s13035_s0 + %s10550_s1]]  }
  0x1b   :  { %s10703_s12 = sld [smem:[%s13035_s0 + %s10551_s7]]   ;;  %s10555_s7 = smov 18  }
  0x1c   :  { %s10708_s20 = sld [smem:[%s13035_s0 + %s10552_s15]]   ;;  %s10556_s15 = smov 19  }
  0x1d   :  { %s10713_s27 = sld [smem:[%s13035_s0 + %s10553_s22]]   ;;  %s10557_s22 = smov 20  }
  0x1e   :  { %s10718_s4 = sld [smem:[%s13035_s0 + %s10554_s28]]   ;;  %s10558_s28 = smov 21  }
  0x1f   :  { %s10723_s25 = sld [smem:[%s13035_s0 + %s10555_s7]]   ;;  %s10559_s7 = smov 22  }
  0x20   :  { %13155 = sst [smem:[#allocation51_spill]] %s10698_s6 }
  0x21   :  { %13156 = sst [smem:[#allocation52_spill]] %s10703_s12 }
  0x22   :  { %13157 = sst [smem:[#allocation53_spill]] %s10708_s20 }
  0x23   :  { %13158 = sst [smem:[#allocation54_spill]] %s10713_s27 }
  0x24   :  { %13159 = sst [smem:[#allocation55_spill]] %s10718_s4 }
  0x25   :  { %13160 = sst [smem:[#allocation56_spill]] %s10723_s25 }
  0x26   :  { %s10728_s21 = sld [smem:[%s13035_s0 + %s10556_s15]]   ;;  %s10560_s15 = smov 23  }
  0x27   :  { %s10733_s27 = sld [smem:[%s13035_s0 + %s10557_s22]]   ;;  %s10561_s22 = smov 24  }
  0x28   :  { %s10738_s4 = sld [smem:[%s13035_s0 + %s10558_s28]]   ;;  %s10562_s28 = smov 25  }
  0x29   :  { %s10743_s25 = sld [smem:[%s13035_s0 + %s10559_s7]]   ;;  %s10563_s7 = smov 26  }
  0x2c   :  { %13161 = sst [smem:[#allocation57_spill]] %s10728_s21 }
  0x2d   :  { %13162 = sst [smem:[#allocation58_spill]] %s10733_s27 }
  0x2e   :  { %13163 = sst [smem:[#allocation59_spill]] %s10738_s4 }
  0x2f   :  { %13164 = sst [smem:[#allocation60_spill]] %s10743_s25 }
  0x30   :  { %s10748_s21 = sld [smem:[%s13035_s0 + %s10560_s15]]   ;;  %s10564_s15 = smov 27  }
  0x31   :  { %s10753_s27 = sld [smem:[%s13035_s0 + %s10561_s22]]   ;;  %s10565_s22 = smov 28  }
  0x32   :  { %s10758_s4 = sld [smem:[%s13035_s0 + %s10562_s28]]   ;;  %s10566_s28 = smov 29  }
  0x33   :  { %s10763_s25 = sld [smem:[%s13035_s0 + %s10563_s7]]   ;;  %s10567_s7 = smov 30  }
  0x36   :  { %13165 = sst [smem:[#allocation61_spill]] %s10748_s21 }
  0x37   :  { %13166 = sst [smem:[#allocation62_spill]] %s10753_s27 }
  0x38   :  { %13167 = sst [smem:[#allocation63_spill]] %s10758_s4 }
  0x39   :  { %13168 = sst [smem:[#allocation64_spill]] %s10763_s25 }
  0x3a   :  { %s10768_s21 = sld [smem:[%s13035_s0 + %s10564_s15]]   ;;  %s10568_s15 = smov 31  }
  0x3b   :  { %s10773_s27 = sld [smem:[%s13035_s0 + %s10565_s22]]   ;;  %s10569_s22 = smov 32  }
  0x3c   :  { %s10778_s4 = sld [smem:[%s13035_s0 + %s10566_s28]]   ;;  %s10570_s28 = smov 33  }
  0x3d   :  { %s10783_s25 = sld [smem:[%s13035_s0 + %s10567_s7]]   ;;  %s10571_s7 = smov 34  }
  0x40   :  { %13169 = sst [smem:[#allocation65_spill]] %s10768_s21 }
  0x41   :  { %13170 = sst [smem:[#allocation66_spill]] %s10773_s27 }
  0x42   :  { %13171 = sst [smem:[#allocation67_spill]] %s10778_s4 }
  0x43   :  { %13172 = sst [smem:[#allocation68_spill]] %s10783_s25 }
  0x44   :  { %s10788_s21 = sld [smem:[%s13035_s0 + %s10568_s15]]   ;;  %s10572_s15 = smov 35  }
  0x45   :  { %s10793_s27 = sld [smem:[%s13035_s0 + %s10569_s22]]   ;;  %s10573_s22 = smov 36  }
  0x46   :  { %s10798_s4 = sld [smem:[%s13035_s0 + %s10570_s28]]   ;;  %s10574_s28 = smov 37  }
  0x47   :  { %s10803_s25 = sld [smem:[%s13035_s0 + %s10571_s7]]   ;;  %s10575_s7 = smov 38  }
  0x48   :  { %s10813_s12 = sld [smem:[%s13035_s0 + %s10573_s22]]   ;;  %s10577_s22 = smov 40  }
  0x49   :  { %s10823_s20 = sld [smem:[%s13035_s0 + %s10575_s7]]   ;;  %s10579_s7 = smov 42  }
  0x4a   :  { %13173 = sst [smem:[#allocation69_spill]] %s10788_s21 }
  0x4b   :  { %s10808_s21 = sld [smem:[%s13035_s0 + %s10572_s15]]   ;;  %s10576_s15 = smov 39  }
  0x4c   :  { %13174 = sst [smem:[#allocation70_spill]] %s10798_s4 }
  0x4d   :  { %s10818_s4 = sld [smem:[%s13035_s0 + %s10574_s28]]   ;;  %s10578_s28 = smov 41  }
  0x4e   :  { %s10833_s6 = sld [smem:[%s13035_s0 + %s10577_s22]]   ;;  %s10581_s22 = smov 44  }
  0x4f   :  { %13176 = sst [smem:[#allocation72_spill]] %s10823_s20 }
  0x50   :  { %s10838_s30 = sld [smem:[%s13035_s0 + %s10578_s28]]   ;;  %s10582_s28 = smov 45  }
  0x51   :  { %13175 = sst [smem:[#allocation71_spill]] %s10808_s21 }
  0x52   :  { %s10828_s21 = sld [smem:[%s13035_s0 + %s10576_s15]]   ;;  %s10580_s15 = smov 43  }
  0x53   :  { %s10843_s20 = sld [smem:[%s13035_s0 + %s10579_s7]]   ;;  %s10583_s7 = smov 46  }
  0x54   :  { %13177 = sst [smem:[#allocation73_spill]] %s10833_s6 }
  0x55   :  { %s10848_s19 = sld [smem:[%s13035_s0 + %s10580_s15]]   ;;  %s10584_s15 = smov 47  }
  0x56   :  { %s10853_s6 = sld [smem:[%s13035_s0 + %s10581_s22]]   ;;  %s10585_s22 = smov 48  }
  0x57   :  { %s10858_s14 = sld [smem:[%s13035_s0 + %s10582_s28]]   ;;  %s10586_s28 = smov 49  }
  0x58   :  { %s10868_s24 = sld [smem:[%s13035_s0 + %s10584_s15]]   ;;  %s10588_s15 = smov 51  }
  0x59   :  { %13178 = sst [smem:[#allocation74_spill]] %s10843_s20 }
  0x5a   :  { %s10863_s20 = sld [smem:[%s13035_s0 + %s10583_s7]]   ;;  %s10587_s7 = smov 50  }
  0x5b   :  { %s10878_s8 = sld [smem:[%s13035_s0 + %s10586_s28]]   ;;  %s10590_s28 = smov 53  }
  0x5c   :  { %13179 = sst [smem:[#allocation75_spill]] %s10853_s6 }
  0x5d   :  { %s10873_s6 = sld [smem:[%s13035_s0 + %s10585_s22]]   ;;  %s10589_s22 = smov 52  }
  0x5e   :  { %13181 = sst [smem:[#allocation77_spill]] %s10868_s24 }
  0x5f   :  { %s10888_s24 = sld [smem:[%s13035_s0 + %s10588_s15]]   ;;  %s10592_s15 = smov 55  }
  0x60   :  { %13180 = sst [smem:[#allocation76_spill]] %s10863_s20 }
  0x61   :  { %13182 = sst [smem:[#allocation78_spill]] %s10878_s8 }
  0x62   :  { %s10883_s20 = sld [smem:[%s13035_s0 + %s10587_s7]]   ;;  %s10591_s7 = smov 54  }
  0x63   :  { %s10893_s17 = sld [smem:[%s13035_s0 + %s10589_s22]]   ;;  %s10593_s22 = smov 56  }
  0x64   :  { %s10898_s8 = sld [smem:[%s13035_s0 + %s10590_s28]]   ;;  %s10594_s28 = smov 57  }
  0x65   :  { %13183 = sst [smem:[#allocation79_spill]] %s10888_s24 }
  0x66   :  { %s10903_s3 = sld [smem:[%s13035_s0 + %s10591_s7]]   ;;  %s10595_s7 = smov 58  }
  0x67   :  { %s10908_s24 = sld [smem:[%s13035_s0 + %s10592_s15]]   ;;  %s10596_s15 = smov 59  }
  0x68   :  { %s10913_s9 = sld [smem:[%s13035_s0 + %s10593_s22]]   ;;  %s10597_s22 = smov 60  }
  0x69   :  { %s10923_s13 = sld [smem:[%s13035_s0 + %s10595_s7]]  }
  0x6a   :  { %13184 = sst [smem:[#allocation80_spill]] %s10898_s8 }
  0x6b   :  { %s10918_s8 = sld [smem:[%s13035_s0 + %s10594_s28]]   ;;  %s10598_s28 = smov 61  }
  0x6c   :  { %s10933_s5 = sld [smem:[%s13035_s0 + %s10597_s22]]  }
  0x6d   :  { %13185 = sst [smem:[#allocation81_spill]] %s10908_s24 }
  0x6e   :  { %s10928_s24 = sld [smem:[%s13035_s0 + %s10596_s15]]  }
  0x71   :  { %13186 = sst [smem:[#allocation82_spill]] %s10918_s8 }
  0x72   :  { %s10938_s8 = sld [smem:[%s13035_s0 + %s10598_s28]]  }
  0x73   :  { %129 = vsyncpa [#allocation3], 0 }
  0x74   :  { %130 = vsyncpa [#allocation6], 0 }
  0x75   :  { %131 = vsyncpa [#allocation9], 0 }
  0x76   :  { %132 = vsyncpa [#allocation12], 0 }
  0x77   :  { %133 = vsyncpa [#allocation15], 0 }
  0x78   :  { %134 = vsyncpa [#allocation18], 0 }
  0x79   :  { %135 = vsyncpa [#allocation21], 0 }
  0x7a   :  { %136 = vsyncpa [#allocation24], 0 }
  0x7b   :  { %137 = vsyncpa [#allocation4], 0 }
  0x7c   :  { %138 = vsyncpa [#allocation27], 0  ;;  %s10599_s7 = smov [#allocation5]   ;;  %s10600_s11 = smov [#allocation8]  }
  0x7d   :  { %s221_s10 = sshll.u32 %s10599_s7, 4  ;;  %s243_s15 = sshll.u32 %s10600_s11, 4  ;;  %s222_s10 = int_to_ptr.vmem [resolvable:$true] %s221_s10  ;;  %s244_s15 = int_to_ptr.vmem [resolvable:$true] %s243_s15 }
  0x7e   :  { %s10144_s0 = scalar_lea.hbm %s10803_s25, 16 }
  0x7f   :  { %p10145_p0 = scmp.ne.s32.totalorder %s10803_s25, %s10144_s0  ;;  %p10148_p1 = scmp.lt.u32.totalorder %s10144_s0, %s10803_s25 }
  0x81   :  { %p10150_p2 = pnand %p10148_p1, %p10145_p0 }
  0x83   :  { %10153 = shalt.err (!%p10150_p2)
}
  0x84   :  { %s10154_s16 = scalar_lea.vmem %s222_s10, 16  ;;  %s10158_s18 = scalar_lea.vmem %s222_s10, 32 }
  0x85   :  { %p10155_p3 = scmp.ne.s32.totalorder %s222_s10, %s10154_s16  ;;  %p10159_p4 = scmp.lt.s32.totalorder %s222_s10, %s222_s10 }
  0x86   :  { %p10160_p5 = scmp.lt.s32.totalorder %s10158_s18, %s10154_s16 }
  0x88   :  { %p10161_p6 = por %p10160_p5, %p10159_p4 }
  0x8a   :  { %p10162_p7 = pnand %p10161_p6, %p10155_p3 }
  0x8c   :  { %10165 = shalt.err (!%p10162_p7)
}
  0x8d   :  { %224 = dma.hbm_to_vmem [thread:$0]  %s10803_s25, 16, %s222_s10, [#allocation6]  }
  0x8e   :  { %s10166_s22 = scalar_lea.hbm %s10818_s4, 16 }
  0x8f   :  { %p10167_p8 = scmp.ne.s32.totalorder %s10818_s4, %s10166_s22  ;;  %p10170_p9 = scmp.lt.u32.totalorder %s10166_s22, %s10818_s4 }
  0x91   :  { %p10172_p10 = pnand %p10170_p9, %p10167_p8 }
  0x93   :  { %10175 = shalt.err (!%p10172_p10)
}
  0x94   :  { %s10176_s23 = scalar_lea.vmem %s244_s15, 16  ;;  %s10180_s26 = scalar_lea.vmem %s244_s15, 32 }
  0x95   :  { %p10177_p11 = scmp.ne.s32.totalorder %s244_s15, %s10176_s23  ;;  %p10181_p12 = scmp.lt.s32.totalorder %s244_s15, %s244_s15 }
  0x96   :  { %p10182_p13 = scmp.lt.s32.totalorder %s10180_s26, %s10176_s23 }
  0x98   :  { %p10183_p0 = por %p10182_p13, %p10181_p12 }
  0x9a   :  { %p10184_p1 = pnand %p10183_p0, %p10177_p11 }
  0x9c   :  { %10187 = shalt.err (!%p10184_p1)
}
  0x9d   :  { %246 = dma.hbm_to_vmem [thread:$0]  %s10818_s4, 16, %s244_s15, [#allocation9]  }
  0x9e   :  { %s10601_s28 = smov [#allocation11]   ;;  %s10602_s1 = smov [#allocation14]  }
  0x9f   :  { %s267_s25 = sshll.u32 %s10601_s28, 4  ;;  %s291_s2 = sshll.u32 %s10602_s1, 4  ;;  %s268_s25 = int_to_ptr.vmem [resolvable:$true] %s267_s25  ;;  %s292_s2 = int_to_ptr.vmem [resolvable:$true] %s291_s2 }
  0xa0   :  { %s10188_s7 = scalar_lea.hbm %s10838_s30, 16 }
  0xa1   :  { %p10189_p2 = scmp.ne.s32.totalorder %s10838_s30, %s10188_s7  ;;  %p10192_p3 = scmp.lt.u32.totalorder %s10188_s7, %s10838_s30 }
  0xa3   :  { %p10194_p4 = pnand %p10192_p3, %p10189_p2 }
  0xa5   :  { %10197 = shalt.err (!%p10194_p4)
}
  0xa6   :  { %s10198_s10 = scalar_lea.vmem %s268_s25, 16  ;;  %s10202_s11 = scalar_lea.vmem %s268_s25, 32 }
  0xa7   :  { %p10199_p5 = scmp.ne.s32.totalorder %s268_s25, %s10198_s10  ;;  %p10203_p6 = scmp.lt.s32.totalorder %s268_s25, %s268_s25 }
  0xa8   :  { %p10204_p7 = scmp.lt.s32.totalorder %s10202_s11, %s10198_s10 }
  0xaa   :  { %p10205_p8 = por %p10204_p7, %p10203_p6 }
  0xac   :  { %p10206_p9 = pnand %p10205_p8, %p10199_p5 }
  0xae   :  { %10209 = shalt.err (!%p10206_p9)
}
  0xaf   :  { %270 = dma.hbm_to_vmem [thread:$0]  %s10838_s30, 16, %s268_s25, [#allocation12]  }
  0xb0   :  { %s10210_s4 = scalar_lea.hbm %s10858_s14, 16 }
  0xb1   :  { %p10211_p10 = scmp.ne.s32.totalorder %s10858_s14, %s10210_s4  ;;  %p10214_p11 = scmp.lt.u32.totalorder %s10210_s4, %s10858_s14 }
  0xb3   :  { %p10216_p12 = pnand %p10214_p11, %p10211_p10 }
  0xb5   :  { %10219 = shalt.err (!%p10216_p12)
}
  0xb6   :  { %s10220_s15 = scalar_lea.vmem %s292_s2, 16  ;;  %s10224_s0 = scalar_lea.vmem %s292_s2, 32 }
  0xb7   :  { %p10221_p13 = scmp.ne.s32.totalorder %s292_s2, %s10220_s15  ;;  %p10225_p0 = scmp.lt.s32.totalorder %s292_s2, %s292_s2 }
  0xb8   :  { %p10226_p1 = scmp.lt.s32.totalorder %s10224_s0, %s10220_s15 }
  0xba   :  { %p10227_p2 = por %p10226_p1, %p10225_p0 }
  0xbc   :  { %p10228_p3 = pnand %p10227_p2, %p10221_p13 }
  0xbe   :  { %10231 = shalt.err (!%p10228_p3)
}
  0xbf   :  { %294 = dma.hbm_to_vmem [thread:$0]  %s10858_s14, 16, %s292_s2, [#allocation15]  }
  0xc0   :  { %s10603_s16 = smov [#allocation17]   ;;  %s10604_s18 = smov [#allocation20]  }
  0xc1   :  { %s317_s30 = sshll.u32 %s10603_s16, 4  ;;  %s341_s22 = sshll.u32 %s10604_s18, 4  ;;  %s318_s30 = int_to_ptr.vmem [resolvable:$true] %s317_s30  ;;  %s342_s22 = int_to_ptr.vmem [resolvable:$true] %s341_s22 }
  0xc2   :  { %s10232_s23 = scalar_lea.hbm %s10883_s20, 16 }
  0xc3   :  { %p10233_p4 = scmp.ne.s32.totalorder %s10883_s20, %s10232_s23  ;;  %p10236_p5 = scmp.lt.u32.totalorder %s10232_s23, %s10883_s20 }
  0xc5   :  { %p10238_p6 = pnand %p10236_p5, %p10233_p4 }
  0xc7   :  { %10241 = shalt.err (!%p10238_p6)
}
  0xc8   :  { %s10242_s26 = scalar_lea.vmem %s318_s30, 16  ;;  %s10246_s28 = scalar_lea.vmem %s318_s30, 32 }
  0xc9   :  { %p10243_p7 = scmp.ne.s32.totalorder %s318_s30, %s10242_s26  ;;  %p10247_p8 = scmp.lt.s32.totalorder %s318_s30, %s318_s30 }
  0xca   :  { %p10248_p9 = scmp.lt.s32.totalorder %s10246_s28, %s10242_s26 }
  0xcc   :  { %p10249_p10 = por %p10248_p9, %p10247_p8 }
  0xce   :  { %p10250_p11 = pnand %p10249_p10, %p10243_p7 }
  0xd0   :  { %10253 = shalt.err (!%p10250_p11)
}
  0xd1   :  { %320 = dma.hbm_to_vmem [thread:$0]  %s10883_s20, 16, %s318_s30, [#allocation18]  }
  0xd2   :  { %s10254_s14 = scalar_lea.hbm %s10903_s3, 16 }
  0xd3   :  { %p10255_p12 = scmp.ne.s32.totalorder %s10903_s3, %s10254_s14  ;;  %p10258_p13 = scmp.lt.u32.totalorder %s10254_s14, %s10903_s3 }
  0xd5   :  { %p10260_p0 = pnand %p10258_p13, %p10255_p12 }
  0xd7   :  { %10263 = shalt.err (!%p10260_p0)
}
  0xd8   :  { %s10264_s25 = scalar_lea.vmem %s342_s22, 16  ;;  %s10268_s1 = scalar_lea.vmem %s342_s22, 32 }
  0xd9   :  { %p10265_p1 = scmp.ne.s32.totalorder %s342_s22, %s10264_s25  ;;  %p10269_p2 = scmp.lt.s32.totalorder %s342_s22, %s342_s22 }
  0xda   :  { %p10270_p3 = scmp.lt.s32.totalorder %s10268_s1, %s10264_s25 }
  0xdc   :  { %p10271_p4 = por %p10270_p3, %p10269_p2 }
  0xde   :  { %p10272_p5 = pnand %p10271_p4, %p10265_p1 }
  0xe0   :  { %10275 = shalt.err (!%p10272_p5)
}
  0xe1   :  { %344 = dma.hbm_to_vmem [thread:$0]  %s10903_s3, 16, %s342_s22, [#allocation21]  }
  0xe2   :  { %s10605_s2 = smov [#allocation2]   ;;  %s10606_s7 = smov [#allocation7]  }
  0xe3   :  { %s209_s20 = sshll.u32 %s10605_s2, 4  ;;  %s233_s10 = sshll.u32 %s10606_s7, 4  ;;  %s210_s20 = int_to_ptr.vmem [resolvable:$true] %s209_s20  ;;  %s234_s10 = int_to_ptr.vmem [resolvable:$true] %s233_s10 }
  0xe4   :  { %s10276_s11 = scalar_lea.hbm %s10793_s27, 16 }
  0xe5   :  { %p10277_p6 = scmp.ne.s32.totalorder %s10793_s27, %s10276_s11  ;;  %p10280_p7 = scmp.lt.u32.totalorder %s10276_s11, %s10793_s27 }
  0xe7   :  { %p10282_p8 = pnand %p10280_p7, %p10277_p6 }
  0xe9   :  { %10285 = shalt.err (!%p10282_p8)
}
  0xea   :  { %s10286_s4 = scalar_lea.vmem %s210_s20, 16  ;;  %s10290_s15 = scalar_lea.vmem %s210_s20, 32 }
  0xeb   :  { %p10287_p9 = scmp.ne.s32.totalorder %s210_s20, %s10286_s4  ;;  %p10291_p10 = scmp.lt.s32.totalorder %s210_s20, %s210_s20 }
  0xec   :  { %p10292_p11 = scmp.lt.s32.totalorder %s10290_s15, %s10286_s4 }
  0xee   :  { %p10293_p12 = por %p10292_p11, %p10291_p10 }
  0xf0   :  { %p10294_p13 = pnand %p10293_p12, %p10287_p9 }
  0xf2   :  { %10297 = shalt.err (!%p10294_p13)
}
  0xf3   :  { %212 = dma.hbm_to_vmem [thread:$0]  %s10793_s27, 16, %s210_s20, [#allocation3]  }
  0xf4   :  { %s10298_s3 = scalar_lea.hbm %s10813_s12, 16 }
  0xf5   :  { %p10299_p0 = scmp.ne.s32.totalorder %s10813_s12, %s10298_s3  ;;  %p10302_p1 = scmp.lt.u32.totalorder %s10298_s3, %s10813_s12 }
  0xf7   :  { %p10304_p2 = pnand %p10302_p1, %p10299_p0 }
  0xf9   :  { %10307 = shalt.err (!%p10304_p2)
}
  0xfa   :  { %s10308_s0 = scalar_lea.vmem %s234_s10, 16  ;;  %s10312_s16 = scalar_lea.vmem %s234_s10, 32 }
  0xfb   :  { %p10309_p3 = scmp.ne.s32.totalorder %s234_s10, %s10308_s0  ;;  %p10313_p4 = scmp.lt.s32.totalorder %s234_s10, %s234_s10 }
  0xfc   :  { %p10314_p5 = scmp.lt.s32.totalorder %s10312_s16, %s10308_s0 }
  0xfe   :  { %p10315_p6 = por %p10314_p5, %p10313_p4 }
 0x100   :  { %p10316_p7 = pnand %p10315_p6, %p10309_p3 }
 0x102   :  { %10319 = shalt.err (!%p10316_p7)
}
 0x103   :  { %236 = dma.hbm_to_vmem [thread:$0]  %s10813_s12, 16, %s234_s10, [#allocation6]  }
 0x104   :  { %s10607_s30 = smov [#allocation10]   ;;  %s10608_s18 = smov [#allocation13]  }
 0x105   :  { %s255_s27 = sshll.u32 %s10607_s30, 4  ;;  %s279_s22 = sshll.u32 %s10608_s18, 4  ;;  %s256_s27 = int_to_ptr.vmem [resolvable:$true] %s255_s27  ;;  %s280_s22 = int_to_ptr.vmem [resolvable:$true] %s279_s22 }
 0x106   :  { %s10320_s23 = scalar_lea.hbm %s10828_s21, 16 }
 0x107   :  { %p10321_p8 = scmp.ne.s32.totalorder %s10828_s21, %s10320_s23  ;;  %p10324_p9 = scmp.lt.u32.totalorder %s10320_s23, %s10828_s21 }
 0x109   :  { %p10326_p10 = pnand %p10324_p9, %p10321_p8 }
 0x10b   :  { %10329 = shalt.err (!%p10326_p10)
}
 0x10c   :  { %s10330_s26 = scalar_lea.vmem %s256_s27, 16  ;;  %s10334_s28 = scalar_lea.vmem %s256_s27, 32 }
 0x10d   :  { %p10331_p11 = scmp.ne.s32.totalorder %s256_s27, %s10330_s26  ;;  %p10335_p12 = scmp.lt.s32.totalorder %s256_s27, %s256_s27 }
 0x10e   :  { %p10336_p13 = scmp.lt.s32.totalorder %s10334_s28, %s10330_s26 }
 0x110   :  { %p10337_p0 = por %p10336_p13, %p10335_p12 }
 0x112   :  { %p10338_p1 = pnand %p10337_p0, %p10331_p11 }
 0x114   :  { %10341 = shalt.err (!%p10338_p1)
}
 0x115   :  { %258 = dma.hbm_to_vmem [thread:$0]  %s10828_s21, 16, %s256_s27, [#allocation9]  }
 0x116   :  { %s10342_s12 = scalar_lea.hbm %s10848_s19, 16 }
 0x117   :  { %p10343_p2 = scmp.ne.s32.totalorder %s10848_s19, %s10342_s12  ;;  %p10346_p3 = scmp.lt.u32.totalorder %s10342_s12, %s10848_s19 }
 0x119   :  { %p10348_p4 = pnand %p10346_p3, %p10343_p2 }
 0x11b   :  { %10351 = shalt.err (!%p10348_p4)
}
 0x11c   :  { %s10352_s14 = scalar_lea.vmem %s280_s22, 16  ;;  %s10356_s25 = scalar_lea.vmem %s280_s22, 32 }
 0x11d   :  { %p10353_p5 = scmp.ne.s32.totalorder %s280_s22, %s10352_s14  ;;  %p10357_p6 = scmp.lt.s32.totalorder %s280_s22, %s280_s22 }
 0x11e   :  { %p10358_p7 = scmp.lt.s32.totalorder %s10356_s25, %s10352_s14 }
 0x120   :  { %p10359_p8 = por %p10358_p7, %p10357_p6 }
 0x122   :  { %p10360_p9 = pnand %p10359_p8, %p10353_p5 }
 0x124   :  { %10363 = shalt.err (!%p10360_p9)
}
 0x125   :  { %282 = dma.hbm_to_vmem [thread:$0]  %s10848_s19, 16, %s280_s22, [#allocation12]  }
 0x126   :  { %s10609_s1 = smov [#allocation16]   ;;  %s10610_s2 = smov [#allocation19]  }
 0x127   :  { %s305_s21 = sshll.u32 %s10609_s1, 4  ;;  %s329_s20 = sshll.u32 %s10610_s2, 4  ;;  %s306_s21 = int_to_ptr.vmem [resolvable:$true] %s305_s21  ;;  %s330_s20 = int_to_ptr.vmem [resolvable:$true] %s329_s20 }
 0x128   :  { %s10364_s7 = scalar_lea.hbm %s10873_s6, 16 }
 0x129   :  { %p10365_p10 = scmp.ne.s32.totalorder %s10873_s6, %s10364_s7  ;;  %p10368_p11 = scmp.lt.u32.totalorder %s10364_s7, %s10873_s6 }
 0x12b   :  { %p10370_p12 = pnand %p10368_p11, %p10365_p10 }
 0x12d   :  { %10373 = shalt.err (!%p10370_p12)
}
 0x12e   :  { %s10374_s10 = scalar_lea.vmem %s306_s21, 16  ;;  %s10378_s11 = scalar_lea.vmem %s306_s21, 32 }
 0x12f   :  { %p10375_p13 = scmp.ne.s32.totalorder %s306_s21, %s10374_s10  ;;  %p10379_p0 = scmp.lt.s32.totalorder %s306_s21, %s306_s21 }
 0x130   :  { %p10380_p1 = scmp.lt.s32.totalorder %s10378_s11, %s10374_s10 }
 0x132   :  { %p10381_p2 = por %p10380_p1, %p10379_p0 }
 0x134   :  { %p10382_p3 = pnand %p10381_p2, %p10375_p13 }
 0x136   :  { %10385 = shalt.err (!%p10382_p3)
}
 0x137   :  { %308 = dma.hbm_to_vmem [thread:$0]  %s10873_s6, 16, %s306_s21, [#allocation15]  }
 0x138   :  { %s10386_s19 = scalar_lea.hbm %s10893_s17, 16 }
 0x139   :  { %p10387_p4 = scmp.ne.s32.totalorder %s10893_s17, %s10386_s19  ;;  %p10390_p5 = scmp.lt.u32.totalorder %s10386_s19, %s10893_s17 }
 0x13b   :  { %p10392_p6 = pnand %p10390_p5, %p10387_p4 }
 0x13d   :  { %10395 = shalt.err (!%p10392_p6)
}
 0x13e   :  { %s10396_s4 = scalar_lea.vmem %s330_s20, 16  ;;  %s10400_s15 = scalar_lea.vmem %s330_s20, 32 }
 0x13f   :  { %p10397_p7 = scmp.ne.s32.totalorder %s330_s20, %s10396_s4  ;;  %p10401_p8 = scmp.lt.s32.totalorder %s330_s20, %s330_s20 }
 0x140   :  { %p10402_p9 = scmp.lt.s32.totalorder %s10400_s15, %s10396_s4 }
 0x142   :  { %p10403_p10 = por %p10402_p9, %p10401_p8 }
 0x144   :  { %p10404_p11 = pnand %p10403_p10, %p10397_p7 }
 0x146   :  { %10407 = shalt.err (!%p10404_p11)
}
 0x147   :  { %332 = dma.hbm_to_vmem [thread:$0]  %s10893_s17, 16, %s330_s20, [#allocation18]  }
 0x148   :  { %s10611_s3 = smov [#allocation22]   ;;  %s10612_s0 = smov [#allocation23]  }
 0x149   :  { %s353_s6 = sshll.u32 %s10611_s3, 4  ;;  %s365_s16 = sshll.u32 %s10612_s0, 4  ;;  %s354_s6 = int_to_ptr.vmem [resolvable:$true] %s353_s6  ;;  %s366_s16 = int_to_ptr.vmem [resolvable:$true] %s365_s16 }
 0x14a   :  { %s10408_s30 = scalar_lea.hbm %s10913_s9, 16 }
 0x14b   :  { %p10409_p12 = scmp.ne.s32.totalorder %s10913_s9, %s10408_s30  ;;  %p10412_p13 = scmp.lt.u32.totalorder %s10408_s30, %s10913_s9 }
 0x14d   :  { %p10414_p0 = pnand %p10412_p13, %p10409_p12 }
 0x14f   :  { %10417 = shalt.err (!%p10414_p0)
}
 0x150   :  { %s10418_s27 = scalar_lea.vmem %s354_s6, 16  ;;  %s10422_s18 = scalar_lea.vmem %s354_s6, 32 }
 0x151   :  { %p10419_p1 = scmp.ne.s32.totalorder %s354_s6, %s10418_s27  ;;  %p10423_p2 = scmp.lt.s32.totalorder %s354_s6, %s354_s6 }
 0x152   :  { %p10424_p3 = scmp.lt.s32.totalorder %s10422_s18, %s10418_s27 }
 0x154   :  { %p10425_p4 = por %p10424_p3, %p10423_p2 }
 0x156   :  { %p10426_p5 = pnand %p10425_p4, %p10419_p1 }
 0x158   :  { %10429 = shalt.err (!%p10426_p5)
}
 0x159   :  { %356 = dma.hbm_to_vmem [thread:$0]  %s10913_s9, 16, %s354_s6, [#allocation21]  }
 0x15a   :  { %s10430_s17 = scalar_lea.hbm %s10923_s13, 16 }
 0x15b   :  { %p10431_p6 = scmp.ne.s32.totalorder %s10923_s13, %s10430_s17  ;;  %p10434_p7 = scmp.lt.u32.totalorder %s10430_s17, %s10923_s13 }
 0x15d   :  { %p10436_p8 = pnand %p10434_p7, %p10431_p6 }
 0x15f   :  { %10439 = shalt.err (!%p10436_p8)
}
 0x160   :  { %s10440_s22 = scalar_lea.vmem %s366_s16, 16  ;;  %s10444_s23 = scalar_lea.vmem %s366_s16, 32 }
 0x161   :  { %p10441_p9 = scmp.ne.s32.totalorder %s366_s16, %s10440_s22  ;;  %p10445_p10 = scmp.lt.s32.totalorder %s366_s16, %s366_s16 }
 0x162   :  { %p10446_p11 = scmp.lt.s32.totalorder %s10444_s23, %s10440_s22 }
 0x164   :  { %p10447_p12 = por %p10446_p11, %p10445_p10 }
 0x166   :  { %p10448_p13 = pnand %p10447_p12, %p10441_p9 }
 0x168   :  { %10451 = shalt.err (!%p10448_p13)
}
 0x169   :  { %368 = dma.hbm_to_vmem [thread:$0]  %s10923_s13, 16, %s366_s16, [#allocation24]  }
 0x16a   :  { %10518 = dma.done.wait [#allocation3], 16  }
 0x16b   :  { %10519 = vsyncadd [#allocation3], 4294967280 }
 0x16c   :  { %10520 = dma.done.wait [#allocation6], 32  }
 0x16d   :  { %10521 = vsyncadd [#allocation6], 4294967264 }
 0x16e   :  { %10522 = dma.done.wait [#allocation9], 32  }
 0x16f   :  { %10523 = vsyncadd [#allocation9], 4294967264 }
 0x170   :  { %10524 = dma.done.wait [#allocation12], 32  }
 0x171   :  { %10525 = vsyncadd [#allocation12], 4294967264 }
 0x172   :  { %10526 = dma.done.wait [#allocation15], 32  }
 0x173   :  { %10527 = vsyncadd [#allocation15], 4294967264 }
 0x174   :  { %10528 = dma.done.wait [#allocation18], 32  }
 0x175   :  { %10529 = vsyncadd [#allocation18], 4294967264 }
 0x176   :  { %10530 = dma.done.wait [#allocation21], 32  }
 0x177   :  { %10531 = vsyncadd [#allocation21], 4294967264 }
 0x178   :  { %10532 = dma.done.wait [#allocation24], 16  }
 0x179   :  { %10533 = vsyncadd [#allocation24], 4294967280  ;;  %s13187_s9 = sld [smem:[#allocation39_spill]]  ;;  %s13188_s13 = sld [smem:[#allocation41_spill]]  ;;  %vm694_vm0 = vcmask 1042432   ;;  %vm687_vm1 = vcmask 89088  }
 0x17a   :  { %vm10613_vm2 = vmmov 1   ;;  %s13189_s26 = sld [smem:[#allocation40_spill]]  ;;  %v411_v0 = vld [vmem:[%s10663_s29] sm:$0xff]  ;;  %v412_v1 = vld [vmem:[%s10663_s29 + $0x8] sm:$0x7]  ;;  %vm773_vm4 = vcmask 130048  }
 0x17b   :  { %vm9077_vm3 = vmpackc.low %vm694_vm0, %vm10613_vm2  ;;  %v9076_v3 = vpack.c.bf16 %v412_v1, %v411_v0  ;;  %s13193_s29 = sld [smem:[#allocation45_spill]]  ;;  %s13200_s28 = sld [smem:[#allocation42_spill]]  ;;  %vm1529_vm5 = vcmask 1043456   ;;  %vm1436_vm6 = vcmask 261120   ;;  %vm1451_vm7 = vcmask 523264  }
 0x17c   :  { %s10614_s12 = smov 64   ;;  %s13201_s14 = sld [smem:[#allocation46_spill]]  ;;  %vm1486_vm8 = vcmask 556032   ;;  %vm2067_vm9 = vcmask 916480   ;;  %vm10618_vm10 = vmmov 0  }
 0x17d   :  { %9078 = vmatprep.subr.msk.bf16.mxu0 %vm9077_vm3, %v9076_v3  ;;  %s10615_s25 = smov 32   ;;  %s13216_s1 = sld [smem:[#allocation49_spill]] }
 0x17e   :  { %9081 = vmatpush3.bf16.msk.msra.mxu0 %vm9077_vm3, %v9076_v3  ;;  %s13229_s21 = sld [smem:[#allocation47_spill]]  ;;  %s13230_s2 = sld [smem:[#allocation48_spill]] }
 0x17f   :  { %v573_v2 = vld [vmem:[%s13187_s9] sm:$0xff]  ;;  %v574_v4 = vld [vmem:[%s13187_s9 + $0x8] sm:$0xff]  ;;  %v7614_v13 = vld [vmem:[%s13188_s13 + $0x10] sm:$0xff]   ;;  %s13244_s20 = sld [smem:[#allocation50_spill]]  ;;  %s13246_s7 = sld [smem:[#allocation51_spill]] }
 0x180   :  { %8165 = vmatprep.mubr.msk.f32.mxu0 %vm687_vm1, %v573_v2  ;;  %v7558_v5 = vld [vmem:[%s13188_s13] sm:$0xff]   ;;  %v576_v8 = vld [vmem:[%s13189_s26 + $0x8] sm:$0xff]  ;;  %v11021_v15 = vunpack.c.l.bf16 %v7614_v13  ;;  %v7615_v16 = vld [vmem:[%s13188_s13 + $0x18] sm:$0xff]   ;;  %v11028_v17 = vunpack.c.h.bf16 %v7614_v13  ;;  %s13247_s10 = sld [smem:[#allocation53_spill]]  ;;  %s13248_s11 = sld [smem:[#allocation52_spill]] }
 0x181   :  { %8166 = vmatmul.mubr.msk.f32.vlgmr.msra.gmra.mrb[0].mxu0 %vm687_vm1, %v574_v4  ;;  %v11001_v6 = vunpack.c.l.bf16 %v7558_v5  ;;  %v575_v7 = vld [vmem:[%s13189_s26] sm:$0xff]  ;;  %v7613_v10 = vld [vmem:[%s13188_s13 + $0x8] sm:$0xff]   ;;  %v11010_v11 = vunpack.c.h.bf16 %v7558_v5  ;;  %v11030_v18 = vunpack.c.l.bf16 %v7615_v16  ;;  %v11037_v20 = vunpack.c.h.bf16 %v7615_v16  ;;  %v7618_v25 = vld [vmem:[%s13188_s13 + $0x30] sm:$0xff]   ;;  %s13249_s19 = sld [smem:[#allocation54_spill]]  ;;  %s13250_s4 = sld [smem:[#allocation55_spill]] }
 0x182   :  { %v9082_v9 = vpack.c.bf16 %v576_v8, %v575_v7  ;;  %v11012_v12 = vunpack.c.l.bf16 %v7613_v10  ;;  %v11019_v14 = vunpack.c.h.bf16 %v7613_v10  ;;  %v7616_v19 = vld [vmem:[%s13188_s13 + $0x20] sm:$0xff]   ;;  %v7617_v22 = vld [vmem:[%s13188_s13 + $0x28] sm:$0xff]   ;;  %v11057_v27 = vunpack.c.l.bf16 %v7618_v25  ;;  %v7619_v28 = vld [vmem:[%s13188_s13 + $0x38] sm:$0xff]   ;;  %s13260_s15 = sld [smem:[#allocation58_spill]]  ;;  %s13264_s3 = sld [smem:[#allocation56_spill]] }
 0x183   :  { %8218 = vmatprep.mubr.msk.f32.mxu0 %vm773_vm4, %v11001_v6  ;;  %8172 = vmatprep.mubr.msk.f32.mxu1 %vm773_vm4, %v11001_v6  ;;  %v11039_v21 = vunpack.c.l.bf16 %v7616_v19  ;;  %v11046_v23 = vunpack.c.h.bf16 %v7616_v19  ;;  %v11048_v24 = vunpack.c.l.bf16 %v7617_v22  ;;  %v11055_v26 = vunpack.c.h.bf16 %v7617_v22  ;;  %v7620_v31 = vld [vmem:[%s13188_s13 + $0x40] sm:$0xff]   ;;  %v7621_v34 = vld [vmem:[%s13188_s13 + $0x48] sm:$0xff]   ;;  %v7622_v37 = vld [vmem:[%s13188_s13 + $0x50] sm:$0xff]   ;;  %s13265_s6 = sld [smem:[#allocation57_spill]]  ;;  %s13280_s0 = sld [smem:[#allocation59_spill]] }
 0x184   :  { %9083 = vmatprep.subr.bf16.mxu1 %v9082_v9  ;;  %v11064_v29 = vunpack.c.h.bf16 %v7618_v25  ;;  %v11066_v30 = vunpack.c.l.bf16 %v7619_v28  ;;  %v11073_v32 = vunpack.c.h.bf16 %v7619_v28  ;;  %v11075_v33 = vunpack.c.l.bf16 %v7620_v31  ;;  %v7623_v40 = vld [vmem:[%s13188_s13 + $0x58] sm:$0xff]   ;;  %v7624_v43 = vld [vmem:[%s13188_s13 + $0x60] sm:$0xff]   ;;  %v7625_v46 = vld [vmem:[%s13188_s13 + $0x68] sm:$0xff]   ;;  %s13281_s16 = sld [smem:[#allocation60_spill]]  ;;  %s13282_s30 = sld [smem:[#allocation62_spill]] }
 0x185   :  { %9085 = vmatpush3.bf16.msra.mxu1 %v9082_v9  ;;  %v11082_v35 = vunpack.c.h.bf16 %v7620_v31  ;;  %v11084_v36 = vunpack.c.l.bf16 %v7621_v34  ;;  %v11091_v38 = vunpack.c.h.bf16 %v7621_v34  ;;  %v11093_v39 = vunpack.c.l.bf16 %v7622_v37  ;;  %v7205_v50 = vld [vmem:[%s13193_s29] ss:$0 sm:$0xff]  ;;  %v635_v57 = vld [vmem:[%s13200_s28 + $0x10] sm:$0xff]  ;;  %v634_v58 = vld [vmem:[%s13200_s28 + $0x8] sm:$0xff]  ;;  %s13283_s27 = sld [smem:[#allocation61_spill]]  ;;  %s13284_s18 = sld [smem:[#allocation63_spill]] }
 0x186   :  { %v11100_v41 = vunpack.c.h.bf16 %v7622_v37  ;;  %v11102_v42 = vunpack.c.l.bf16 %v7623_v40  ;;  %v11109_v44 = vunpack.c.h.bf16 %v7623_v40  ;;  %v11111_v45 = vunpack.c.l.bf16 %v7624_v43  ;;  %v633_v56 = vld [vmem:[%s13200_s28] sm:$0xff]  ;;  %1398 = vrot.lane.b32.xlu0 %v635_v57, %s10614_s12  ;;  %v636_v60 = vld [vmem:[%s13200_s28 + $0x18] sm:$0xff]  ;;  %v639_v61 = vld [vmem:[%s13200_s28 + $0x30] sm:$0xff]  ;;  %s13285_s17 = sld [smem:[#allocation64_spill]]  ;;  %s13293_s22 = sld [smem:[#allocation67_spill]] }
 0x187   :  { %13190 = vst [vmem:[#allocation83_spill] sm:$0xff] %v11091_v38  ;;  %13191 = vst [vmem:[#allocation84_spill] sm:$0xff] %v11093_v39  ;;  %v11118_v47 = vunpack.c.h.bf16 %v7624_v43  ;;  %v11120_v48 = vunpack.c.l.bf16 %v7625_v46  ;;  %v11126_v49 = vunpack.c.h.bf16 %v7625_v46  ;;  %1394 = vrot.lane.b32.xlu1 %v633_v56, %s10614_s12  ;;  %v637_v59 = vld [vmem:[%s13200_s28 + $0x20] sm:$0xff]  ;;  %v638_v62 = vld [vmem:[%s13200_s28 + $0x28] sm:$0xff]  ;;  %s13297_s23 = sld [smem:[#allocation65_spill]]  ;;  %s13298_s9 = sld [smem:[#allocation66_spill]] }
 0x188   :  { %8173 = vmatmul.mubr.msk.f32.vlgmr.msra.gmra.mrb[0].mxu1 %vm773_vm4, %v11010_v11  ;;  %13192 = vst [vmem:[#allocation85_spill] sm:$0xff] %v11100_v41  ;;  %13194 = vst [vmem:[#allocation86_spill] sm:$0xff] %v11102_v42  ;;  %v641_v63 = vld [vmem:[%s13200_s28 + $0x40] sm:$0xff]  ;;  %v640_v0 = vld [vmem:[%s13200_s28 + $0x38] sm:$0xff]  ;;  %s13313_s13 = sld [smem:[#allocation68_spill]]  ;;  %s13314_s29 = sld [smem:[#allocation69_spill]] }
 0x189   :  { %8175 = vmatprep.mubr.msk.f32.mxu1 %vm773_vm4, %v11012_v12  ;;  %13195 = vst [vmem:[#allocation87_spill] sm:$0xff] %v11109_v44  ;;  %13196 = vst [vmem:[#allocation88_spill] sm:$0xff] %v11111_v45  ;;  %v643_v1 = vld [vmem:[%s13200_s28 + $0x50] sm:$0xff]  ;;  %v642_v2 = vld [vmem:[%s13200_s28 + $0x48] sm:$0xff] }
 0x18a   :  { %13197 = vst [vmem:[#allocation89_spill] sm:$0xff] %v11118_v47  ;;  %13198 = vst [vmem:[#allocation90_spill] sm:$0xff] %v11120_v48  ;;  %1402 = vrot.lane.b32.xlu0 %v637_v59, %s10614_s12  ;;  %v644_v3 = vld [vmem:[%s13200_s28 + $0x58] sm:$0xff]  ;;  %v414_v4 = vld [vmem:[%s13201_s14] sm:$0xff] }
 0x18b   :  { %13199 = vst [vmem:[#allocation91_spill] sm:$0xff] %v11126_v49  ;;  %1396 = vrot.lane.b32.xlu1 %v634_v58, %s10614_s12  ;;  %v415_v5 = vld [vmem:[%s13201_s14 + $0x8] sm:$0xff]  ;;  %v416_v7 = vld [vmem:[%s13201_s14 + $0x10] sm:$0xff]  ;;  %v417_v9 = vld [vmem:[%s13201_s14 + $0x18] sm:$0xff] }
 0x18c   :  { %8176 = vmatmul.mubr.msk.f32.gmra.mrb[2].mxu1 %vm773_vm4, %v11019_v14  ;;  %v9090_v8 = vpack.c.bf16 %v415_v5, %v414_v4  ;;  %v9094_v10 = vpack.c.bf16 %v417_v9, %v416_v7  ;;  %v418_v13 = vld [vmem:[%s13201_s14 + $0x20] sm:$0xff]  ;;  %v419_v16 = vld [vmem:[%s13201_s14 + $0x28] sm:$0xff]  ;;  %v420_v46 = vld [vmem:[%s13201_s14 + $0x30] sm:$0xff] }
 0x18d   :  { %8178 = vmatprep.mubr.msk.f32.mxu1 %vm773_vm4, %v11021_v15  ;;  %v9098_v19 = vpack.c.bf16 %v419_v16, %v418_v13  ;;  %v422_v57 = vld [vmem:[%s13201_s14 + $0x40] sm:$0xf] }
 0x18e   :  { %1406 = vrot.lane.b32.xlu0 %v639_v61, %s10614_s12  ;;  %9091 = vmatprep.subr.bf16.mxu1 %v9090_v8 }
 0x18f   :  { %1400 = vrot.lane.b32.xlu1 %v636_v60, %s10614_s12  ;;  %9093 = vmatpush3.bf16.msra.mxu1 %v9090_v8 }
 0x190   :  { %8179 = vmatmul.mubr.msk.f32.gmra.mrb[4].mxu1 %vm773_vm4, %v11028_v17  ;;  %9095 = vmatprep.subr.bf16.mxu1 %v9094_v10 }
 0x191   :  { %8181 = vmatprep.mubr.msk.f32.mxu1 %vm773_vm4, %v11030_v18 }
 0x192   :  { %1410 = vrot.lane.b32.xlu0 %v641_v63, %s10614_s12 }
 0x193   :  { %1404 = vrot.lane.b32.xlu1 %v638_v62, %s10614_s12  ;;  %9097 = vmatpush3.bf16.msra.mxu1 %v9094_v10 }
 0x194   :  { %8182 = vmatmul.mubr.msk.f32.gmra.mrb[6].mxu1 %vm773_vm4, %v11037_v20  ;;  %9099 = vmatprep.subr.bf16.mxu1 %v9098_v19 }
 0x195   :  { %8184 = vmatprep.mubr.msk.f32.mxu1 %vm773_vm4, %v11039_v21 }
 0x196   :  { %1414 = vrot.lane.b32.xlu0 %v643_v1, %s10614_s12 }
 0x197   :  { %1408 = vrot.lane.b32.xlu1 %v640_v0, %s10614_s12  ;;  %9101 = vmatpush3.bf16.msra.mxu1 %v9098_v19 }
 0x198   :  { %8185 = vmatmul.mubr.msk.f32.gmra.mrb[8].mxu1 %vm773_vm4, %v11046_v23 }
 0x199   :  { %8187 = vmatprep.mubr.msk.f32.mxu1 %vm773_vm4, %v11048_v24 }
 0x19b   :  { %1412 = vrot.lane.b32.xlu1 %v642_v2, %s10614_s12 }
 0x19c   :  { %8188 = vmatmul.mubr.msk.f32.gmra.mrb[10].mxu1 %vm773_vm4, %v11055_v26 }
 0x19d   :  { %8190 = vmatprep.mubr.msk.f32.mxu1 %vm773_vm4, %v11057_v27 }
 0x19f   :  { %1416 = vrot.lane.b32.xlu1 %v644_v3, %s10614_s12 }
 0x1a0   :  { %8191 = vmatmul.mubr.msk.f32.gmra.mrb[12].mxu1 %vm773_vm4, %v11064_v29 }
 0x1a1   :  { %8193 = vmatprep.mubr.msk.f32.mxu1 %vm773_vm4, %v11066_v30 }
 0x1a4   :  { %8194 = vmatmul.mubr.msk.f32.gmra.mrb[14].mxu1 %vm773_vm4, %v11073_v32 }
 0x1a5   :  { %8196 = vmatprep.mubr.msk.f32.mxu1 %vm773_vm4, %v11075_v33 }
 0x1a8   :  { %8197 = vmatmul.mubr.msk.f32.gmra.mrb[16].mxu1 %vm773_vm4, %v11082_v35 }
 0x1a9   :  { %8199 = vmatprep.mubr.msk.f32.mxu1 %vm773_vm4, %v11084_v36 }
 0x1ac   :  { %8200 = vmatmul.mubr.msk.f32.gmra.mrb[18].mxu1 %vm773_vm4, %v11091_v38 }
 0x1ad   :  { %8202 = vmatprep.mubr.msk.f32.mxu1 %vm773_vm4, %v11093_v39 }
 0x1b0   :  { %8203 = vmatmul.mubr.msk.f32.gmra.mrb[20].mxu1 %vm773_vm4, %v11100_v41 }
 0x1b1   :  { %8205 = vmatprep.mubr.msk.f32.mxu1 %vm773_vm4, %v11102_v42 }
 0x1b4   :  { %8206 = vmatmul.mubr.msk.f32.gmra.mrb[22].mxu1 %vm773_vm4, %v11109_v44 }
 0x1b5   :  { %8208 = vmatprep.mubr.msk.f32.mxu1 %vm773_vm4, %v11111_v45 }
 0x1b8   :  { %8209 = vmatmul.mubr.msk.f32.gmra.mrb[24].mxu1 %vm773_vm4, %v11118_v47 }
 0x1b9   :  { %8211 = vmatprep.mubr.msk.f32.mxu1 %vm773_vm4, %v11120_v48 }
 0x1bc   :  { %8212 = vmatmul.mubr.msk.f32.gmra.mrb[26].mxu1 %vm773_vm4, %v11126_v49 }
 0x254   :  { %v8167_v51 = vpop.f32.mrb[0].mxu0 }
 0x255   :  { %v11131_v52 = vadd.f32 %v8167_v51, %v7205_v50  ;;  %v764_v53 = vpop.f32.mrb[1].mxu0 }
 0x256   :  { %v11133_v54 = vadd.f32 %v7205_v50, %v764_v53  ;;  %v421_v50 = vld [vmem:[%s13201_s14 + $0x38] sm:$0xff]  ;;  %s13326_s14 = sld [smem:[#allocation72_spill]] }
 0x257   :  { %v9102_v51 = vpack.c.bf16 %v421_v50, %v420_v46 }
 0x258   :  { %v9086_v55 = vpack.c.bf16 %v11131_v52, %v11133_v54 }
 0x259   :  { %9103 = vmatprep.subr.bf16.mxu1 %v9102_v51 }
 0x25a   :  { %9087 = vmatprep.subr.bf16.mxu0 %v9086_v55  ;;  %9105 = vmatpush3.bf16.msra.mxu1 %v9102_v51 }
 0x25b   :  { %9089 = vmatpush3.bf16.msra.mxu0 %v9086_v55  ;;  %8276 = vmatprep.subr.msk.mxu1 %vm1529_vm5, %v422_v57  ;;  %v8174_v3 = vpop.f32.mrb[0].mxu1 }
 0x25c   :  { %v924_v5 = vpop.f32.mrb[1].mxu1 }
 0x25e   :  { %8219 = vmatmul.mubr.msk.f32.vlgmr.msra.gmra.mrb[2].mxu0 %vm773_vm4, %v11010_v11  ;;  %8277 = vmatpush3.msk.msra.mxu1 %vm1529_vm5, %v422_v57 }
 0x25f   :  { %8221 = vmatprep.mubr.msk.f32.mxu0 %vm773_vm4, %v11012_v12  ;;  %v8177_v8 = vpop.f32.mrb[2].mxu1 }
 0x260   :  { %v934_v9 = vpop.f32.mrb[3].mxu1 }
 0x262   :  { %8222 = vmatmul.mubr.msk.f32.gmra.mrb[4].mxu0 %vm773_vm4, %v11019_v14 }
 0x263   :  { %8224 = vmatprep.mubr.msk.f32.mxu0 %vm773_vm4, %v11021_v15  ;;  %v8180_v10 = vpop.f32.mrb[4].mxu1 }
 0x264   :  { %v944_v16 = vpop.f32.mrb[5].mxu1 }
 0x266   :  { %8225 = vmatmul.mubr.msk.f32.gmra.mrb[6].mxu0 %vm773_vm4, %v11028_v17 }
 0x267   :  { %8227 = vmatprep.mubr.msk.f32.mxu0 %vm773_vm4, %v11030_v18  ;;  %v8183_v46 = vpop.f32.mrb[6].mxu1 }
 0x268   :  { %v954_v50 = vpop.f32.mrb[7].mxu1 }
 0x26a   :  { %8228 = vmatmul.mubr.msk.f32.gmra.mrb[8].mxu0 %vm773_vm4, %v11037_v20 }
 0x26b   :  { %8230 = vmatprep.mubr.msk.f32.mxu0 %vm773_vm4, %v11039_v21  ;;  %v8186_v51 = vpop.f32.mrb[8].mxu1 }
 0x26e   :  { %8231 = vmatmul.mubr.msk.f32.gmra.mrb[10].mxu0 %vm773_vm4, %v11046_v23 }
 0x26f   :  { %8233 = vmatprep.mubr.msk.f32.mxu0 %vm773_vm4, %v11048_v24 }
 0x272   :  { %8234 = vmatmul.mubr.msk.f32.gmra.mrb[12].mxu0 %vm773_vm4, %v11055_v26 }
 0x273   :  { %8236 = vmatprep.mubr.msk.f32.mxu0 %vm773_vm4, %v11057_v27 }
 0x276   :  { %8237 = vmatmul.mubr.msk.f32.gmra.mrb[14].mxu0 %vm773_vm4, %v11064_v29 }
 0x277   :  { %8239 = vmatprep.mubr.msk.f32.mxu0 %vm773_vm4, %v11066_v30 }
 0x27a   :  { %8240 = vmatmul.mubr.msk.f32.gmra.mrb[16].mxu0 %vm773_vm4, %v11073_v32 }
 0x27b   :  { %8242 = vmatprep.mubr.msk.f32.mxu0 %vm773_vm4, %v11075_v33 }
 0x27e   :  { %8243 = vmatmul.mubr.msk.f32.gmra.mrb[18].mxu0 %vm773_vm4, %v11082_v35 }
 0x27f   :  { %8245 = vmatprep.mubr.msk.f32.mxu0 %vm773_vm4, %v11084_v36 }
 0x282   :  { %8246 = vmatmul.mubr.msk.f32.gmra.mrb[20].mxu0 %vm773_vm4, %v11091_v38 }
 0x283   :  { %8248 = vmatprep.mubr.msk.f32.mxu0 %vm773_vm4, %v11093_v39 }
 0x286   :  { %8249 = vmatmul.mubr.msk.f32.gmra.mrb[22].mxu0 %vm773_vm4, %v11100_v41 }
 0x287   :  { %8251 = vmatprep.mubr.msk.f32.mxu0 %vm773_vm4, %v11102_v42 }
 0x28a   :  { %8252 = vmatmul.mubr.msk.f32.gmra.mrb[24].mxu0 %vm773_vm4, %v11109_v44 }
 0x28b   :  { %8254 = vmatprep.mubr.msk.f32.mxu0 %vm773_vm4, %v11111_v45 }
 0x28e   :  { %8255 = vmatmul.mubr.msk.f32.gmra.mrb[26].mxu0 %vm773_vm4, %v11118_v47 }
 0x28f   :  { %8257 = vmatprep.mubr.msk.f32.mxu0 %vm773_vm4, %v11120_v48 }
 0x292   :  { %8258 = vmatmul.mubr.msk.f32.gmra.mrb[28].mxu0 %vm773_vm4, %v11126_v49  ;;  %v646_v49 = vld [vmem:[%s13200_s28 + $0x68] sm:$0xff] }
 0x331   :  { %v11221_v22 = vpop.f32.mrb[2].mxu0 }
 0x332   :  { %v11223_v25 = vpop.f32.mrb[3].mxu0 }
 0x335   :  { %v11225_v28 = vpop.f32.mrb[4].mxu0 }
 0x336   :  { %v11227_v31 = vpop.f32.mrb[5].mxu0 }
 0x339   :  { %v11229_v34 = vpop.f32.mrb[6].mxu0 }
 0x33a   :  { %v11231_v37 = vpop.f32.mrb[7].mxu0 }
 0x33d   :  { %v11233_v40 = vpop.f32.mrb[8].mxu0 }
 0x33e   :  { %v11235_v43 = vpop.f32.mrb[9].mxu0 }
 0x341   :  { %v11239_v53 = vpop.f32.mrb[10].mxu0 }
 0x342   :  { %v11241_v55 = vpop.f32.mrb[11].mxu0 }
 0x345   :  { %v11243_v56 = vpop.f32.mrb[12].mxu0 }
 0x346   :  { %v11246_v58 = vpop.f32.mrb[13].mxu0 }
 0x349   :  { %v11250_v59 = vpop.f32.mrb[14].mxu0 }
 0x34a   :  { %v11252_v60 = vpop.f32.mrb[15].mxu0 }
 0x34d   :  { %v8241_v61 = vpop.f32.mrb[16].mxu0 }
 0x34e   :  { %1340 = vrot.lane.b32.xlu0 %v8241_v61, %s10615_s25  ;;  %v1255_v62 = vpop.f32.mrb[17].mxu0  ;;  %v964_v61 = vpop.f32.mrb[9].mxu1 }
 0x351   :  { %v8244_v63 = vpop.f32.mrb[18].mxu0 }
 0x352   :  { %1338 = vrot.lane.b32.xlu0 %v1255_v62, %s10615_s25  ;;  %1344 = vrot.lane.b32.xlu1 %v8244_v63, %s10615_s25  ;;  %v1265_v0 = vpop.f32.mrb[19].mxu0  ;;  %v8189_v63 = vpop.f32.mrb[10].mxu1 }
 0x355   :  { %v8247_v1 = vpop.f32.mrb[20].mxu0 }
 0x356   :  { %1342 = vrot.lane.b32.xlu0 %v1265_v0, %s10615_s25  ;;  %1348 = vrot.lane.b32.xlu1 %v8247_v1, %s10615_s25  ;;  %v1275_v2 = vpop.f32.mrb[21].mxu0  ;;  %v974_v0 = vpop.f32.mrb[11].mxu1 }
 0x357   :  { %v8192_v1 = vpop.f32.mrb[12].mxu1 }
 0x359   :  { %v8250_v4 = vpop.f32.mrb[22].mxu0 }
 0x35a   :  { %1346 = vrot.lane.b32.xlu0 %v1275_v2, %s10615_s25  ;;  %1352 = vrot.lane.b32.xlu1 %v8250_v4, %s10615_s25  ;;  %v1285_v7 = vpop.f32.mrb[23].mxu0  ;;  %v984_v4 = vpop.f32.mrb[13].mxu1 }
 0x35d   :  { %v8253_v13 = vpop.f32.mrb[24].mxu0 }
 0x35e   :  { %1350 = vrot.lane.b32.xlu0 %v1285_v7, %s10615_s25  ;;  %1356 = vrot.lane.b32.xlu1 %v8253_v13, %s10615_s25  ;;  %v1295_v19 = vpop.f32.mrb[25].mxu0  ;;  %v8195_v13 = vpop.f32.mrb[14].mxu1 }
 0x35f   :  { %v11268_v48 = vsub.f32 %v8174_v3, %v8195_v13  ;;  %v994_v47 = vpop.f32.mrb[15].mxu1 }
 0x361   :  { %v8256_v57 = vpop.f32.mrb[26].mxu0  ;;  %13202 = vst [vmem:[#allocation92_spill] sm:$0xff] %v11268_v48 }
 0x362   :  { %1354 = vrot.lane.b32.xlu0 %v1295_v19, %s10615_s25  ;;  %1360 = vrot.lane.b32.xlu1 %v8256_v57, %s10615_s25  ;;  %v1305_v62 = vpop.f32.mrb[27].mxu0  ;;  %v11270_v19 = vsub.f32 %v924_v5, %v994_v47  ;;  %v8198_v57 = vpop.f32.mrb[16].mxu1 }
 0x363   :  { %v11272_v45 = vsub.f32 %v8177_v8, %v8198_v57  ;;  %v1004_v44 = vpop.f32.mrb[17].mxu1 }
 0x364   :  { %13203 = vst [vmem:[#allocation93_spill] sm:$0xff] %v11270_v19  ;;  %v11276_v42 = vsub.f32 %v934_v9, %v1004_v44 }
 0x365   :  { %v8259_v2 = vpop.f32.mrb[28].mxu0  ;;  %13204 = vst [vmem:[#allocation94_spill] sm:$0xff] %v11272_v45 }
 0x366   :  { %1358 = vrot.lane.b32.xlu0 %v1305_v62, %s10615_s25  ;;  %1364 = vrot.lane.b32.xlu1 %v8259_v2, %s10615_s25  ;;  %v1315_v7 = vpop.f32.mrb[29].mxu0  ;;  %13205 = vst [vmem:[#allocation95_spill] sm:$0xff] %v11276_v42  ;;  %v8201_v62 = vpop.f32.mrb[18].mxu1  ;;  %v645_v2 = vld [vmem:[%s13200_s28 + $0x60] sm:$0xff]  ;;  %s13315_s28 = sld [smem:[#allocation70_spill]] }
 0x367   :  { %v11279_v41 = vsub.f32 %v8180_v10, %v8201_v62  ;;  %v1014_v39 = vpop.f32.mrb[19].mxu1 }
 0x368   :  { %v11281_v3 = vsub.f32 %v944_v16, %v1014_v39  ;;  %v8204_v13 = vpop.f32.mrb[20].mxu1 }
 0x369   :  { %13206 = vst [vmem:[#allocation96_spill] sm:$0xff] %v11279_v41  ;;  %v11283_v47 = vsub.f32 %v8183_v46, %v8204_v13  ;;  %v1024_v5 = vpop.f32.mrb[21].mxu1 }
 0x36a   :  { %1420 = vrot.lane.b32.xlu1 %v646_v49, %s10614_s12  ;;  %1362 = vrot.lane.b32.xlu0 %v1315_v7, %s10615_s25  ;;  %13207 = vst [vmem:[#allocation97_spill] sm:$0xff] %v11281_v3  ;;  %v11286_v8 = vsub.f32 %v954_v50, %v1024_v5  ;;  %v8207_v49 = vpop.f32.mrb[22].mxu1  ;;  %v1077_v50 = vmul.f32 %v11270_v19, %v11270_v19 }
 0x36b   :  { %13208 = vst [vmem:[#allocation98_spill] sm:$0xff] %v11283_v47  ;;  %v11288_v57 = vsub.f32 %v8186_v51, %v8207_v49  ;;  %v1034_v44 = vpop.f32.mrb[23].mxu1  ;;  %v1078_v51 = vmul.f32 %v11268_v48, %v11268_v48  ;;  %v1084_v5 = vmul.f32 %v11283_v47, %v11283_v47  ;;  %v11318_v49 = vpop.permute.xlu1 %1394 }
 0x36c   :  { %13209 = vst [vmem:[#allocation99_spill] sm:$0xff] %v11286_v8  ;;  %v11290_v9 = vsub.f32 %v964_v61, %v1034_v44  ;;  %v8210_v7 = vpop.f32.mrb[24].mxu1  ;;  %v1079_v61 = vmul.f32 %v11276_v42, %v11276_v42 }
 0x36d   :  { %13210 = vst [vmem:[#allocation100_spill] sm:$0xff] %v11288_v57  ;;  %v11292_v10 = vsub.f32 %v8189_v63, %v8210_v7  ;;  %v1044_v62 = vpop.f32.mrb[25].mxu1  ;;  %v1081_v63 = vmul.f32 %v11281_v3, %v11281_v3  ;;  %v1086_v7 = vmul.f32 %v11288_v57, %v11288_v57 }
 0x36e   :  { %1418 = vrot.lane.b32.xlu0 %v645_v2, %s10614_s12  ;;  %13211 = vst [vmem:[#allocation101_spill] sm:$0xff] %v11290_v9  ;;  %v11294_v39 = vsub.f32 %v974_v0, %v1044_v62  ;;  %v8213_v16 = vpop.f32.mrb[26].mxu1  ;;  %v1080_v0 = vmul.f32 %v11272_v45, %v11272_v45  ;;  %v1085_v2 = vmul.f32 %v11290_v9, %v11290_v9  ;;  %s13316_s12 = sld [smem:[#allocation71_spill]] }
 0x36f   :  { %13212 = vst [vmem:[#allocation102_spill] sm:$0xff] %v11292_v10  ;;  %v11296_v46 = vsub.f32 %v8192_v1, %v8213_v16  ;;  %v1054_v13 = vpop.f32.mrb[27].mxu1  ;;  %v1083_v1 = vmul.f32 %v11286_v8, %v11286_v8  ;;  %v11326_v16 = vpop.permute.xlu1 %1396 }
 0x370   :  { %13213 = vst [vmem:[#allocation103_spill] sm:$0xff] %v11294_v39  ;;  %v11298_v38 = vsub.f32 %v984_v4, %v1054_v13  ;;  %v1082_v4 = vmul.f32 %v11279_v41, %v11279_v41  ;;  %v1087_v44 = vmul.f32 %v11294_v39, %v11294_v39  ;;  %v1088_v13 = vmul.f32 %v11292_v10, %v11292_v10 }
 0x371   :  { %13214 = vst [vmem:[#allocation104_spill] sm:$0xff] %v11296_v46 }
 0x372   :  { %13215 = vst [vmem:[#allocation105_spill] sm:$0xff] %v11298_v38  ;;  %v1089_v62 = vmul.f32 %v11298_v38, %v11298_v38 }
 0x38d   :  { %1091 = vadd.xlane.f32.xlu0 %v1077_v50  ;;  %v11330_v50 = vpop.permute.xlu0 %1398 }
 0x38e   :  { %1093 = vadd.xlane.f32.xlu1 %v1078_v51  ;;  %13217 = vst [vmem:[#allocation106_spill] sm:$0xff] %v11330_v50  ;;  %v1090_v51 = vmul.f32 %v11296_v46, %v11296_v46 }
 0x391   :  { %1095 = vadd.xlane.f32.xlu0 %v1079_v61  ;;  %v11334_v61 = vpop.permute.xlu1 %1400 }
 0x392   :  { %1099 = vadd.xlane.f32.xlu1 %v1081_v63  ;;  %13218 = vst [vmem:[#allocation107_spill] sm:$0xff] %v11334_v61  ;;  %v11336_v63 = vpop.permute.xlu0 %1402 }
 0x393   :  { %13219 = vst [vmem:[#allocation108_spill] sm:$0xff] %v11336_v63 }
 0x395   :  { %1097 = vadd.xlane.f32.xlu0 %v1080_v0  ;;  %v11338_v0 = vpop.permute.xlu1 %1404 }
 0x396   :  { %1103 = vadd.xlane.f32.xlu1 %v1083_v1  ;;  %13220 = vst [vmem:[#allocation109_spill] sm:$0xff] %v11338_v0  ;;  %v11340_v1 = vpop.permute.xlu0 %1406 }
 0x397   :  { %13221 = vst [vmem:[#allocation110_spill] sm:$0xff] %v11340_v1 }
 0x399   :  { %1101 = vadd.xlane.f32.xlu0 %v1082_v4  ;;  %v11342_v4 = vpop.permute.xlu1 %1408 }
 0x39a   :  { %1107 = vadd.xlane.f32.xlu1 %v1085_v2  ;;  %13222 = vst [vmem:[#allocation111_spill] sm:$0xff] %v11342_v4  ;;  %v11344_v2 = vpop.permute.xlu0 %1410 }
 0x39b   :  { %13223 = vst [vmem:[#allocation112_spill] sm:$0xff] %v11344_v2 }
 0x39d   :  { %1105 = vadd.xlane.f32.xlu0 %v1084_v5  ;;  %v425_v5 = vld [vmem:[%s13216_s1] sm:$0xff] }
 0x39e   :  { %1111 = vadd.xlane.f32.xlu1 %v1087_v44  ;;  %v426_v44 = vld [vmem:[%s13216_s1 + $0x8] sm:$0xff] }
 0x3a1   :  { %1109 = vadd.xlane.f32.xlu0 %v1086_v7  ;;  %v9106_v7 = vpack.c.bf16 %v426_v44, %v425_v5 }
 0x3a2   :  { %1115 = vadd.xlane.f32.xlu1 %v1089_v62  ;;  %v11348_v62 = vpop.permute.xlu1 %1412 }
 0x3a3   :  { %13224 = vst [vmem:[#allocation113_spill] sm:$0xff] %v11348_v62  ;;  %9107 = vmatprep.subr.bf16.mxu0 %v9106_v7 }
 0x3a4   :  { %9109 = vmatpush3.bf16.msra.mxu0 %v9106_v7 }
 0x3a5   :  { %1113 = vadd.xlane.f32.xlu0 %v1088_v13  ;;  %v11350_v13 = vpop.permute.xlu0 %1414 }
 0x3a6   :  { %13225 = vst [vmem:[#allocation114_spill] sm:$0xff] %v11350_v13  ;;  %v11352_v38 = vpop.permute.xlu1 %1416 }
 0x3a7   :  { %13226 = vst [vmem:[#allocation115_spill] sm:$0xff] %v11352_v38 }
 0x3a9   :  { %1117 = vadd.xlane.f32.xlu0 %v1090_v51 }
 0x3c0   :  { %v1341_v51 = vpop.permute.xlu0 %1340 }
 0x3c1   :  { %v1438_v46 = vsel %vm1436_vm6, %v11221_v22, %v1341_v51 }
 0x3c2   :  { %v1453_v7 = vsel %vm1451_vm7, %v1438_v46, %v11326_v16 }
 0x3c4   :  { %v1339_v10 = vpop.permute.xlu0 %1338  ;;  %v1345_v39 = vpop.permute.xlu1 %1344 }
 0x3c5   :  { %v1437_v5 = vsel %vm1436_vm6, %v11223_v25, %v1339_v10  ;;  %v1440_v57 = vsel %vm1436_vm6, %v11225_v28, %v1345_v39 }
 0x3c6   :  { %v1452_v44 = vsel %vm1451_vm7, %v1437_v5, %v11318_v49  ;;  %v1455_v10 = vsel %vm1451_vm7, %v1440_v57, %v11334_v61 }
 0x3c7   :  { %8278 = vmatprep.mubr.msk.f32.mxu1 %vm1486_vm8, %v1452_v44 }
 0x3c8   :  { %8279 = vmatmul.mubr.msk.f32.vlgmr.msra.gmra.mrb[28].mxu1 %vm1486_vm8, %v1453_v7  ;;  %v1343_v22 = vpop.permute.xlu0 %1342  ;;  %v1349_v51 = vpop.permute.xlu1 %1348 }
 0x3c9   :  { %v1439_v9 = vsel %vm1436_vm6, %v11227_v31, %v1343_v22  ;;  %v1442_v46 = vsel %vm1436_vm6, %v11229_v34, %v1349_v51 }
 0x3ca   :  { %v1454_v25 = vsel %vm1451_vm7, %v1439_v9, %v11330_v50  ;;  %v1457_v9 = vsel %vm1451_vm7, %v1442_v46, %v11338_v0 }
 0x3cb   :  { %8281 = vmatprep.mubr.msk.f32.mxu1 %vm1486_vm8, %v1454_v25 }
 0x3cc   :  { %8282 = vmatmul.mubr.msk.f32.gmra.mrb[30].mxu1 %vm1486_vm8, %v1455_v10  ;;  %v1347_v28 = vpop.permute.xlu0 %1346  ;;  %v1353_v39 = vpop.permute.xlu1 %1352 }
 0x3cd   :  { %v1441_v5 = vsel %vm1436_vm6, %v11231_v37, %v1347_v28  ;;  %v1444_v57 = vsel %vm1436_vm6, %v11233_v40, %v1353_v39 }
 0x3ce   :  { %v1456_v31 = vsel %vm1451_vm7, %v1441_v5, %v11336_v63  ;;  %v1459_v22 = vsel %vm1451_vm7, %v1444_v57, %v11342_v4 }
 0x3cf   :  { %8284 = vmatprep.mubr.msk.f32.mxu1 %vm1486_vm8, %v1456_v31 }
 0x3d0   :  { %8285 = vmatmul.mubr.msk.f32.gmra.mrb[32].mxu1 %vm1486_vm8, %v1457_v9  ;;  %v1351_v34 = vpop.permute.xlu0 %1350  ;;  %v1357_v44 = vpop.permute.xlu1 %1356 }
 0x3d1   :  { %v1443_v7 = vsel %vm1436_vm6, %v11235_v43, %v1351_v34  ;;  %v1446_v51 = vsel %vm1436_vm6, %v11239_v53, %v1357_v44 }
 0x3d2   :  { %v1458_v37 = vsel %vm1451_vm7, %v1443_v7, %v11340_v1  ;;  %v1461_v46 = vsel %vm1451_vm7, %v1446_v51, %v11348_v62 }
 0x3d3   :  { %8287 = vmatprep.mubr.msk.f32.mxu1 %vm1486_vm8, %v1458_v37 }
 0x3d4   :  { %8288 = vmatmul.mubr.msk.f32.gmra.mrb[34].mxu1 %vm1486_vm8, %v1459_v22  ;;  %v1355_v40 = vpop.permute.xlu0 %1354  ;;  %v1361_v25 = vpop.permute.xlu1 %1360 }
 0x3d5   :  { %v1445_v10 = vsel %vm1436_vm6, %v11241_v55, %v1355_v40  ;;  %649 = vxpose.xlu1.b32.start [1/14] (short) (narrow) %v11001_v6, 16  ;;  %v1448_v53 = vsel %vm1436_vm6, %v11243_v56, %v1361_v25 }
 0x3d6   :  { %v1460_v43 = vsel %vm1451_vm7, %v1445_v10, %v11344_v2  ;;  %v1463_v31 = vsel %vm1451_vm7, %v1448_v53, %v11352_v38  ;;  %v11453_v10 = vld [vmem:[%s13229_s21] ss:$0 sm:$0xff]  ;;  %s13343_s21 = sld [smem:[#allocation76_spill]] }
 0x3d7   :  { %8290 = vmatprep.mubr.msk.f32.mxu1 %vm1486_vm8, %v1460_v43 }
 0x3d8   :  { %8291 = vmatmul.mubr.msk.f32.gmra.mrb[36].mxu1 %vm1486_vm8, %v1461_v46  ;;  %v1359_v28 = vpop.permute.xlu0 %1358  ;;  %v1365_v55 = vpop.permute.xlu1 %1364 }
 0x3d9   :  { %v1447_v39 = vsel %vm1436_vm6, %v11246_v58, %v1359_v28  ;;  %650 = vxpose.xlu1.b32.cont [2/14] (short) (narrow) %v11010_v11, 16  ;;  %v1450_v34 = vsel %vm1436_vm6, %v11250_v59, %v1365_v55  ;;  %v427_v59 = vld [vmem:[%s13216_s1 + $0x10] sm:$0xff]  ;;  %v11462_v28 = vld [vmem:[%s13230_s2] ss:$0 sm:$0xff]  ;;  %s13345_s2 = sld [smem:[#allocation43_spill]] }
 0x3da   :  { %v1462_v5 = vsel %vm1451_vm7, %v1447_v39, %v11350_v13 }
 0x3db   :  { %8293 = vmatprep.mubr.msk.f32.mxu1 %vm1486_vm8, %v1462_v5 }
 0x3dc   :  { %8294 = vmatmul.mubr.msk.f32.gmra.mrb[38].mxu1 %vm1486_vm8, %v1463_v31  ;;  %v1363_v56 = vpop.permute.xlu0 %1362  ;;  %v11417_v9 = vpop.permute.xlu1 %1420 }
 0x3dd   :  { %651 = vxpose.xlu1.b32.cont [3/14] (short) (narrow) %v11012_v12, 16  ;;  %13227 = vst [vmem:[#allocation116_spill] sm:$0xff] %v11417_v9  ;;  %v1449_v58 = vsel %vm1436_vm6, %v11252_v60, %v1363_v56  ;;  %v1465_v7 = vsel %vm1451_vm7, %v1450_v34, %v11417_v9  ;;  %v428_v60 = vld [vmem:[%s13216_s1 + $0x18] sm:$0xff]  ;;  %s13329_s1 = sld [smem:[#allocation75_spill]] }
 0x3de   :  { %v9110_v37 = vpack.c.bf16 %v428_v60, %v427_v59 }
 0x3e0   :  { %v11421_v57 = vpop.permute.xlu0 %1418  ;;  %9111 = vmatprep.subr.bf16.mxu0 %v9110_v37 }
 0x3e1   :  { %13228 = vst [vmem:[#allocation117_spill] sm:$0xff] %v11421_v57  ;;  %v1464_v44 = vsel %vm1451_vm7, %v1449_v58, %v11421_v57  ;;  %652 = vxpose.xlu1.b32.cont [4/14] (short) (narrow) %v11019_v14, 16  ;;  %9113 = vmatpush3.bf16.msra.mxu0 %v9110_v37 }
 0x3e2   :  { %8296 = vmatprep.mubr.msk.f32.mxu1 %vm1486_vm8, %v1464_v44 }
 0x3e3   :  { %8297 = vmatmul.mubr.msk.f32.gmra.mrb[40].mxu1 %vm1486_vm8, %v1465_v7 }
 0x3e5   :  { %653 = vxpose.xlu1.b32.cont [5/14] (short) (narrow) %v11021_v15, 16 }
 0x3e9   :  { %654 = vxpose.xlu1.b32.cont [6/14] (short) (narrow) %v11028_v17, 16 }
 0x3ed   :  { %655 = vxpose.xlu1.b32.cont [7/14] (short) (narrow) %v11030_v18, 16 }
 0x3f1   :  { %656 = vxpose.xlu1.b32.cont [8/14] (short) (narrow) %v11037_v20, 16 }
 0x3f5   :  { %657 = vxpose.xlu1.b32.cont [9/14] (short) (narrow) %v11039_v21, 16 }
 0x3f9   :  { %658 = vxpose.xlu1.b32.cont [10/14] (short) (narrow) %v11046_v23, 16 }
 0x3fd   :  { %659 = vxpose.xlu1.b32.cont [11/14] (short) (narrow) %v11048_v24, 16 }
 0x401   :  { %660 = vxpose.xlu1.b32.cont [12/14] (short) (narrow) %v11055_v26, 16 }
 0x405   :  { %661 = vxpose.xlu1.b32.cont [13/14] (short) (narrow) %v11057_v27, 16 }
 0x409   :  { %662 = vxpose.xlu1.b32.end [14/14] (short) (narrow) %v11064_v29, 16 }
 0x41a   :  { %v11444_v22 = vpop.xlane.xlu0 %1091 }
 0x41b   :  { %13231 = vst [vmem:[#allocation118_spill] sm:$0xff] %v11444_v22  ;;  %v11450_v25 = vpop.xlane.xlu1 %1093  ;;  %v1472_v55 = vmul.f32 %v11453_v10, %v11444_v22 }
 0x41c   :  { %13234 = vst [vmem:[#allocation121_spill] sm:$0xff] %v11450_v25  ;;  %v1473_v53 = vmul.f32 %v11453_v10, %v11450_v25 }
 0x41e   :  { %v11446_v51 = vpop.xlane.xlu0 %1095 }
 0x41f   :  { %13232 = vst [vmem:[#allocation119_spill] sm:$0xff] %v11446_v51  ;;  %v11457_v46 = vpop.xlane.xlu1 %1099  ;;  %v1474_v60 = vmul.f32 %v11453_v10, %v11446_v51 }
 0x420   :  { %13236 = vst [vmem:[#allocation123_spill] sm:$0xff] %v11457_v46  ;;  %v1476_v45 = vmul.f32 %v11453_v10, %v11457_v46 }
 0x422   :  { %v11448_v40 = vpop.xlane.xlu0 %1097 }
 0x423   :  { %13233 = vst [vmem:[#allocation120_spill] sm:$0xff] %v11448_v40  ;;  %v1475_v34 = vmul.f32 %v11453_v10, %v11448_v40  ;;  %v11478_v37 = vpop.xlane.xlu1 %1103 }
 0x424   :  { %13238 = vst [vmem:[#allocation125_spill] sm:$0xff] %v11478_v37 }
 0x426   :  { %v11455_v43 = vpop.xlane.xlu0 %1101 }
 0x427   :  { %13235 = vst [vmem:[#allocation122_spill] sm:$0xff] %v11455_v43  ;;  %v11496_v19 = vpop.xlane.xlu1 %1107 }
 0x428   :  { %13240 = vst [vmem:[#allocation127_spill] sm:$0xff] %v11496_v19 }
 0x42a   :  { %v11471_v44 = vpop.xlane.xlu0 %1105 }
 0x42b   :  { %13237 = vst [vmem:[#allocation124_spill] sm:$0xff] %v11471_v44  ;;  %v1479_v48 = vmul.f32 %v11453_v10, %v11471_v44 }
 0x49b   :  { %v8280_v39 = vpop.f32.mrb[28].mxu1 }
 0x49c   :  { %v1605_v5 = vadd.f32 %v8280_v39, %v1473_v53  ;;  %v1599_v31 = vpop.f32.mrb[29].mxu1 }
 0x49d   :  { %v1600_v56 = vadd.f32 %v1599_v31, %v1472_v55 }
 0x49e   :  { %v11467_v58 = vadd.f32 %v11462_v28, %v1605_v5 }
 0x49f   :  { %v11474_v7 = vadd.f32 %v11462_v28, %v1600_v56  ;;  %v8283_v59 = vpop.f32.mrb[30].mxu1  ;;  %v1477_v56 = vmul.f32 %v11453_v10, %v11455_v43 }
 0x4a0   :  { %v1689_v53 = vsub.f32 0.0, %v11467_v58  ;;  %v1615_v39 = vadd.f32 %v8283_v59, %v1475_v34  ;;  %v1609_v55 = vpop.f32.mrb[31].mxu1 }
 0x4a1   :  { %v1688_v5 = vsub.f32 0.0, %v11474_v7  ;;  %v1610_v31 = vadd.f32 %v1609_v55, %v1474_v60 }
 0x4a2   :  { %v1704_v47 = vmul.f32 1.442695, %v1689_v53  ;;  %v11483_v8 = vadd.f32 %v11462_v28, %v1615_v39  ;;  %v11493_v53 = vpop.xlane.xlu0 %1109 }
 0x4a3   :  { %v1702_v41 = vmul.f32 1.442695, %v1688_v5  ;;  %v11488_v3 = vadd.f32 %v11462_v28, %v1610_v31  ;;  %v8286_v42 = vpop.f32.mrb[32].mxu1  ;;  %13239 = vst [vmem:[#allocation126_spill] sm:$0xff] %v11493_v53 }
 0x4a4   :  { %9586 = vpow2.f32 %v1704_v47  ;;  %v1691_v34 = vsub.f32 0.0, %v11483_v8  ;;  %v1625_v59 = vadd.f32 %v8286_v42, %v1477_v56  ;;  %v1619_v60 = vpop.f32.mrb[33].mxu1 }
 0x4a5   :  { %9588 = vpow2.f32 %v1702_v41  ;;  %v1690_v39 = vsub.f32 0.0, %v11488_v3  ;;  %v1620_v55 = vadd.f32 %v1619_v60, %v1476_v45  ;;  %v1478_v41 = vmul.f32 %v11453_v10, %v11478_v37 }
 0x4a6   :  { %v1708_v5 = vmul.f32 1.442695, %v1691_v34  ;;  %v11499_v31 = vadd.f32 %v11462_v28, %v1625_v59 }
 0x4a7   :  { %v1706_v47 = vmul.f32 1.442695, %v1690_v39  ;;  %v11504_v46 = vadd.f32 %v11462_v28, %v1620_v55  ;;  %v8289_v42 = vpop.f32.mrb[34].mxu1  ;;  %v1481_v39 = vmul.f32 %v11453_v10, %v11493_v53  ;;  %v11515_v55 = vpop.xlane.xlu0 %1113 }
 0x4a8   :  { %9590 = vpow2.f32 %v1708_v5  ;;  %v1693_v45 = vsub.f32 0.0, %v11499_v31  ;;  %v1635_v56 = vadd.f32 %v8289_v42, %v1479_v48  ;;  %v1629_v60 = vpop.f32.mrb[35].mxu1  ;;  %13241 = vst [vmem:[#allocation128_spill] sm:$0xff] %v11515_v55  ;;  %v1480_v48 = vmul.f32 %v11453_v10, %v11496_v19 }
 0x4a9   :  { %9592 = vpow2.f32 %v1706_v47  ;;  %v1692_v34 = vsub.f32 0.0, %v11504_v46  ;;  %v1630_v59 = vadd.f32 %v1629_v60, %v1478_v41  ;;  %v11522_v47 = vpop.xlane.xlu1 %1111  ;;  %v1483_v40 = vmul.f32 %v11453_v10, %v11515_v55 }
 0x4aa   :  { %v1712_v43 = vmul.f32 1.442695, %v1693_v45  ;;  %v11511_v44 = vadd.f32 %v11462_v28, %v1635_v56  ;;  %13242 = vst [vmem:[#allocation129_spill] sm:$0xff] %v11522_v47 }
 0x4ab   :  { %v1710_v51 = vmul.f32 1.442695, %v1692_v34  ;;  %v11518_v5 = vadd.f32 %v11462_v28, %v1630_v59  ;;  %v8292_v37 = vpop.f32.mrb[36].mxu1 }
 0x4ac   :  { %9594 = vpow2.f32 %v1712_v43  ;;  %v1695_v42 = vsub.f32 0.0, %v11511_v44  ;;  %v1645_v41 = vadd.f32 %v8292_v37, %v1481_v39  ;;  %v1639_v45 = vpop.f32.mrb[37].mxu1 }
 0x4ad   :  { %9596 = vpow2.f32 %v1710_v51  ;;  %v1694_v56 = vsub.f32 0.0, %v11518_v5  ;;  %v1640_v60 = vadd.f32 %v1639_v45, %v1480_v48  ;;  %v1482_v51 = vmul.f32 %v11453_v10, %v11522_v47  ;;  %v11543_v47 = vpop.xlane.xlu1 %1115 }
 0x4ae   :  { %v9587_v53 = vpop.eup %9586  ;;  %v1716_v34 = vmul.f32 1.442695, %v1695_v42  ;;  %v11527_v59 = vadd.f32 %v11462_v28, %v1645_v41 }
 0x4af   :  { %v9589_v19 = vpop.eup %9588  ;;  %v1731_v22 = vadd.f32 1.0, %v9587_v53  ;;  %v1714_v25 = vmul.f32 1.442695, %v1694_v56  ;;  %v11532_v43 = vadd.f32 %v11462_v28, %v1640_v60  ;;  %v8295_v37 = vpop.f32.mrb[38].mxu1 }
 0x4b0   :  { %v1730_v39 = vadd.f32 1.0, %v9589_v19  ;;  %9598 = vpow2.f32 %v1716_v34  ;;  %v1697_v48 = vsub.f32 0.0, %v11527_v59  ;;  %v1655_v42 = vadd.f32 %v8295_v37, %v1483_v40  ;;  %v1649_v41 = vpop.f32.mrb[39].mxu1  ;;  %v11538_v53 = vpop.xlane.xlu0 %1117 }
 0x4b1   :  { %9600 = vrcp.f32 %v1731_v22  ;;  %v1696_v45 = vsub.f32 0.0, %v11532_v43  ;;  %v1650_v55 = vadd.f32 %v1649_v41, %v1482_v51  ;;  %13243 = vst [vmem:[#allocation130_spill] sm:$0xff] %v11538_v53 }
 0x4b2   :  { %v9591_v9 = vpop.eup %9590  ;;  %9602 = vrcp.f32 %v1730_v39  ;;  %v1720_v56 = vmul.f32 1.442695, %v1697_v48  ;;  %v11541_v60 = vadd.f32 %v11462_v28, %v1655_v42  ;;  %v1485_v39 = vmul.f32 %v11453_v10, %v11538_v53 }
 0x4b3   :  { %v9593_v57 = vpop.eup %9592  ;;  %v1733_v19 = vadd.f32 1.0, %v9591_v9  ;;  %9604 = vpow2.f32 %v1714_v25  ;;  %v1718_v34 = vmul.f32 1.442695, %v1696_v45  ;;  %v11546_v40 = vadd.f32 %v11462_v28, %v1650_v55 }
 0x4b4   :  { %v1732_v22 = vadd.f32 1.0, %v9593_v57  ;;  %9606 = vpow2.f32 %v1720_v56  ;;  %v1699_v37 = vsub.f32 0.0, %v11541_v60  ;;  %v1484_v9 = vmul.f32 %v11453_v10, %v11543_v47 }
 0x4b5   :  { %9608 = vrcp.f32 %v1733_v19  ;;  %v1698_v51 = vsub.f32 0.0, %v11546_v40 }
 0x4b6   :  { %v9595_v48 = vpop.eup %9594  ;;  %9610 = vrcp.f32 %v1732_v22  ;;  %v1724_v42 = vmul.f32 1.442695, %v1699_v37  ;;  %v8298_v41 = vpop.f32.mrb[40].mxu1 }
 0x4b7   :  { %v9597_v25 = vpop.eup %9596  ;;  %v1735_v55 = vadd.f32 1.0, %v9595_v48  ;;  %9612 = vpow2.f32 %v1718_v34  ;;  %v1722_v57 = vmul.f32 1.442695, %v1698_v51  ;;  %v1665_v45 = vadd.f32 %v8298_v41, %v1485_v39  ;;  %v1659_v56 = vpop.f32.mrb[41].mxu1 }
 0x4b8   :  { %v1734_v38 = vadd.f32 1.0, %v9597_v25  ;;  %9614 = vpow2.f32 %v1724_v42  ;;  %v1660_v19 = vadd.f32 %v1659_v56, %v1484_v9 }
 0x4b9   :  { %9616 = vrcp.f32 %v1735_v55  ;;  %v11555_v13 = vadd.f32 %v11462_v28, %v1665_v45 }
 0x4ba   :  { %v9599_v53 = vpop.eup %9598  ;;  %9618 = vrcp.f32 %v1734_v38  ;;  %v11558_v22 = vadd.f32 %v11462_v28, %v1660_v19 }
 0x4bb   :  { %v9601_v37 = vpop.eup %9600  ;;  %v1737_v10 = vadd.f32 1.0, %v9599_v53  ;;  %9620 = vpow2.f32 %v1722_v57  ;;  %v1701_v34 = vsub.f32 0.0, %v11555_v13 }
 0x4bc   :  { %v9603_v51 = vpop.eup %9602  ;;  %v1700_v39 = vsub.f32 0.0, %v11558_v22  ;;  %v1773_v25 = vmul.f32 %v9601_v37, %v11467_v58 }
 0x4bd   :  { %v9605_v48 = vpop.eup %9604  ;;  %v1772_v42 = vmul.f32 %v9603_v51, %v11474_v7  ;;  %v1728_v41 = vmul.f32 1.442695, %v1701_v34  ;;  %9622 = vrcp.f32 %v1737_v10 }
 0x4be   :  { %v9607_v9 = vpop.eup %9606  ;;  %v1736_v38 = vadd.f32 1.0, %v9605_v48  ;;  %v1726_v55 = vmul.f32 1.442695, %v1700_v39 }
 0x4bf   :  { %v9609_v28 = vpop.eup %9608  ;;  %v1739_v45 = vadd.f32 1.0, %v9607_v9  ;;  %9624 = vpow2.f32 %v1728_v41  ;;  %8307 = vmatprep.mubr.msk.f32.mxu0 %vm1436_vm6, %v1772_v42 }
 0x4c0   :  { %v9611_v53 = vpop.eup %9610  ;;  %9626 = vrcp.f32 %v1736_v38  ;;  %8308 = vmatmul.mubr.msk.f32.vlgmr.msra.gmra.mrb[30].mxu0 %vm1436_vm6, %v1773_v25  ;;  %v1775_v19 = vmul.f32 %v9609_v28, %v11483_v8 }
 0x4c1   :  { %v9613_v57 = vpop.eup %9612  ;;  %v1774_v56 = vmul.f32 %v9611_v53, %v11488_v3  ;;  %9628 = vpow2.f32 %v1726_v55 }
 0x4c2   :  { %v9615_v7 = vpop.eup %9614  ;;  %v1738_v34 = vadd.f32 1.0, %v9613_v57  ;;  %9630 = vrcp.f32 %v1739_v45 }
 0x4c3   :  { %v9617_v58 = vpop.eup %9616  ;;  %v1741_v37 = vadd.f32 1.0, %v9615_v7  ;;  %8310 = vmatprep.mubr.msk.f32.mxu0 %vm1436_vm6, %v1774_v56 }
 0x4c4   :  { %v9619_v10 = vpop.eup %9618  ;;  %9632 = vrcp.f32 %v1738_v34  ;;  %8311 = vmatmul.mubr.msk.f32.gmra.mrb[32].mxu0 %vm1436_vm6, %v1775_v19  ;;  %v1777_v48 = vmul.f32 %v9617_v58, %v11499_v31  ;;  %v11590_v34 = vpop.trf.xlu1 }
 0x4c5   :  { %v9621_v51 = vpop.eup %9620  ;;  %v1776_v39 = vmul.f32 %v9619_v10, %v11504_v46  ;;  %9634 = vrcp.f32 %v1741_v37  ;;  %13245 = vst [vmem:[#allocation131_spill] sm:$0xff] %v11590_v34  ;;  %8356 = vmatprep.mubr.msk.f32.mxu1 %vm2067_vm9, %v11590_v34 }
 0x4c6   :  { %v1740_v3 = vadd.f32 1.0, %v9621_v51 }
 0x4c7   :  { %8313 = vmatprep.mubr.msk.f32.mxu0 %vm1436_vm6, %v1776_v39  ;;  %v9623_v8 = vpop.eup %9622 }
 0x4c8   :  { %9636 = vrcp.f32 %v1740_v3  ;;  %8314 = vmatmul.mubr.msk.f32.gmra.mrb[34].mxu0 %vm1436_vm6, %v1777_v48  ;;  %v1779_v55 = vmul.f32 %v9623_v8, %v11511_v44 }
 0x4c9   :  { %v9625_v42 = vpop.eup %9624 }
 0x4ca   :  { %v9627_v41 = vpop.eup %9626  ;;  %v1743_v9 = vadd.f32 1.0, %v9625_v42 }
 0x4cb   :  { %v1778_v25 = vmul.f32 %v9627_v41, %v11518_v5  ;;  %v9629_v38 = vpop.eup %9628 }
 0x4cc   :  { %v9631_v28 = vpop.eup %9630  ;;  %v1742_v46 = vadd.f32 1.0, %v9629_v38  ;;  %9638 = vrcp.f32 %v1743_v9 }
 0x4cd   :  { %8316 = vmatprep.mubr.msk.f32.mxu0 %vm1436_vm6, %v1778_v25  ;;  %v1781_v53 = vmul.f32 %v9631_v28, %v11527_v59 }
 0x4ce   :  { %v9633_v31 = vpop.eup %9632  ;;  %8317 = vmatmul.mubr.msk.f32.gmra.mrb[36].mxu0 %vm1436_vm6, %v1779_v55  ;;  %9640 = vrcp.f32 %v1742_v46 }
 0x4cf   :  { %v1780_v45 = vmul.f32 %v9633_v31, %v11532_v43  ;;  %v9635_v57 = vpop.eup %9634 }
 0x4d0   :  { %v1783_v56 = vmul.f32 %v9635_v57, %v11541_v60  ;;  %v11595_v60 = vld [vmem:[%s13244_s20] ss:$0 sm:$0xff]  ;;  %s13361_s20 = sld [smem:[#allocation74_spill]] }
 0x4d1   :  { %8319 = vmatprep.mubr.msk.f32.mxu0 %vm1436_vm6, %v1780_v45 }
 0x4d2   :  { %v9637_v5 = vpop.eup %9636  ;;  %8320 = vmatmul.mubr.msk.f32.gmra.mrb[38].mxu0 %vm1436_vm6, %v1781_v53 }
 0x4d3   :  { %v1782_v44 = vmul.f32 %v9637_v5, %v11546_v40 }
 0x4d5   :  { %8322 = vmatprep.mubr.msk.f32.mxu0 %vm1436_vm6, %v1782_v44 }
 0x4d6   :  { %8323 = vmatmul.mubr.msk.f32.gmra.mrb[40].mxu0 %vm1436_vm6, %v1783_v56  ;;  %v9639_v7 = vpop.eup %9638 }
 0x4d7   :  { %v1785_v59 = vmul.f32 %v9639_v7, %v11555_v13 }
 0x4d8   :  { %v9641_v43 = vpop.eup %9640 }
 0x4d9   :  { %v1784_v19 = vmul.f32 %v9641_v43, %v11558_v22 }
 0x4db   :  { %8325 = vmatprep.mubr.msk.f32.mxu0 %vm1436_vm6, %v1784_v19 }
 0x4dc   :  { %8326 = vmatmul.mubr.msk.f32.gmra.mrb[42].mxu0 %vm1436_vm6, %v1785_v59 }
 0x593   :  { %v8309_v40 = vpop.f32.mrb[30].mxu0 }
 0x594   :  { %v11598_v58 = vadd.f32 %v8309_v40, %v11595_v60  ;;  %v1900_v37 = vpop.f32.mrb[31].mxu0 }
 0x595   :  { %v11601_v22 = vadd.f32 %v11595_v60, %v1900_v37 }
 0x596   :  { %v1970_v13 = vsub.f32 0.0, %v11598_v58 }
 0x597   :  { %v1969_v10 = vsub.f32 0.0, %v11601_v22  ;;  %v8312_v51 = vpop.f32.mrb[32].mxu0 }
 0x598   :  { %v1985_v39 = vmul.f32 1.442695, %v1970_v13  ;;  %v11606_v48 = vadd.f32 %v8312_v51, %v11595_v60  ;;  %v1910_v3 = vpop.f32.mrb[33].mxu0 }
 0x599   :  { %v1983_v8 = vmul.f32 1.442695, %v1969_v10  ;;  %v11609_v42 = vadd.f32 %v11595_v60, %v1910_v3 }
 0x59a   :  { %9642 = vpow2.f32 %v1985_v39  ;;  %v1972_v41 = vsub.f32 0.0, %v11606_v48 }
 0x59b   :  { %9644 = vpow2.f32 %v1983_v8  ;;  %v1971_v9 = vsub.f32 0.0, %v11609_v42  ;;  %v8315_v25 = vpop.f32.mrb[34].mxu0 }
 0x59c   :  { %v1989_v38 = vmul.f32 1.442695, %v1972_v41  ;;  %v11614_v55 = vadd.f32 %v8315_v25, %v11595_v60  ;;  %v1920_v28 = vpop.f32.mrb[35].mxu0 }
 0x59d   :  { %v1987_v46 = vmul.f32 1.442695, %v1971_v9  ;;  %v11617_v31 = vadd.f32 %v11595_v60, %v1920_v28 }
 0x59e   :  { %9646 = vpow2.f32 %v1989_v38  ;;  %v1974_v45 = vsub.f32 0.0, %v11614_v55 }
 0x59f   :  { %9648 = vpow2.f32 %v1987_v46  ;;  %v1973_v53 = vsub.f32 0.0, %v11617_v31 }
 0x5a0   :  { %v1993_v57 = vmul.f32 1.442695, %v1974_v45 }
 0x5a1   :  { %v1991_v5 = vmul.f32 1.442695, %v1973_v53  ;;  %v8318_v44 = vpop.f32.mrb[36].mxu0 }
 0x5a2   :  { %9650 = vpow2.f32 %v1993_v57  ;;  %v11622_v56 = vadd.f32 %v8318_v44, %v11595_v60  ;;  %v1930_v7 = vpop.f32.mrb[37].mxu0 }
 0x5a3   :  { %9652 = vpow2.f32 %v1991_v5  ;;  %v11625_v43 = vadd.f32 %v11595_v60, %v1930_v7 }
 0x5a4   :  { %v9643_v19 = vpop.eup %9642  ;;  %v1976_v59 = vsub.f32 0.0, %v11622_v56 }
 0x5a5   :  { %v9645_v40 = vpop.eup %9644  ;;  %v2012_v37 = vadd.f32 1.0, %v9643_v19  ;;  %v1975_v13 = vsub.f32 0.0, %v11625_v43  ;;  %v8321_v10 = vpop.f32.mrb[38].mxu0 }
 0x5a6   :  { %v2011_v51 = vadd.f32 1.0, %v9645_v40  ;;  %v1997_v39 = vmul.f32 1.442695, %v1976_v59  ;;  %v11630_v3 = vadd.f32 %v8321_v10, %v11595_v60  ;;  %v1940_v8 = vpop.f32.mrb[39].mxu0 }
 0x5a7   :  { %9654 = vrcp.f32 %v2012_v37  ;;  %v1995_v41 = vmul.f32 1.442695, %v1975_v13  ;;  %v11633_v9 = vadd.f32 %v11595_v60, %v1940_v8 }
 0x5a8   :  { %v9647_v25 = vpop.eup %9646  ;;  %9656 = vrcp.f32 %v2011_v51  ;;  %v1978_v38 = vsub.f32 0.0, %v11630_v3 }
 0x5a9   :  { %v9649_v28 = vpop.eup %9648  ;;  %v2014_v46 = vadd.f32 1.0, %v9647_v25  ;;  %9658 = vpow2.f32 %v1997_v39  ;;  %v1977_v45 = vsub.f32 0.0, %v11633_v9  ;;  %v8324_v53 = vpop.f32.mrb[40].mxu0 }
 0x5aa   :  { %v2013_v57 = vadd.f32 1.0, %v9649_v28  ;;  %9660 = vpow2.f32 %v1995_v41  ;;  %v2001_v5 = vmul.f32 1.442695, %v1978_v38  ;;  %v11638_v44 = vadd.f32 %v8324_v53, %v11595_v60  ;;  %v1950_v7 = vpop.f32.mrb[41].mxu0 }
 0x5ab   :  { %9662 = vrcp.f32 %v2014_v46  ;;  %v1999_v19 = vmul.f32 1.442695, %v1977_v45  ;;  %v11641_v59 = vadd.f32 %v11595_v60, %v1950_v7 }
 0x5ac   :  { %v9651_v40 = vpop.eup %9650  ;;  %9664 = vrcp.f32 %v2013_v57  ;;  %v1980_v37 = vsub.f32 0.0, %v11638_v44 }
 0x5ad   :  { %v9653_v13 = vpop.eup %9652  ;;  %v2016_v10 = vadd.f32 1.0, %v9651_v40  ;;  %9666 = vpow2.f32 %v2001_v5  ;;  %v1979_v51 = vsub.f32 0.0, %v11641_v59 }
 0x5ae   :  { %v2015_v39 = vadd.f32 1.0, %v9653_v13  ;;  %9668 = vpow2.f32 %v1999_v19  ;;  %v2005_v8 = vmul.f32 1.442695, %v1980_v37 }
 0x5af   :  { %9670 = vrcp.f32 %v2016_v10  ;;  %v2003_v41 = vmul.f32 1.442695, %v1979_v51  ;;  %v8327_v25 = vpop.f32.mrb[42].mxu0 }
 0x5b0   :  { %9672 = vrcp.f32 %v2015_v39  ;;  %v11646_v28 = vadd.f32 %v8327_v25, %v11595_v60  ;;  %v1960_v46 = vpop.f32.mrb[43].mxu0 }
 0x5b1   :  { %v9655_v38 = vpop.eup %9654  ;;  %9674 = vpow2.f32 %v2005_v8  ;;  %v11650_v57 = vadd.f32 %v11595_v60, %v1960_v46 }
 0x5b2   :  { %v9657_v45 = vpop.eup %9656  ;;  %v2054_v53 = vmul.f32 %v9655_v38, %v11598_v58  ;;  %9676 = vpow2.f32 %v2003_v41  ;;  %v1982_v19 = vsub.f32 0.0, %v11646_v28 }
 0x5b3   :  { %v9659_v5 = vpop.eup %9658  ;;  %v2053_v7 = vmul.f32 %v9657_v45, %v11601_v22  ;;  %v1981_v13 = vsub.f32 0.0, %v11650_v57 }
 0x5b4   :  { %v9661_v40 = vpop.eup %9660  ;;  %v2018_v37 = vadd.f32 1.0, %v9659_v5  ;;  %v2009_v39 = vmul.f32 1.442695, %v1982_v19 }
 0x5b5   :  { %v9663_v10 = vpop.eup %9662  ;;  %v2017_v51 = vadd.f32 1.0, %v9661_v40  ;;  %v9114_v8 = vpack.c.bf16 %v2054_v53, %v2053_v7  ;;  %v2007_v41 = vmul.f32 1.442695, %v1981_v13 }
 0x5b6   :  { %v9665_v25 = vpop.eup %9664  ;;  %v2056_v58 = vmul.f32 %v9663_v10, %v11606_v48  ;;  %9678 = vrcp.f32 %v2018_v37 }
 0x5b7   :  { %v9667_v60 = vpop.eup %9666  ;;  %v2055_v38 = vmul.f32 %v9665_v25, %v11609_v42  ;;  %9680 = vrcp.f32 %v2017_v51  ;;  %9115 = vmatprep.subr.bf16.mxu1 %v9114_v8 }
 0x5b8   :  { %v9669_v22 = vpop.eup %9668  ;;  %v2020_v46 = vadd.f32 1.0, %v9667_v60  ;;  %9682 = vpow2.f32 %v2009_v39  ;;  %9117 = vmatpush3.bf16.msra.mxu1 %v9114_v8 }
 0x5b9   :  { %v9671_v45 = vpop.eup %9670  ;;  %v2019_v5 = vadd.f32 1.0, %v9669_v22  ;;  %9684 = vpow2.f32 %v2007_v41  ;;  %v9118_v40 = vpack.c.bf16 %v2056_v58, %v2055_v38 }
 0x5ba   :  { %v9673_v19 = vpop.eup %9672  ;;  %v2058_v53 = vmul.f32 %v9671_v45, %v11614_v55  ;;  %9686 = vrcp.f32 %v2020_v46 }
 0x5bb   :  { %v9675_v48 = vpop.eup %9674  ;;  %v2057_v7 = vmul.f32 %v9673_v19, %v11617_v31  ;;  %9688 = vrcp.f32 %v2019_v5  ;;  %9119 = vmatprep.subr.bf16.mxu1 %v9118_v40 }
 0x5bc   :  { %v9677_v42 = vpop.eup %9676  ;;  %v2022_v37 = vadd.f32 1.0, %v9675_v48  ;;  %9121 = vmatpush3.bf16.msra.mxu1 %v9118_v40 }
 0x5bd   :  { %v2021_v13 = vadd.f32 1.0, %v9677_v42  ;;  %v9122_v10 = vpack.c.bf16 %v2058_v53, %v2057_v7  ;;  %v430_v42 = vld [vmem:[%s13246_s7] sm:$0xff] }
 0x5be   :  { %9690 = vrcp.f32 %v2022_v37  ;;  %v431_v37 = vld [vmem:[%s13246_s7 + $0x8] sm:$0xff] }
 0x5bf   :  { %9692 = vrcp.f32 %v2021_v13  ;;  %9123 = vmatprep.subr.bf16.mxu1 %v9122_v10  ;;  %v432_v13 = vld [vmem:[%s13246_s7 + $0x10] sm:$0xff] }
 0x5c0   :  { %v9679_v51 = vpop.eup %9678  ;;  %9125 = vmatpush3.bf16.msra.mxu1 %v9122_v10  ;;  %v9142_v10 = vpack.c.bf16 %v431_v37, %v430_v42 }
 0x5c1   :  { %v9681_v39 = vpop.eup %9680  ;;  %v2060_v8 = vmul.f32 %v9679_v51, %v11622_v56  ;;  %v433_v51 = vld [vmem:[%s13246_s7 + $0x18] sm:$0xff] }
 0x5c2   :  { %v9683_v55 = vpop.eup %9682  ;;  %v2059_v25 = vmul.f32 %v9681_v39, %v11625_v43  ;;  %v9146_v39 = vpack.c.bf16 %v433_v51, %v432_v13  ;;  %9143 = vmatprep.subr.bf16.mxu0 %v9142_v10 }
 0x5c3   :  { %v9685_v58 = vpop.eup %9684  ;;  %v2024_v31 = vadd.f32 1.0, %v9683_v55  ;;  %9145 = vmatpush3.bf16.msra.mxu0 %v9142_v10  ;;  %v436_v55 = vld [vmem:[%s13246_s7 + $0x30] sm:$0xff] }
 0x5c4   :  { %v9687_v41 = vpop.eup %9686  ;;  %v2023_v60 = vadd.f32 1.0, %v9685_v58  ;;  %v9126_v38 = vpack.c.bf16 %v2060_v8, %v2059_v25  ;;  %v434_v8 = vld [vmem:[%s13246_s7 + $0x20] sm:$0xff]  ;;  %9147 = vmatprep.subr.bf16.mxu0 %v9146_v39  ;;  %v437_v25 = vld [vmem:[%s13246_s7 + $0x38] sm:$0xff] }
 0x5c5   :  { %v9689_v22 = vpop.eup %9688  ;;  %v2062_v46 = vmul.f32 %v9687_v41, %v11630_v3  ;;  %9694 = vrcp.f32 %v2024_v31  ;;  %v9154_v58 = vpack.c.bf16 %v437_v25, %v436_v55 }
 0x5c6   :  { %v2061_v45 = vmul.f32 %v9689_v22, %v11633_v9  ;;  %9696 = vrcp.f32 %v2023_v60  ;;  %9127 = vmatprep.subr.bf16.mxu1 %v9126_v38 }
 0x5c7   :  { %9129 = vmatpush3.bf16.msra.mxu1 %v9126_v38  ;;  %9149 = vmatpush3.bf16.msra.mxu0 %v9146_v39 }
 0x5c8   :  { %v9691_v5 = vpop.eup %9690  ;;  %v9130_v40 = vpack.c.bf16 %v2062_v46, %v2061_v45  ;;  %v439_v45 = vld [vmem:[%s13247_s10] sm:$0xff] }
 0x5c9   :  { %v9693_v56 = vpop.eup %9692  ;;  %v2064_v19 = vmul.f32 %v9691_v5, %v11638_v44  ;;  %v440_v5 = vld [vmem:[%s13247_s10 + $0x8] sm:$0xff] }
 0x5ca   :  { %v2063_v43 = vmul.f32 %v9693_v56, %v11641_v59  ;;  %9131 = vmatprep.subr.bf16.mxu1 %v9130_v40  ;;  %v11667_v59 = vpop.trf.xlu1  ;;  %v441_v56 = vld [vmem:[%s13247_s10 + $0x10] sm:$0xff] }
 0x5cb   :  { %9133 = vmatpush3.bf16.msra.mxu1 %v9130_v40  ;;  %v9158_v40 = vpack.c.bf16 %v440_v5, %v439_v45  ;;  %v13253_v5 = vld [vmem:[#allocation85_spill] sm:$0xff] }
 0x5cc   :  { %v9134_v53 = vpack.c.bf16 %v2064_v19, %v2063_v43  ;;  %v442_v19 = vld [vmem:[%s13247_s10 + $0x18] sm:$0xff]  ;;  %s13363_s10 = sld [smem:[#allocation79_spill]] }
 0x5cd   :  { %v9162_v43 = vpack.c.bf16 %v442_v19, %v441_v56  ;;  %v13255_v56 = vld [vmem:[#allocation87_spill] sm:$0xff]  ;;  %v13256_v19 = vld [vmem:[#allocation88_spill] sm:$0xff] }
 0x5ce   :  { %9135 = vmatprep.subr.bf16.mxu1 %v9134_v53 }
 0x5cf   :  { %v9695_v3 = vpop.eup %9694  ;;  %9137 = vmatpush3.bf16.msra.mxu1 %v9134_v53  ;;  %v7299_v53 = vld [vmem:[%s13248_s11] ss:$0 sm:$0xff]  ;;  %s13365_s11 = sld [smem:[#allocation80_spill]] }
 0x5d0   :  { %v9697_v9 = vpop.eup %9696  ;;  %v2066_v48 = vmul.f32 %v9695_v3, %v11646_v28  ;;  %v435_v28 = vld [vmem:[%s13246_s7 + $0x28] sm:$0xff]  ;;  %s13362_s7 = sld [smem:[#allocation77_spill]] }
 0x5d1   :  { %v2065_v7 = vmul.f32 %v9697_v9, %v11650_v57  ;;  %v9150_v57 = vpack.c.bf16 %v435_v28, %v434_v8 }
 0x5d3   :  { %v9138_v44 = vpack.c.bf16 %v2066_v48, %v2065_v7  ;;  %9151 = vmatprep.subr.bf16.mxu0 %v9150_v57 }
 0x5d4   :  { %9153 = vmatpush3.bf16.msra.mxu0 %v9150_v57 }
 0x5d5   :  { %9139 = vmatprep.subr.bf16.mxu1 %v9138_v44  ;;  %9155 = vmatprep.subr.bf16.mxu0 %v9154_v58 }
 0x5d6   :  { %9141 = vmatpush3.bf16.msra.mxu1 %v9138_v44 }
 0x5d7   :  { %9159 = vmatprep.subr.bf16.mxu1 %v9158_v40 }
 0x5d8   :  { %9157 = vmatpush3.bf16.msra.mxu0 %v9154_v58  ;;  %v7304_v58 = vld [vmem:[%s13249_s19] ss:$0 sm:$0xff]  ;;  %s13366_s19 = sld [smem:[#allocation81_spill]] }
 0x5d9   :  { %8357 = vmatmul.mubr.msk.f32.vlgmr.msra.gmra.mrb[42].mxu1 %vm2067_vm9, %v11667_v59 }
 0x5da   :  { %9161 = vmatpush3.bf16.msra.mxu1 %v9158_v40  ;;  %v13254_v40 = vld [vmem:[#allocation86_spill] sm:$0xff] }
 0x5db   :  { %9163 = vmatprep.subr.bf16.mxu1 %v9162_v43 }
 0x5de   :  { %9165 = vmatpush3.bf16.msra.mxu1 %v9162_v43  ;;  %v13257_v43 = vld [vmem:[#allocation89_spill] sm:$0xff] }
 0x6ac   :  { %v8358_v31 = vpop.f32.mrb[42].mxu1 }
 0x6ad   :  { %v2140_v41 = vpop.f32.mrb[43].mxu1 }
 0x6ae   :  { %2151 = vrot.lane.b32.xlu0 %v2140_v41, %s10615_s25 }
 0x6b2   :  { %2153 = vrot.lane.b32.xlu0 %v8358_v31, %s10615_s25 }
 0x720   :  { %v2152_v60 = vpop.permute.xlu0 %2151 }
 0x721   :  { %v2157_v38 = vsel %vm1436_vm6, %v11133_v54, %v2152_v60 }
 0x722   :  { %8375 = vmatprep.mubr.msk.f32.mxu0 %vm1451_vm7, %v2157_v38 }
 0x724   :  { %v2154_v22 = vpop.permute.xlu0 %2153 }
 0x725   :  { %v2158_v46 = vsel %vm1436_vm6, %v11131_v52, %v2154_v22 }
 0x726   :  { %8376 = vmatmul.mubr.msk.f32.vlgmr.msra.gmra.mrb[44].mxu0 %vm1451_vm7, %v2158_v46 }
 0x727   :  { %8393 = vmatprep.mubr.msk.f32.mxu0 %vm773_vm4, %v11001_v6 }
 0x7f9   :  { %v8377_v3 = vpop.f32.mrb[44].mxu0 }
 0x7fa   :  { %v2243_v9 = vadd.f32 %v8377_v3, %v7299_v53  ;;  %v2237_v48 = vpop.f32.mrb[45].mxu0  ;;  %v13259_v3 = vld [vmem:[#allocation91_spill] sm:$0xff] }
 0x7fb   :  { %v2238_v7 = vadd.f32 %v7299_v53, %v2237_v48  ;;  %v13258_v53 = vld [vmem:[#allocation90_spill] sm:$0xff]  ;;  %v445_v48 = vld [vmem:[%s13250_s4 + $0x8] sm:$0xff] }
 0x7fc   :  { %v2247_v44 = vsub.f32 0.0, %v2243_v9 }
 0x7fd   :  { %v2246_v42 = vsub.f32 0.0, %v2238_v7 }
 0x7fe   :  { %v2250_v37 = vmul.f32 1.442695, %v2247_v44 }
 0x7ff   :  { %v2248_v13 = vmul.f32 1.442695, %v2246_v42  ;;  %v447_v42 = vld [vmem:[%s13250_s4 + $0x18] sm:$0xff] }
 0x800   :  { %9698 = vpow2.f32 %v2250_v37 }
 0x801   :  { %9700 = vpow2.f32 %v2248_v13  ;;  %v448_v13 = vld [vmem:[%s13250_s4 + $0x20] sm:$0xff] }
 0x80a   :  { %v9699_v10 = vpop.eup %9698 }
 0x80b   :  { %v9701_v51 = vpop.eup %9700  ;;  %v2253_v39 = vadd.f32 1.0, %v9699_v10  ;;  %v449_v10 = vld [vmem:[%s13250_s4 + $0x28] sm:$0xff] }
 0x80c   :  { %v2252_v8 = vadd.f32 1.0, %v9701_v51  ;;  %v9178_v51 = vpack.c.bf16 %v449_v10, %v448_v13 }
 0x80d   :  { %9702 = vrcp.f32 %v2253_v39 }
 0x80e   :  { %9704 = vrcp.f32 %v2252_v8 }
 0x817   :  { %v9703_v28 = vpop.eup %9702 }
 0x818   :  { %v9705_v57 = vpop.eup %9704  ;;  %v2259_v25 = vmul.f32 %v9703_v28, %v2243_v9  ;;  %v444_v9 = vld [vmem:[%s13250_s4] sm:$0xff] }
 0x819   :  { %v2258_v55 = vmul.f32 %v9705_v57, %v2238_v7  ;;  %v446_v7 = vld [vmem:[%s13250_s4 + $0x10] sm:$0xff]  ;;  %v9170_v44 = vpack.c.bf16 %v445_v48, %v444_v9 }
 0x81a   :  { %v9174_v37 = vpack.c.bf16 %v447_v42, %v446_v7  ;;  %v452_v7 = vld [vmem:[%s13250_s4 + $0x40] sm:$0xf] }
 0x81b   :  { %8386 = vmatprep.mubr.msk.f32.mxu1 %vm1436_vm6, %v2258_v55  ;;  %9171 = vmatprep.subr.bf16.mxu1 %v9170_v44 }
 0x81c   :  { %8387 = vmatmul.mubr.msk.f32.vlgmr.msra.gmra.mrb[44].mxu1 %vm1436_vm6, %v2259_v25 }
 0x81d   :  { %9173 = vmatpush3.bf16.msra.mxu1 %v9170_v44 }
 0x81e   :  { %9175 = vmatprep.subr.bf16.mxu1 %v9174_v37 }
 0x821   :  { %9177 = vmatpush3.bf16.msra.mxu1 %v9174_v37 }
 0x822   :  { %9179 = vmatprep.subr.bf16.mxu1 %v9178_v51 }
 0x825   :  { %9181 = vmatpush3.bf16.msra.mxu1 %v9178_v51 }
 0x8ef   :  { %v8388_v31 = vpop.f32.mrb[44].mxu1 }
 0x8f0   :  { %v2342_v41 = vadd.f32 %v8388_v31, %v11131_v52  ;;  %v2332_v60 = vpop.f32.mrb[45].mxu1  ;;  %v13251_v52 = vld [vmem:[#allocation83_spill] sm:$0xff] }
 0x8f1   :  { %v2341_v38 = vadd.f32 %v2332_v60, %v11133_v54  ;;  %v13252_v54 = vld [vmem:[#allocation84_spill] sm:$0xff]  ;;  %v451_v60 = vld [vmem:[%s13250_s4 + $0x38] sm:$0xff] }
 0x8f2   :  { %v11699_v22 = vadd.f32 %v7304_v58, %v2342_v41  ;;  %v450_v41 = vld [vmem:[%s13250_s4 + $0x30] sm:$0xff]  ;;  %s13367_s4 = sld [smem:[#allocation44_spill]] }
 0x8f3   :  { %v11701_v46 = vadd.f32 %v7304_v58, %v2341_v38  ;;  %v9182_v38 = vpack.c.bf16 %v451_v60, %v450_v41 }
 0x8f5   :  { %v9166_v45 = vpack.c.bf16 %v11699_v22, %v11701_v46  ;;  %9183 = vmatprep.subr.bf16.mxu1 %v9182_v38 }
 0x8f6   :  { %9185 = vmatpush3.bf16.msra.mxu1 %v9182_v38 }
 0x8f7   :  { %9167 = vmatprep.subr.bf16.mxu0 %v9166_v45  ;;  %8451 = vmatprep.subr.msk.mxu1 %vm1529_vm5, %v452_v7 }
 0x8f8   :  { %9169 = vmatpush3.bf16.msra.mxu0 %v9166_v45 }
 0x8fa   :  { %8452 = vmatpush3.msk.msra.mxu1 %vm1529_vm5, %v452_v7 }
 0x8fb   :  { %8394 = vmatmul.mubr.msk.f32.vlgmr.msra.gmra.mrb[46].mxu0 %vm773_vm4, %v11010_v11 }
 0x8fc   :  { %8396 = vmatprep.mubr.msk.f32.mxu0 %vm773_vm4, %v11012_v12 }
 0x8ff   :  { %8397 = vmatmul.mubr.msk.f32.gmra.mrb[48].mxu0 %vm773_vm4, %v11019_v14 }
 0x900   :  { %8399 = vmatprep.mubr.msk.f32.mxu0 %vm773_vm4, %v11021_v15 }
 0x903   :  { %8400 = vmatmul.mubr.msk.f32.gmra.mrb[50].mxu0 %vm773_vm4, %v11028_v17 }
 0x904   :  { %8402 = vmatprep.mubr.msk.f32.mxu0 %vm773_vm4, %v11030_v18 }
 0x907   :  { %8403 = vmatmul.mubr.msk.f32.gmra.mrb[52].mxu0 %vm773_vm4, %v11037_v20 }
 0x908   :  { %8405 = vmatprep.mubr.msk.f32.mxu0 %vm773_vm4, %v11039_v21 }
 0x90b   :  { %8406 = vmatmul.mubr.msk.f32.gmra.mrb[54].mxu0 %vm773_vm4, %v11046_v23 }
 0x90c   :  { %8408 = vmatprep.mubr.msk.f32.mxu0 %vm773_vm4, %v11048_v24 }
 0x90f   :  { %8409 = vmatmul.mubr.msk.f32.gmra.mrb[56].mxu0 %vm773_vm4, %v11055_v26 }
 0x910   :  { %8411 = vmatprep.mubr.msk.f32.mxu0 %vm773_vm4, %v11057_v27 }
 0x913   :  { %8412 = vmatmul.mubr.msk.f32.gmra.mrb[58].mxu0 %vm773_vm4, %v11064_v29 }
 0x914   :  { %8414 = vmatprep.mubr.msk.f32.mxu0 %vm773_vm4, %v11066_v30 }
 0x917   :  { %8415 = vmatmul.mubr.msk.f32.gmra.mrb[60].mxu0 %vm773_vm4, %v11073_v32 }
 0x918   :  { %8417 = vmatprep.mubr.msk.f32.mxu0 %vm773_vm4, %v11075_v33 }
 0x91b   :  { %8418 = vmatmul.mubr.msk.f32.gmra.mrb[62].mxu0 %vm773_vm4, %v11082_v35 }
 0x91c   :  { %8420 = vmatprep.mubr.msk.f32.mxu0 %vm773_vm4, %v11084_v36 }
 0x91f   :  { %8421 = vmatmul.mubr.msk.f32.gmra.mrb[64].mxu0 %vm773_vm4, %v13251_v52 }
 0x920   :  { %8423 = vmatprep.mubr.msk.f32.mxu0 %vm773_vm4, %v13252_v54 }
 0x923   :  { %8424 = vmatmul.mubr.msk.f32.gmra.mrb[66].mxu0 %vm773_vm4, %v13253_v5 }
 0x924   :  { %8426 = vmatprep.mubr.msk.f32.mxu0 %vm773_vm4, %v13254_v40 }
 0x927   :  { %8427 = vmatmul.mubr.msk.f32.gmra.mrb[68].mxu0 %vm773_vm4, %v13255_v56 }
 0x928   :  { %8429 = vmatprep.mubr.msk.f32.mxu0 %vm773_vm4, %v13256_v19 }
 0x92b   :  { %8430 = vmatmul.mubr.msk.f32.gmra.mrb[70].mxu0 %vm773_vm4, %v13257_v43 }
 0x92c   :  { %8432 = vmatprep.mubr.msk.f32.mxu0 %vm773_vm4, %v13258_v53 }
 0x92f   :  { %8433 = vmatmul.mubr.msk.f32.gmra.mrb[72].mxu0 %vm773_vm4, %v13259_v3 }
 0x930   :  { %8531 = vmatprep.mubr.msk.f32.mxu0 %vm2067_vm9, %v11590_v34 }
 0x9ce   :  { %v8395_v39 = vpop.f32.mrb[46].mxu0 }
 0x9cf   :  { %v2417_v8 = vpop.f32.mrb[47].mxu0 }
 0x9d2   :  { %v8398_v28 = vpop.f32.mrb[48].mxu0 }
 0x9d3   :  { %v2427_v57 = vpop.f32.mrb[49].mxu0 }
 0x9d6   :  { %v11767_v55 = vpop.f32.mrb[50].mxu0 }
 0x9d7   :  { %v11769_v25 = vpop.f32.mrb[51].mxu0 }
 0x9da   :  { %v11771_v58 = vpop.f32.mrb[52].mxu0 }
 0x9db   :  { %v11773_v31 = vpop.f32.mrb[53].mxu0 }
 0x9de   :  { %v11777_v45 = vpop.f32.mrb[54].mxu0 }
 0x9df   :  { %v11779_v9 = vpop.f32.mrb[55].mxu0 }
 0x9e2   :  { %v11781_v48 = vpop.f32.mrb[56].mxu0 }
 0x9e3   :  { %v11784_v44 = vpop.f32.mrb[57].mxu0 }
 0x9e6   :  { %v11788_v42 = vpop.f32.mrb[58].mxu0 }
 0x9e7   :  { %v11790_v37 = vpop.f32.mrb[59].mxu0 }
 0x9ea   :  { %v8416_v13 = vpop.f32.mrb[60].mxu0 }
 0x9eb   :  { %2572 = vrot.lane.b32.xlu0 %v8416_v13, %s10615_s25  ;;  %v2487_v10 = vpop.f32.mrb[61].mxu0 }
 0x9ee   :  { %v8419_v51 = vpop.f32.mrb[62].mxu0 }
 0x9ef   :  { %2570 = vrot.lane.b32.xlu0 %v2487_v10, %s10615_s25  ;;  %v2497_v41 = vpop.f32.mrb[63].mxu0 }
 0x9f2   :  { %v8422_v60 = vpop.f32.mrb[64].mxu0 }
 0x9f3   :  { %2576 = vrot.lane.b32.xlu0 %v8419_v51, %s10615_s25  ;;  %v2507_v38 = vpop.f32.mrb[65].mxu0 }
 0x9f6   :  { %v8425_v34 = vpop.f32.mrb[66].mxu0 }
 0x9f7   :  { %2574 = vrot.lane.b32.xlu0 %v2497_v41, %s10615_s25  ;;  %v2517_v7 = vpop.f32.mrb[67].mxu0 }
 0x9fa   :  { %v8428_v3 = vpop.f32.mrb[68].mxu0 }
 0x9fb   :  { %2580 = vrot.lane.b32.xlu0 %v8422_v60, %s10615_s25  ;;  %v2527_v53 = vpop.f32.mrb[69].mxu0 }
 0x9fe   :  { %v8431_v43 = vpop.f32.mrb[70].mxu0 }
 0x9ff   :  { %2578 = vrot.lane.b32.xlu0 %v2507_v38, %s10615_s25  ;;  %v2537_v13 = vpop.f32.mrb[71].mxu0 }
 0xa02   :  { %v8434_v19 = vpop.f32.mrb[72].mxu0 }
 0xa03   :  { %2584 = vrot.lane.b32.xlu0 %v8425_v34, %s10615_s25  ;;  %v2547_v10 = vpop.f32.mrb[73].mxu0 }
 0xa07   :  { %2582 = vrot.lane.b32.xlu0 %v2517_v7, %s10615_s25 }
 0xa0b   :  { %2588 = vrot.lane.b32.xlu0 %v8428_v3, %s10615_s25 }
 0xa0f   :  { %2586 = vrot.lane.b32.xlu0 %v2527_v53, %s10615_s25 }
 0xa13   :  { %2592 = vrot.lane.b32.xlu0 %v8431_v43, %s10615_s25 }
 0xa17   :  { %2590 = vrot.lane.b32.xlu0 %v2537_v13, %s10615_s25 }
 0xa1b   :  { %2594 = vrot.lane.b32.xlu0 %v2547_v10, %s10615_s25 }
 0xa1f   :  { %2596 = vrot.lane.b32.xlu0 %v8434_v19, %s10615_s25 }
 0xa5d   :  { %v2573_v51 = vpop.permute.xlu0 %2572 }
 0xa5e   :  { %v2613_v41 = vsel %vm1436_vm6, %v8395_v39, %v2573_v51 }
 0xa5f   :  { %v2627_v53 = vsel %vm1451_vm7, %v2613_v41, %v11326_v16 }
 0xa61   :  { %v2571_v60 = vpop.permute.xlu0 %2570 }
 0xa62   :  { %v2612_v34 = vsel %vm1436_vm6, %v2417_v8, %v2571_v60 }
 0xa63   :  { %v2626_v38 = vsel %vm1451_vm7, %v2612_v34, %v11318_v49 }
 0xa64   :  { %8453 = vmatprep.mubr.msk.f32.mxu1 %vm1486_vm8, %v2626_v38 }
 0xa65   :  { %8454 = vmatmul.mubr.msk.f32.vlgmr.msra.gmra.mrb[46].mxu1 %vm1486_vm8, %v2627_v53  ;;  %v2577_v43 = vpop.permute.xlu0 %2576 }
 0xa66   :  { %v2615_v3 = vsel %vm1436_vm6, %v8398_v28, %v2577_v43 }
 0xa67   :  { %v2629_v8 = vsel %vm1451_vm7, %v2615_v3, %v11334_v61 }
 0xa69   :  { %v2575_v19 = vpop.permute.xlu0 %2574 }
 0xa6a   :  { %v2614_v7 = vsel %vm1436_vm6, %v2427_v57, %v2575_v19 }
 0xa6b   :  { %v2628_v39 = vsel %vm1451_vm7, %v2614_v7, %v11330_v50 }
 0xa6c   :  { %8456 = vmatprep.mubr.msk.f32.mxu1 %vm1486_vm8, %v2628_v39 }
 0xa6d   :  { %8457 = vmatmul.mubr.msk.f32.gmra.mrb[48].mxu1 %vm1486_vm8, %v2629_v8  ;;  %v2581_v13 = vpop.permute.xlu0 %2580 }
 0xa6e   :  { %v2617_v10 = vsel %vm1436_vm6, %v11767_v55, %v2581_v13  ;;  %v13261_v13 = vld [vmem:[#allocation114_spill] sm:$0xff] }
 0xa6f   :  { %v2631_v41 = vsel %vm1451_vm7, %v2617_v10, %v11338_v0 }
 0xa71   :  { %v2579_v51 = vpop.permute.xlu0 %2578 }
 0xa72   :  { %v2616_v28 = vsel %vm1436_vm6, %v11769_v25, %v2579_v51  ;;  %v13262_v51 = vld [vmem:[#allocation115_spill] sm:$0xff] }
 0xa73   :  { %v2630_v57 = vsel %vm1451_vm7, %v2616_v28, %v11336_v63 }
 0xa74   :  { %8459 = vmatprep.mubr.msk.f32.mxu1 %vm1486_vm8, %v2630_v57 }
 0xa75   :  { %8460 = vmatmul.mubr.msk.f32.gmra.mrb[50].mxu1 %vm1486_vm8, %v2631_v41  ;;  %v2585_v60 = vpop.permute.xlu0 %2584  ;;  %v13263_v41 = vld [vmem:[#allocation117_spill] sm:$0xff] }
 0xa76   :  { %v2619_v34 = vsel %vm1436_vm6, %v11771_v58, %v2585_v60 }
 0xa77   :  { %v2633_v53 = vsel %vm1451_vm7, %v2619_v34, %v11342_v4 }
 0xa79   :  { %v2583_v38 = vpop.permute.xlu0 %2582 }
 0xa7a   :  { %v2618_v55 = vsel %vm1436_vm6, %v11773_v31, %v2583_v38  ;;  %v13266_v38 = vld [vmem:[#allocation116_spill] sm:$0xff] }
 0xa7b   :  { %v2632_v25 = vsel %vm1451_vm7, %v2618_v55, %v11340_v1 }
 0xa7c   :  { %8462 = vmatprep.mubr.msk.f32.mxu1 %vm1486_vm8, %v2632_v25  ;;  %v455_v25 = vld [vmem:[%s13260_s15] sm:$0xff] }
 0xa7d   :  { %8463 = vmatmul.mubr.msk.f32.gmra.mrb[52].mxu1 %vm1486_vm8, %v2633_v53  ;;  %v2589_v43 = vpop.permute.xlu0 %2588  ;;  %v456_v53 = vld [vmem:[%s13260_s15 + $0x8] sm:$0xff] }
 0xa7e   :  { %v2621_v3 = vsel %vm1436_vm6, %v11777_v45, %v2589_v43  ;;  %v9186_v43 = vpack.c.bf16 %v456_v53, %v455_v25 }
 0xa7f   :  { %v2635_v7 = vsel %vm1451_vm7, %v2621_v3, %v11348_v62  ;;  %v458_v3 = vld [vmem:[%s13260_s15 + $0x18] sm:$0xff] }
 0xa80   :  { %9187 = vmatprep.subr.bf16.mxu1 %v9186_v43 }
 0xa81   :  { %v2587_v19 = vpop.permute.xlu0 %2586  ;;  %9189 = vmatpush3.bf16.msra.mxu1 %v9186_v43 }
 0xa82   :  { %v2620_v58 = vsel %vm1436_vm6, %v11779_v9, %v2587_v19 }
 0xa83   :  { %v2634_v31 = vsel %vm1451_vm7, %v2620_v58, %v11344_v2  ;;  %v11877_v58 = vld [vmem:[%s13264_s3] ss:$0 sm:$0xff]  ;;  %s10620_s3 = smov [#allocation26]  }
 0xa84   :  { %8465 = vmatprep.mubr.msk.f32.mxu1 %vm1486_vm8, %v2634_v31  ;;  %v13267_v31 = vld [vmem:[#allocation121_spill] sm:$0xff] }
 0xa85   :  { %8466 = vmatmul.mubr.msk.f32.gmra.mrb[54].mxu1 %vm1486_vm8, %v2635_v7  ;;  %v2593_v39 = vpop.permute.xlu0 %2592  ;;  %v11882_v7 = vld [vmem:[%s13265_s6] ss:$0 sm:$0xff]  ;;  %s7106_s6 = sshll.u32 %s10620_s3, 4  ;;  %s7107_s6 = int_to_ptr.vmem [resolvable:$true] %s7106_s6 }
 0xa86   :  { %v2623_v8 = vsel %vm1436_vm6, %v11781_v48, %v2593_v39  ;;  %p10457_p1 = scmp.lt.s32.totalorder %s7107_s6, %s7107_s6 }
 0xa87   :  { %v2637_v28 = vsel %vm1451_vm7, %v2623_v8, %v13262_v51  ;;  %v13268_v8 = vld [vmem:[#allocation118_spill] sm:$0xff] }
 0xa89   :  { %v2591_v45 = vpop.permute.xlu0 %2590 }
 0xa8a   :  { %v2622_v9 = vsel %vm1436_vm6, %v11784_v44, %v2591_v45  ;;  %v2646_v45 = vmul.f32 %v11877_v58, %v13268_v8 }
 0xa8b   :  { %v2636_v10 = vsel %vm1451_vm7, %v2622_v9, %v13261_v13 }
 0xa8c   :  { %8468 = vmatprep.mubr.msk.f32.mxu1 %vm1486_vm8, %v2636_v10 }
 0xa8d   :  { %8469 = vmatmul.mubr.msk.f32.gmra.mrb[56].mxu1 %vm1486_vm8, %v2637_v28  ;;  %v2595_v57 = vpop.permute.xlu0 %2594 }
 0xa8e   :  { %v2624_v48 = vsel %vm1436_vm6, %v11790_v37, %v2595_v57  ;;  %v457_v37 = vld [vmem:[%s13260_s15 + $0x10] sm:$0xff]  ;;  %s13368_s15 = sld [smem:[#allocation82_spill]] }
 0xa8f   :  { %v2638_v60 = vsel %vm1451_vm7, %v2624_v48, %v13263_v41  ;;  %v9190_v19 = vpack.c.bf16 %v458_v3, %v457_v37  ;;  %v13270_v37 = vld [vmem:[#allocation119_spill] sm:$0xff] }
 0xa90   :  { %8471 = vmatprep.mubr.msk.f32.mxu1 %vm1486_vm8, %v2638_v60  ;;  %v2648_v3 = vmul.f32 %v11877_v58, %v13270_v37 }
 0xa91   :  { %v2597_v44 = vpop.permute.xlu0 %2596  ;;  %9191 = vmatprep.subr.bf16.mxu1 %v9190_v19 }
 0xa92   :  { %v2625_v34 = vsel %vm1436_vm6, %v11788_v42, %v2597_v44  ;;  %9193 = vmatpush3.bf16.msra.mxu1 %v9190_v19  ;;  %v2647_v42 = vmul.f32 %v11877_v58, %v13267_v31 }
 0xa93   :  { %v2639_v55 = vsel %vm1451_vm7, %v2625_v34, %v13266_v38 }
 0xa94   :  { %8472 = vmatmul.mubr.msk.f32.gmra.mrb[58].mxu1 %vm1486_vm8, %v2639_v55  ;;  %v13269_v55 = vld [vmem:[#allocation120_spill] sm:$0xff] }
 0xa95   :  { %v2649_v25 = vmul.f32 %v11877_v58, %v13269_v55 }
 0xb38   :  { %v8455_v39 = vpop.f32.mrb[46].mxu1 }
 0xb39   :  { %v2777_v9 = vadd.f32 %v8455_v39, %v2647_v42  ;;  %v2771_v10 = vpop.f32.mrb[47].mxu1 }
 0xb3a   :  { %v2772_v28 = vadd.f32 %v2771_v10, %v2646_v45 }
 0xb3b   :  { %v11887_v57 = vadd.f32 %v11882_v7, %v2777_v9 }
 0xb3c   :  { %v11890_v48 = vadd.f32 %v11882_v7, %v2772_v28 }
 0xb3d   :  { %v2861_v60 = vsub.f32 0.0, %v11887_v57 }
 0xb3e   :  { %v2860_v44 = vsub.f32 0.0, %v11890_v48 }
 0xb3f   :  { %v2876_v34 = vmul.f32 1.442695, %v2861_v60 }
 0xb40   :  { %v2874_v53 = vmul.f32 1.442695, %v2860_v44  ;;  %v8458_v43 = vpop.f32.mrb[48].mxu1  ;;  %v13271_v44 = vld [vmem:[#allocation122_spill] sm:$0xff] }
 0xb41   :  { %9706 = vpow2.f32 %v2876_v34  ;;  %v2787_v19 = vadd.f32 %v8458_v43, %v2649_v25  ;;  %v2781_v42 = vpop.f32.mrb[49].mxu1  ;;  %v2651_v55 = vmul.f32 %v11877_v58, %v13271_v44  ;;  %v13272_v25 = vld [vmem:[#allocation123_spill] sm:$0xff] }
 0xb42   :  { %9708 = vpow2.f32 %v2874_v53  ;;  %v2782_v39 = vadd.f32 %v2781_v42, %v2648_v3  ;;  %v2650_v53 = vmul.f32 %v11877_v58, %v13272_v25 }
 0xb43   :  { %v11899_v45 = vadd.f32 %v11882_v7, %v2787_v19 }
 0xb44   :  { %v11902_v9 = vadd.f32 %v11882_v7, %v2782_v39 }
 0xb45   :  { %v2863_v10 = vsub.f32 0.0, %v11899_v45 }
 0xb46   :  { %v2862_v28 = vsub.f32 0.0, %v11902_v9 }
 0xb47   :  { %v2880_v60 = vmul.f32 1.442695, %v2863_v10 }
 0xb48   :  { %v2878_v37 = vmul.f32 1.442695, %v2862_v28  ;;  %v8461_v34 = vpop.f32.mrb[50].mxu1 }
 0xb49   :  { %9710 = vpow2.f32 %v2880_v60  ;;  %v2797_v43 = vadd.f32 %v8461_v34, %v2651_v55  ;;  %v2791_v3 = vpop.f32.mrb[51].mxu1  ;;  %v13273_v60 = vld [vmem:[#allocation124_spill] sm:$0xff] }
 0xb4a   :  { %9712 = vpow2.f32 %v2878_v37  ;;  %v2792_v19 = vadd.f32 %v2791_v3, %v2650_v53  ;;  %v2653_v37 = vmul.f32 %v11877_v58, %v13273_v60 }
 0xb4b   :  { %v9707_v42 = vpop.eup %9706  ;;  %v11911_v39 = vadd.f32 %v11882_v7, %v2797_v43  ;;  %v13274_v43 = vld [vmem:[#allocation125_spill] sm:$0xff] }
 0xb4c   :  { %v9709_v8 = vpop.eup %9708  ;;  %v2903_v31 = vadd.f32 1.0, %v9707_v42  ;;  %v11914_v10 = vadd.f32 %v11882_v7, %v2792_v19  ;;  %v2652_v3 = vmul.f32 %v11877_v58, %v13274_v43 }
 0xb4d   :  { %v2902_v44 = vadd.f32 1.0, %v9709_v8  ;;  %v2865_v28 = vsub.f32 0.0, %v11911_v39 }
 0xb4e   :  { %9714 = vrcp.f32 %v2903_v31  ;;  %v2864_v25 = vsub.f32 0.0, %v11914_v10 }
 0xb4f   :  { %9716 = vrcp.f32 %v2902_v44  ;;  %v2884_v55 = vmul.f32 1.442695, %v2865_v28 }
 0xb50   :  { %v2882_v34 = vmul.f32 1.442695, %v2864_v25  ;;  %v8464_v53 = vpop.f32.mrb[52].mxu1 }
 0xb51   :  { %9718 = vpow2.f32 %v2884_v55  ;;  %v2807_v42 = vadd.f32 %v8464_v53, %v2653_v37  ;;  %v2801_v19 = vpop.f32.mrb[53].mxu1  ;;  %v13275_v37 = vld [vmem:[#allocation126_spill] sm:$0xff] }
 0xb52   :  { %9720 = vpow2.f32 %v2882_v34  ;;  %v2802_v8 = vadd.f32 %v2801_v19, %v2652_v3  ;;  %v2655_v34 = vmul.f32 %v11877_v58, %v13275_v37  ;;  %v13276_v19 = vld [vmem:[#allocation127_spill] sm:$0xff] }
 0xb53   :  { %v9711_v38 = vpop.eup %9710  ;;  %v11923_v31 = vadd.f32 %v11882_v7, %v2807_v42 }
 0xb54   :  { %v9713_v41 = vpop.eup %9712  ;;  %v2905_v44 = vadd.f32 1.0, %v9711_v38  ;;  %v11926_v28 = vadd.f32 %v11882_v7, %v2802_v8  ;;  %v2654_v38 = vmul.f32 %v11877_v58, %v13276_v19 }
 0xb55   :  { %v2904_v60 = vadd.f32 1.0, %v9713_v41  ;;  %v2867_v25 = vsub.f32 0.0, %v11923_v31 }
 0xb56   :  { %9722 = vrcp.f32 %v2905_v44  ;;  %v2866_v43 = vsub.f32 0.0, %v11926_v28 }
 0xb57   :  { %9724 = vrcp.f32 %v2904_v60  ;;  %v2888_v55 = vmul.f32 1.442695, %v2867_v25 }
 0xb58   :  { %v9715_v53 = vpop.eup %9714  ;;  %v2886_v3 = vmul.f32 1.442695, %v2866_v43  ;;  %v8467_v42 = vpop.f32.mrb[54].mxu1 }
 0xb59   :  { %v9717_v51 = vpop.eup %9716  ;;  %9726 = vpow2.f32 %v2888_v55  ;;  %v2817_v8 = vadd.f32 %v8467_v42, %v2655_v34  ;;  %v2811_v41 = vpop.f32.mrb[55].mxu1  ;;  %v2945_v60 = vmul.f32 %v9715_v53, %v11887_v57 }
 0xb5a   :  { %v2944_v13 = vmul.f32 %v9717_v51, %v11890_v48  ;;  %9728 = vpow2.f32 %v2886_v3  ;;  %v2812_v44 = vadd.f32 %v2811_v41, %v2654_v38  ;;  %v13277_v48 = vld [vmem:[#allocation128_spill] sm:$0xff]  ;;  %v13278_v38 = vld [vmem:[#allocation129_spill] sm:$0xff] }
 0xb5b   :  { %v9719_v62 = vpop.eup %9718  ;;  %v11937_v25 = vadd.f32 %v11882_v7, %v2817_v8  ;;  %v2657_v53 = vmul.f32 %v11877_v58, %v13277_v48  ;;  %v2656_v8 = vmul.f32 %v11877_v58, %v13278_v38 }
 0xb5c   :  { %v9721_v37 = vpop.eup %9720  ;;  %v2907_v43 = vadd.f32 1.0, %v9719_v62  ;;  %v11940_v2 = vadd.f32 %v11882_v7, %v2812_v44  ;;  %8482 = vmatprep.mubr.msk.f32.mxu1 %vm1436_vm6, %v2944_v13 }
 0xb5d   :  { %v2906_v55 = vadd.f32 1.0, %v9721_v37  ;;  %v2869_v34 = vsub.f32 0.0, %v11937_v25  ;;  %8483 = vmatmul.mubr.msk.f32.vlgmr.msra.gmra.mrb[60].mxu1 %vm1436_vm6, %v2945_v60 }
 0xb5e   :  { %9730 = vrcp.f32 %v2907_v43  ;;  %v2868_v51 = vsub.f32 0.0, %v11940_v2 }
 0xb5f   :  { %9732 = vrcp.f32 %v2906_v55  ;;  %v2892_v57 = vmul.f32 1.442695, %v2869_v34 }
 0xb60   :  { %v9723_v3 = vpop.eup %9722  ;;  %v2890_v62 = vmul.f32 1.442695, %v2868_v51  ;;  %v8470_v42 = vpop.f32.mrb[56].mxu1 }
 0xb61   :  { %v9725_v13 = vpop.eup %9724  ;;  %9734 = vpow2.f32 %v2892_v57  ;;  %v2827_v37 = vadd.f32 %v8470_v42, %v2657_v53  ;;  %v2821_v41 = vpop.f32.mrb[57].mxu1  ;;  %v2947_v55 = vmul.f32 %v9723_v3, %v11899_v45 }
 0xb62   :  { %v2946_v44 = vmul.f32 %v9725_v13, %v11902_v9  ;;  %9736 = vpow2.f32 %v2890_v62  ;;  %v2822_v60 = vadd.f32 %v2821_v41, %v2656_v8  ;;  %v13279_v62 = vld [vmem:[#allocation130_spill] sm:$0xff]  ;;  %v2658_v8 = vmul.f32 %v11877_v58, %v11543_v47 }
 0xb63   :  { %v9727_v43 = vpop.eup %9726  ;;  %v11953_v34 = vadd.f32 %v11882_v7, %v2827_v37  ;;  %v2659_v45 = vmul.f32 %v11877_v58, %v13279_v62 }
 0xb64   :  { %v9729_v48 = vpop.eup %9728  ;;  %v2909_v51 = vadd.f32 1.0, %v9727_v43  ;;  %v11956_v19 = vadd.f32 %v11882_v7, %v2822_v60  ;;  %8485 = vmatprep.mubr.msk.f32.mxu1 %vm1436_vm6, %v2946_v44 }
 0xb65   :  { %v2908_v57 = vadd.f32 1.0, %v9729_v48  ;;  %v2871_v53 = vsub.f32 0.0, %v11953_v34  ;;  %8486 = vmatmul.mubr.msk.f32.gmra.mrb[62].mxu1 %vm1436_vm6, %v2947_v55 }
 0xb66   :  { %9738 = vrcp.f32 %v2909_v51  ;;  %v2870_v9 = vsub.f32 0.0, %v11956_v19 }
 0xb67   :  { %9740 = vrcp.f32 %v2908_v57  ;;  %v2896_v3 = vmul.f32 1.442695, %v2871_v53  ;;  %v8473_v42 = vpop.f32.mrb[58].mxu1 }
 0xb68   :  { %v9731_v13 = vpop.eup %9730  ;;  %v2894_v37 = vmul.f32 1.442695, %v2870_v9  ;;  %v2837_v41 = vadd.f32 %v8473_v42, %v2659_v45  ;;  %v2831_v48 = vpop.f32.mrb[59].mxu1 }
 0xb69   :  { %v9733_v44 = vpop.eup %9732  ;;  %9742 = vpow2.f32 %v2896_v3  ;;  %v2832_v60 = vadd.f32 %v2831_v48, %v2658_v8  ;;  %v2949_v57 = vmul.f32 %v9731_v13, %v11911_v39 }
 0xb6a   :  { %v2948_v43 = vmul.f32 %v9733_v44, %v11914_v10  ;;  %9744 = vpow2.f32 %v2894_v37  ;;  %v2859_v55 = vadd.f32 %v11882_v7, %v2837_v41 }
 0xb6b   :  { %v9735_v51 = vpop.eup %9734  ;;  %v2858_v53 = vadd.f32 %v11882_v7, %v2832_v60 }
 0xb6c   :  { %v9737_v62 = vpop.eup %9736  ;;  %v2911_v38 = vadd.f32 1.0, %v9735_v51  ;;  %v2873_v58 = vsub.f32 0.0, %v2859_v55  ;;  %8488 = vmatprep.mubr.msk.f32.mxu1 %vm1436_vm6, %v2948_v43 }
 0xb6d   :  { %v2910_v9 = vadd.f32 1.0, %v9737_v62  ;;  %v2872_v45 = vsub.f32 0.0, %v2858_v53  ;;  %8489 = vmatmul.mubr.msk.f32.gmra.mrb[64].mxu1 %vm1436_vm6, %v2949_v57 }
 0xb6e   :  { %9746 = vrcp.f32 %v2911_v38  ;;  %v2900_v3 = vmul.f32 1.442695, %v2873_v58 }
 0xb6f   :  { %9748 = vrcp.f32 %v2910_v9  ;;  %v2898_v10 = vmul.f32 1.442695, %v2872_v45 }
 0xb70   :  { %v9739_v42 = vpop.eup %9738  ;;  %9750 = vpow2.f32 %v2900_v3 }
 0xb71   :  { %v9741_v8 = vpop.eup %9740  ;;  %9752 = vpow2.f32 %v2898_v10  ;;  %v2951_v13 = vmul.f32 %v9739_v42, %v11923_v31  ;;  %v11987_v42 = vld [vmem:[%s13280_s0] ss:$0 sm:$0xff]  ;;  %s10452_s0 = scalar_lea.vmem %s7107_s6, 256 }
 0xb72   :  { %v2950_v39 = vmul.f32 %v9741_v8, %v11926_v28  ;;  %p10453_p0 = scmp.ne.s32.totalorder %s7107_s6, %s10452_s0  ;;  %p10458_p2 = scmp.lt.s32.totalorder %s10452_s0, %s10452_s0 }
 0xb73   :  { %v9743_v7 = vpop.eup %9742 }
 0xb74   :  { %v9745_v37 = vpop.eup %9744  ;;  %v2913_v41 = vadd.f32 1.0, %v9743_v7  ;;  %8491 = vmatprep.mubr.msk.f32.mxu1 %vm1436_vm6, %v2950_v39  ;;  %p10459_p3 = por %p10458_p2, %p10457_p1 }
 0xb75   :  { %v2912_v62 = vadd.f32 1.0, %v9745_v37  ;;  %8492 = vmatmul.mubr.msk.f32.gmra.mrb[66].mxu1 %vm1436_vm6, %v2951_v13 }
 0xb76   :  { %9754 = vrcp.f32 %v2913_v41  ;;  %p10460_p4 = pnand %p10459_p3, %p10453_p0 }
 0xb77   :  { %9756 = vrcp.f32 %v2912_v62 }
 0xb78   :  { %v9747_v38 = vpop.eup %9746 }
 0xb79   :  { %v9749_v48 = vpop.eup %9748  ;;  %v2953_v28 = vmul.f32 %v9747_v38, %v11937_v25 }
 0xb7a   :  { %v9751_v44 = vpop.eup %9750  ;;  %v2952_v60 = vmul.f32 %v9749_v48, %v11940_v2 }
 0xb7b   :  { %v9753_v43 = vpop.eup %9752  ;;  %v2915_v51 = vadd.f32 1.0, %v9751_v44 }
 0xb7c   :  { %v2914_v57 = vadd.f32 1.0, %v9753_v43  ;;  %8494 = vmatprep.mubr.msk.f32.mxu1 %vm1436_vm6, %v2952_v60 }
 0xb7d   :  { %9758 = vrcp.f32 %v2915_v51  ;;  %8495 = vmatmul.mubr.msk.f32.gmra.mrb[68].mxu1 %vm1436_vm6, %v2953_v28 }
 0xb7e   :  { %9760 = vrcp.f32 %v2914_v57 }
 0xb80   :  { %v9755_v31 = vpop.eup %9754 }
 0xb81   :  { %v9757_v58 = vpop.eup %9756  ;;  %v2955_v45 = vmul.f32 %v9755_v31, %v11953_v34 }
 0xb82   :  { %v2954_v9 = vmul.f32 %v9757_v58, %v11956_v19 }
 0xb84   :  { %8497 = vmatprep.mubr.msk.f32.mxu1 %vm1436_vm6, %v2954_v9 }
 0xb85   :  { %8498 = vmatmul.mubr.msk.f32.gmra.mrb[70].mxu1 %vm1436_vm6, %v2955_v45 }
 0xb87   :  { %v9759_v2 = vpop.eup %9758 }
 0xb88   :  { %v9761_v25 = vpop.eup %9760  ;;  %v2957_v10 = vmul.f32 %v9759_v2, %v2859_v55 }
 0xb89   :  { %v2956_v3 = vmul.f32 %v9761_v25, %v2858_v53 }
 0xb8b   :  { %8500 = vmatprep.mubr.msk.f32.mxu1 %vm1436_vm6, %v2956_v3 }
 0xb8c   :  { %8501 = vmatmul.mubr.msk.f32.gmra.mrb[72].mxu1 %vm1436_vm6, %v2957_v10 }
 0xc30   :  { %v8484_v8 = vpop.f32.mrb[60].mxu1 }
 0xc31   :  { %v3078_v39 = vadd.f32 %v8484_v8, %v11987_v42  ;;  %v3072_v19 = vpop.f32.mrb[61].mxu1 }
 0xc32   :  { %v3073_v34 = vadd.f32 %v11987_v42, %v3072_v19 }
 0xc33   :  { %v3142_v7 = vsub.f32 0.0, %v3078_v39 }
 0xc34   :  { %v3141_v13 = vsub.f32 0.0, %v3073_v34 }
 0xc35   :  { %v3157_v37 = vmul.f32 1.442695, %v3142_v7 }
 0xc36   :  { %v3155_v41 = vmul.f32 1.442695, %v3141_v13 }
 0xc37   :  { %9762 = vpow2.f32 %v3157_v37 }
 0xc38   :  { %9764 = vpow2.f32 %v3155_v41  ;;  %v8487_v53 = vpop.f32.mrb[62].mxu1 }
 0xc39   :  { %v11992_v55 = vadd.f32 %v8487_v53, %v11987_v42  ;;  %v3082_v62 = vpop.f32.mrb[63].mxu1 }
 0xc3a   :  { %v11995_v38 = vadd.f32 %v11987_v42, %v3082_v62 }
 0xc3b   :  { %v3144_v48 = vsub.f32 0.0, %v11992_v55 }
 0xc3c   :  { %v3143_v44 = vsub.f32 0.0, %v11995_v38 }
 0xc3d   :  { %v3161_v60 = vmul.f32 1.442695, %v3144_v48 }
 0xc3e   :  { %v3159_v43 = vmul.f32 1.442695, %v3143_v44 }
 0xc3f   :  { %9766 = vpow2.f32 %v3161_v60 }
 0xc40   :  { %9768 = vpow2.f32 %v3159_v43  ;;  %v8490_v28 = vpop.f32.mrb[64].mxu1 }
 0xc41   :  { %v9763_v51 = vpop.eup %9762  ;;  %v12000_v57 = vadd.f32 %v8490_v28, %v11987_v42  ;;  %v3092_v31 = vpop.f32.mrb[65].mxu1 }
 0xc42   :  { %v9765_v58 = vpop.eup %9764  ;;  %v3184_v9 = vadd.f32 1.0, %v9763_v51  ;;  %v12003_v45 = vadd.f32 %v11987_v42, %v3092_v31 }
 0xc43   :  { %v3183_v2 = vadd.f32 1.0, %v9765_v58  ;;  %v3146_v25 = vsub.f32 0.0, %v12000_v57 }
 0xc44   :  { %9770 = vrcp.f32 %v3184_v9  ;;  %v3145_v3 = vsub.f32 0.0, %v12003_v45 }
 0xc45   :  { %9772 = vrcp.f32 %v3183_v2  ;;  %v3165_v10 = vmul.f32 1.442695, %v3146_v25 }
 0xc46   :  { %v3163_v8 = vmul.f32 1.442695, %v3145_v3 }
 0xc47   :  { %9774 = vpow2.f32 %v3165_v10 }
 0xc48   :  { %9776 = vpow2.f32 %v3163_v8  ;;  %v8493_v19 = vpop.f32.mrb[66].mxu1 }
 0xc49   :  { %v9767_v7 = vpop.eup %9766  ;;  %v12008_v13 = vadd.f32 %v8493_v19, %v11987_v42  ;;  %v3102_v37 = vpop.f32.mrb[67].mxu1 }
 0xc4a   :  { %v9769_v41 = vpop.eup %9768  ;;  %v3186_v53 = vadd.f32 1.0, %v9767_v7  ;;  %v12011_v62 = vadd.f32 %v11987_v42, %v3102_v37 }
 0xc4b   :  { %v3185_v48 = vadd.f32 1.0, %v9769_v41  ;;  %v3148_v44 = vsub.f32 0.0, %v12008_v13 }
 0xc4c   :  { %9778 = vrcp.f32 %v3186_v53  ;;  %v3147_v60 = vsub.f32 0.0, %v12011_v62 }
 0xc4d   :  { %9780 = vrcp.f32 %v3185_v48  ;;  %v3169_v43 = vmul.f32 1.442695, %v3148_v44 }
 0xc4e   :  { %v9771_v28 = vpop.eup %9770  ;;  %v3167_v51 = vmul.f32 1.442695, %v3147_v60 }
 0xc4f   :  { %v9773_v31 = vpop.eup %9772  ;;  %v3226_v58 = vmul.f32 %v9771_v28, %v3078_v39  ;;  %9782 = vpow2.f32 %v3169_v43 }
 0xc50   :  { %v3225_v9 = vmul.f32 %v9773_v31, %v3073_v34  ;;  %9784 = vpow2.f32 %v3167_v51  ;;  %v8496_v2 = vpop.f32.mrb[68].mxu1 }
 0xc51   :  { %v9775_v25 = vpop.eup %9774  ;;  %v12016_v3 = vadd.f32 %v8496_v2, %v11987_v42  ;;  %v3112_v10 = vpop.f32.mrb[69].mxu1 }
 0xc52   :  { %v9777_v8 = vpop.eup %9776  ;;  %v3188_v19 = vadd.f32 1.0, %v9775_v25  ;;  %v12019_v7 = vadd.f32 %v11987_v42, %v3112_v10  ;;  %v9194_v37 = vpack.c.bf16 %v3226_v58, %v3225_v9 }
 0xc53   :  { %v3187_v41 = vadd.f32 1.0, %v9777_v8  ;;  %v3150_v53 = vsub.f32 0.0, %v12016_v3 }
 0xc54   :  { %9786 = vrcp.f32 %v3188_v19  ;;  %v3149_v39 = vsub.f32 0.0, %v12019_v7  ;;  %9195 = vmatprep.subr.bf16.mxu0 %v9194_v37 }
 0xc55   :  { %9788 = vrcp.f32 %v3187_v41  ;;  %v3173_v34 = vmul.f32 1.442695, %v3150_v53  ;;  %9197 = vmatpush3.bf16.msra.mxu0 %v9194_v37 }
 0xc56   :  { %v9779_v48 = vpop.eup %9778  ;;  %v3171_v44 = vmul.f32 1.442695, %v3149_v39 }
 0xc57   :  { %v9781_v60 = vpop.eup %9780  ;;  %v3228_v43 = vmul.f32 %v9779_v48, %v11992_v55  ;;  %9790 = vpow2.f32 %v3173_v34 }
 0xc58   :  { %v3227_v28 = vmul.f32 %v9781_v60, %v11995_v38  ;;  %9792 = vpow2.f32 %v3171_v44  ;;  %v8499_v51 = vpop.f32.mrb[70].mxu1 }
 0xc59   :  { %v9783_v31 = vpop.eup %9782  ;;  %v12026_v58 = vadd.f32 %v8499_v51, %v11987_v42  ;;  %v3122_v9 = vpop.f32.mrb[71].mxu1 }
 0xc5a   :  { %v9785_v2 = vpop.eup %9784  ;;  %v3190_v25 = vadd.f32 1.0, %v9783_v31  ;;  %v12029_v10 = vadd.f32 %v11987_v42, %v3122_v9  ;;  %v9198_v8 = vpack.c.bf16 %v3228_v43, %v3227_v28 }
 0xc5b   :  { %v3189_v19 = vadd.f32 1.0, %v9785_v2  ;;  %v3152_v37 = vsub.f32 0.0, %v12026_v58 }
 0xc5c   :  { %9794 = vrcp.f32 %v3190_v25  ;;  %v3151_v55 = vsub.f32 0.0, %v12029_v10  ;;  %9199 = vmatprep.subr.bf16.mxu0 %v9198_v8 }
 0xc5d   :  { %9796 = vrcp.f32 %v3189_v19  ;;  %v3177_v38 = vmul.f32 1.442695, %v3152_v37  ;;  %9201 = vmatpush3.bf16.msra.mxu0 %v9198_v8 }
 0xc5e   :  { %v9787_v41 = vpop.eup %9786  ;;  %v3175_v53 = vmul.f32 1.442695, %v3151_v55 }
 0xc5f   :  { %v9789_v39 = vpop.eup %9788  ;;  %v3230_v34 = vmul.f32 %v9787_v41, %v12000_v57  ;;  %9798 = vpow2.f32 %v3177_v38  ;;  %v8502_v48 = vpop.f32.mrb[72].mxu1 }
 0xc60   :  { %v3229_v44 = vmul.f32 %v9789_v39, %v12003_v45  ;;  %9800 = vpow2.f32 %v3175_v53  ;;  %v3138_v60 = vadd.f32 %v8502_v48, %v11987_v42  ;;  %v3132_v43 = vpop.f32.mrb[73].mxu1 }
 0xc61   :  { %v9791_v28 = vpop.eup %9790  ;;  %v3133_v51 = vadd.f32 %v11987_v42, %v3132_v43 }
 0xc62   :  { %v9793_v31 = vpop.eup %9792  ;;  %v3192_v9 = vadd.f32 1.0, %v9791_v28  ;;  %v3154_v2 = vsub.f32 0.0, %v3138_v60  ;;  %v9202_v25 = vpack.c.bf16 %v3230_v34, %v3229_v44 }
 0xc63   :  { %v3191_v8 = vadd.f32 1.0, %v9793_v31  ;;  %v3153_v19 = vsub.f32 0.0, %v3133_v51 }
 0xc64   :  { %9802 = vrcp.f32 %v3192_v9  ;;  %v3181_v37 = vmul.f32 1.442695, %v3154_v2  ;;  %9203 = vmatprep.subr.bf16.mxu0 %v9202_v25 }
 0xc65   :  { %9804 = vrcp.f32 %v3191_v8  ;;  %v3179_v57 = vmul.f32 1.442695, %v3153_v19  ;;  %9205 = vmatpush3.bf16.msra.mxu0 %v9202_v25 }
 0xc66   :  { %v9795_v45 = vpop.eup %9794  ;;  %9806 = vpow2.f32 %v3181_v37 }
 0xc67   :  { %v9797_v55 = vpop.eup %9796  ;;  %v3232_v38 = vmul.f32 %v9795_v45, %v12008_v13  ;;  %9808 = vpow2.f32 %v3179_v57 }
 0xc68   :  { %v3231_v42 = vmul.f32 %v9797_v55, %v12011_v62 }
 0xc69   :  { %v9799_v41 = vpop.eup %9798 }
 0xc6a   :  { %v9801_v53 = vpop.eup %9800  ;;  %v3194_v39 = vadd.f32 1.0, %v9799_v41  ;;  %v9206_v34 = vpack.c.bf16 %v3232_v38, %v3231_v42  ;;  %v462_v41 = vld [vmem:[%s13281_s16 + $0x10] sm:$0xff] }
 0xc6b   :  { %v3193_v48 = vadd.f32 1.0, %v9801_v53 }
 0xc6c   :  { %9810 = vrcp.f32 %v3194_v39  ;;  %9207 = vmatprep.subr.bf16.mxu0 %v9206_v34  ;;  %v463_v39 = vld [vmem:[%s13281_s16 + $0x18] sm:$0xff] }
 0xc6d   :  { %9812 = vrcp.f32 %v3193_v48  ;;  %9209 = vmatpush3.bf16.msra.mxu0 %v9206_v34  ;;  %v9226_v34 = vpack.c.bf16 %v463_v39, %v462_v41  ;;  %v464_v48 = vld [vmem:[%s13281_s16 + $0x20] sm:$0xff] }
 0xc6e   :  { %v9803_v44 = vpop.eup %9802 }
 0xc6f   :  { %v9805_v43 = vpop.eup %9804  ;;  %v3234_v28 = vmul.f32 %v9803_v44, %v12016_v3  ;;  %v465_v44 = vld [vmem:[%s13281_s16 + $0x28] sm:$0xff] }
 0xc70   :  { %v9807_v31 = vpop.eup %9806  ;;  %v3233_v9 = vmul.f32 %v9805_v43, %v12019_v7  ;;  %v467_v43 = vld [vmem:[%s13281_s16 + $0x38] sm:$0xff] }
 0xc71   :  { %v9809_v13 = vpop.eup %9808  ;;  %v3196_v2 = vadd.f32 1.0, %v9807_v31 }
 0xc72   :  { %v3195_v25 = vadd.f32 1.0, %v9809_v13  ;;  %v9210_v62 = vpack.c.bf16 %v3234_v28, %v3233_v9 }
 0xc73   :  { %9814 = vrcp.f32 %v3196_v2 }
 0xc74   :  { %9816 = vrcp.f32 %v3195_v25  ;;  %9211 = vmatprep.subr.bf16.mxu0 %v9210_v62 }
 0xc75   :  { %9213 = vmatpush3.bf16.msra.mxu0 %v9210_v62 }
 0xc76   :  { %v9811_v8 = vpop.eup %9810 }
 0xc77   :  { %v9813_v19 = vpop.eup %9812  ;;  %v3236_v37 = vmul.f32 %v9811_v8, %v12026_v58  ;;  %v460_v58 = vld [vmem:[%s13281_s16] sm:$0xff] }
 0xc78   :  { %v3235_v3 = vmul.f32 %v9813_v19, %v12029_v10  ;;  %v461_v10 = vld [vmem:[%s13281_s16 + $0x8] sm:$0xff]  ;;  %v469_v8 = vld [vmem:[%s13282_s30] sm:$0xff] }
 0xc79   :  { %v9222_v53 = vpack.c.bf16 %v461_v10, %v460_v58  ;;  %v470_v19 = vld [vmem:[%s13282_s30 + $0x8] sm:$0xff] }
 0xc7a   :  { %v9214_v57 = vpack.c.bf16 %v3236_v37, %v3235_v3  ;;  %v9238_v37 = vpack.c.bf16 %v470_v19, %v469_v8  ;;  %v471_v3 = vld [vmem:[%s13282_s30 + $0x10] sm:$0xff] }
 0xc7c   :  { %9215 = vmatprep.subr.bf16.mxu0 %v9214_v57  ;;  %9239 = vmatprep.subr.bf16.mxu1 %v9238_v37 }
 0xc7d   :  { %v9815_v7 = vpop.eup %9814  ;;  %9217 = vmatpush3.bf16.msra.mxu0 %v9214_v57  ;;  %9241 = vmatpush3.bf16.msra.mxu1 %v9238_v37  ;;  %v472_v57 = vld [vmem:[%s13282_s30 + $0x18] sm:$0xff] }
 0xc7e   :  { %v9817_v45 = vpop.eup %9816  ;;  %v3238_v55 = vmul.f32 %v9815_v7, %v3138_v60  ;;  %v9230_v60 = vpack.c.bf16 %v465_v44, %v464_v48  ;;  %v9242_v7 = vpack.c.bf16 %v472_v57, %v471_v3  ;;  %v13288_v3 = vld [vmem:[#allocation90_spill] sm:$0xff]  ;;  %v13289_v57 = vld [vmem:[#allocation91_spill] sm:$0xff] }
 0xc7f   :  { %v3237_v38 = vmul.f32 %v9817_v45, %v3133_v51  ;;  %v466_v51 = vld [vmem:[%s13281_s16 + $0x30] sm:$0xff]  ;;  %v7367_v45 = vld [vmem:[%s13283_s27] ss:$0 sm:$0xff] }
 0xc80   :  { %v9234_v28 = vpack.c.bf16 %v467_v43, %v466_v51  ;;  %9243 = vmatprep.subr.bf16.mxu1 %v9242_v7 }
 0xc81   :  { %v9218_v42 = vpack.c.bf16 %v3238_v55, %v3237_v38  ;;  %9245 = vmatpush3.bf16.msra.mxu1 %v9242_v7  ;;  %v13290_v7 = vld [vmem:[#allocation131_spill] sm:$0xff] }
 0xc83   :  { %9219 = vmatprep.subr.bf16.mxu0 %v9218_v42 }
 0xc84   :  { %9221 = vmatpush3.bf16.msra.mxu0 %v9218_v42 }
 0xc85   :  { %9223 = vmatprep.subr.bf16.mxu0 %v9222_v53 }
 0xc87   :  { %8532 = vmatmul.mubr.msk.f32.vlgmr.msra.gmra.mrb[74].mxu0 %vm2067_vm9, %v11667_v59 }
 0xc88   :  { %9225 = vmatpush3.bf16.msra.mxu0 %v9222_v53 }
 0xc89   :  { %9227 = vmatprep.subr.bf16.mxu0 %v9226_v34 }
 0xc8c   :  { %9229 = vmatpush3.bf16.msra.mxu0 %v9226_v34 }
 0xc8d   :  { %9231 = vmatprep.subr.bf16.mxu0 %v9230_v60 }
 0xc90   :  { %9233 = vmatpush3.bf16.msra.mxu0 %v9230_v60 }
 0xc91   :  { %9235 = vmatprep.subr.bf16.mxu0 %v9234_v28 }
 0xc94   :  { %9237 = vmatpush3.bf16.msra.mxu0 %v9234_v28 }
 0xd5a   :  { %v8533_v31 = vpop.f32.mrb[74].mxu0 }
 0xd5b   :  { %v3305_v9 = vpop.f32.mrb[75].mxu0 }
 0xd5c   :  { %3316 = vrot.lane.b32.xlu0 %v3305_v9, %s10615_s25  ;;  %v7372_v9 = vld [vmem:[%s13284_s18] ss:$0 sm:$0xff] }
 0xd60   :  { %3318 = vrot.lane.b32.xlu0 %v8533_v31, %s10615_s25 }
 0xdce   :  { %v3317_v13 = vpop.permute.xlu0 %3316 }
 0xdcf   :  { %v3322_v2 = vsel %vm1436_vm6, %v11701_v46, %v3317_v13 }
 0xdd0   :  { %8550 = vmatprep.mubr.msk.f32.mxu0 %vm1451_vm7, %v3322_v2 }
 0xdd2   :  { %v3319_v25 = vpop.permute.xlu0 %3318 }
 0xdd3   :  { %v3323_v62 = vsel %vm1436_vm6, %v11699_v22, %v3319_v25 }
 0xdd4   :  { %8551 = vmatmul.mubr.msk.f32.vlgmr.msra.gmra.mrb[76].mxu0 %vm1451_vm7, %v3323_v62 }
 0xdd5   :  { %8568 = vmatprep.mubr.msk.f32.mxu0 %vm773_vm4, %v11001_v6 }
 0xea7   :  { %v8552_v55 = vpop.f32.mrb[76].mxu0 }
 0xea8   :  { %v3408_v38 = vadd.f32 %v8552_v55, %v7367_v45  ;;  %v3402_v42 = vpop.f32.mrb[77].mxu0  ;;  %v475_v55 = vld [vmem:[%s13285_s17 + $0x8] sm:$0xff] }
 0xea9   :  { %v3403_v58 = vadd.f32 %v7367_v45, %v3402_v42  ;;  %v474_v45 = vld [vmem:[%s13285_s17] sm:$0xff] }
 0xeaa   :  { %v3412_v10 = vsub.f32 0.0, %v3408_v38  ;;  %v9250_v42 = vpack.c.bf16 %v475_v55, %v474_v45  ;;  %v482_v45 = vld [vmem:[%s13285_s17 + $0x40] sm:$0xf] }
 0xeab   :  { %v3411_v41 = vsub.f32 0.0, %v3403_v58 }
 0xeac   :  { %v3415_v53 = vmul.f32 1.442695, %v3412_v10  ;;  %9251 = vmatprep.subr.bf16.mxu1 %v9250_v42 }
 0xead   :  { %v3413_v39 = vmul.f32 1.442695, %v3411_v41  ;;  %v478_v41 = vld [vmem:[%s13285_s17 + $0x20] sm:$0xff] }
 0xeae   :  { %9818 = vpow2.f32 %v3415_v53  ;;  %v479_v53 = vld [vmem:[%s13285_s17 + $0x28] sm:$0xff] }
 0xeaf   :  { %9820 = vpow2.f32 %v3413_v39  ;;  %v9258_v39 = vpack.c.bf16 %v479_v53, %v478_v41 }
 0xeb8   :  { %v9819_v34 = vpop.eup %9818 }
 0xeb9   :  { %v9821_v48 = vpop.eup %9820  ;;  %v3418_v44 = vadd.f32 1.0, %v9819_v34 }
 0xeba   :  { %v3417_v60 = vadd.f32 1.0, %v9821_v48 }
 0xebb   :  { %9822 = vrcp.f32 %v3418_v44 }
 0xebc   :  { %9824 = vrcp.f32 %v3417_v60 }
 0xec5   :  { %v9823_v51 = vpop.eup %9822 }
 0xec6   :  { %v9825_v43 = vpop.eup %9824  ;;  %v3424_v31 = vmul.f32 %v9823_v51, %v3408_v38  ;;  %v476_v38 = vld [vmem:[%s13285_s17 + $0x10] sm:$0xff] }
 0xec7   :  { %v3423_v28 = vmul.f32 %v9825_v43, %v3403_v58  ;;  %v477_v58 = vld [vmem:[%s13285_s17 + $0x18] sm:$0xff] }
 0xec8   :  { %v9254_v10 = vpack.c.bf16 %v477_v58, %v476_v38 }
 0xec9   :  { %8561 = vmatprep.mubr.msk.f32.mxu1 %vm1436_vm6, %v3423_v28 }
 0xeca   :  { %8562 = vmatmul.mubr.msk.f32.vlgmr.msra.gmra.mrb[74].mxu1 %vm1436_vm6, %v3424_v31 }
 0xecb   :  { %9253 = vmatpush3.bf16.msra.mxu1 %v9250_v42 }
 0xecc   :  { %9255 = vmatprep.subr.bf16.mxu1 %v9254_v10 }
 0xecf   :  { %9257 = vmatpush3.bf16.msra.mxu1 %v9254_v10 }
 0xed0   :  { %9259 = vmatprep.subr.bf16.mxu1 %v9258_v39 }
 0xed3   :  { %9261 = vmatpush3.bf16.msra.mxu1 %v9258_v39 }
 0xf9d   :  { %v8563_v13 = vpop.f32.mrb[74].mxu1 }
 0xf9e   :  { %v3507_v2 = vadd.f32 %v8563_v13, %v11699_v22  ;;  %v3497_v25 = vpop.f32.mrb[75].mxu1  ;;  %v13286_v22 = vld [vmem:[#allocation88_spill] sm:$0xff]  ;;  %v481_v13 = vld [vmem:[%s13285_s17 + $0x38] sm:$0xff] }
 0xf9f   :  { %v3506_v62 = vadd.f32 %v3497_v25, %v11701_v46  ;;  %v13287_v46 = vld [vmem:[#allocation89_spill] sm:$0xff] }
 0xfa0   :  { %v12073_v8 = vadd.f32 %v7372_v9, %v3507_v2 }
 0xfa1   :  { %v12075_v19 = vadd.f32 %v7372_v9, %v3506_v62  ;;  %v480_v9 = vld [vmem:[%s13285_s17 + $0x30] sm:$0xff] }
 0xfa2   :  { %v9262_v2 = vpack.c.bf16 %v481_v13, %v480_v9 }
 0xfa3   :  { %v9246_v37 = vpack.c.bf16 %v12073_v8, %v12075_v19 }
 0xfa4   :  { %9263 = vmatprep.subr.bf16.mxu1 %v9262_v2 }
 0xfa5   :  { %9247 = vmatprep.subr.bf16.mxu0 %v9246_v37  ;;  %9265 = vmatpush3.bf16.msra.mxu1 %v9262_v2 }
 0xfa6   :  { %9249 = vmatpush3.bf16.msra.mxu0 %v9246_v37  ;;  %8626 = vmatprep.subr.msk.mxu1 %vm1529_vm5, %v482_v45 }
 0xfa9   :  { %8569 = vmatmul.mubr.msk.f32.vlgmr.msra.gmra.mrb[78].mxu0 %vm773_vm4, %v11010_v11  ;;  %8627 = vmatpush3.msk.msra.mxu1 %vm1529_vm5, %v482_v45 }
 0xfaa   :  { %8571 = vmatprep.mubr.msk.f32.mxu0 %vm773_vm4, %v11012_v12 }
 0xfad   :  { %8572 = vmatmul.mubr.msk.f32.gmra.mrb[80].mxu0 %vm773_vm4, %v11019_v14 }
 0xfae   :  { %8574 = vmatprep.mubr.msk.f32.mxu0 %vm773_vm4, %v11021_v15 }
 0xfb1   :  { %8575 = vmatmul.mubr.msk.f32.gmra.mrb[82].mxu0 %vm773_vm4, %v11028_v17 }
 0xfb2   :  { %8577 = vmatprep.mubr.msk.f32.mxu0 %vm773_vm4, %v11030_v18 }
 0xfb5   :  { %8578 = vmatmul.mubr.msk.f32.gmra.mrb[84].mxu0 %vm773_vm4, %v11037_v20 }
 0xfb6   :  { %8580 = vmatprep.mubr.msk.f32.mxu0 %vm773_vm4, %v11039_v21 }
 0xfb9   :  { %8581 = vmatmul.mubr.msk.f32.gmra.mrb[86].mxu0 %vm773_vm4, %v11046_v23 }
 0xfba   :  { %8583 = vmatprep.mubr.msk.f32.mxu0 %vm773_vm4, %v11048_v24 }
 0xfbd   :  { %8584 = vmatmul.mubr.msk.f32.gmra.mrb[88].mxu0 %vm773_vm4, %v11055_v26 }
 0xfbe   :  { %8586 = vmatprep.mubr.msk.f32.mxu0 %vm773_vm4, %v11057_v27 }
 0xfc1   :  { %8587 = vmatmul.mubr.msk.f32.gmra.mrb[90].mxu0 %vm773_vm4, %v11064_v29 }
 0xfc2   :  { %8589 = vmatprep.mubr.msk.f32.mxu0 %vm773_vm4, %v11066_v30 }
 0xfc5   :  { %8590 = vmatmul.mubr.msk.f32.gmra.mrb[92].mxu0 %vm773_vm4, %v11073_v32 }
 0xfc6   :  { %8592 = vmatprep.mubr.msk.f32.mxu0 %vm773_vm4, %v11075_v33 }
 0xfc9   :  { %8593 = vmatmul.mubr.msk.f32.gmra.mrb[94].mxu0 %vm773_vm4, %v11082_v35 }
 0xfca   :  { %8595 = vmatprep.mubr.msk.f32.mxu0 %vm773_vm4, %v11084_v36 }
 0xfcd   :  { %8596 = vmatmul.mubr.msk.f32.gmra.mrb[96].mxu0 %vm773_vm4, %v13251_v52 }
 0xfce   :  { %8598 = vmatprep.mubr.msk.f32.mxu0 %vm773_vm4, %v13252_v54 }
 0xfd1   :  { %8599 = vmatmul.mubr.msk.f32.gmra.mrb[98].mxu0 %vm773_vm4, %v13253_v5 }
 0xfd2   :  { %8601 = vmatprep.mubr.msk.f32.mxu0 %vm773_vm4, %v13254_v40 }
 0xfd5   :  { %8602 = vmatmul.mubr.msk.f32.gmra.mrb[100].mxu0 %vm773_vm4, %v13255_v56 }
 0xfd6   :  { %8604 = vmatprep.mubr.msk.f32.mxu0 %vm773_vm4, %v13286_v22 }
 0xfd9   :  { %8605 = vmatmul.mubr.msk.f32.gmra.mrb[102].mxu0 %vm773_vm4, %v13287_v46 }
 0xfda   :  { %8607 = vmatprep.mubr.msk.f32.mxu0 %vm773_vm4, %v13288_v3 }
 0xfdd   :  { %8608 = vmatmul.mubr.msk.f32.gmra.mrb[104].mxu0 %vm773_vm4, %v13289_v57 }
 0xfde   :  { %8706 = vmatprep.mubr.msk.f32.mxu0 %vm2067_vm9, %v13290_v7 }
0x107c   :  { %v8570_v34 = vpop.f32.mrb[78].mxu0 }
0x107d   :  { %v3582_v48 = vpop.f32.mrb[79].mxu0 }
0x1080   :  { %v8573_v44 = vpop.f32.mrb[80].mxu0 }
0x1081   :  { %v3592_v60 = vpop.f32.mrb[81].mxu0 }
0x1084   :  { %v12141_v51 = vpop.f32.mrb[82].mxu0 }
0x1085   :  { %v12143_v43 = vpop.f32.mrb[83].mxu0 }
0x1088   :  { %v12145_v28 = vpop.f32.mrb[84].mxu0 }
0x1089   :  { %v12147_v31 = vpop.f32.mrb[85].mxu0 }
0x108c   :  { %v12151_v25 = vpop.f32.mrb[86].mxu0 }
0x108d   :  { %v12153_v62 = vpop.f32.mrb[87].mxu0 }
0x1090   :  { %v12155_v37 = vpop.f32.mrb[88].mxu0 }
0x1091   :  { %v12158_v55 = vpop.f32.mrb[89].mxu0 }
0x1094   :  { %v12162_v38 = vpop.f32.mrb[90].mxu0 }
0x1095   :  { %v12164_v42 = vpop.f32.mrb[91].mxu0 }
0x1098   :  { %v8591_v58 = vpop.f32.mrb[92].mxu0 }
0x1099   :  { %3737 = vrot.lane.b32.xlu0 %v8591_v58, %s10615_s25  ;;  %v3652_v10 = vpop.f32.mrb[93].mxu0 }
0x109c   :  { %v8594_v41 = vpop.f32.mrb[94].mxu0 }
0x109d   :  { %3735 = vrot.lane.b32.xlu0 %v3652_v10, %s10615_s25  ;;  %3741 = vrot.lane.b32.xlu1 %v8594_v41, %s10615_s25  ;;  %v3662_v53 = vpop.f32.mrb[95].mxu0 }
0x10a0   :  { %v8597_v39 = vpop.f32.mrb[96].mxu0 }
0x10a1   :  { %3739 = vrot.lane.b32.xlu0 %v3662_v53, %s10615_s25  ;;  %v3672_v9 = vpop.f32.mrb[97].mxu0 }
0x10a4   :  { %v8600_v13 = vpop.f32.mrb[98].mxu0 }
0x10a5   :  { %3745 = vrot.lane.b32.xlu0 %v8597_v39, %s10615_s25  ;;  %v3682_v2 = vpop.f32.mrb[99].mxu0 }
0x10a8   :  { %v8603_v45 = vpop.f32.mrb[100].mxu0 }
0x10a9   :  { %3743 = vrot.lane.b32.xlu0 %v3672_v9, %s10615_s25  ;;  %v3692_v7 = vpop.f32.mrb[101].mxu0 }
0x10ac   :  { %v8606_v58 = vpop.f32.mrb[102].mxu0 }
0x10ad   :  { %3749 = vrot.lane.b32.xlu0 %v8600_v13, %s10615_s25  ;;  %v3702_v57 = vpop.f32.mrb[103].mxu0 }
0x10b0   :  { %v8609_v10 = vpop.f32.mrb[104].mxu0 }
0x10b1   :  { %3747 = vrot.lane.b32.xlu0 %v3682_v2, %s10615_s25  ;;  %v3712_v41 = vpop.f32.mrb[105].mxu0 }
0x10b2   :  { %3759 = vrot.lane.b32.xlu1 %v3712_v41, %s10615_s25 }
0x10b5   :  { %3753 = vrot.lane.b32.xlu0 %v8603_v45, %s10615_s25 }
0x10b9   :  { %3751 = vrot.lane.b32.xlu0 %v3692_v7, %s10615_s25 }
0x10bd   :  { %3755 = vrot.lane.b32.xlu0 %v3702_v57, %s10615_s25 }
0x10c1   :  { %3757 = vrot.lane.b32.xlu0 %v8606_v58, %s10615_s25 }
0x10c5   :  { %3761 = vrot.lane.b32.xlu0 %v8609_v10, %s10615_s25 }
0x110b   :  { %v3738_v53 = vpop.permute.xlu0 %3737 }
0x110c   :  { %v3778_v39 = vsel %vm1436_vm6, %v8570_v34, %v3738_v53 }
0x110d   :  { %v3792_v45 = vsel %vm1451_vm7, %v3778_v39, %v11326_v16 }
0x110f   :  { %v3736_v9 = vpop.permute.xlu0 %3735  ;;  %v3742_v2 = vpop.permute.xlu1 %3741 }
0x1110   :  { %v3777_v13 = vsel %vm1436_vm6, %v3582_v48, %v3736_v9  ;;  %v3780_v57 = vsel %vm1436_vm6, %v8573_v44, %v3742_v2 }
0x1111   :  { %v3791_v41 = vsel %vm1451_vm7, %v3777_v13, %v11318_v49  ;;  %v3794_v48 = vsel %vm1451_vm7, %v3780_v57, %v11334_v61 }
0x1112   :  { %8628 = vmatprep.mubr.msk.f32.mxu1 %vm1486_vm8, %v3791_v41 }
0x1113   :  { %8629 = vmatmul.mubr.msk.f32.vlgmr.msra.gmra.mrb[76].mxu1 %vm1486_vm8, %v3792_v45  ;;  %v3740_v7 = vpop.permute.xlu0 %3739 }
0x1114   :  { %v3779_v58 = vsel %vm1436_vm6, %v3592_v60, %v3740_v7 }
0x1115   :  { %v3793_v34 = vsel %vm1451_vm7, %v3779_v58, %v11330_v50 }
0x1116   :  { %8631 = vmatprep.mubr.msk.f32.mxu1 %vm1486_vm8, %v3793_v34  ;;  %v13291_v34 = vld [vmem:[#allocation112_spill] sm:$0xff] }
0x1117   :  { %8632 = vmatmul.mubr.msk.f32.gmra.mrb[78].mxu1 %vm1486_vm8, %v3794_v48  ;;  %v3746_v10 = vpop.permute.xlu0 %3745  ;;  %v13292_v48 = vld [vmem:[#allocation113_spill] sm:$0xff] }
0x1118   :  { %v3782_v53 = vsel %vm1436_vm6, %v12141_v51, %v3746_v10 }
0x1119   :  { %v3796_v9 = vsel %vm1451_vm7, %v3782_v53, %v11338_v0 }
0x111b   :  { %v3744_v44 = vpop.permute.xlu0 %3743 }
0x111c   :  { %v3781_v39 = vsel %vm1436_vm6, %v12143_v43, %v3744_v44 }
0x111d   :  { %v3795_v60 = vsel %vm1451_vm7, %v3781_v39, %v11336_v63  ;;  %v13294_v39 = vld [vmem:[#allocation114_spill] sm:$0xff] }
0x111e   :  { %8634 = vmatprep.mubr.msk.f32.mxu1 %vm1486_vm8, %v3795_v60 }
0x111f   :  { %8635 = vmatmul.mubr.msk.f32.gmra.mrb[80].mxu1 %vm1486_vm8, %v3796_v9  ;;  %v3750_v13 = vpop.permute.xlu0 %3749 }
0x1120   :  { %v3784_v2 = vsel %vm1436_vm6, %v12145_v28, %v3750_v13 }
0x1121   :  { %v3798_v45 = vsel %vm1451_vm7, %v3784_v2, %v11342_v4  ;;  %v13295_v2 = vld [vmem:[#allocation115_spill] sm:$0xff] }
0x1123   :  { %v3748_v41 = vpop.permute.xlu0 %3747 }
0x1124   :  { %v3783_v51 = vsel %vm1436_vm6, %v12147_v31, %v3748_v41  ;;  %v3760_v44 = vpop.permute.xlu1 %3759 }
0x1125   :  { %v3797_v43 = vsel %vm1451_vm7, %v3783_v51, %v11340_v1  ;;  %v3789_v60 = vsel %vm1436_vm6, %v12164_v42, %v3760_v44  ;;  %v13300_v44 = vld [vmem:[#allocation121_spill] sm:$0xff] }
0x1126   :  { %8637 = vmatprep.mubr.msk.f32.mxu1 %vm1486_vm8, %v3797_v43 }
0x1127   :  { %8638 = vmatmul.mubr.msk.f32.gmra.mrb[82].mxu1 %vm1486_vm8, %v3798_v45  ;;  %v3754_v57 = vpop.permute.xlu0 %3753  ;;  %v13299_v45 = vld [vmem:[#allocation116_spill] sm:$0xff] }
0x1128   :  { %v3786_v7 = vsel %vm1436_vm6, %v12151_v25, %v3754_v57 }
0x1129   :  { %v3800_v10 = vsel %vm1451_vm7, %v3786_v7, %v13292_v48  ;;  %v486_v7 = vld [vmem:[%s13293_s22 + $0x8] sm:$0xff] }
0x112b   :  { %v3752_v58 = vpop.permute.xlu0 %3751 }
0x112c   :  { %v3785_v28 = vsel %vm1436_vm6, %v12153_v62, %v3752_v58 }
0x112d   :  { %v3799_v31 = vsel %vm1451_vm7, %v3785_v28, %v13291_v34  ;;  %v487_v28 = vld [vmem:[%s13293_s22 + $0x10] sm:$0xff] }
0x112e   :  { %8640 = vmatprep.mubr.msk.f32.mxu1 %vm1486_vm8, %v3799_v31  ;;  %v488_v31 = vld [vmem:[%s13293_s22 + $0x18] sm:$0xff] }
0x112f   :  { %8641 = vmatmul.mubr.msk.f32.gmra.mrb[84].mxu1 %vm1486_vm8, %v3800_v10  ;;  %v3756_v53 = vpop.permute.xlu0 %3755  ;;  %v9270_v10 = vpack.c.bf16 %v488_v31, %v487_v28 }
0x1130   :  { %v3787_v25 = vsel %vm1436_vm6, %v12158_v55, %v3756_v53  ;;  %v13296_v55 = vld [vmem:[#allocation117_spill] sm:$0xff]  ;;  %v12251_v53 = vld [vmem:[%s13297_s23] ss:$0 sm:$0xff] }
0x1131   :  { %v3801_v62 = vsel %vm1451_vm7, %v3787_v25, %v13294_v39  ;;  %v3803_v51 = vsel %vm1451_vm7, %v3789_v60, %v13296_v55  ;;  %v12256_v25 = vld [vmem:[%s13298_s9] ss:$0 sm:$0xff]  ;;  %v13301_v60 = vld [vmem:[#allocation118_spill] sm:$0xff] }
0x1132   :  { %8643 = vmatprep.mubr.msk.f32.mxu1 %vm1486_vm8, %v3801_v62 }
0x1133   :  { %v3758_v9 = vpop.permute.xlu0 %3757 }
0x1134   :  { %v3788_v13 = vsel %vm1436_vm6, %v12155_v37, %v3758_v9  ;;  %v485_v37 = vld [vmem:[%s13293_s22] sm:$0xff]  ;;  %v3811_v9 = vmul.f32 %v12251_v53, %v13301_v60 }
0x1135   :  { %v3802_v41 = vsel %vm1451_vm7, %v3788_v13, %v13295_v2  ;;  %v9266_v58 = vpack.c.bf16 %v486_v7, %v485_v37  ;;  %v13306_v2 = vld [vmem:[#allocation124_spill] sm:$0xff] }
0x1136   :  { %8644 = vmatmul.mubr.msk.f32.gmra.mrb[86].mxu1 %vm1486_vm8, %v3802_v41 }
0x1137   :  { %v3762_v43 = vpop.permute.xlu0 %3761  ;;  %8646 = vmatprep.mubr.msk.f32.mxu1 %vm1486_vm8, %v3803_v51  ;;  %9267 = vmatprep.subr.bf16.mxu1 %v9266_v58 }
0x1138   :  { %v3790_v42 = vsel %vm1436_vm6, %v12162_v38, %v3762_v43  ;;  %9269 = vmatpush3.bf16.msra.mxu1 %v9266_v58  ;;  %v3812_v38 = vmul.f32 %v12251_v53, %v13300_v44  ;;  %v13303_v58 = vld [vmem:[#allocation119_spill] sm:$0xff] }
0x1139   :  { %v3804_v57 = vsel %vm1451_vm7, %v3790_v42, %v13299_v45  ;;  %9271 = vmatprep.subr.bf16.mxu1 %v9270_v10  ;;  %v13302_v42 = vld [vmem:[#allocation120_spill] sm:$0xff]  ;;  %v3813_v28 = vmul.f32 %v12251_v53, %v13303_v58 }
0x113a   :  { %8647 = vmatmul.mubr.msk.f32.gmra.mrb[88].mxu1 %vm1486_vm8, %v3804_v57  ;;  %v3814_v57 = vmul.f32 %v12251_v53, %v13302_v42 }
0x113c   :  { %9273 = vmatpush3.bf16.msra.mxu1 %v9270_v10 }
0x11e6   :  { %v8630_v62 = vpop.f32.mrb[76].mxu1 }
0x11e7   :  { %v3942_v13 = vadd.f32 %v8630_v62, %v3812_v38  ;;  %v3936_v41 = vpop.f32.mrb[77].mxu1 }
0x11e8   :  { %v3937_v51 = vadd.f32 %v3936_v41, %v3811_v9 }
0x11e9   :  { %v12261_v43 = vadd.f32 %v12256_v25, %v3942_v13 }
0x11ea   :  { %v12266_v37 = vadd.f32 %v12256_v25, %v3937_v51  ;;  %v8633_v7 = vpop.f32.mrb[78].mxu1 }
0x11eb   :  { %v4026_v31 = vsub.f32 0.0, %v12261_v43  ;;  %v3952_v10 = vadd.f32 %v8633_v7, %v3814_v57  ;;  %v3946_v60 = vpop.f32.mrb[79].mxu1  ;;  %v13304_v57 = vld [vmem:[#allocation122_spill] sm:$0xff] }
0x11ec   :  { %v4025_v38 = vsub.f32 0.0, %v12266_v37  ;;  %v3947_v62 = vadd.f32 %v3946_v60, %v3813_v28  ;;  %v3816_v7 = vmul.f32 %v12251_v53, %v13304_v57  ;;  %v13305_v28 = vld [vmem:[#allocation123_spill] sm:$0xff] }
0x11ed   :  { %v4041_v9 = vmul.f32 1.442695, %v4026_v31  ;;  %v12273_v13 = vadd.f32 %v12256_v25, %v3952_v10  ;;  %v3815_v31 = vmul.f32 %v12251_v53, %v13305_v28  ;;  %v3818_v28 = vmul.f32 %v12251_v53, %v13306_v2 }
0x11ee   :  { %v4039_v41 = vmul.f32 1.442695, %v4025_v38  ;;  %v12276_v42 = vadd.f32 %v12256_v25, %v3947_v62 }
0x11ef   :  { %9826 = vpow2.f32 %v4041_v9  ;;  %v4028_v51 = vsub.f32 0.0, %v12273_v13 }
0x11f0   :  { %9828 = vpow2.f32 %v4039_v41  ;;  %v4027_v58 = vsub.f32 0.0, %v12276_v42 }
0x11f1   :  { %v4045_v44 = vmul.f32 1.442695, %v4028_v51 }
0x11f2   :  { %v4043_v45 = vmul.f32 1.442695, %v4027_v58  ;;  %v8636_v60 = vpop.f32.mrb[80].mxu1 }
0x11f3   :  { %9830 = vpow2.f32 %v4045_v44  ;;  %v3962_v10 = vadd.f32 %v8636_v60, %v3816_v7  ;;  %v3956_v38 = vpop.f32.mrb[81].mxu1 }
0x11f4   :  { %9832 = vpow2.f32 %v4043_v45  ;;  %v3957_v62 = vadd.f32 %v3956_v38, %v3815_v31  ;;  %v13307_v31 = vld [vmem:[#allocation125_spill] sm:$0xff] }
0x11f5   :  { %v12285_v9 = vadd.f32 %v12256_v25, %v3962_v10  ;;  %v3817_v10 = vmul.f32 %v12251_v53, %v13307_v31 }
0x11f6   :  { %v12288_v41 = vadd.f32 %v12256_v25, %v3957_v62 }
0x11f7   :  { %v4030_v51 = vsub.f32 0.0, %v12285_v9 }
0x11f8   :  { %v4029_v57 = vsub.f32 0.0, %v12288_v41 }
0x11f9   :  { %v9827_v58 = vpop.eup %9826  ;;  %v4049_v55 = vmul.f32 1.442695, %v4030_v51 }
0x11fa   :  { %v9829_v44 = vpop.eup %9828  ;;  %v4068_v7 = vadd.f32 1.0, %v9827_v58  ;;  %v4047_v60 = vmul.f32 1.442695, %v4029_v57  ;;  %v8639_v45 = vpop.f32.mrb[82].mxu1 }
0x11fb   :  { %v4067_v38 = vadd.f32 1.0, %v9829_v44  ;;  %9834 = vpow2.f32 %v4049_v55  ;;  %v3972_v62 = vadd.f32 %v8639_v45, %v3818_v28  ;;  %v3966_v39 = vpop.f32.mrb[83].mxu1 }
0x11fc   :  { %9836 = vrcp.f32 %v4068_v7  ;;  %v3967_v48 = vadd.f32 %v3966_v39, %v3817_v10  ;;  %v13308_v39 = vld [vmem:[#allocation126_spill] sm:$0xff]  ;;  %v13309_v10 = vld [vmem:[#allocation127_spill] sm:$0xff] }
0x11fd   :  { %v9831_v34 = vpop.eup %9830  ;;  %9838 = vrcp.f32 %v4067_v38  ;;  %v12297_v51 = vadd.f32 %v12256_v25, %v3972_v62  ;;  %v3820_v44 = vmul.f32 %v12251_v53, %v13308_v39 }
0x11fe   :  { %v9833_v4 = vpop.eup %9832  ;;  %v4070_v2 = vadd.f32 1.0, %v9831_v34  ;;  %9840 = vpow2.f32 %v4047_v60  ;;  %v12300_v57 = vadd.f32 %v12256_v25, %v3967_v48  ;;  %v3819_v34 = vmul.f32 %v12251_v53, %v13309_v10 }
0x11ff   :  { %v4069_v58 = vadd.f32 1.0, %v9833_v4  ;;  %v4032_v31 = vsub.f32 0.0, %v12297_v51 }
0x1200   :  { %9842 = vrcp.f32 %v4070_v2  ;;  %v4031_v55 = vsub.f32 0.0, %v12300_v57 }
0x1201   :  { %9844 = vrcp.f32 %v4069_v58  ;;  %v4053_v28 = vmul.f32 1.442695, %v4032_v31 }
0x1202   :  { %v4051_v7 = vmul.f32 1.442695, %v4031_v55  ;;  %v8642_v45 = vpop.f32.mrb[84].mxu1 }
0x1203   :  { %9846 = vpow2.f32 %v4053_v28  ;;  %v3982_v60 = vadd.f32 %v8642_v45, %v3820_v44  ;;  %v3976_v48 = vpop.f32.mrb[85].mxu1  ;;  %v13310_v44 = vld [vmem:[#allocation128_spill] sm:$0xff] }
0x1204   :  { %9848 = vpow2.f32 %v4051_v7  ;;  %v3977_v4 = vadd.f32 %v3976_v48, %v3819_v34  ;;  %v3822_v7 = vmul.f32 %v12251_v53, %v13310_v44 }
0x1205   :  { %v9835_v38 = vpop.eup %9834  ;;  %v12309_v2 = vadd.f32 %v12256_v25, %v3982_v60 }
0x1206   :  { %v9837_v62 = vpop.eup %9836  ;;  %v4072_v58 = vadd.f32 1.0, %v9835_v38  ;;  %v12312_v31 = vadd.f32 %v12256_v25, %v3977_v4  ;;  %v13311_v38 = vld [vmem:[#allocation129_spill] sm:$0xff] }
0x1207   :  { %v9839_v39 = vpop.eup %9838  ;;  %v4034_v55 = vsub.f32 0.0, %v12309_v2  ;;  %v4110_v45 = vmul.f32 %v9837_v62, %v12261_v43  ;;  %v3821_v4 = vmul.f32 %v12251_v53, %v13311_v38  ;;  %v13312_v62 = vld [vmem:[#allocation130_spill] sm:$0xff] }
0x1208   :  { %v9841_v1 = vpop.eup %9840  ;;  %v4109_v10 = vmul.f32 %v9839_v39, %v12266_v37  ;;  %v4033_v28 = vsub.f32 0.0, %v12312_v31  ;;  %9850 = vrcp.f32 %v4072_v58 }
0x1209   :  { %v4071_v34 = vadd.f32 1.0, %v9841_v1  ;;  %v4057_v60 = vmul.f32 1.442695, %v4034_v55  ;;  %v8645_v48 = vpop.f32.mrb[86].mxu1  ;;  %v3824_v55 = vmul.f32 %v12251_v53, %v13312_v62 }
0x120a   :  { %v9843_v0 = vpop.eup %9842  ;;  %v4055_v63 = vmul.f32 1.442695, %v4033_v28  ;;  %v3992_v61 = vadd.f32 %v8645_v48, %v3822_v7  ;;  %v3986_v50 = vpop.f32.mrb[87].mxu1  ;;  %8657 = vmatprep.mubr.msk.f32.mxu1 %vm1436_vm6, %v4109_v10 }
0x120b   :  { %v9845_v37 = vpop.eup %9844  ;;  %9852 = vrcp.f32 %v4071_v34  ;;  %v3987_v39 = vadd.f32 %v3986_v50, %v3821_v4  ;;  %8658 = vmatmul.mubr.msk.f32.vlgmr.msra.gmra.mrb[90].mxu1 %vm1436_vm6, %v4110_v45  ;;  %v4112_v28 = vmul.f32 %v9843_v0, %v12273_v13  ;;  %v3823_v50 = vmul.f32 %v12251_v53, %v11543_v47 }
0x120c   :  { %v4111_v43 = vmul.f32 %v9845_v37, %v12276_v42  ;;  %9854 = vpow2.f32 %v4057_v60  ;;  %v12326_v1 = vadd.f32 %v12256_v25, %v3992_v61 }
0x120d   :  { %v9847_v58 = vpop.eup %9846  ;;  %9856 = vpow2.f32 %v4055_v63  ;;  %v12332_v10 = vadd.f32 %v12256_v25, %v3987_v39  ;;  %v8648_v7 = vpop.f32.mrb[88].mxu1 }
0x120e   :  { %v9849_v45 = vpop.eup %9848  ;;  %v4074_v42 = vadd.f32 1.0, %v9847_v58  ;;  %v4036_v34 = vsub.f32 0.0, %v12326_v1  ;;  %v4002_v61 = vadd.f32 %v8648_v7, %v3824_v55  ;;  %v3996_v60 = vpop.f32.mrb[89].mxu1  ;;  %8660 = vmatprep.mubr.msk.f32.mxu1 %vm1436_vm6, %v4111_v43 }
0x120f   :  { %v4073_v48 = vadd.f32 1.0, %v9849_v45  ;;  %v4035_v4 = vsub.f32 0.0, %v12332_v10  ;;  %v3997_v0 = vadd.f32 %v3996_v60, %v3823_v50  ;;  %8661 = vmatmul.mubr.msk.f32.gmra.mrb[92].mxu1 %vm1436_vm6, %v4112_v28 }
0x1210   :  { %9858 = vrcp.f32 %v4074_v42  ;;  %v4061_v63 = vmul.f32 1.442695, %v4036_v34  ;;  %v4024_v13 = vadd.f32 %v12256_v25, %v4002_v61 }
0x1211   :  { %9860 = vrcp.f32 %v4073_v48  ;;  %v4059_v53 = vmul.f32 1.442695, %v4035_v4  ;;  %v4023_v37 = vadd.f32 %v12256_v25, %v3997_v0 }
0x1212   :  { %9862 = vpow2.f32 %v4061_v63  ;;  %v4038_v39 = vsub.f32 0.0, %v4024_v13  ;;  %v9851_v58 = vpop.eup %9850 }
0x1213   :  { %9864 = vpow2.f32 %v4059_v53  ;;  %v4037_v55 = vsub.f32 0.0, %v4023_v37  ;;  %v4114_v42 = vmul.f32 %v9851_v58, %v12285_v9 }
0x1214   :  { %v4065_v43 = vmul.f32 1.442695, %v4038_v39 }
0x1215   :  { %v9853_v7 = vpop.eup %9852  ;;  %v4063_v45 = vmul.f32 1.442695, %v4037_v55 }
0x1216   :  { %v9855_v62 = vpop.eup %9854  ;;  %v4113_v50 = vmul.f32 %v9853_v7, %v12288_v41  ;;  %9866 = vpow2.f32 %v4065_v43 }
0x1217   :  { %v9857_v28 = vpop.eup %9856  ;;  %v4076_v34 = vadd.f32 1.0, %v9855_v62  ;;  %9868 = vpow2.f32 %v4063_v45 }
0x1218   :  { %v4075_v61 = vadd.f32 1.0, %v9857_v28  ;;  %8663 = vmatprep.mubr.msk.f32.mxu1 %vm1436_vm6, %v4113_v50 }
0x1219   :  { %9870 = vrcp.f32 %v4076_v34  ;;  %8664 = vmatmul.mubr.msk.f32.gmra.mrb[94].mxu1 %vm1436_vm6, %v4114_v42 }
0x121a   :  { %v9859_v25 = vpop.eup %9858  ;;  %9872 = vrcp.f32 %v4075_v61 }
0x121b   :  { %v9861_v60 = vpop.eup %9860  ;;  %v4116_v41 = vmul.f32 %v9859_v25, %v12297_v51 }
0x121c   :  { %v9863_v48 = vpop.eup %9862  ;;  %v4115_v4 = vmul.f32 %v9861_v60, %v12300_v57 }
0x121d   :  { %v9865_v0 = vpop.eup %9864  ;;  %v4078_v63 = vadd.f32 1.0, %v9863_v48 }
0x121e   :  { %v4077_v53 = vadd.f32 1.0, %v9865_v0  ;;  %8666 = vmatprep.mubr.msk.f32.mxu1 %vm1436_vm6, %v4115_v4 }
0x121f   :  { %9874 = vrcp.f32 %v4078_v63  ;;  %8667 = vmatmul.mubr.msk.f32.gmra.mrb[96].mxu1 %vm1436_vm6, %v4116_v41 }
0x1220   :  { %v9867_v9 = vpop.eup %9866  ;;  %9876 = vrcp.f32 %v4077_v53 }
0x1221   :  { %v9869_v62 = vpop.eup %9868  ;;  %v4080_v39 = vadd.f32 1.0, %v9867_v9 }
0x1222   :  { %v4079_v55 = vadd.f32 1.0, %v9869_v62 }
0x1223   :  { %v9871_v58 = vpop.eup %9870  ;;  %9878 = vrcp.f32 %v4080_v39 }
0x1224   :  { %v9873_v43 = vpop.eup %9872  ;;  %9880 = vrcp.f32 %v4079_v55  ;;  %v4118_v51 = vmul.f32 %v9871_v58, %v12309_v2  ;;  %v12361_v2 = vld [vmem:[%s13313_s13] ss:$0 sm:$0xff] }
0x1225   :  { %v4117_v57 = vmul.f32 %v9873_v43, %v12312_v31 }
0x1227   :  { %8669 = vmatprep.mubr.msk.f32.mxu1 %vm1436_vm6, %v4117_v57 }
0x1228   :  { %8670 = vmatmul.mubr.msk.f32.gmra.mrb[98].mxu1 %vm1436_vm6, %v4118_v51 }
0x1229   :  { %v9875_v7 = vpop.eup %9874 }
0x122a   :  { %v9877_v45 = vpop.eup %9876  ;;  %v4120_v28 = vmul.f32 %v9875_v7, %v12326_v1 }
0x122b   :  { %v4119_v50 = vmul.f32 %v9877_v45, %v12332_v10 }
0x122d   :  { %v9879_v42 = vpop.eup %9878  ;;  %8672 = vmatprep.mubr.msk.f32.mxu1 %vm1436_vm6, %v4119_v50 }
0x122e   :  { %v9881_v34 = vpop.eup %9880  ;;  %8673 = vmatmul.mubr.msk.f32.gmra.mrb[100].mxu1 %vm1436_vm6, %v4120_v28  ;;  %v4122_v61 = vmul.f32 %v9879_v42, %v4024_v13 }
0x122f   :  { %v4121_v31 = vmul.f32 %v9881_v34, %v4023_v37 }
0x1231   :  { %8675 = vmatprep.mubr.msk.f32.mxu1 %vm1436_vm6, %v4121_v31 }
0x1232   :  { %8676 = vmatmul.mubr.msk.f32.gmra.mrb[102].mxu1 %vm1436_vm6, %v4122_v61 }
0x12de   :  { %v8659_v25 = vpop.f32.mrb[90].mxu1 }
0x12df   :  { %v4243_v60 = vadd.f32 %v8659_v25, %v12361_v2  ;;  %v4237_v10 = vpop.f32.mrb[91].mxu1 }
0x12e0   :  { %v4238_v1 = vadd.f32 %v12361_v2, %v4237_v10 }
0x12e1   :  { %v4307_v48 = vsub.f32 0.0, %v4243_v60 }
0x12e2   :  { %v4306_v4 = vsub.f32 0.0, %v4238_v1  ;;  %v8662_v0 = vpop.f32.mrb[92].mxu1 }
0x12e3   :  { %v4322_v41 = vmul.f32 1.442695, %v4307_v48  ;;  %v4253_v63 = vadd.f32 %v8662_v0, %v12361_v2  ;;  %v4247_v37 = vpop.f32.mrb[93].mxu1 }
0x12e4   :  { %v4320_v13 = vmul.f32 1.442695, %v4306_v4  ;;  %v12367_v53 = vadd.f32 %v12361_v2, %v4247_v37 }
0x12e5   :  { %9882 = vpow2.f32 %v4322_v41  ;;  %v4309_v9 = vsub.f32 0.0, %v4253_v63 }
0x12e6   :  { %9884 = vpow2.f32 %v4320_v13  ;;  %v4308_v62 = vsub.f32 0.0, %v12367_v53 }
0x12e7   :  { %v4326_v39 = vmul.f32 1.442695, %v4309_v9 }
0x12e8   :  { %v4324_v55 = vmul.f32 1.442695, %v4308_v62 }
0x12e9   :  { %9886 = vpow2.f32 %v4326_v39 }
0x12ea   :  { %9888 = vpow2.f32 %v4324_v55 }
0x12ec   :  { %v8665_v58 = vpop.f32.mrb[94].mxu1 }
0x12ed   :  { %v12371_v43 = vadd.f32 %v8665_v58, %v12361_v2  ;;  %v4257_v57 = vpop.f32.mrb[95].mxu1 }
0x12ee   :  { %v12374_v51 = vadd.f32 %v12361_v2, %v4257_v57 }
0x12ef   :  { %v9883_v7 = vpop.eup %9882  ;;  %v4311_v45 = vsub.f32 0.0, %v12371_v43 }
0x12f0   :  { %v9885_v50 = vpop.eup %9884  ;;  %v4349_v28 = vadd.f32 1.0, %v9883_v7  ;;  %v4310_v42 = vsub.f32 0.0, %v12374_v51 }
0x12f1   :  { %v4348_v34 = vadd.f32 1.0, %v9885_v50  ;;  %v4330_v31 = vmul.f32 1.442695, %v4311_v45 }
0x12f2   :  { %9890 = vrcp.f32 %v4349_v28  ;;  %v4328_v61 = vmul.f32 1.442695, %v4310_v42  ;;  %v8668_v25 = vpop.f32.mrb[96].mxu1 }
0x12f3   :  { %v9887_v10 = vpop.eup %9886  ;;  %9892 = vrcp.f32 %v4348_v34  ;;  %v12379_v48 = vadd.f32 %v8668_v25, %v12361_v2  ;;  %v4267_v4 = vpop.f32.mrb[97].mxu1 }
0x12f4   :  { %v9889_v0 = vpop.eup %9888  ;;  %v4351_v41 = vadd.f32 1.0, %v9887_v10  ;;  %9894 = vpow2.f32 %v4330_v31  ;;  %v12382_v37 = vadd.f32 %v12361_v2, %v4267_v4 }
0x12f5   :  { %v4350_v13 = vadd.f32 1.0, %v9889_v0  ;;  %9896 = vpow2.f32 %v4328_v61  ;;  %v4313_v9 = vsub.f32 0.0, %v12379_v48 }
0x12f6   :  { %9898 = vrcp.f32 %v4351_v41  ;;  %v4312_v62 = vsub.f32 0.0, %v12382_v37 }
0x12f7   :  { %9900 = vrcp.f32 %v4350_v13  ;;  %v4334_v39 = vmul.f32 1.442695, %v4313_v9 }
0x12f8   :  { %v4332_v55 = vmul.f32 1.442695, %v4312_v62 }
0x12f9   :  { %9902 = vpow2.f32 %v4334_v39 }
0x12fa   :  { %9904 = vpow2.f32 %v4332_v55 }
0x12fb   :  { %v8671_v58 = vpop.f32.mrb[98].mxu1 }
0x12fc   :  { %v9891_v57 = vpop.eup %9890  ;;  %v12387_v7 = vadd.f32 %v8671_v58, %v12361_v2  ;;  %v4277_v45 = vpop.f32.mrb[99].mxu1 }
0x12fd   :  { %v9893_v50 = vpop.eup %9892  ;;  %v4391_v28 = vmul.f32 %v9891_v57, %v4243_v60  ;;  %v12390_v42 = vadd.f32 %v12361_v2, %v4277_v45 }
0x12fe   :  { %v9895_v34 = vpop.eup %9894  ;;  %v4390_v31 = vmul.f32 %v9893_v50, %v4238_v1  ;;  %v4315_v61 = vsub.f32 0.0, %v12387_v7 }
0x12ff   :  { %v9897_v25 = vpop.eup %9896  ;;  %v4353_v10 = vadd.f32 1.0, %v9895_v34  ;;  %v4314_v4 = vsub.f32 0.0, %v12390_v42 }
0x1300   :  { %v9899_v0 = vpop.eup %9898  ;;  %v4352_v41 = vadd.f32 1.0, %v9897_v25  ;;  %v4338_v13 = vmul.f32 1.442695, %v4315_v61  ;;  %v9274_v9 = vpack.c.bf16 %v4391_v28, %v4390_v31 }
0x1301   :  { %v9901_v62 = vpop.eup %9900  ;;  %v4393_v39 = vmul.f32 %v9899_v0, %v4253_v63  ;;  %9906 = vrcp.f32 %v4353_v10  ;;  %v4336_v55 = vmul.f32 1.442695, %v4314_v4  ;;  %v8674_v60 = vpop.f32.mrb[100].mxu1 }
0x1302   :  { %v4392_v58 = vmul.f32 %v9901_v62, %v12367_v53  ;;  %9908 = vrcp.f32 %v4352_v41  ;;  %v12396_v1 = vadd.f32 %v8674_v60, %v12361_v2  ;;  %v4287_v57 = vpop.f32.mrb[101].mxu1  ;;  %9275 = vmatprep.subr.bf16.mxu0 %v9274_v9 }
0x1303   :  { %v9903_v45 = vpop.eup %9902  ;;  %9910 = vpow2.f32 %v4338_v13  ;;  %v12399_v50 = vadd.f32 %v12361_v2, %v4287_v57  ;;  %9277 = vmatpush3.bf16.msra.mxu0 %v9274_v9 }
0x1304   :  { %v9905_v28 = vpop.eup %9904  ;;  %v4355_v34 = vadd.f32 1.0, %v9903_v45  ;;  %9912 = vpow2.f32 %v4336_v55  ;;  %v4317_v63 = vsub.f32 0.0, %v12396_v1  ;;  %v9278_v31 = vpack.c.bf16 %v4393_v39, %v4392_v58 }
0x1305   :  { %v4354_v61 = vadd.f32 1.0, %v9905_v28  ;;  %v4316_v53 = vsub.f32 0.0, %v12399_v50  ;;  %v8677_v25 = vpop.f32.mrb[102].mxu1 }
0x1306   :  { %9914 = vrcp.f32 %v4355_v34  ;;  %v4342_v10 = vmul.f32 1.442695, %v4317_v63  ;;  %v4303_v4 = vadd.f32 %v8677_v25, %v12361_v2  ;;  %v4297_v0 = vpop.f32.mrb[103].mxu1  ;;  %9279 = vmatprep.subr.bf16.mxu0 %v9278_v31 }
0x1307   :  { %9916 = vrcp.f32 %v4354_v61  ;;  %v4340_v41 = vmul.f32 1.442695, %v4316_v53  ;;  %v4298_v13 = vadd.f32 %v12361_v2, %v4297_v0  ;;  %9281 = vmatpush3.bf16.msra.mxu0 %v9278_v31 }
0x1308   :  { %9918 = vpow2.f32 %v4342_v10  ;;  %v4319_v9 = vsub.f32 0.0, %v4303_v4 }
0x1309   :  { %9920 = vpow2.f32 %v4340_v41  ;;  %v4318_v62 = vsub.f32 0.0, %v4298_v13 }
0x130a   :  { %v4346_v39 = vmul.f32 1.442695, %v4319_v9 }
0x130b   :  { %v9907_v55 = vpop.eup %9906  ;;  %v4344_v60 = vmul.f32 1.442695, %v4318_v62 }
0x130c   :  { %v9909_v58 = vpop.eup %9908  ;;  %v4395_v57 = vmul.f32 %v9907_v55, %v12371_v43  ;;  %9922 = vpow2.f32 %v4346_v39 }
0x130d   :  { %v9911_v45 = vpop.eup %9910  ;;  %v4394_v28 = vmul.f32 %v9909_v58, %v12374_v51  ;;  %9924 = vpow2.f32 %v4344_v60 }
0x130e   :  { %v9913_v34 = vpop.eup %9912  ;;  %v4357_v63 = vadd.f32 1.0, %v9911_v45 }
0x130f   :  { %v4356_v61 = vadd.f32 1.0, %v9913_v34  ;;  %v9282_v2 = vpack.c.bf16 %v4395_v57, %v4394_v28 }
0x1310   :  { %v9915_v31 = vpop.eup %9914  ;;  %9926 = vrcp.f32 %v4357_v63 }
0x1311   :  { %v9917_v53 = vpop.eup %9916  ;;  %v4397_v25 = vmul.f32 %v9915_v31, %v12379_v48  ;;  %9928 = vrcp.f32 %v4356_v61  ;;  %9283 = vmatprep.subr.bf16.mxu0 %v9282_v2 }
0x1312   :  { %v9919_v10 = vpop.eup %9918  ;;  %v4396_v0 = vmul.f32 %v9917_v53, %v12382_v37  ;;  %9285 = vmatpush3.bf16.msra.mxu0 %v9282_v2 }
0x1313   :  { %v9921_v43 = vpop.eup %9920  ;;  %v4359_v41 = vadd.f32 1.0, %v9919_v10  ;;  %v492_v10 = vld [vmem:[%s13314_s29 + $0x10] sm:$0xff] }
0x1314   :  { %v4358_v9 = vadd.f32 1.0, %v9921_v43  ;;  %v9286_v51 = vpack.c.bf16 %v4397_v25, %v4396_v0  ;;  %v493_v43 = vld [vmem:[%s13314_s29 + $0x18] sm:$0xff] }
0x1315   :  { %9930 = vrcp.f32 %v4359_v41  ;;  %v9306_v41 = vpack.c.bf16 %v493_v43, %v492_v10 }
0x1316   :  { %v9923_v62 = vpop.eup %9922  ;;  %9932 = vrcp.f32 %v4358_v9  ;;  %9287 = vmatprep.subr.bf16.mxu0 %v9286_v51  ;;  %v494_v9 = vld [vmem:[%s13314_s29 + $0x20] sm:$0xff] }
0x1317   :  { %v9925_v39 = vpop.eup %9924  ;;  %v4361_v55 = vadd.f32 1.0, %v9923_v62  ;;  %9289 = vmatpush3.bf16.msra.mxu0 %v9286_v51  ;;  %v495_v51 = vld [vmem:[%s13314_s29 + $0x28] sm:$0xff]  ;;  %v497_v62 = vld [vmem:[%s13314_s29 + $0x38] sm:$0xff] }
0x1318   :  { %v4360_v60 = vadd.f32 1.0, %v9925_v39 }
0x1319   :  { %9934 = vrcp.f32 %v4361_v55 }
0x131a   :  { %v9927_v48 = vpop.eup %9926  ;;  %9936 = vrcp.f32 %v4360_v60 }
0x131b   :  { %v9929_v58 = vpop.eup %9928  ;;  %v4399_v57 = vmul.f32 %v9927_v48, %v12387_v7 }
0x131c   :  { %v4398_v37 = vmul.f32 %v9929_v58, %v12390_v42 }
0x131e   :  { %v9290_v45 = vpack.c.bf16 %v4399_v57, %v4398_v37 }
0x131f   :  { %v9931_v28 = vpop.eup %9930 }
0x1320   :  { %v9933_v34 = vpop.eup %9932  ;;  %v4401_v63 = vmul.f32 %v9931_v28, %v12396_v1  ;;  %9291 = vmatprep.subr.bf16.mxu0 %v9290_v45  ;;  %v490_v1 = vld [vmem:[%s13314_s29] sm:$0xff]  ;;  %v500_v28 = vld [vmem:[%s13315_s28 + $0x8] sm:$0xff] }
0x1321   :  { %v4400_v61 = vmul.f32 %v9933_v34, %v12399_v50  ;;  %9293 = vmatpush3.bf16.msra.mxu0 %v9290_v45  ;;  %v491_v50 = vld [vmem:[%s13314_s29 + $0x8] sm:$0xff]  ;;  %v499_v45 = vld [vmem:[%s13315_s28] sm:$0xff] }
0x1322   :  { %v9302_v0 = vpack.c.bf16 %v491_v50, %v490_v1  ;;  %v9318_v34 = vpack.c.bf16 %v500_v28, %v499_v45 }
0x1323   :  { %v9935_v2 = vpop.eup %9934  ;;  %v9294_v31 = vpack.c.bf16 %v4401_v63, %v4400_v61  ;;  %v501_v63 = vld [vmem:[%s13315_s28 + $0x10] sm:$0xff]  ;;  %v502_v61 = vld [vmem:[%s13315_s28 + $0x18] sm:$0xff] }
0x1324   :  { %v9937_v53 = vpop.eup %9936  ;;  %v4403_v7 = vmul.f32 %v9935_v2, %v4303_v4  ;;  %v9310_v4 = vpack.c.bf16 %v495_v51, %v494_v9  ;;  %9319 = vmatprep.subr.bf16.mxu1 %v9318_v34  ;;  %v9322_v2 = vpack.c.bf16 %v502_v61, %v501_v63 }
0x1325   :  { %v4402_v42 = vmul.f32 %v9937_v53, %v4298_v13  ;;  %9295 = vmatprep.subr.bf16.mxu0 %v9294_v31  ;;  %v496_v13 = vld [vmem:[%s13314_s29 + $0x30] sm:$0xff]  ;;  %9321 = vmatpush3.bf16.msra.mxu1 %v9318_v34 }
0x1326   :  { %9297 = vmatpush3.bf16.msra.mxu0 %v9294_v31  ;;  %v9314_v39 = vpack.c.bf16 %v497_v62, %v496_v13  ;;  %9323 = vmatprep.subr.bf16.mxu1 %v9322_v2  ;;  %v7435_v31 = vld [vmem:[#allocation2] ss:$0 sm:$0xff] }
0x1327   :  { %v9298_v25 = vpack.c.bf16 %v4403_v7, %v4402_v42 }
0x1329   :  { %9299 = vmatprep.subr.bf16.mxu0 %v9298_v25  ;;  %9325 = vmatpush3.bf16.msra.mxu1 %v9322_v2 }
0x132a   :  { %9301 = vmatpush3.bf16.msra.mxu0 %v9298_v25 }
0x132b   :  { %9303 = vmatprep.subr.bf16.mxu0 %v9302_v0 }
0x132d   :  { %8707 = vmatmul.mubr.msk.f32.vlgmr.msra.gmra.mrb[106].mxu0 %vm2067_vm9, %v11667_v59 }
0x132e   :  { %9305 = vmatpush3.bf16.msra.mxu0 %v9302_v0 }
0x132f   :  { %9307 = vmatprep.subr.bf16.mxu0 %v9306_v41 }
0x1332   :  { %9309 = vmatpush3.bf16.msra.mxu0 %v9306_v41 }
0x1333   :  { %9311 = vmatprep.subr.bf16.mxu0 %v9310_v4 }
0x1336   :  { %9313 = vmatpush3.bf16.msra.mxu0 %v9310_v4 }
0x1337   :  { %9315 = vmatprep.subr.bf16.mxu0 %v9314_v39 }
0x133a   :  { %9317 = vmatpush3.bf16.msra.mxu0 %v9314_v39  ;;  %v7440_v39 = vld [vmem:[#allocation5] ss:$0 sm:$0xff] }
0x1400   :  { %v8708_v55 = vpop.f32.mrb[106].mxu0 }
0x1401   :  { %4483 = vrot.lane.b32.xlu0 %v8708_v55, %s10615_s25  ;;  %v4470_v60 = vpop.f32.mrb[107].mxu0 }
0x1402   :  { %4481 = vrot.lane.b32.xlu1 %v4470_v60, %s10615_s25 }
0x1473   :  { %v4484_v48 = vpop.permute.xlu0 %4483 }
0x1474   :  { %v4482_v58 = vpop.permute.xlu1 %4481  ;;  %v4488_v37 = vsel %vm1436_vm6, %v12073_v8, %v4484_v48 }
0x1475   :  { %v4487_v57 = vsel %vm1436_vm6, %v12075_v19, %v4482_v58 }
0x1476   :  { %8725 = vmatprep.mubr.msk.f32.mxu0 %vm1451_vm7, %v4487_v57 }
0x1477   :  { %8726 = vmatmul.mubr.msk.f32.vlgmr.msra.gmra.mrb[108].mxu0 %vm1451_vm7, %v4488_v37 }
0x1478   :  { %8743 = vmatprep.mubr.msk.f32.mxu0 %vm773_vm4, %v11001_v6 }
0x154a   :  { %v8727_v53 = vpop.f32.mrb[108].mxu0 }
0x154b   :  { %v4573_v7 = vadd.f32 %v8727_v53, %v7435_v31  ;;  %v4567_v42 = vpop.f32.mrb[109].mxu0 }
0x154c   :  { %v4568_v25 = vadd.f32 %v7435_v31, %v4567_v42 }
0x154d   :  { %v4577_v1 = vsub.f32 0.0, %v4573_v7 }
0x154e   :  { %v4576_v50 = vsub.f32 0.0, %v4568_v25 }
0x154f   :  { %v4580_v10 = vmul.f32 1.442695, %v4577_v1 }
0x1550   :  { %v4578_v0 = vmul.f32 1.442695, %v4576_v50 }
0x1551   :  { %9938 = vpow2.f32 %v4580_v10 }
0x1552   :  { %9940 = vpow2.f32 %v4578_v0 }
0x155b   :  { %v9939_v6 = vpop.eup %9938 }
0x155c   :  { %v9941_v43 = vpop.eup %9940  ;;  %v4583_v41 = vadd.f32 1.0, %v9939_v6 }
0x155d   :  { %v4582_v9 = vadd.f32 1.0, %v9941_v43 }
0x155e   :  { %9942 = vrcp.f32 %v4583_v41 }
0x155f   :  { %9944 = vrcp.f32 %v4582_v9 }
0x1568   :  { %v9943_v51 = vpop.eup %9942 }
0x1569   :  { %v9945_v4 = vpop.eup %9944  ;;  %v4589_v62 = vmul.f32 %v9943_v51, %v4573_v7 }
0x156a   :  { %v4588_v13 = vmul.f32 %v9945_v4, %v4568_v25 }
0x156c   :  { %8736 = vmatprep.mubr.msk.f32.mxu1 %vm1436_vm6, %v4588_v13 }
0x156d   :  { %8737 = vmatmul.mubr.msk.f32.vlgmr.msra.gmra.mrb[104].mxu1 %vm1436_vm6, %v4589_v62 }
0x1640   :  { %v8738_v55 = vpop.f32.mrb[104].mxu1 }
0x1641   :  { %v4672_v60 = vadd.f32 %v8738_v55, %v12073_v8  ;;  %v4662_v48 = vpop.f32.mrb[105].mxu1  ;;  %v512_v8 = vld [vmem:[%s13316_s12 + $0x40] sm:$0xf] }
0x1642   :  { %v4671_v58 = vadd.f32 %v4662_v48, %v12075_v19 }
0x1643   :  { %v12441_v57 = vadd.f32 %v7440_v39, %v4672_v60  ;;  %v13318_v60 = vld [vmem:[#allocation106_spill] sm:$0xff] }
0x1644   :  { %v12443_v37 = vadd.f32 %v7440_v39, %v4671_v58 }
0x1646   :  { %v9326_v45 = vpack.c.bf16 %v12441_v57, %v12443_v37 }
0x1648   :  { %9327 = vmatprep.subr.bf16.mxu0 %v9326_v45 }
0x1649   :  { %9329 = vmatpush3.bf16.msra.mxu0 %v9326_v45 }
0x164c   :  { %8744 = vmatmul.mubr.msk.f32.vlgmr.msra.gmra.mrb[110].mxu0 %vm773_vm4, %v11010_v11  ;;  %v13317_v11 = vld [vmem:[#allocation91_spill] sm:$0xff] }
0x164d   :  { %8746 = vmatprep.mubr.msk.f32.mxu0 %vm773_vm4, %v11012_v12  ;;  %v504_v12 = vld [vmem:[%s13316_s12] sm:$0xff] }
0x1650   :  { %8747 = vmatmul.mubr.msk.f32.gmra.mrb[112].mxu0 %vm773_vm4, %v11019_v14  ;;  %v505_v14 = vld [vmem:[%s13316_s12 + $0x8] sm:$0xff] }
0x1651   :  { %8749 = vmatprep.mubr.msk.f32.mxu0 %vm773_vm4, %v11021_v15  ;;  %v506_v15 = vld [vmem:[%s13316_s12 + $0x10] sm:$0xff] }
0x1654   :  { %8750 = vmatmul.mubr.msk.f32.gmra.mrb[114].mxu0 %vm773_vm4, %v11028_v17  ;;  %v9330_v17 = vpack.c.bf16 %v505_v14, %v504_v12  ;;  %v13320_v14 = vld [vmem:[#allocation108_spill] sm:$0xff] }
0x1655   :  { %8752 = vmatprep.mubr.msk.f32.mxu0 %vm773_vm4, %v11030_v18  ;;  %v507_v18 = vld [vmem:[%s13316_s12 + $0x18] sm:$0xff] }
0x1656   :  { %9331 = vmatprep.subr.bf16.mxu1 %v9330_v17 }
0x1657   :  { %9333 = vmatpush3.bf16.msra.mxu1 %v9330_v17 }
0x1658   :  { %8753 = vmatmul.mubr.msk.f32.gmra.mrb[116].mxu0 %vm773_vm4, %v11037_v20  ;;  %v9334_v20 = vpack.c.bf16 %v507_v18, %v506_v15  ;;  %v13321_v18 = vld [vmem:[#allocation109_spill] sm:$0xff] }
0x1659   :  { %8755 = vmatprep.mubr.msk.f32.mxu0 %vm773_vm4, %v11039_v21  ;;  %v508_v21 = vld [vmem:[%s13316_s12 + $0x20] sm:$0xff] }
0x165a   :  { %9335 = vmatprep.subr.bf16.mxu1 %v9334_v20 }
0x165b   :  { %9337 = vmatpush3.bf16.msra.mxu1 %v9334_v20 }
0x165c   :  { %8756 = vmatmul.mubr.msk.f32.gmra.mrb[118].mxu0 %vm773_vm4, %v11046_v23  ;;  %v509_v23 = vld [vmem:[%s13316_s12 + $0x28] sm:$0xff] }
0x165d   :  { %8758 = vmatprep.mubr.msk.f32.mxu0 %vm773_vm4, %v11048_v24  ;;  %v9338_v24 = vpack.c.bf16 %v509_v23, %v508_v21 }
0x165f   :  { %9339 = vmatprep.subr.bf16.mxu1 %v9338_v24 }
0x1660   :  { %8759 = vmatmul.mubr.msk.f32.gmra.mrb[120].mxu0 %vm773_vm4, %v11055_v26  ;;  %v510_v26 = vld [vmem:[%s13316_s12 + $0x30] sm:$0xff]  ;;  %9341 = vmatpush3.bf16.msra.mxu1 %v9338_v24 }
0x1661   :  { %8761 = vmatprep.mubr.msk.f32.mxu0 %vm773_vm4, %v11057_v27  ;;  %v511_v27 = vld [vmem:[%s13316_s12 + $0x38] sm:$0xff] }
0x1664   :  { %8762 = vmatmul.mubr.msk.f32.gmra.mrb[122].mxu0 %vm773_vm4, %v11064_v29  ;;  %v9342_v29 = vpack.c.bf16 %v511_v27, %v510_v26  ;;  %v13322_v26 = vld [vmem:[#allocation110_spill] sm:$0xff] }
0x1665   :  { %8764 = vmatprep.mubr.msk.f32.mxu0 %vm773_vm4, %v11066_v30 }
0x1666   :  { %9343 = vmatprep.subr.bf16.mxu1 %v9342_v29 }
0x1667   :  { %9345 = vmatpush3.bf16.msra.mxu1 %v9342_v29 }
0x1668   :  { %8765 = vmatmul.mubr.msk.f32.gmra.mrb[124].mxu0 %vm773_vm4, %v11073_v32  ;;  %8801 = vmatprep.subr.msk.mxu1 %vm1529_vm5, %v512_v8 }
0x1669   :  { %8767 = vmatprep.mubr.msk.f32.mxu0 %vm773_vm4, %v11075_v33 }
0x166b   :  { %8802 = vmatpush3.msk.msra.mxu1 %vm1529_vm5, %v512_v8  ;;  %v13325_v8 = vld [vmem:[#allocation113_spill] sm:$0xff] }
0x166c   :  { %8768 = vmatmul.mubr.msk.f32.gmra.mrb[126].mxu0 %vm773_vm4, %v11082_v35 }
0x166d   :  { %8770 = vmatprep.mubr.msk.f32.mxu0 %vm773_vm4, %v11084_v36 }
0x1670   :  { %8771 = vmatmul.mubr.msk.f32.gmra.mrb[128].mxu0 %vm773_vm4, %v13251_v52 }
0x1671   :  { %8773 = vmatprep.mubr.msk.f32.mxu0 %vm773_vm4, %v13252_v54 }
0x1674   :  { %8774 = vmatmul.mubr.msk.f32.gmra.mrb[130].mxu0 %vm773_vm4, %v13253_v5 }
0x1675   :  { %8776 = vmatprep.mubr.msk.f32.mxu0 %vm773_vm4, %v13254_v40 }
0x1678   :  { %8777 = vmatmul.mubr.msk.f32.gmra.mrb[132].mxu0 %vm773_vm4, %v13255_v56 }
0x1679   :  { %8779 = vmatprep.mubr.msk.f32.mxu0 %vm773_vm4, %v13286_v22 }
0x167c   :  { %8780 = vmatmul.mubr.msk.f32.gmra.mrb[134].mxu0 %vm773_vm4, %v13287_v46 }
0x167d   :  { %8782 = vmatprep.mubr.msk.f32.mxu0 %vm773_vm4, %v13288_v3 }
0x1680   :  { %8783 = vmatmul.mubr.msk.f32.gmra.mrb[136].mxu0 %vm773_vm4, %v13317_v11 }
0x171f   :  { %v8745_v30 = vpop.f32.mrb[110].mxu0 }
0x1720   :  { %v4747_v32 = vpop.f32.mrb[111].mxu0 }
0x1723   :  { %v8748_v33 = vpop.f32.mrb[112].mxu0 }
0x1724   :  { %v4757_v35 = vpop.f32.mrb[113].mxu0 }
0x1727   :  { %v8751_v36 = vpop.f32.mrb[114].mxu0 }
0x1728   :  { %v4767_v52 = vpop.f32.mrb[115].mxu0 }
0x172b   :  { %v12509_v54 = vpop.f32.mrb[116].mxu0 }
0x172c   :  { %v12511_v5 = vpop.f32.mrb[117].mxu0 }
0x172f   :  { %v12513_v40 = vpop.f32.mrb[118].mxu0 }
0x1730   :  { %v12515_v56 = vpop.f32.mrb[119].mxu0 }
0x1733   :  { %v12520_v19 = vpop.f32.mrb[120].mxu0 }
0x1734   :  { %v12522_v22 = vpop.f32.mrb[121].mxu0 }
0x1737   :  { %v12524_v46 = vpop.f32.mrb[122].mxu0 }
0x1738   :  { %v12526_v3 = vpop.f32.mrb[123].mxu0 }
0x173b   :  { %v8766_v28 = vpop.f32.mrb[124].mxu0 }
0x173c   :  { %4902 = vrot.lane.b32.xlu0 %v8766_v28, %s10615_s25  ;;  %v4817_v34 = vpop.f32.mrb[125].mxu0 }
0x173d   :  { %4900 = vrot.lane.b32.xlu1 %v4817_v34, %s10615_s25 }
0x173f   :  { %v8769_v63 = vpop.f32.mrb[126].mxu0 }
0x1740   :  { %4906 = vrot.lane.b32.xlu0 %v8769_v63, %s10615_s25  ;;  %v4827_v61 = vpop.f32.mrb[127].mxu0  ;;  %v13327_v63 = vld [vmem:[#allocation114_spill] sm:$0xff] }
0x1741   :  { %4904 = vrot.lane.b32.xlu1 %v4827_v61, %s10615_s25 }
0x1743   :  { %v8772_v2 = vpop.f32.mrb[128].mxu0 }
0x1744   :  { %4910 = vrot.lane.b32.xlu0 %v8772_v2, %s10615_s25  ;;  %v4837_v31 = vpop.f32.mrb[129].mxu0 }
0x1745   :  { %4908 = vrot.lane.b32.xlu1 %v4837_v31, %s10615_s25  ;;  %v13328_v31 = vld [vmem:[#allocation115_spill] sm:$0xff] }
0x1747   :  { %v8775_v53 = vpop.f32.mrb[130].mxu0 }
0x1748   :  { %4914 = vrot.lane.b32.xlu0 %v8775_v53, %s10615_s25  ;;  %v4847_v7 = vpop.f32.mrb[131].mxu0 }
0x1749   :  { %4912 = vrot.lane.b32.xlu1 %v4847_v7, %s10615_s25 }
0x174b   :  { %v8778_v42 = vpop.f32.mrb[132].mxu0 }
0x174c   :  { %4918 = vrot.lane.b32.xlu0 %v8778_v42, %s10615_s25  ;;  %v4857_v25 = vpop.f32.mrb[133].mxu0  ;;  %v13330_v42 = vld [vmem:[#allocation117_spill] sm:$0xff] }
0x174d   :  { %4916 = vrot.lane.b32.xlu1 %v4857_v25, %s10615_s25 }
0x174f   :  { %v8781_v1 = vpop.f32.mrb[134].mxu0 }
0x1750   :  { %4922 = vrot.lane.b32.xlu0 %v8781_v1, %s10615_s25  ;;  %v4867_v50 = vpop.f32.mrb[135].mxu0  ;;  %v13331_v1 = vld [vmem:[#allocation116_spill] sm:$0xff] }
0x1751   :  { %4920 = vrot.lane.b32.xlu1 %v4867_v50, %s10615_s25 }
0x1753   :  { %v8784_v10 = vpop.f32.mrb[136].mxu0 }
0x1754   :  { %4926 = vrot.lane.b32.xlu0 %v8784_v10, %s10615_s25  ;;  %v4877_v0 = vpop.f32.mrb[137].mxu0  ;;  %v515_v10 = vld [vmem:[%s13326_s14] sm:$0xff] }
0x1755   :  { %4924 = vrot.lane.b32.xlu1 %v4877_v0, %s10615_s25 }
0x17ae   :  { %v4903_v6 = vpop.permute.xlu0 %4902 }
0x17af   :  { %v4943_v43 = vsel %vm1436_vm6, %v8745_v30, %v4903_v6  ;;  %v4901_v41 = vpop.permute.xlu1 %4900  ;;  %v13323_v30 = vld [vmem:[#allocation111_spill] sm:$0xff]  ;;  %v517_v6 = vld [vmem:[%s13326_s14 + $0x10] sm:$0xff] }
0x17b0   :  { %v4942_v9 = vsel %vm1436_vm6, %v4747_v32, %v4901_v41  ;;  %v4957_v4 = vsel %vm1451_vm7, %v4943_v43, %v11326_v16  ;;  %v518_v43 = vld [vmem:[%s13326_s14 + $0x18] sm:$0xff] }
0x17b1   :  { %v4956_v51 = vsel %vm1451_vm7, %v4942_v9, %v11318_v49  ;;  %v13319_v49 = vld [vmem:[#allocation107_spill] sm:$0xff]  ;;  %v9350_v41 = vpack.c.bf16 %v518_v43, %v517_v6  ;;  %v535_v9 = vld [vmem:[%s13329_s1 + $0x8] sm:$0xff]  ;;  %v13340_v6 = vld [vmem:[#allocation126_spill] sm:$0xff] }
0x17b2   :  { %8803 = vmatprep.mubr.msk.f32.mxu1 %vm1486_vm8, %v4956_v51  ;;  %v4907_v13 = vpop.permute.xlu0 %4906 }
0x17b3   :  { %v4945_v62 = vsel %vm1436_vm6, %v8748_v33, %v4907_v13  ;;  %8804 = vmatmul.mubr.msk.f32.vlgmr.msra.gmra.mrb[106].mxu1 %vm1486_vm8, %v4957_v4  ;;  %v4905_v39 = vpop.permute.xlu1 %4904  ;;  %v12612_v4 = vld [vmem:[#allocation7] ss:$0 sm:$0xff]  ;;  %v13332_v13 = vld [vmem:[#allocation121_spill] sm:$0xff] }
0x17b4   :  { %v4944_v55 = vsel %vm1436_vm6, %v4757_v35, %v4905_v39  ;;  %v4959_v45 = vsel %vm1451_vm7, %v4945_v62, %v13319_v49  ;;  %v4977_v62 = vmul.f32 %v12612_v4, %v13332_v13  ;;  %v12616_v39 = vld [vmem:[#allocation8] ss:$0 sm:$0xff]  ;;  %v4985_v43 = vmul.f32 %v12612_v4, %v13340_v6 }
0x17b5   :  { %v4958_v48 = vsel %vm1451_vm7, %v4944_v55, %v13318_v60  ;;  %v13333_v60 = vld [vmem:[#allocation118_spill] sm:$0xff] }
0x17b6   :  { %8806 = vmatprep.mubr.msk.f32.mxu1 %vm1486_vm8, %v4958_v48  ;;  %v4911_v58 = vpop.permute.xlu0 %4910  ;;  %v4976_v48 = vmul.f32 %v12612_v4, %v13333_v60 }
0x17b7   :  { %v4947_v16 = vsel %vm1436_vm6, %v8751_v36, %v4911_v58  ;;  %8807 = vmatmul.mubr.msk.f32.gmra.mrb[108].mxu1 %vm1486_vm8, %v4959_v45  ;;  %v4909_v11 = vpop.permute.xlu1 %4908 }
0x17b8   :  { %v4946_v12 = vsel %vm1436_vm6, %v4767_v52, %v4909_v11  ;;  %v4961_v20 = vsel %vm1451_vm7, %v4947_v16, %v13321_v18  ;;  %v13324_v52 = vld [vmem:[#allocation112_spill] sm:$0xff] }
0x17b9   :  { %v4960_v15 = vsel %vm1451_vm7, %v4946_v12, %v13320_v14  ;;  %v13334_v11 = vld [vmem:[#allocation120_spill] sm:$0xff] }
0x17ba   :  { %8809 = vmatprep.mubr.msk.f32.mxu1 %vm1486_vm8, %v4960_v15  ;;  %v4915_v17 = vpop.permute.xlu0 %4914  ;;  %v4979_v12 = vmul.f32 %v12612_v4, %v13334_v11 }
0x17bb   :  { %v4949_v21 = vsel %vm1436_vm6, %v12509_v54, %v4915_v17  ;;  %8810 = vmatmul.mubr.msk.f32.gmra.mrb[110].mxu1 %vm1486_vm8, %v4961_v20  ;;  %v4913_v23 = vpop.permute.xlu1 %4912  ;;  %v13335_v17 = vld [vmem:[#allocation119_spill] sm:$0xff] }
0x17bc   :  { %v4948_v24 = vsel %vm1436_vm6, %v12511_v5, %v4913_v23  ;;  %v4963_v32 = vsel %vm1451_vm7, %v4949_v21, %v13323_v30  ;;  %v4978_v18 = vmul.f32 %v12612_v4, %v13335_v17  ;;  %v13336_v30 = vld [vmem:[#allocation122_spill] sm:$0xff] }
0x17bd   :  { %v4962_v27 = vsel %vm1451_vm7, %v4948_v24, %v13322_v26 }
0x17be   :  { %8812 = vmatprep.mubr.msk.f32.mxu1 %vm1486_vm8, %v4962_v27  ;;  %v4919_v29 = vpop.permute.xlu0 %4918 }
0x17bf   :  { %v4951_v33 = vsel %vm1436_vm6, %v12513_v40, %v4919_v29  ;;  %8813 = vmatmul.mubr.msk.f32.gmra.mrb[112].mxu1 %vm1486_vm8, %v4963_v32  ;;  %v4917_v35 = vpop.permute.xlu1 %4916  ;;  %v4981_v32 = vmul.f32 %v12612_v4, %v13336_v30 }
0x17c0   :  { %v4950_v36 = vsel %vm1436_vm6, %v12515_v56, %v4917_v35  ;;  %v4965_v28 = vsel %vm1451_vm7, %v4951_v33, %v13325_v8 }
0x17c1   :  { %v4964_v54 = vsel %vm1451_vm7, %v4950_v36, %v13324_v52  ;;  %v13337_v52 = vld [vmem:[#allocation123_spill] sm:$0xff] }
0x17c2   :  { %8815 = vmatprep.mubr.msk.f32.mxu1 %vm1486_vm8, %v4964_v54  ;;  %v4923_v5 = vpop.permute.xlu0 %4922  ;;  %v4980_v54 = vmul.f32 %v12612_v4, %v13337_v52 }
0x17c3   :  { %v4953_v34 = vsel %vm1436_vm6, %v12520_v19, %v4923_v5  ;;  %8816 = vmatmul.mubr.msk.f32.gmra.mrb[114].mxu1 %vm1486_vm8, %v4965_v28  ;;  %v4921_v40 = vpop.permute.xlu1 %4920 }
0x17c4   :  { %v4952_v56 = vsel %vm1436_vm6, %v12522_v22, %v4921_v40  ;;  %v4967_v53 = vsel %vm1451_vm7, %v4953_v34, %v13328_v31 }
0x17c5   :  { %v4966_v61 = vsel %vm1451_vm7, %v4952_v56, %v13327_v63 }
0x17c6   :  { %8818 = vmatprep.mubr.msk.f32.mxu1 %vm1486_vm8, %v4966_v61  ;;  %v4927_v2 = vpop.permute.xlu0 %4926  ;;  %v13338_v61 = vld [vmem:[#allocation124_spill] sm:$0xff] }
0x17c7   :  { %v4955_v19 = vsel %vm1436_vm6, %v12524_v46, %v4927_v2  ;;  %8819 = vmatmul.mubr.msk.f32.gmra.mrb[116].mxu1 %vm1486_vm8, %v4967_v53  ;;  %v4925_v7 = vpop.permute.xlu1 %4924  ;;  %v516_v46 = vld [vmem:[%s13326_s14 + $0x8] sm:$0xff]  ;;  %v4983_v2 = vmul.f32 %v12612_v4, %v13338_v61 }
0x17c8   :  { %v4954_v22 = vsel %vm1436_vm6, %v12526_v3, %v4925_v7  ;;  %v4969_v50 = vsel %vm1451_vm7, %v4955_v19, %v13331_v1  ;;  %v9346_v0 = vpack.c.bf16 %v516_v46, %v515_v10  ;;  %v534_v3 = vld [vmem:[%s13329_s1] sm:$0xff]  ;;  %v13339_v7 = vld [vmem:[#allocation125_spill] sm:$0xff] }
0x17c9   :  { %v4968_v25 = vsel %vm1451_vm7, %v4954_v22, %v13330_v42  ;;  %v9354_v51 = vpack.c.bf16 %v535_v9, %v534_v3  ;;  %v4982_v22 = vmul.f32 %v12612_v4, %v13339_v7 }
0x17ca   :  { %8821 = vmatprep.mubr.msk.f32.mxu1 %vm1486_vm8, %v4968_v25  ;;  %9347 = vmatprep.subr.bf16.mxu1 %v9346_v0 }
0x17cb   :  { %8822 = vmatmul.mubr.msk.f32.gmra.mrb[118].mxu1 %vm1486_vm8, %v4969_v50  ;;  %9355 = vmatprep.subr.bf16.mxu0 %v9354_v51 }
0x17cc   :  { %9349 = vmatpush3.bf16.msra.mxu1 %v9346_v0  ;;  %9357 = vmatpush3.bf16.msra.mxu0 %v9354_v51  ;;  %v13341_v51 = vld [vmem:[#allocation127_spill] sm:$0xff] }
0x17cd   :  { %9351 = vmatprep.subr.bf16.mxu1 %v9350_v41  ;;  %v4984_v13 = vmul.f32 %v12612_v4, %v13341_v51 }
0x17d0   :  { %9353 = vmatpush3.bf16.msra.mxu1 %v9350_v41 }
0x1886   :  { %v8805_v55 = vpop.f32.mrb[106].mxu1 }
0x1887   :  { %v5107_v58 = vadd.f32 %v8805_v55, %v4977_v62  ;;  %v5101_v49 = vpop.f32.mrb[107].mxu1 }
0x1888   :  { %v5102_v45 = vadd.f32 %v5101_v49, %v4976_v48 }
0x1889   :  { %v12621_v16 = vadd.f32 %v12616_v39, %v5107_v58 }
0x188a   :  { %v12626_v14 = vadd.f32 %v12616_v39, %v5102_v45  ;;  %v8808_v15 = vpop.f32.mrb[108].mxu1 }
0x188b   :  { %v5191_v20 = vsub.f32 0.0, %v12621_v16  ;;  %v5117_v21 = vadd.f32 %v8808_v15, %v4979_v12  ;;  %v5111_v23 = vpop.f32.mrb[109].mxu1  ;;  %v4987_v12 = vmul.f32 %v12612_v4, %v13310_v44 }
0x188c   :  { %v5190_v24 = vsub.f32 0.0, %v12626_v14  ;;  %v5112_v26 = vadd.f32 %v5111_v23, %v4978_v18  ;;  %v4986_v23 = vmul.f32 %v12612_v4, %v13311_v38  ;;  %v13342_v38 = vld [vmem:[#allocation130_spill] sm:$0xff] }
0x188d   :  { %v5206_v27 = vmul.f32 1.442695, %v5191_v20  ;;  %v12633_v29 = vadd.f32 %v12616_v39, %v5117_v21 }
0x188e   :  { %v5204_v33 = vmul.f32 1.442695, %v5190_v24  ;;  %v12638_v35 = vadd.f32 %v12616_v39, %v5112_v26  ;;  %v8811_v36 = vpop.f32.mrb[110].mxu1 }
0x188f   :  { %9946 = vpow2.f32 %v5206_v27  ;;  %v5193_v5 = vsub.f32 0.0, %v12633_v29  ;;  %v5127_v8 = vadd.f32 %v8811_v36, %v4981_v32  ;;  %v5121_v28 = vpop.f32.mrb[111].mxu1 }
0x1890   :  { %9948 = vpow2.f32 %v5204_v33  ;;  %v5192_v34 = vsub.f32 0.0, %v12638_v35  ;;  %v5122_v40 = vadd.f32 %v5121_v28, %v4980_v54  ;;  %v4988_v33 = vmul.f32 %v12612_v4, %v11543_v47 }
0x1891   :  { %v5210_v56 = vmul.f32 1.442695, %v5193_v5  ;;  %v12645_v63 = vadd.f32 %v12616_v39, %v5127_v8  ;;  %v4989_v5 = vmul.f32 %v12612_v4, %v13342_v38 }
0x1892   :  { %v5208_v31 = vmul.f32 1.442695, %v5192_v34  ;;  %v12650_v53 = vadd.f32 %v12616_v39, %v5122_v40  ;;  %v8814_v19 = vpop.f32.mrb[112].mxu1 }
0x1893   :  { %9950 = vpow2.f32 %v5210_v56  ;;  %v5195_v42 = vsub.f32 0.0, %v12645_v63  ;;  %v5137_v25 = vadd.f32 %v8814_v19, %v4983_v2  ;;  %v5131_v1 = vpop.f32.mrb[113].mxu1 }
0x1894   :  { %9952 = vpow2.f32 %v5208_v31  ;;  %v5194_v50 = vsub.f32 0.0, %v12650_v53  ;;  %v5132_v10 = vadd.f32 %v5131_v1, %v4982_v22 }
0x1895   :  { %v5214_v46 = vmul.f32 1.442695, %v5195_v42  ;;  %v12657_v0 = vadd.f32 %v12616_v39, %v5137_v25 }
0x1896   :  { %v5212_v41 = vmul.f32 1.442695, %v5194_v50  ;;  %v12662_v3 = vadd.f32 %v12616_v39, %v5132_v10  ;;  %v8817_v9 = vpop.f32.mrb[114].mxu1 }
0x1897   :  { %9954 = vpow2.f32 %v5214_v46  ;;  %v5197_v62 = vsub.f32 0.0, %v12657_v0  ;;  %v5147_v55 = vadd.f32 %v8817_v9, %v4985_v43  ;;  %v5141_v60 = vpop.f32.mrb[115].mxu1 }
0x1898   :  { %9956 = vpow2.f32 %v5212_v41  ;;  %v5196_v48 = vsub.f32 0.0, %v12662_v3  ;;  %v5142_v58 = vadd.f32 %v5141_v60, %v4984_v13 }
0x1899   :  { %v9947_v49 = vpop.eup %9946  ;;  %v5218_v45 = vmul.f32 1.442695, %v5197_v62  ;;  %v12669_v11 = vadd.f32 %v12616_v39, %v5147_v55 }
0x189a   :  { %v9949_v15 = vpop.eup %9948  ;;  %v5233_v17 = vadd.f32 1.0, %v9947_v49  ;;  %v5216_v18 = vmul.f32 1.442695, %v5196_v48  ;;  %v12674_v20 = vadd.f32 %v12616_v39, %v5142_v58  ;;  %v8820_v21 = vpop.f32.mrb[116].mxu1 }
0x189b   :  { %v5232_v24 = vadd.f32 1.0, %v9949_v15  ;;  %9958 = vpow2.f32 %v5218_v45  ;;  %v5199_v26 = vsub.f32 0.0, %v12669_v11  ;;  %v5157_v27 = vadd.f32 %v8820_v21, %v4987_v12  ;;  %v5151_v30 = vpop.f32.mrb[117].mxu1 }
0x189c   :  { %9960 = vrcp.f32 %v5233_v17  ;;  %v5198_v32 = vsub.f32 0.0, %v12674_v20  ;;  %v5152_v44 = vadd.f32 %v5151_v30, %v4986_v23 }
0x189d   :  { %v9951_v36 = vpop.eup %9950  ;;  %9962 = vrcp.f32 %v5232_v24  ;;  %v5222_v52 = vmul.f32 1.442695, %v5199_v26  ;;  %v12683_v54 = vadd.f32 %v12616_v39, %v5157_v27 }
0x189e   :  { %v9953_v8 = vpop.eup %9952  ;;  %v5235_v28 = vadd.f32 1.0, %v9951_v36  ;;  %9964 = vpow2.f32 %v5216_v18  ;;  %v5220_v34 = vmul.f32 1.442695, %v5198_v32  ;;  %v12688_v40 = vadd.f32 %v12616_v39, %v5152_v44  ;;  %v8823_v56 = vpop.f32.mrb[118].mxu1 }
0x189f   :  { %v5234_v61 = vadd.f32 1.0, %v9953_v8  ;;  %9966 = vpow2.f32 %v5222_v52  ;;  %v5201_v47 = vsub.f32 0.0, %v12683_v54  ;;  %v5167_v2 = vadd.f32 %v8823_v56, %v4989_v5  ;;  %v5161_v31 = vpop.f32.mrb[119].mxu1 }
0x18a0   :  { %9968 = vrcp.f32 %v5235_v28  ;;  %v5200_v19 = vsub.f32 0.0, %v12688_v40  ;;  %v5162_v7 = vadd.f32 %v5161_v31, %v4988_v33  ;;  %v539_v31 = vld [vmem:[%s13343_s21] sm:$0xff] }
0x18a1   :  { %v9955_v22 = vpop.eup %9954  ;;  %9970 = vrcp.f32 %v5234_v61  ;;  %v5226_v4 = vmul.f32 1.442695, %v5201_v47  ;;  %v12693_v42 = vadd.f32 %v12616_v39, %v5167_v2 }
0x18a2   :  { %v9957_v25 = vpop.eup %9956  ;;  %v5237_v1 = vadd.f32 1.0, %v9955_v22  ;;  %9972 = vpow2.f32 %v5220_v34  ;;  %v5224_v50 = vmul.f32 1.442695, %v5200_v19  ;;  %v12696_v10 = vadd.f32 %v12616_v39, %v5162_v7  ;;  %v536_v19 = vld [vmem:[%s13329_s1 + $0x10] sm:$0xff]  ;;  %v537_v7 = vld [vmem:[%s13329_s1 + $0x18] sm:$0xff] }
0x18a3   :  { %v5236_v46 = vadd.f32 1.0, %v9957_v25  ;;  %9974 = vpow2.f32 %v5226_v4  ;;  %v5203_v6 = vsub.f32 0.0, %v12693_v42  ;;  %v9358_v22 = vpack.c.bf16 %v537_v7, %v536_v19  ;;  %v541_v4 = vld [vmem:[%s13343_s21 + $0x10] sm:$0xff]  ;;  %v542_v25 = vld [vmem:[%s13343_s21 + $0x18] sm:$0xff] }
0x18a4   :  { %9976 = vrcp.f32 %v5237_v1  ;;  %v5202_v43 = vsub.f32 0.0, %v12696_v10  ;;  %v9366_v1 = vpack.c.bf16 %v542_v25, %v541_v4 }
0x18a5   :  { %v9959_v41 = vpop.eup %9958  ;;  %9978 = vrcp.f32 %v5236_v46  ;;  %v5230_v9 = vmul.f32 1.442695, %v5203_v6  ;;  %9359 = vmatprep.subr.bf16.mxu0 %v9358_v22 }
0x18a6   :  { %v9961_v51 = vpop.eup %9960  ;;  %v5239_v13 = vadd.f32 1.0, %v9959_v41  ;;  %9980 = vpow2.f32 %v5224_v50  ;;  %v5228_v62 = vmul.f32 1.442695, %v5202_v43  ;;  %9361 = vmatpush3.bf16.msra.mxu0 %v9358_v22 }
0x18a7   :  { %v9963_v55 = vpop.eup %9962  ;;  %9982 = vpow2.f32 %v5230_v9  ;;  %v5275_v58 = vmul.f32 %v9961_v51, %v12621_v16 }
0x18a8   :  { %v9965_v60 = vpop.eup %9964  ;;  %v5274_v39 = vmul.f32 %v9963_v55, %v12626_v14  ;;  %9984 = vpow2.f32 %v5228_v62 }
0x18a9   :  { %v9967_v48 = vpop.eup %9966  ;;  %v5238_v49 = vadd.f32 1.0, %v9965_v60  ;;  %9986 = vrcp.f32 %v5239_v13 }
0x18aa   :  { %v9969_v45 = vpop.eup %9968  ;;  %v5241_v12 = vadd.f32 1.0, %v9967_v48  ;;  %8832 = vmatprep.mubr.msk.f32.mxu1 %vm1436_vm6, %v5274_v39 }
0x18ab   :  { %v9971_v15 = vpop.eup %9970  ;;  %9988 = vrcp.f32 %v5238_v49  ;;  %8833 = vmatmul.mubr.msk.f32.vlgmr.msra.gmra.mrb[120].mxu1 %vm1436_vm6, %v5275_v58  ;;  %v5277_v14 = vmul.f32 %v9969_v45, %v12633_v29 }
0x18ac   :  { %v9973_v17 = vpop.eup %9972  ;;  %v5276_v18 = vmul.f32 %v9971_v15, %v12638_v35  ;;  %9990 = vrcp.f32 %v5241_v12 }
0x18ad   :  { %v9975_v21 = vpop.eup %9974  ;;  %v5240_v23 = vadd.f32 1.0, %v9973_v17 }
0x18ae   :  { %v9977_v24 = vpop.eup %9976  ;;  %v5243_v16 = vadd.f32 1.0, %v9975_v21  ;;  %8835 = vmatprep.mubr.msk.f32.mxu1 %vm1436_vm6, %v5276_v18 }
0x18af   :  { %v9979_v26 = vpop.eup %9978  ;;  %9992 = vrcp.f32 %v5240_v23  ;;  %8836 = vmatmul.mubr.msk.f32.gmra.mrb[122].mxu1 %vm1436_vm6, %v5277_v14  ;;  %v5279_v44 = vmul.f32 %v9977_v24, %v12645_v63 }
0x18b0   :  { %v9981_v27 = vpop.eup %9980  ;;  %v5278_v30 = vmul.f32 %v9979_v26, %v12650_v53  ;;  %9994 = vrcp.f32 %v5243_v16 }
0x18b1   :  { %v9983_v32 = vpop.eup %9982  ;;  %v5242_v35 = vadd.f32 1.0, %v9981_v27 }
0x18b2   :  { %v5245_v33 = vadd.f32 1.0, %v9983_v32  ;;  %8838 = vmatprep.mubr.msk.f32.mxu1 %vm1436_vm6, %v5278_v30  ;;  %v9985_v29 = vpop.eup %9984 }
0x18b3   :  { %9996 = vrcp.f32 %v5242_v35  ;;  %8839 = vmatmul.mubr.msk.f32.gmra.mrb[124].mxu1 %vm1436_vm6, %v5279_v44  ;;  %v9987_v36 = vpop.eup %9986  ;;  %v5244_v52 = vadd.f32 1.0, %v9985_v29 }
0x18b4   :  { %9998 = vrcp.f32 %v5245_v33  ;;  %v5281_v53 = vmul.f32 %v9987_v36, %v12657_v0 }
0x18b5   :  { %v9989_v38 = vpop.eup %9988  ;;  %10000 = vrcp.f32 %v5244_v52 }
0x18b6   :  { %v5280_v5 = vmul.f32 %v9989_v38, %v12662_v3  ;;  %v9991_v8 = vpop.eup %9990 }
0x18b7   :  { %v5283_v34 = vmul.f32 %v9991_v8, %v12669_v11 }
0x18b8   :  { %8841 = vmatprep.mubr.msk.f32.mxu1 %vm1436_vm6, %v5280_v5 }
0x18b9   :  { %v9993_v63 = vpop.eup %9992  ;;  %8842 = vmatmul.mubr.msk.f32.gmra.mrb[126].mxu1 %vm1436_vm6, %v5281_v53 }
0x18ba   :  { %v5282_v28 = vmul.f32 %v9993_v63, %v12674_v20  ;;  %v9995_v56 = vpop.eup %9994 }
0x18bb   :  { %v5285_v47 = vmul.f32 %v9995_v56, %v12683_v54 }
0x18bc   :  { %8844 = vmatprep.mubr.msk.f32.mxu1 %vm1436_vm6, %v5282_v28 }
0x18bd   :  { %v9997_v3 = vpop.eup %9996  ;;  %8845 = vmatmul.mubr.msk.f32.gmra.mrb[128].mxu1 %vm1436_vm6, %v5283_v34 }
0x18be   :  { %v5284_v0 = vmul.f32 %v9997_v3, %v12688_v40  ;;  %v9999_v61 = vpop.eup %9998  ;;  %v540_v40 = vld [vmem:[%s13343_s21 + $0x8] sm:$0xff] }
0x18bf   :  { %v10001_v2 = vpop.eup %10000  ;;  %v5287_v20 = vmul.f32 %v9999_v61, %v12693_v42  ;;  %v9362_v54 = vpack.c.bf16 %v540_v40, %v539_v31  ;;  %v12734_v42 = vld [vmem:[#allocation10] ss:$0 sm:$0xff] }
0x18c0   :  { %8847 = vmatprep.mubr.msk.f32.mxu1 %vm1436_vm6, %v5284_v0  ;;  %v5286_v11 = vmul.f32 %v10001_v2, %v12696_v10 }
0x18c1   :  { %8848 = vmatmul.mubr.msk.f32.gmra.mrb[130].mxu1 %vm1436_vm6, %v5285_v47  ;;  %9363 = vmatprep.subr.bf16.mxu1 %v9362_v54 }
0x18c2   :  { %8850 = vmatprep.mubr.msk.f32.mxu1 %vm1436_vm6, %v5286_v11  ;;  %9365 = vmatpush3.bf16.msra.mxu1 %v9362_v54 }
0x18c3   :  { %9367 = vmatprep.subr.bf16.mxu1 %v9366_v1 }
0x18c5   :  { %8851 = vmatmul.mubr.msk.f32.gmra.mrb[132].mxu1 %vm1436_vm6, %v5287_v20 }
0x18c6   :  { %9369 = vmatpush3.bf16.msra.mxu1 %v9366_v1 }
0x197e   :  { %v8834_v50 = vpop.f32.mrb[120].mxu1 }
0x197f   :  { %v12737_v10 = vadd.f32 %v8834_v50, %v12734_v42  ;;  %v5402_v46 = vpop.f32.mrb[121].mxu1 }
0x1980   :  { %v12740_v6 = vadd.f32 %v12734_v42, %v5402_v46 }
0x1981   :  { %v5472_v43 = vsub.f32 0.0, %v12737_v10 }
0x1982   :  { %v5471_v41 = vsub.f32 0.0, %v12740_v6  ;;  %v8837_v9 = vpop.f32.mrb[122].mxu1 }
0x1983   :  { %v5487_v51 = vmul.f32 1.442695, %v5472_v43  ;;  %v12745_v13 = vadd.f32 %v8837_v9, %v12734_v42  ;;  %v5412_v62 = vpop.f32.mrb[123].mxu1 }
0x1984   :  { %v5485_v55 = vmul.f32 1.442695, %v5471_v41  ;;  %v12748_v60 = vadd.f32 %v12734_v42, %v5412_v62 }
0x1985   :  { %10002 = vpow2.f32 %v5487_v51  ;;  %v5474_v39 = vsub.f32 0.0, %v12745_v13 }
0x1986   :  { %10004 = vpow2.f32 %v5485_v55  ;;  %v5473_v48 = vsub.f32 0.0, %v12748_v60  ;;  %v8840_v58 = vpop.f32.mrb[124].mxu1 }
0x1987   :  { %v5491_v49 = vmul.f32 1.442695, %v5474_v39  ;;  %v12753_v45 = vadd.f32 %v8840_v58, %v12734_v42  ;;  %v5422_v12 = vpop.f32.mrb[125].mxu1 }
0x1988   :  { %v5489_v15 = vmul.f32 1.442695, %v5473_v48  ;;  %v12756_v17 = vadd.f32 %v12734_v42, %v5422_v12 }
0x1989   :  { %10006 = vpow2.f32 %v5491_v49  ;;  %v5476_v18 = vsub.f32 0.0, %v12753_v45 }
0x198a   :  { %10008 = vpow2.f32 %v5489_v15  ;;  %v5475_v21 = vsub.f32 0.0, %v12756_v17 }
0x198b   :  { %v5495_v14 = vmul.f32 1.442695, %v5476_v18 }
0x198c   :  { %v5493_v23 = vmul.f32 1.442695, %v5475_v21  ;;  %v8843_v24 = vpop.f32.mrb[126].mxu1 }
0x198d   :  { %10010 = vpow2.f32 %v5495_v14  ;;  %v12761_v16 = vadd.f32 %v8843_v24, %v12734_v42  ;;  %v5432_v26 = vpop.f32.mrb[127].mxu1 }
0x198e   :  { %10012 = vpow2.f32 %v5493_v23  ;;  %v12764_v27 = vadd.f32 %v12734_v42, %v5432_v26 }
0x198f   :  { %v10003_v30 = vpop.eup %10002  ;;  %v5478_v32 = vsub.f32 0.0, %v12761_v16 }
0x1990   :  { %v10005_v44 = vpop.eup %10004  ;;  %v5514_v35 = vadd.f32 1.0, %v10003_v30  ;;  %v5477_v33 = vsub.f32 0.0, %v12764_v27  ;;  %v8846_v29 = vpop.f32.mrb[128].mxu1 }
0x1991   :  { %v5513_v36 = vadd.f32 1.0, %v10005_v44  ;;  %v5499_v52 = vmul.f32 1.442695, %v5478_v32  ;;  %v12769_v38 = vadd.f32 %v8846_v29, %v12734_v42  ;;  %v5442_v5 = vpop.f32.mrb[129].mxu1 }
0x1992   :  { %10014 = vrcp.f32 %v5514_v35  ;;  %v5497_v53 = vmul.f32 1.442695, %v5477_v33  ;;  %v12772_v8 = vadd.f32 %v12734_v42, %v5442_v5 }
0x1993   :  { %v10007_v63 = vpop.eup %10006  ;;  %10016 = vrcp.f32 %v5513_v36  ;;  %v5480_v28 = vsub.f32 0.0, %v12769_v38 }
0x1994   :  { %v10009_v34 = vpop.eup %10008  ;;  %v5516_v56 = vadd.f32 1.0, %v10007_v63  ;;  %10018 = vpow2.f32 %v5499_v52  ;;  %v5479_v3 = vsub.f32 0.0, %v12772_v8  ;;  %v8849_v0 = vpop.f32.mrb[130].mxu1 }
0x1995   :  { %v5515_v61 = vadd.f32 1.0, %v10009_v34  ;;  %10020 = vpow2.f32 %v5497_v53  ;;  %v5503_v47 = vmul.f32 1.442695, %v5480_v28  ;;  %v12777_v2 = vadd.f32 %v8849_v0, %v12734_v42  ;;  %v5452_v11 = vpop.f32.mrb[131].mxu1 }
0x1996   :  { %10022 = vrcp.f32 %v5516_v56  ;;  %v5501_v20 = vmul.f32 1.442695, %v5479_v3  ;;  %v12780_v31 = vadd.f32 %v12734_v42, %v5452_v11 }
0x1997   :  { %v10011_v40 = vpop.eup %10010  ;;  %10024 = vrcp.f32 %v5515_v61  ;;  %v5482_v19 = vsub.f32 0.0, %v12777_v2 }
0x1998   :  { %v10013_v7 = vpop.eup %10012  ;;  %v5518_v54 = vadd.f32 1.0, %v10011_v40  ;;  %10026 = vpow2.f32 %v5503_v47  ;;  %v5481_v22 = vsub.f32 0.0, %v12780_v31  ;;  %v8852_v4 = vpop.f32.mrb[132].mxu1 }
0x1999   :  { %v5517_v25 = vadd.f32 1.0, %v10013_v7  ;;  %10028 = vpow2.f32 %v5501_v20  ;;  %v5507_v1 = vmul.f32 1.442695, %v5482_v19  ;;  %v12785_v50 = vadd.f32 %v8852_v4, %v12734_v42  ;;  %v5462_v46 = vpop.f32.mrb[133].mxu1 }
0x199a   :  { %10030 = vrcp.f32 %v5518_v54  ;;  %v5505_v43 = vmul.f32 1.442695, %v5481_v22  ;;  %v12788_v41 = vadd.f32 %v12734_v42, %v5462_v46 }
0x199b   :  { %10032 = vrcp.f32 %v5517_v25  ;;  %v5484_v9 = vsub.f32 0.0, %v12785_v50 }
0x199c   :  { %v10015_v51 = vpop.eup %10014  ;;  %10034 = vpow2.f32 %v5507_v1  ;;  %v5483_v62 = vsub.f32 0.0, %v12788_v41 }
0x199d   :  { %v10017_v55 = vpop.eup %10016  ;;  %v5556_v39 = vmul.f32 %v10015_v51, %v12737_v10  ;;  %10036 = vpow2.f32 %v5505_v43  ;;  %v5511_v48 = vmul.f32 1.442695, %v5484_v9 }
0x199e   :  { %v10019_v58 = vpop.eup %10018  ;;  %v5555_v49 = vmul.f32 %v10017_v55, %v12740_v6  ;;  %v5509_v12 = vmul.f32 1.442695, %v5483_v62 }
0x199f   :  { %v10021_v15 = vpop.eup %10020  ;;  %v5520_v18 = vadd.f32 1.0, %v10019_v58  ;;  %10038 = vpow2.f32 %v5511_v48 }
0x19a0   :  { %v10023_v42 = vpop.eup %10022  ;;  %v5519_v21 = vadd.f32 1.0, %v10021_v15  ;;  %10040 = vpow2.f32 %v5509_v12  ;;  %8861 = vmatprep.mubr.msk.f32.mxu0 %vm1436_vm6, %v5555_v49  ;;  %v12795_v14 = vpack.c.bf16 %v5556_v39, %v5555_v49 }
0x19a1   :  { %v10025_v23 = vpop.eup %10024  ;;  %v5558_v24 = vmul.f32 %v10023_v42, %v12745_v13  ;;  %10042 = vrcp.f32 %v5520_v18  ;;  %8862 = vmatmul.mubr.msk.f32.vlgmr.msra.gmra.mrb[138].mxu0 %vm1436_vm6, %v5556_v39 }
0x19a2   :  { %v10027_v10 = vpop.eup %10026  ;;  %v5557_v6 = vmul.f32 %v10025_v23, %v12748_v60  ;;  %10044 = vrcp.f32 %v5519_v21  ;;  %9399 = vmatprep.subr.bf16.mxu1 %v12795_v14 }
0x19a3   :  { %v10029_v26 = vpop.eup %10028  ;;  %v5522_v30 = vadd.f32 1.0, %v10027_v10 }
0x19a4   :  { %v10031_v32 = vpop.eup %10030  ;;  %v5521_v44 = vadd.f32 1.0, %v10029_v26  ;;  %8864 = vmatprep.mubr.msk.f32.mxu0 %vm1436_vm6, %v5557_v6  ;;  %v12802_v35 = vpack.c.bf16 %v5558_v24, %v5557_v6 }
0x19a5   :  { %v10033_v33 = vpop.eup %10032  ;;  %v5560_v13 = vmul.f32 %v10031_v32, %v12753_v45  ;;  %10046 = vrcp.f32 %v5522_v30  ;;  %8865 = vmatmul.mubr.msk.f32.gmra.mrb[140].mxu0 %vm1436_vm6, %v5558_v24 }
0x19a6   :  { %v10035_v29 = vpop.eup %10034  ;;  %v5559_v60 = vmul.f32 %v10033_v33, %v12756_v17  ;;  %10048 = vrcp.f32 %v5521_v44 }
0x19a7   :  { %v10037_v36 = vpop.eup %10036  ;;  %v5524_v52 = vadd.f32 1.0, %v10035_v29 }
0x19a8   :  { %v5523_v5 = vadd.f32 1.0, %v10037_v36  ;;  %8867 = vmatprep.mubr.msk.f32.mxu0 %vm1436_vm6, %v5559_v60  ;;  %v12808_v53 = vpack.c.bf16 %v5560_v13, %v5559_v60 }
0x19a9   :  { %v10039_v63 = vpop.eup %10038  ;;  %10050 = vrcp.f32 %v5524_v52  ;;  %8868 = vmatmul.mubr.msk.f32.gmra.mrb[142].mxu0 %vm1436_vm6, %v5560_v13 }
0x19aa   :  { %v10041_v28 = vpop.eup %10040  ;;  %10052 = vrcp.f32 %v5523_v5  ;;  %v5526_v45 = vadd.f32 1.0, %v10039_v63 }
0x19ab   :  { %v10043_v34 = vpop.eup %10042  ;;  %v5525_v56 = vadd.f32 1.0, %v10041_v28 }
0x19ac   :  { %v10045_v3 = vpop.eup %10044  ;;  %v5562_v17 = vmul.f32 %v10043_v34, %v12761_v16  ;;  %10054 = vrcp.f32 %v5526_v45 }
0x19ad   :  { %v5561_v0 = vmul.f32 %v10045_v3, %v12764_v27  ;;  %10056 = vrcp.f32 %v5525_v56 }
0x19af   :  { %v10047_v61 = vpop.eup %10046  ;;  %8870 = vmatprep.mubr.msk.f32.mxu0 %vm1436_vm6, %v5561_v0  ;;  %v12814_v47 = vpack.c.bf16 %v5562_v17, %v5561_v0 }
0x19b0   :  { %v10049_v11 = vpop.eup %10048  ;;  %v5564_v20 = vmul.f32 %v10047_v61, %v12769_v38  ;;  %8871 = vmatmul.mubr.msk.f32.gmra.mrb[144].mxu0 %vm1436_vm6, %v5562_v17 }
0x19b1   :  { %v5563_v40 = vmul.f32 %v10049_v11, %v12772_v8 }
0x19b3   :  { %v10051_v19 = vpop.eup %10050  ;;  %8873 = vmatprep.mubr.msk.f32.mxu0 %vm1436_vm6, %v5563_v40  ;;  %v12820_v16 = vpack.c.bf16 %v5564_v20, %v5563_v40 }
0x19b4   :  { %v10053_v7 = vpop.eup %10052  ;;  %v5566_v27 = vmul.f32 %v10051_v19, %v12777_v2  ;;  %8874 = vmatmul.mubr.msk.f32.gmra.mrb[146].mxu0 %vm1436_vm6, %v5564_v20  ;;  %v13344_v2 = vld [vmem:[#allocation131_spill] sm:$0xff] }
0x19b5   :  { %v5565_v54 = vmul.f32 %v10053_v7, %v12780_v31  ;;  %v10616_v31 = vmov 0  }
0x19b6   :  { %v10055_v22 = vpop.eup %10054  ;;  %9584 = vset.pattern.permute.xlu0 %v10616_v31  ;;  %9585 = vset.pattern.permute.xlu1 %v10616_v31 }
0x19b7   :  { %v10057_v4 = vpop.eup %10056  ;;  %v5568_v38 = vmul.f32 %v10055_v22, %v12785_v50  ;;  %8876 = vmatprep.mubr.msk.f32.mxu0 %vm1436_vm6, %v5565_v54  ;;  %v12827_v25 = vpack.c.bf16 %v5566_v27, %v5565_v54  ;;  %v12837_v50 = vld [vmem:[#allocation14] ss:$0 sm:$0xff] }
0x19b8   :  { %v5567_v8 = vmul.f32 %v10057_v4, %v12788_v41  ;;  %8877 = vmatmul.mubr.msk.f32.gmra.mrb[148].mxu0 %vm1436_vm6, %v5566_v27 }
0x19ba   :  { %8879 = vmatprep.mubr.msk.f32.mxu0 %vm1436_vm6, %v5567_v8  ;;  %v12832_v1 = vpack.c.bf16 %v5568_v38, %v5567_v8 }
0x19bc   :  { %8880 = vmatmul.mubr.msk.f32.gmra.mrb[150].mxu0 %vm1436_vm6, %v5568_v38 }
0x19bd   :  { %8939 = vmatprep.mubr.msk.f32.mxu0 %vm2067_vm9, %v13344_v2 }
0x1a74   :  { %v8863_v46 = vpop.f32.mrb[138].mxu0 }
0x1a75   :  { %v12840_v43 = vadd.f32 %v8863_v46, %v12837_v50  ;;  %v5683_v41 = vpop.f32.mrb[139].mxu0 }
0x1a76   :  { %v12843_v9 = vadd.f32 %v12837_v50, %v5683_v41 }
0x1a77   :  { %v5753_v51 = vsub.f32 0.0, %v12840_v43 }
0x1a78   :  { %v5752_v62 = vsub.f32 0.0, %v12843_v9  ;;  %v8866_v55 = vpop.f32.mrb[140].mxu0 }
0x1a79   :  { %v5768_v39 = vmul.f32 1.442695, %v5753_v51  ;;  %v12848_v48 = vadd.f32 %v8866_v55, %v12837_v50  ;;  %v5693_v58 = vpop.f32.mrb[141].mxu0 }
0x1a7a   :  { %v5766_v49 = vmul.f32 1.442695, %v5752_v62  ;;  %v12851_v12 = vadd.f32 %v12837_v50, %v5693_v58 }
0x1a7b   :  { %10058 = vpow2.f32 %v5768_v39  ;;  %v5755_v15 = vsub.f32 0.0, %v12848_v48 }
0x1a7c   :  { %10060 = vpow2.f32 %v5766_v49  ;;  %v5754_v18 = vsub.f32 0.0, %v12851_v12  ;;  %v8869_v42 = vpop.f32.mrb[142].mxu0 }
0x1a7d   :  { %v5772_v21 = vmul.f32 1.442695, %v5755_v15  ;;  %v12856_v23 = vadd.f32 %v8869_v42, %v12837_v50  ;;  %v5703_v24 = vpop.f32.mrb[143].mxu0 }
0x1a7e   :  { %v5770_v10 = vmul.f32 1.442695, %v5754_v18  ;;  %v12859_v6 = vadd.f32 %v12837_v50, %v5703_v24 }
0x1a7f   :  { %10062 = vpow2.f32 %v5772_v21  ;;  %v5757_v26 = vsub.f32 0.0, %v12856_v23 }
0x1a80   :  { %10064 = vpow2.f32 %v5770_v10  ;;  %v5756_v30 = vsub.f32 0.0, %v12859_v6 }
0x1a81   :  { %v5776_v32 = vmul.f32 1.442695, %v5757_v26 }
0x1a82   :  { %v5774_v44 = vmul.f32 1.442695, %v5756_v30 }
0x1a83   :  { %10066 = vpow2.f32 %v5776_v32  ;;  %v8872_v33 = vpop.f32.mrb[144].mxu0 }
0x1a84   :  { %10068 = vpow2.f32 %v5774_v44  ;;  %v12864_v13 = vadd.f32 %v8872_v33, %v12837_v50  ;;  %v5713_v29 = vpop.f32.mrb[145].mxu0 }
0x1a85   :  { %v10059_v60 = vpop.eup %10058  ;;  %v12867_v36 = vadd.f32 %v12837_v50, %v5713_v29 }
0x1a86   :  { %v10061_v52 = vpop.eup %10060  ;;  %v5795_v5 = vadd.f32 1.0, %v10059_v60  ;;  %v5759_v63 = vsub.f32 0.0, %v12864_v13 }
0x1a87   :  { %v5794_v28 = vadd.f32 1.0, %v10061_v52  ;;  %v5758_v45 = vsub.f32 0.0, %v12867_v36  ;;  %v8875_v34 = vpop.f32.mrb[146].mxu0 }
0x1a88   :  { %10070 = vrcp.f32 %v5795_v5  ;;  %v5780_v56 = vmul.f32 1.442695, %v5759_v63  ;;  %v12872_v3 = vadd.f32 %v8875_v34, %v12837_v50  ;;  %v5723_v17 = vpop.f32.mrb[147].mxu0 }
0x1a89   :  { %v10063_v0 = vpop.eup %10062  ;;  %10072 = vrcp.f32 %v5794_v28  ;;  %v5778_v61 = vmul.f32 1.442695, %v5758_v45  ;;  %v12875_v11 = vadd.f32 %v12837_v50, %v5723_v17 }
0x1a8a   :  { %v10065_v20 = vpop.eup %10064  ;;  %v5797_v40 = vadd.f32 1.0, %v10063_v0  ;;  %10074 = vpow2.f32 %v5780_v56  ;;  %v5761_v19 = vsub.f32 0.0, %v12872_v3 }
0x1a8b   :  { %v5796_v7 = vadd.f32 1.0, %v10065_v20  ;;  %10076 = vpow2.f32 %v5778_v61  ;;  %v5760_v27 = vsub.f32 0.0, %v12875_v11  ;;  %v8878_v54 = vpop.f32.mrb[148].mxu0 }
0x1a8c   :  { %10078 = vrcp.f32 %v5797_v40  ;;  %v5784_v22 = vmul.f32 1.442695, %v5761_v19  ;;  %v12880_v4 = vadd.f32 %v8878_v54, %v12837_v50  ;;  %v5733_v38 = vpop.f32.mrb[149].mxu0 }
0x1a8d   :  { %v10067_v8 = vpop.eup %10066  ;;  %10080 = vrcp.f32 %v5796_v7  ;;  %v5782_v31 = vmul.f32 1.442695, %v5760_v27  ;;  %v12883_v46 = vadd.f32 %v12837_v50, %v5733_v38 }
0x1a8e   :  { %v10069_v41 = vpop.eup %10068  ;;  %v5799_v51 = vadd.f32 1.0, %v10067_v8  ;;  %10082 = vpow2.f32 %v5784_v22  ;;  %v5763_v62 = vsub.f32 0.0, %v12880_v4 }
0x1a8f   :  { %v5798_v55 = vadd.f32 1.0, %v10069_v41  ;;  %10084 = vpow2.f32 %v5782_v31  ;;  %v5762_v39 = vsub.f32 0.0, %v12883_v46  ;;  %v8881_v58 = vpop.f32.mrb[150].mxu0 }
0x1a90   :  { %10086 = vrcp.f32 %v5799_v51  ;;  %v5788_v49 = vmul.f32 1.442695, %v5763_v62  ;;  %v12888_v15 = vadd.f32 %v8881_v58, %v12837_v50  ;;  %v5743_v18 = vpop.f32.mrb[151].mxu0 }
0x1a91   :  { %10088 = vrcp.f32 %v5798_v55  ;;  %v5786_v42 = vmul.f32 1.442695, %v5762_v39  ;;  %v12891_v21 = vadd.f32 %v12837_v50, %v5743_v18 }
0x1a92   :  { %v10071_v24 = vpop.eup %10070  ;;  %10090 = vpow2.f32 %v5788_v49  ;;  %v5765_v10 = vsub.f32 0.0, %v12888_v15 }
0x1a93   :  { %v10073_v26 = vpop.eup %10072  ;;  %10092 = vpow2.f32 %v5786_v42  ;;  %v5764_v30 = vsub.f32 0.0, %v12891_v21  ;;  %v5837_v60 = vmul.f32 %v10071_v24, %v12840_v43 }
0x1a94   :  { %v10075_v32 = vpop.eup %10074  ;;  %v5836_v44 = vmul.f32 %v10073_v26, %v12843_v9  ;;  %v5792_v33 = vmul.f32 1.442695, %v5765_v10 }
0x1a95   :  { %v10077_v29 = vpop.eup %10076  ;;  %v5801_v52 = vadd.f32 1.0, %v10075_v32  ;;  %v5790_v5 = vmul.f32 1.442695, %v5764_v30  ;;  %v648_v30 = vld [vmem:[%s13345_s2 + $0x8] sm:$0xff]  ;;  %v647_v32 = vld [vmem:[%s13345_s2] sm:$0xff] }
0x1a96   :  { %v10079_v63 = vpop.eup %10078  ;;  %v5800_v50 = vadd.f32 1.0, %v10077_v29  ;;  %10094 = vpow2.f32 %v5792_v33  ;;  %8890 = vmatprep.mubr.msk.f32.mxu1 %vm1436_vm6, %v5836_v44  ;;  %v13346_v33 = vld [vmem:[#allocation92_spill] sm:$0xff] }
0x1a97   :  { %v10081_v28 = vpop.eup %10080  ;;  %10096 = vrcp.f32 %v5801_v52  ;;  %8891 = vmatmul.mubr.msk.f32.vlgmr.msra.gmra.mrb[134].mxu1 %vm1436_vm6, %v5837_v60  ;;  %v5839_v43 = vmul.f32 %v10079_v63, %v12848_v48  ;;  %v13347_v52 = vld [vmem:[#allocation93_spill] sm:$0xff] }
0x1a98   :  { %v10083_v45 = vpop.eup %10082  ;;  %v5838_v34 = vmul.f32 %v10081_v28, %v12851_v12  ;;  %10098 = vrcp.f32 %v5800_v50  ;;  %9401 = vmatpush3.bf16.msra.mxu1 %v12795_v14 }
0x1a99   :  { %v10085_v9 = vpop.eup %10084  ;;  %v5803_v56 = vadd.f32 1.0, %v10083_v45  ;;  %10100 = vpow2.f32 %v5790_v5  ;;  %9403 = vmatprep.subr.bf16.mxu1 %v12802_v35  ;;  %v13348_v45 = vld [vmem:[#allocation94_spill] sm:$0xff] }
0x1a9a   :  { %v10087_v17 = vpop.eup %10086  ;;  %v5802_v0 = vadd.f32 1.0, %v10085_v9  ;;  %8893 = vmatprep.mubr.msk.f32.mxu1 %vm1436_vm6, %v5838_v34  ;;  %v13349_v9 = vld [vmem:[#allocation95_spill] sm:$0xff] }
0x1a9b   :  { %v10089_v61 = vpop.eup %10088  ;;  %10102 = vrcp.f32 %v5803_v56  ;;  %8894 = vmatmul.mubr.msk.f32.gmra.mrb[136].mxu1 %vm1436_vm6, %v5839_v43  ;;  %v5841_v48 = vmul.f32 %v10087_v17, %v12856_v23 }
0x1a9c   :  { %v10091_v20 = vpop.eup %10090  ;;  %v5840_v12 = vmul.f32 %v10089_v61, %v12859_v6  ;;  %10104 = vrcp.f32 %v5802_v0  ;;  %9405 = vmatpush3.bf16.msra.mxu1 %v12802_v35  ;;  %v13350_v61 = vld [vmem:[#allocation97_spill] sm:$0xff] }
0x1a9d   :  { %v10093_v14 = vpop.eup %10092  ;;  %v5805_v40 = vadd.f32 1.0, %v10091_v20  ;;  %9407 = vmatprep.subr.bf16.mxu1 %v12808_v53 }
0x1a9e   :  { %v5804_v19 = vadd.f32 1.0, %v10093_v14  ;;  %8896 = vmatprep.mubr.msk.f32.mxu1 %vm1436_vm6, %v5840_v12  ;;  %v13351_v12 = vld [vmem:[#allocation96_spill] sm:$0xff] }
0x1a9f   :  { %10106 = vrcp.f32 %v5805_v40  ;;  %8897 = vmatmul.mubr.msk.f32.gmra.mrb[138].mxu1 %vm1436_vm6, %v5841_v48 }
0x1aa0   :  { %v10095_v7 = vpop.eup %10094  ;;  %10108 = vrcp.f32 %v5804_v19  ;;  %9409 = vmatpush3.bf16.msra.mxu1 %v12808_v53 }
0x1aa1   :  { %v10097_v6 = vpop.eup %10096  ;;  %v5807_v27 = vadd.f32 1.0, %v10095_v7  ;;  %9411 = vmatprep.subr.bf16.mxu1 %v12814_v47  ;;  %v13352_v7 = vld [vmem:[#allocation99_spill] sm:$0xff] }
0x1aa2   :  { %v10099_v35 = vpop.eup %10098  ;;  %v5843_v22 = vmul.f32 %v10097_v6, %v12864_v13 }
0x1aa3   :  { %v10101_v54 = vpop.eup %10100  ;;  %v5842_v23 = vmul.f32 %v10099_v35, %v12867_v36  ;;  %10110 = vrcp.f32 %v5807_v27  ;;  %v13353_v27 = vld [vmem:[#allocation98_spill] sm:$0xff] }
0x1aa4   :  { %v5806_v38 = vadd.f32 1.0, %v10101_v54  ;;  %9413 = vmatpush3.bf16.msra.mxu1 %v12814_v47 }
0x1aa5   :  { %v10103_v8 = vpop.eup %10102  ;;  %8899 = vmatprep.mubr.msk.f32.mxu1 %vm1436_vm6, %v5842_v23  ;;  %9415 = vmatprep.subr.bf16.mxu1 %v12820_v16 }
0x1aa6   :  { %v10105_v53 = vpop.eup %10104  ;;  %10112 = vrcp.f32 %v5806_v38  ;;  %8900 = vmatmul.mubr.msk.f32.gmra.mrb[140].mxu1 %vm1436_vm6, %v5843_v22  ;;  %v5845_v41 = vmul.f32 %v10103_v8, %v12872_v3  ;;  %v13354_v38 = vld [vmem:[#allocation101_spill] sm:$0xff] }
0x1aa7   :  { %v5844_v31 = vmul.f32 %v10105_v53, %v12875_v11  ;;  %v13355_v53 = vld [vmem:[#allocation100_spill] sm:$0xff] }
0x1aa8   :  { %9417 = vmatpush3.bf16.msra.mxu1 %v12820_v16 }
0x1aa9   :  { %v10107_v13 = vpop.eup %10106  ;;  %8902 = vmatprep.mubr.msk.f32.mxu1 %vm1436_vm6, %v5844_v31  ;;  %9419 = vmatprep.subr.bf16.mxu1 %v12827_v25 }
0x1aaa   :  { %v10109_v47 = vpop.eup %10108  ;;  %8903 = vmatmul.mubr.msk.f32.gmra.mrb[142].mxu1 %vm1436_vm6, %v5845_v41  ;;  %v5847_v51 = vmul.f32 %v10107_v13, %v12880_v4 }
0x1aab   :  { %v5846_v36 = vmul.f32 %v10109_v47, %v12883_v46 }
0x1aac   :  { %9421 = vmatpush3.bf16.msra.mxu1 %v12827_v25 }
0x1aad   :  { %8905 = vmatprep.mubr.msk.f32.mxu1 %vm1436_vm6, %v5846_v36  ;;  %9423 = vmatprep.subr.bf16.mxu1 %v12832_v1  ;;  %v10111_v16 = vpop.eup %10110  ;;  %v13357_v36 = vld [vmem:[#allocation103_spill] sm:$0xff] }
0x1aae   :  { %8906 = vmatmul.mubr.msk.f32.gmra.mrb[144].mxu1 %vm1436_vm6, %v5847_v51  ;;  %v5849_v62 = vmul.f32 %v10111_v16, %v12888_v15  ;;  %v13358_v16 = vld [vmem:[#allocation102_spill] sm:$0xff] }
0x1ab0   :  { %v10113_v3 = vpop.eup %10112  ;;  %9425 = vmatpush3.bf16.msra.mxu1 %v12832_v1 }
0x1ab1   :  { %v5848_v11 = vmul.f32 %v10113_v3, %v12891_v21 }
0x1ab3   :  { %8908 = vmatprep.mubr.msk.f32.mxu1 %vm1436_vm6, %v5848_v11 }
0x1ab4   :  { %8909 = vmatmul.mubr.msk.f32.gmra.mrb[146].mxu1 %vm1436_vm6, %v5849_v62 }
0x1ab5   :  { %8970 = vmatprep.mubr.msk.f32.mxu1 %vm2067_vm9, %v13344_v2 }
0x1ab8   :  { %8971 = vmatmul.mubr.msk.f32.vlgmr.msra.gmra.mrb[148].mxu1 %vm2067_vm9, %v11667_v59 }
0x1b6a   :  { %v8892_v25 = vpop.f32.mrb[134].mxu1 }
0x1b6b   :  { %6034 = vperm.xlu0 %9584, %v8892_v25   ;;  %v5958_v4 = vpop.f32.mrb[135].mxu1 }
0x1b6c   :  { %6029 = vperm.xlu1 %9585, %v5958_v4   ;;  %v13359_v4 = vld [vmem:[#allocation104_spill] sm:$0xff] }
0x1b6e   :  { %v8895_v46 = vpop.f32.mrb[136].mxu1 }
0x1b6f   :  { %v5968_v1 = vpop.f32.mrb[137].mxu1 }
0x1b70   :  { %6044 = vperm.xlu1 %9585, %v8895_v46  }
0x1b72   :  { %v8898_v55 = vpop.f32.mrb[138].mxu1 }
0x1b73   :  { %v5978_v39 = vpop.f32.mrb[139].mxu1 }
0x1b74   :  { %6039 = vperm.xlu1 %9585, %v5968_v1   ;;  %6049 = vperm.xlu0 %9584, %v5978_v39   ;;  %v13360_v39 = vld [vmem:[#allocation105_spill] sm:$0xff] }
0x1b78   :  { %6054 = vperm.xlu1 %9585, %v8898_v55  }
0x1b79   :  { %v8901_v58 = vpop.f32.mrb[140].mxu1 }
0x1b7a   :  { %v5988_v49 = vpop.f32.mrb[141].mxu1 }
0x1b7b   :  { %6059 = vperm.xlu0 %9584, %v5988_v49  }
0x1b7c   :  { %6064 = vperm.xlu1 %9585, %v8901_v58  }
0x1b7d   :  { %v8904_v2 = vpop.f32.mrb[142].mxu1 }
0x1b7e   :  { %v5998_v15 = vpop.f32.mrb[143].mxu1 }
0x1b7f   :  { %6069 = vperm.xlu0 %9584, %v5998_v15  }
0x1b80   :  { %6074 = vperm.xlu1 %9585, %v8904_v2  }
0x1b81   :  { %v8907_v18 = vpop.f32.mrb[144].mxu1 }
0x1b82   :  { %v6008_v42 = vpop.f32.mrb[145].mxu1 }
0x1b83   :  { %6079 = vperm.xlu0 %9584, %v6008_v42  }
0x1b84   :  { %6084 = vperm.xlu1 %9585, %v8907_v18  }
0x1b87   :  { %v8910_v21 = vpop.f32.mrb[146].mxu1 }
0x1b88   :  { %v6018_v24 = vpop.f32.mrb[147].mxu1  ;;  %6094 = vperm.xlu1 %9585, %v8910_v21  }
0x1b89   :  { %6089 = vperm.xlu0 %9584, %v6018_v24  }
0x1b8b   :  { %v8972_v10 = vpop.f32.mrb[148].mxu1 }
0x1b8c   :  { %v6268_v26 = vpop.f32.mrb[149].mxu1  ;;  %6281 = vrot.lane.b32.xlu1 %v8972_v10, %s10615_s25 }
0x1b8d   :  { %6279 = vrot.lane.b32.xlu0 %v6268_v26, %s10615_s25  ;;  %s13356_s25 = sld [smem:[#allocation73_spill]] }
0x1b90   :  { %6193 = vperm.xlu1 %9585, %v648_v30  }
0x1b91   :  { %6188 = vperm.xlu0 %9584, %v647_v32  }
0x1b93   :  { %v520_v1 = vld [vmem:[%s13356_s25] sm:$0xff]  ;;  %v521_v55 = vld [vmem:[%s13356_s25 + $0x8] sm:$0xff]  ;;  %v522_v15 = vld [vmem:[%s13356_s25 + $0x10] sm:$0xff] }
0x1b94   :  { %v9426_v2 = vpack.c.bf16 %v521_v55, %v520_v1  ;;  %v523_v18 = vld [vmem:[%s13356_s25 + $0x18] sm:$0xff]  ;;  %v524_v24 = vld [vmem:[%s13356_s25 + $0x20] sm:$0xff]  ;;  %v525_v10 = vld [vmem:[%s13356_s25 + $0x28] sm:$0xff] }
0x1b95   :  { %v9430_v21 = vpack.c.bf16 %v523_v18, %v522_v15  ;;  %v9434_v30 = vpack.c.bf16 %v525_v10, %v524_v24  ;;  %v526_v32 = vld [vmem:[%s13356_s25 + $0x30] sm:$0xff]  ;;  %v7539_v1 = vld [vmem:[#allocation13] ss:$0 sm:$0xff] }
0x1bea   :  { %v6035_v44 = vpop.permute.xlu0 %6034 }
0x1beb   :  { %v6098_v29 = vmul.f32 %v6035_v44, %v13346_v33  ;;  %v6030_v60 = vpop.permute.xlu1 %6029  ;;  %v527_v44 = vld [vmem:[%s13356_s25 + $0x38] sm:$0xff] }
0x1bec   :  { %v6097_v5 = vmul.f32 %v6030_v60, %v13347_v52  ;;  %v9438_v33 = vpack.c.bf16 %v527_v44, %v526_v32  ;;  %v529_v60 = vld [vmem:[%s13361_s20] sm:$0xff]  ;;  %v530_v52 = vld [vmem:[%s13361_s20 + $0x8] sm:$0xff] }
0x1bed   :  { %v559_v32 = vld [vmem:[%s13365_s11 + $0x8] sm:$0xff] }
0x1bee   :  { %v9370_v63 = vpack.c.bf16 %v6098_v29, %v6097_v5  ;;  %v9442_v5 = vpack.c.bf16 %v530_v52, %v529_v60 }
0x1bef   :  { %v6045_v50 = vpop.permute.xlu1 %6044 }
0x1bf0   :  { %9371 = vmatprep.subr.bf16.mxu0 %v9370_v63  ;;  %v6100_v34 = vmul.f32 %v6045_v50, %v13348_v45  ;;  %9443 = vmatprep.subr.bf16.mxu1 %v9442_v5  ;;  %v532_v50 = vld [vmem:[%s13361_s20 + $0x18] sm:$0xff]  ;;  %v543_v45 = vld [vmem:[%s13362_s7] sm:$0xff] }
0x1bf1   :  { %9373 = vmatpush3.bf16.msra.mxu0 %v9370_v63  ;;  %9445 = vmatpush3.bf16.msra.mxu1 %v9442_v5  ;;  %v531_v63 = vld [vmem:[%s13361_s20 + $0x10] sm:$0xff] }
0x1bf3   :  { %v6040_v28 = vpop.permute.xlu1 %6039  ;;  %v6050_v56 = vpop.permute.xlu0 %6049 }
0x1bf4   :  { %v6099_v43 = vmul.f32 %v6040_v28, %v13349_v9  ;;  %v6101_v20 = vmul.f32 %v6050_v56, %v13350_v61  ;;  %v9446_v28 = vpack.c.bf16 %v532_v50, %v531_v63 }
0x1bf6   :  { %v9374_v17 = vpack.c.bf16 %v6100_v34, %v6099_v43  ;;  %9447 = vmatprep.subr.bf16.mxu1 %v9446_v28  ;;  %v544_v34 = vld [vmem:[%s13362_s7 + $0x8] sm:$0xff] }
0x1bf7   :  { %v6055_v0 = vpop.permute.xlu1 %6054  ;;  %9449 = vmatpush3.bf16.msra.mxu1 %v9446_v28  ;;  %v9450_v9 = vpack.c.bf16 %v544_v34, %v543_v45  ;;  %v7546_v45 = vld [vmem:[#allocation19] ss:$0 sm:$0xff] }
0x1bf8   :  { %v6102_v14 = vmul.f32 %v6055_v0, %v13351_v12  ;;  %9375 = vmatprep.subr.bf16.mxu0 %v9374_v17  ;;  %v10142_v12 = vld [vmem:[%s13189_s26 + $0x8] sm:$0xff] }
0x1bf9   :  { %9377 = vmatpush3.bf16.msra.mxu0 %v9374_v17 }
0x1bfa   :  { %v9378_v48 = vpack.c.bf16 %v6102_v14, %v6101_v20  ;;  %v6060_v40 = vpop.permute.xlu0 %6059 }
0x1bfb   :  { %v6065_v19 = vpop.permute.xlu1 %6064  ;;  %v6103_v6 = vmul.f32 %v6060_v40, %v13352_v7 }
0x1bfc   :  { %v6104_v35 = vmul.f32 %v6065_v19, %v13353_v27  ;;  %9379 = vmatprep.subr.bf16.mxu0 %v9378_v48  ;;  %v7534_v19 = vld [vmem:[#allocation11] ss:$0 sm:$0xff] }
0x1bfd   :  { %9381 = vmatpush3.bf16.msra.mxu0 %v9378_v48  ;;  %v10143_v48 = vld [vmem:[%s13189_s26] sm:$0xff]  ;;  %s13364_s26 = sld [smem:[#allocation78_spill]] }
0x1bfe   :  { %v9382_v54 = vpack.c.bf16 %v6104_v35, %v6103_v6  ;;  %v6070_v23 = vpop.permute.xlu0 %6069 }
0x1bff   :  { %v6075_v22 = vpop.permute.xlu1 %6074  ;;  %v6105_v8 = vmul.f32 %v6070_v23, %v13354_v38 }
0x1c00   :  { %v6106_v31 = vmul.f32 %v6075_v22, %v13355_v53  ;;  %9383 = vmatprep.subr.bf16.mxu0 %v9382_v54 }
0x1c01   :  { %9385 = vmatpush3.bf16.msra.mxu0 %v9382_v54 }
0x1c02   :  { %v9386_v41 = vpack.c.bf16 %v6106_v31, %v6105_v8  ;;  %v6080_v13 = vpop.permute.xlu0 %6079 }
0x1c03   :  { %v6085_v47 = vpop.permute.xlu1 %6084  ;;  %v6107_v51 = vmul.f32 %v6080_v13, %v13357_v36  ;;  %v550_v24 = vld [vmem:[%s13364_s26 + $0x10] sm:$0xff]  ;;  %v551_v10 = vld [vmem:[%s13364_s26 + $0x18] sm:$0xff] }
0x1c04   :  { %v6108_v3 = vmul.f32 %v6085_v47, %v13358_v16  ;;  %9387 = vmatprep.subr.bf16.mxu0 %v9386_v41  ;;  %v545_v16 = vld [vmem:[%s13362_s7 + $0x10] sm:$0xff] }
0x1c05   :  { %9389 = vmatpush3.bf16.msra.mxu0 %v9386_v41 }
0x1c06   :  { %v9390_v11 = vpack.c.bf16 %v6108_v3, %v6107_v51  ;;  %v546_v3 = vld [vmem:[%s13362_s7 + $0x18] sm:$0xff] }
0x1c07   :  { %v6095_v62 = vpop.permute.xlu1 %6094 }
0x1c08   :  { %v6090_v25 = vpop.permute.xlu0 %6089  ;;  %v6110_v46 = vmul.f32 %v6095_v62, %v13359_v4  ;;  %9391 = vmatprep.subr.bf16.mxu0 %v9390_v11  ;;  %v553_v62 = vld [vmem:[%s13363_s10] sm:$0xff] }
0x1c09   :  { %v6109_v58 = vmul.f32 %v6090_v25, %v13360_v39  ;;  %9393 = vmatpush3.bf16.msra.mxu0 %v9390_v11  ;;  %v9454_v11 = vpack.c.bf16 %v546_v3, %v545_v16  ;;  %v554_v25 = vld [vmem:[%s13363_s10 + $0x8] sm:$0xff]  ;;  %v7543_v16 = vld [vmem:[#allocation17] ss:$0 sm:$0xff] }
0x1c0a   :  { %v9466_v4 = vpack.c.bf16 %v554_v25, %v553_v62 }
0x1c0b   :  { %v9394_v49 = vpack.c.bf16 %v6110_v46, %v6109_v58  ;;  %v6282_v29 = vpop.permute.xlu1 %6281 }
0x1c0c   :  { %v6280_v42 = vpop.permute.xlu0 %6279 }
0x1c0d   :  { %9395 = vmatprep.subr.bf16.mxu0 %v9394_v49  ;;  %v6285_v26 = vsel %vm1436_vm6, %v12443_v37, %v6280_v42 }
0x1c0e   :  { %9397 = vmatpush3.bf16.msra.mxu0 %v9394_v49  ;;  %v555_v49 = vld [vmem:[%s13363_s10 + $0x10] sm:$0xff] }
0x1c0f   :  { %9427 = vmatprep.subr.bf16.mxu0 %v9426_v2  ;;  %v6194_v43 = vpop.permute.xlu1 %6193 }
0x1c10   :  { %v6189_v17 = vpop.permute.xlu0 %6188 }
0x1c11   :  { %8940 = vmatmul.mubr.msk.f32.vlgmr.msra.gmra.mrb[152].mxu0 %vm2067_vm9, %v11667_v59  ;;  %v6286_v59 = vsel %vm1436_vm6, %v12441_v57, %v6282_v29 }
0x1c12   :  { %9429 = vmatpush3.bf16.msra.mxu0 %v9426_v2  ;;  %8989 = vmatprep.mubr.msk.f32.mxu0 %vm1451_vm7, %v6285_v26  ;;  %v556_v2 = vld [vmem:[%s13363_s10 + $0x18] sm:$0xff]  ;;  %v9462_v26 = vpack.c.bf16 %v551_v10, %v550_v24  ;;  %v568_v10 = vld [vmem:[%s13368_s15] sm:$0xff] }
0x1c13   :  { %9431 = vmatprep.subr.bf16.mxu0 %v9430_v21  ;;  %v9470_v42 = vpack.c.bf16 %v556_v2, %v555_v49  ;;  %v564_v49 = vld [vmem:[%s13366_s19 + $0x8] sm:$0xff] }
0x1c16   :  { %9433 = vmatpush3.bf16.msra.mxu0 %v9430_v21 }
0x1c17   :  { %9435 = vmatprep.subr.bf16.mxu0 %v9434_v30 }
0x1c1a   :  { %9437 = vmatpush3.bf16.msra.mxu0 %v9434_v30  ;;  %v558_v30 = vld [vmem:[%s13365_s11] sm:$0xff] }
0x1c1b   :  { %9439 = vmatprep.subr.bf16.mxu0 %v9438_v33  ;;  %v9474_v44 = vpack.c.bf16 %v559_v32, %v558_v30  ;;  %v570_v32 = vld [vmem:[%s13368_s15 + $0x10] sm:$0xff] }
0x1c1e   :  { %9441 = vmatpush3.bf16.msra.mxu0 %v9438_v33  ;;  %v7540_v33 = vld [vmem:[#allocation16] ss:$0 sm:$0xff] }
0x1c1f   :  { %9451 = vmatprep.subr.bf16.mxu0 %v9450_v9 }
0x1c21   :  { %8990 = vmatmul.mubr.msk.f32.vlgmr.msra.gmra.mrb[154].mxu0 %vm1451_vm7, %v6286_v59 }
0x1c22   :  { %9453 = vmatpush3.bf16.msra.mxu0 %v9450_v9 }
0x1c23   :  { %9455 = vmatprep.subr.bf16.mxu0 %v9454_v11 }
0x1c26   :  { %9457 = vmatpush3.bf16.msra.mxu0 %v9454_v11 }
0x1c27   :  { %9467 = vmatprep.subr.bf16.mxu0 %v9466_v4 }
0x1ce4   :  { %v8941_v56 = vpop.f32.mrb[152].mxu0 }
0x1ce5   :  { %v6197_v0 = vmul.f32 %v8941_v56, %v6194_v43  ;;  %v6177_v61 = vpop.f32.mrb[153].mxu0 }
0x1ce6   :  { %v6196_v20 = vmul.f32 %v6189_v17, %v6177_v61 }
0x1ce7   :  { %v6199_v14 = vadd.f32 %v10142_v12, %v6197_v0 }
0x1ce8   :  { %v6198_v40 = vadd.f32 %v10143_v48, %v6196_v20 }
0x1ce9   :  { %6201 = vst [vmem:[#allocation28 + $0x8] sm:$0xff] %v6199_v14 }
0x1cea   :  { %6200 = vst [vmem:[#allocation28] sm:$0xff] %v6198_v40 }
0x1cf4   :  { %v8991_v7 = vpop.f32.mrb[154].mxu0 }
0x1cf5   :  { %v6371_v6 = vadd.f32 %v8991_v7, %v7534_v19  ;;  %v6365_v27 = vpop.f32.mrb[155].mxu0 }
0x1cf6   :  { %v6366_v35 = vadd.f32 %v7534_v19, %v6365_v27 }
0x1cf7   :  { %v6375_v54 = vsub.f32 0.0, %v6371_v6 }
0x1cf8   :  { %v6374_v23 = vsub.f32 0.0, %v6366_v35 }
0x1cf9   :  { %v6378_v22 = vmul.f32 1.442695, %v6375_v54  ;;  %v560_v54 = vld [vmem:[%s13365_s11 + $0x10] sm:$0xff] }
0x1cfa   :  { %v6376_v38 = vmul.f32 1.442695, %v6374_v23  ;;  %v561_v23 = vld [vmem:[%s13365_s11 + $0x18] sm:$0xff] }
0x1cfb   :  { %10114 = vpow2.f32 %v6378_v22 }
0x1cfc   :  { %10116 = vpow2.f32 %v6376_v38 }
0x1d05   :  { %v10115_v8 = vpop.eup %10114 }
0x1d06   :  { %v10117_v53 = vpop.eup %10116  ;;  %v6381_v31 = vadd.f32 1.0, %v10115_v8 }
0x1d07   :  { %v6380_v41 = vadd.f32 1.0, %v10117_v53  ;;  %v9478_v53 = vpack.c.bf16 %v561_v23, %v560_v54 }
0x1d08   :  { %10118 = vrcp.f32 %v6381_v31 }
0x1d09   :  { %10120 = vrcp.f32 %v6380_v41 }
0x1d12   :  { %v10119_v13 = vpop.eup %10118 }
0x1d13   :  { %v10121_v47 = vpop.eup %10120  ;;  %v6387_v51 = vmul.f32 %v10119_v13, %v6371_v6 }
0x1d14   :  { %v6386_v36 = vmul.f32 %v10121_v47, %v6366_v35 }
0x1d16   :  { %9000 = vmatprep.mubr.msk.f32.mxu1 %vm1436_vm6, %v6386_v36  ;;  %v10617_v36 = vmov 0.0|0.0  }
0x1d17   :  { %9001 = vmatmul.mubr.msk.f32.vlgmr.msra.gmra.mrb[150].mxu1 %vm1436_vm6, %v6387_v51  ;;  %v10619_v51 = vmov 0.0  }
0x1dea   :  { %v9002_v46 = vpop.f32.mrb[150].mxu1 }
0x1deb   :  { %v6470_v55 = vadd.f32 %v9002_v46, %v12441_v57  ;;  %v6460_v39 = vpop.f32.mrb[151].mxu1  ;;  %v548_v57 = vld [vmem:[%s13364_s26] sm:$0xff] }
0x1dec   :  { %v6469_v58 = vadd.f32 %v6460_v39, %v12443_v37  ;;  %v549_v37 = vld [vmem:[%s13364_s26 + $0x8] sm:$0xff] }
0x1ded   :  { %v6478_v18 = vadd.f32 %v7539_v1, %v6470_v55  ;;  %v9458_v21 = vpack.c.bf16 %v549_v37, %v548_v57  ;;  %v566_v57 = vld [vmem:[%s13366_s19 + $0x18] sm:$0xff] }
0x1dee   :  { %v6477_v15 = vadd.f32 %v7539_v1, %v6469_v58  ;;  %v563_v58 = vld [vmem:[%s13366_s19] sm:$0xff] }
0x1def   :  { %9459 = vmatprep.subr.bf16.mxu1 %v9458_v21 }
0x1df0   :  { %9011 = vmatprep.mubr.msk.f32.mxu0 %vm1436_vm6, %v6477_v15  ;;  %9461 = vmatpush3.bf16.msra.mxu1 %v9458_v21 }
0x1df1   :  { %9012 = vmatmul.mubr.msk.f32.vlgmr.msra.gmra.mrb[156].mxu0 %vm1436_vm6, %v6478_v18  ;;  %9463 = vmatprep.subr.bf16.mxu1 %v9462_v26 }
0x1df2   :  { %9469 = vmatpush3.bf16.msra.mxu0 %v9466_v4  ;;  %9033 = vmatprep.mubr.msk.f32.mxu0 %vm1436_vm6, %v6477_v15  ;;  %v7549_v4 = vld [vmem:[#allocation20] ss:$0 sm:$0xff]  ;;  %v6851_v15 = vld [vmem:[%s13367_s4] sm:$0x3] }
0x1df3   :  { %9471 = vmatprep.subr.bf16.mxu0 %v9470_v42 }
0x1df4   :  { %9465 = vmatpush3.bf16.msra.mxu1 %v9462_v26  ;;  %v569_v26 = vld [vmem:[%s13368_s15 + $0x8] sm:$0xff] }
0x1df5   :  { %9475 = vmatprep.subr.bf16.mxu1 %v9474_v44  ;;  %v9492_v30 = vpack.c.bf16 %v569_v26, %v568_v10 }
0x1df6   :  { %9473 = vmatpush3.bf16.msra.mxu0 %v9470_v42  ;;  %v565_v42 = vld [vmem:[%s13366_s19 + $0x10] sm:$0xff] }
0x1df7   :  { %9482 = vmatprep.subr.bf16.mxu0 %v10617_v36  ;;  %v9489_v37 = vpack.c.bf16 %v566_v57, %v565_v42 }
0x1df9   :  { %9034 = vmatmul.mubr.msk.f32.vlgmr.msra.gmra.mrb[158].mxu0 %vm1436_vm6, %v6478_v18  ;;  %v9486_v18 = vpack.c.bf16 %v564_v49, %v563_v58 }
0x1dfa   :  { %9051 = vmatprep.mubr.msk.f32.mxu0 %vm10618_vm10, %v10619_v51 }
0x1ec4   :  { %v9013_v29 = vpop.f32.mrb[156].mxu0 }
0x1ec5   :  { %v6563_v59 = vadd.f32 %v9013_v29, %v7540_v33  ;;  %v6557_v60 = vpop.f32.mrb[157].mxu0  ;;  %v7553_v29 = vld [vmem:[#allocation22] ss:$0 sm:$0xff] }
0x1ec6   :  { %v6558_v52 = vadd.f32 %v7540_v33, %v6557_v60 }
0x1ec7   :  { %v6567_v5 = vsub.f32 0.0, %v6563_v59 }
0x1ec8   :  { %v6566_v63 = vsub.f32 0.0, %v6558_v52 }
0x1ec9   :  { %v6570_v50 = vmul.f32 1.442695, %v6567_v5 }
0x1eca   :  { %v6568_v28 = vmul.f32 1.442695, %v6566_v63 }
0x1ecb   :  { %10122 = vpow2.f32 %v6570_v50 }
0x1ecc   :  { %10124 = vpow2.f32 %v6568_v28  ;;  %v9035_v34 = vpop.f32.mrb[158].mxu0 }
0x1ecd   :  { %v6747_v9 = vadd.f32 %v9035_v34, %v7546_v45  ;;  %v6741_v43 = vpop.f32.mrb[159].mxu0 }
0x1ece   :  { %v6742_v56 = vadd.f32 %v7546_v45, %v6741_v43 }
0x1ecf   :  { %v6751_v17 = vsub.f32 0.0, %v6747_v9 }
0x1ed0   :  { %v6750_v0 = vsub.f32 0.0, %v6742_v56 }
0x1ed1   :  { %v6754_v61 = vmul.f32 1.442695, %v6751_v17 }
0x1ed2   :  { %v6752_v20 = vmul.f32 1.442695, %v6750_v0 }
0x1ed3   :  { %10126 = vpow2.f32 %v6754_v61 }
0x1ed4   :  { %10128 = vpow2.f32 %v6752_v20 }
0x1ed5   :  { %v10123_v12 = vpop.eup %10122 }
0x1ed6   :  { %v10125_v14 = vpop.eup %10124  ;;  %v6573_v48 = vadd.f32 1.0, %v10123_v12 }
0x1ed7   :  { %v6572_v40 = vadd.f32 1.0, %v10125_v14 }
0x1ed8   :  { %10130 = vrcp.f32 %v6573_v48 }
0x1ed9   :  { %10132 = vrcp.f32 %v6572_v40 }
0x1edd   :  { %v10127_v19 = vpop.eup %10126 }
0x1ede   :  { %v10129_v7 = vpop.eup %10128  ;;  %v6757_v6 = vadd.f32 1.0, %v10127_v19 }
0x1edf   :  { %v6756_v27 = vadd.f32 1.0, %v10129_v7 }
0x1ee0   :  { %10134 = vrcp.f32 %v6757_v6 }
0x1ee1   :  { %10136 = vrcp.f32 %v6756_v27 }
0x1ee2   :  { %v10131_v35 = vpop.eup %10130 }
0x1ee3   :  { %v10133_v22 = vpop.eup %10132  ;;  %v6579_v8 = vmul.f32 %v10131_v35, %v6563_v59 }
0x1ee4   :  { %v6578_v38 = vmul.f32 %v10133_v22, %v6558_v52 }
0x1ee6   :  { %9022 = vmatprep.mubr.msk.f32.mxu1 %vm1436_vm6, %v6578_v38 }
0x1ee7   :  { %9023 = vmatmul.mubr.msk.f32.vlgmr.msra.gmra.mrb[152].mxu1 %vm1436_vm6, %v6579_v8 }
0x1ee8   :  { %9477 = vmatpush3.bf16.msra.mxu1 %v9474_v44  ;;  %v571_v44 = vld [vmem:[%s13368_s15 + $0x18] sm:$0xff] }
0x1ee9   :  { %9479 = vmatprep.subr.bf16.mxu1 %v9478_v53  ;;  %v9495_v33 = vpack.c.bf16 %v571_v44, %v570_v32 }
0x1eea   :  { %v10135_v31 = vpop.eup %10134 }
0x1eeb   :  { %v10137_v41 = vpop.eup %10136  ;;  %v6763_v47 = vmul.f32 %v10135_v31, %v6747_v9 }
0x1eec   :  { %v6762_v13 = vmul.f32 %v10137_v41, %v6742_v56  ;;  %9481 = vmatpush3.bf16.msra.mxu1 %v9478_v53 }
0x1eed   :  { %9491 = vmatprep.subr.bf16.mxu1 %v10617_v36 }
0x1eee   :  { %9044 = vmatprep.mubr.msk.f32.mxu1 %vm1436_vm6, %v6762_v13 }
0x1eef   :  { %9045 = vmatmul.mubr.msk.f32.vlgmr.msra.gmra.mrb[154].mxu1 %vm1436_vm6, %v6763_v47 }
0x1ef0   :  { %9073 = vmatprep.mubr.msk.f32.mxu1 %vm10618_vm10, %v10619_v51  ;;  %9493 = vmatpush3.bf16.msra.mxu1 %v9492_v30 }
0x1ef1   :  { %9494 = vmatprep.subr.bf16.mxu1 %v10617_v36 }
0x1ef4   :  { %9496 = vmatpush3.bf16.msra.mxu1 %v9495_v33 }
0x1fba   :  { %v9024_v3 = vpop.f32.mrb[152].mxu1 }
0x1fbb   :  { %v6664_v11 = vadd.f32 %v9024_v3, %v7543_v16  ;;  %v6658_v62 = vpop.f32.mrb[153].mxu1 }
0x1fbc   :  { %v6659_v25 = vadd.f32 %v7543_v16, %v6658_v62 }
0x1fbd   :  { %6668 = vst [vmem:[#allocation26 + $0x8] sm:$0xff] %v6664_v11 }
0x1fbe   :  { %6667 = vst [vmem:[#allocation26] sm:$0xff] %v6659_v25 }
0x1fc2   :  { %v9046_v46 = vpop.f32.mrb[154].mxu1 }
0x1fc3   :  { %v6848_v1 = vadd.f32 %v9046_v46, %v7549_v4  ;;  %v6842_v55 = vpop.f32.mrb[155].mxu1 }
0x1fc4   :  { %v6843_v39 = vadd.f32 %v7549_v4, %v6842_v55 }
0x1fc6   :  { %v9483_v2 = vpack.c.bf16 %v6848_v1, %v6843_v39 }
0x1fc8   :  { %9484 = vmatpush3.bf16.msra.mxu0 %v9483_v2 }
0x1fc9   :  { %9485 = vmatprep.subr.bf16.mxu0 %v10617_v36 }
0x1fcb   :  { %9052 = vmatmul.mubr.msk.f32.vlgmr.msra.gmra.mrb[160].mxu0 %vm773_vm4, %v6851_v15 }
0x1fcc   :  { %9487 = vmatpush3.bf16.msra.mxu0 %v9486_v18  ;;  %9062 = vmatprep.mubr.msk.f32.mxu0 %vm10618_vm10, %v10619_v51 }
0x1fcd   :  { %9488 = vmatprep.subr.bf16.mxu0 %v10617_v36 }
0x1fd0   :  { %9490 = vmatpush3.bf16.msra.mxu0 %v9489_v37 }
0x209e   :  { %v6921_v21 = vpop.f32.mrb[160].mxu0 }
0x209f   :  { %9063 = vmatmul.mubr.msk.f32.vlgmr.msra.gmra.mrb[162].mxu0 %vm1436_vm6, %v6921_v21  ;;  %v9053_v24 = vpop.f32.mrb[161].mxu0 }
0x2172   :  { %v7000_v59 = vpop.f32.mrb[162].mxu0 }
0x2173   :  { %v7001_v60 = vadd.f32 %v7553_v29, %v7000_v59  ;;  %v9064_v52 = vpop.f32.mrb[163].mxu0 }
0x2175   :  { %v7004_v5 = vsub.f32 0.0, %v7001_v60 }
0x2177   :  { %v7005_v63 = vmul.f32 1.442695, %v7004_v5 }
0x2179   :  { %10138 = vpow2.f32 %v7005_v63 }
0x2183   :  { %v10139_v50 = vpop.eup %10138 }
0x2184   :  { %v7007_v28 = vadd.f32 1.0, %v10139_v50 }
0x2186   :  { %10140 = vrcp.f32 %v7007_v28 }
0x2190   :  { %v10141_v45 = vpop.eup %10140 }
0x2191   :  { %v7010_v34 = vmul.f32 %v10141_v45, %v7001_v60 }
0x2193   :  { %9074 = vmatmul.mubr.msk.f32.vlgmr.msra.gmra.mrb[156].mxu1 %vm1436_vm6, %v7010_v34 }
0x2194   :  { %10463 = shalt.err (!%p10460_p4)
}
0x2195   :  { %s10464_s16 = scalar_lea.hbm %s10933_s5, 256 }
0x2196   :  { %p10465_p5 = scmp.ne.s32.totalorder %s10933_s5, %s10464_s16  ;;  %p10468_p6 = scmp.lt.u32.totalorder %s10464_s16, %s10933_s5 }
0x2198   :  { %p10470_p7 = pnand %p10468_p6, %p10465_p5 }
0x219a   :  { %10473 = shalt.err (!%p10470_p7)
}
0x219b   :  { %s10621_s30 = smov 128   ;;  %s10622_s27 = smov 8  }
0x219c   :  { %7112 = dma.vmem_to_hbm [thread:$0]  %s7107_s6, 256, %s10933_s5, [#allocation27], %s10621_s30, %s10621_s30, %s10622_s27  }
0x219d   :  { %s10623_s18 = smov [#allocation28]  }
0x219e   :  { %s7118_s17 = sshll.u32 %s10623_s18, 4  ;;  %s7119_s17 = int_to_ptr.vmem [resolvable:$true] %s7118_s17 }
0x219f   :  { %s10474_s22 = scalar_lea.vmem %s7119_s17, 256  ;;  %p10479_p9 = scmp.lt.s32.totalorder %s7119_s17, %s7119_s17 }
0x21a0   :  { %p10475_p8 = scmp.ne.s32.totalorder %s7119_s17, %s10474_s22  ;;  %p10480_p10 = scmp.lt.s32.totalorder %s10474_s22, %s10474_s22 }
0x21a2   :  { %p10481_p11 = por %p10480_p10, %p10479_p9 }
0x21a4   :  { %p10482_p12 = pnand %p10481_p11, %p10475_p8 }
0x21a6   :  { %10485 = shalt.err (!%p10482_p12)
}
0x21a7   :  { %s10486_s23 = scalar_lea.hbm %s10938_s8, 256 }
0x21a8   :  { %p10487_p13 = scmp.ne.s32.totalorder %s10938_s8, %s10486_s23  ;;  %p10490_p0 = scmp.lt.u32.totalorder %s10486_s23, %s10938_s8 }
0x21aa   :  { %p10492_p1 = pnand %p10490_p0, %p10487_p13 }
0x21ac   :  { %10495 = shalt.err (!%p10492_p1)
}
0x21ad   :  { %7124 = dma.vmem_to_hbm [thread:$0]  %s7119_s17, 256, %s10938_s8, [#allocation27], %s10621_s30, %s10621_s30, %s10622_s27   ;;  %v7555_v9 = vld [vmem:[#allocation23] ss:$0 sm:$0xff] }
0x21ae   :  { %s10624_s5 = smov [#allocation25]  }
0x21af   :  { %s7097_s9 = sshll.u32 %s10624_s5, 4  ;;  %s7098_s9 = int_to_ptr.vmem [resolvable:$true] %s7097_s9 }
0x21b0   :  { %s10496_s13 = scalar_lea.vmem %s7098_s9, 32  ;;  %p10501_p3 = scmp.lt.s32.totalorder %s7098_s9, %s7098_s9 }
0x21b1   :  { %p10497_p2 = scmp.ne.s32.totalorder %s7098_s9, %s10496_s13  ;;  %p10502_p4 = scmp.lt.s32.totalorder %s10496_s13, %s10496_s13 }
0x21b3   :  { %p10503_p5 = por %p10502_p4, %p10501_p3 }
0x21b5   :  { %p10504_p6 = pnand %p10503_p5, %p10497_p2 }
0x2266   :  { %v7086_v43 = vpop.f32.mrb[156].mxu1 }
0x2267   :  { %v7087_v56 = vadd.f32 %v7555_v9, %v7086_v43  ;;  %v9075_v17 = vpop.f32.mrb[157].mxu1 }
0x2269   :  { %7090 = vst [vmem:[#allocation25] sm:$0x3] %v7087_v56 }
0x226a   :  { %10507 = shalt.err (!%p10504_p6)
}
0x226b   :  { %s10508_s29 = scalar_lea.hbm %s10928_s24, 32 }
0x226c   :  { %p10509_p7 = scmp.ne.s32.totalorder %s10928_s24, %s10508_s29  ;;  %p10512_p8 = scmp.lt.u32.totalorder %s10508_s29, %s10928_s24 }
0x226e   :  { %p10514_p9 = pnand %p10512_p8, %p10509_p7 }
0x2270   :  { %10517 = shalt.err (!%p10514_p9)
}
0x2271   :  { %7100 = dma.vmem_to_hbm [thread:$0]  %s7098_s9, 32, %s10928_s24, [#allocation4]  }
0x2272   :  { %10534 = dma.done.wait [#allocation4], 32  }
0x2273   :  { %10535 = vsyncadd [#allocation4], 4294967264 }
0x2274   :  { %10536 = dma.done.wait [#allocation27], 512  }
0x2275   :  { %10537 = vsyncadd [#allocation27], 4294966784 }
0x2276   :  { %7134 = vsyncpa [#allocation3], 1 }
0x2277   :  { %7135 = vsyncpa [#allocation6], 1 }
0x2278   :  { %7136 = vsyncpa [#allocation9], 1 }
0x2279   :  { %7137 = vsyncpa [#allocation12], 1 }
0x227a   :  { %7138 = vsyncpa [#allocation15], 1 }
0x227b   :  { %7139 = vsyncpa [#allocation18], 1 }
0x227c   :  { %7140 = vsyncpa [#allocation21], 1 }
0x227d   :  { %7141 = vsyncpa [#allocation24], 1 }
0x227e   :  { %7142 = vsyncpa [#allocation4], 1 }
0x227f   :  { %7143 = vsyncpa [#allocation27], 1 }

</bundles_post_ra>
